<compile_context>
chip_gen: v6e
topology: v6e:2x2x1
jax: 0.10.0
libtpu: 0.0.40
codegen_flags: <defaults>
</compile_context>

<pallas_src>
import functools

import jax
import jax.numpy as jnp
import numpy as np
from jax import lax
from jax.experimental import pallas as pl
from jax.experimental.pallas import tpu as pltpu


def _round_up(v, m):
    return (v + m - 1) // m * m


def _tpu_generation():
    """Best-effort (TensorCores per chip, VMEM bytes per core).

    Conservative fallbacks (1 core, 64 MiB) are always safe: they only make
    the batch split / time chunks smaller, never overcommit VMEM."""
    n_cores, vmem = 1, 64 * 1024 * 1024
    try:
        info = pltpu.get_tpu_info()
        vmem = int(getattr(info, "vmem_capacity_bytes", 0) or vmem)
        for attr in ("num_cores", "num_tensorcores", "tensorcores_per_chip",
                     "cores_per_chip", "core_count"):
            val = getattr(info, attr, None)
            if val:
                n_cores = max(n_cores, int(val))
                break
    except Exception:
        pass
    try:
        kind = jax.devices()[0].device_kind.lower()
        if "v7" in kind:                        # v7x: 2 TCs, 64 MiB VMEM per TC
            n_cores = max(n_cores, 2)
            vmem = min(vmem, 64 * 1024 * 1024)
        elif ("v5" in kind) or ("v6" in kind):  # v5e/v6e: 1 TC, 128 MiB VMEM
            vmem = max(vmem, 128 * 1024 * 1024)
    except Exception:
        pass
    return n_cores, vmem


def _lstm_kernel(len_ref, x_ref, wih_ref, whh_ref, b_ref,
                 out_ref, ht_ref, ct_ref, xp_sc,
                 *, tile_t, hidden_pad, unroll):
    """One (batch-chunk, time-chunk) grid step.

    x_ref   : (TB, tile_t, D)   bf16 input chunk (batch-first)
    wih_ref : (D, 4Hp)          bf16, VMEM-resident (constant index_map)
    whh_ref : (Hp, 4Hp)         bf16, VMEM-resident
    b_ref   : (1, 4Hp)          f32 fused bias
    out_ref : (TB, tile_t, Hp)  f32 hidden outputs for this chunk
    ht/ct   : (TB, Hp)          f32; double as the recurrent carry across time
                                chunks (constant index_map along the time axis
                                -> VMEM-resident accumulators)
    xp_sc   : (TB, tile_t, 4Hp) f32 hoisted input projection for this chunk
    """
    Hp = hidden_pad
    G4 = 4 * Hp
    TB = x_ref.shape[0]
    D = x_ref.shape[2]
    tc = pl.program_id(1)

    @pl.when(tc == 0)
    def _init():
        ht_ref[...] = jnp.zeros_like(ht_ref)
        ct_ref[...] = jnp.zeros_like(ct_ref)

    # ---- hoisted input projection: one MXU-filling bf16 matmul per chunk ----
    # (TB*tile_t, D) @ (D, 4Hp), f32 accumulation, bias fused here so the time
    # loop only does the recurrent h @ W_hh^T product.
    xb = x_ref[...].reshape(TB * tile_t, D)
    xp = jnp.dot(xb, wih_ref[...], preferred_element_type=jnp.float32)
    xp = xp + b_ref[...]
    xp_sc[...] = xp.reshape(TB, tile_t, G4)   # kept f32: exact preactivations

    lens = len_ref[...]                       # (TB, 1) int32
    whh = whh_ref[...]                        # (Hp, 4Hp) bf16, resident
    t0 = tc * tile_t

    def step(tt, carry):
        h, c = carry                                            # f32 (TB, Hp)
        x_t = xp_sc[:, pl.ds(tt, 1), :][:, 0, :]                # f32 (TB, 4Hp)
        gates = x_t + jnp.dot(h.astype(whh.dtype), whh,
                              preferred_element_type=jnp.float32)
        # PyTorch gate order i, f, g, o; slices are lane-aligned (Hp % 128 == 0).
        i_g = jax.nn.sigmoid(gates[:, 0 * Hp:1 * Hp])
        f_g = jax.nn.sigmoid(gates[:, 1 * Hp:2 * Hp])
        g_g = jnp.tanh(gates[:, 2 * Hp:3 * Hp])
        o_g = jax.nn.sigmoid(gates[:, 3 * Hp:4 * Hp])
        c_new = f_g * c + i_g * g_g
        h_new = o_g * jnp.tanh(c_new)
        valid = (t0 + tt) < lens                                # (TB, 1)
        out_ref[:, pl.ds(tt, 1), :] = (
            jnp.where(valid, h_new, 0.0)[:, None, :].astype(out_ref.dtype))
        return jnp.where(valid, h_new, h), jnp.where(valid, c_new, c)

    # Recurrent critical path: partial unroll lets the scheduler overlap EUP
    # (3 sigmoid + 2 tanh), VPU selects, the per-step store and the MXU push
    # across iterations without blowing vreg pressure on long chunks.
    h_fin, c_fin = lax.fori_loop(0, tile_t, step,
                                 (ht_ref[...], ct_ref[...]), unroll=unroll)
    ht_ref[...] = h_fin
    ct_ref[...] = c_fin


def dynamic_lstm_pallas(x, x_len, w_ih, w_hh, b_ih, b_hh, max_len=None):
    """x: (B, T, D) float (batch_first), x_len: (B,) ints.

    Returns (out, (ht, ct)) matching DynamicLSTM.forward for the default
    config (LSTM, num_layers=1, unidirectional, batch_first=True):
      out: (B, max(x_len), H), ht/ct: (1, B, H).

    Pass `max_len` (== max(x_len)) explicitly when x_len is traced (jit);
    it must be >= max(x_len)."""
    B, T, D = x.shape
    H = w_hh.shape[1]
    f32 = jnp.float32
    bf16 = jnp.bfloat16

    if max_len is None:
        # pad_packed_sequence truncation; requires a concrete x_len (not jit).
        max_len = int(np.asarray(x_len).max())
    T_run = int(max(1, min(T, int(max_len))))

    n_cores, vmem_phys = _tpu_generation()

    # ---- padded, lane/sublane-dense problem sizes ---------------------------
    Hp = _round_up(H, 128)               # lane-dense hidden; gate offsets k*Hp
    G4 = 4 * Hp
    B_pad = _round_up(B, 8)
    n_bc = 1
    if n_cores >= 2 and B_pad >= 16:     # split the batch only when a second
        n_bc = 2                         # TensorCore exists (v7x); on v5e/v6e
        B_pad = _round_up(B_pad, 16)     # keep full M rows for every matmul.
    TB = B_pad // n_bc

    # ---- generation-aware VMEM budget & time-chunk size ---------------------
    vmem_limit = min(int(vmem_phys * 0.85), 112 * 1024 * 1024)
    # Resident bytes: weights + bias (worst case double-buffered if the
    # single-buffer request falls back) and the ht/ct accumulator blocks.
    resident = 2 * ((D + Hp) * G4 * 2 + G4 * 4) + 2 * 2 * TB * Hp * 4
    chunk_budget = min(vmem_limit - resident - (6 << 20), 32 << 20)
    chunk_budget = max(chunk_budget, 2 << 20)
    # Per time step: x chunk (bf16, 2 bufs) + out chunk (f32, 2 bufs) + xp_sc.
    per_t_bytes = TB * (2 * D * 2 + 2 * Hp * 4 + G4 * 4)
    cand = min(int(chunk_budget // per_t_bytes), 1024)
    T_ceil = _round_up(T_run, 8)
    if cand >= T_ceil:
        tile_t = T_ceil                      # single time chunk (block == full dim)
    else:
        tile_t = max(16, (cand // 16) * 16)  # chunked: bf16 sublane-tiling safe
    T_pad = _round_up(T_run, tile_t)
    n_tc = T_pad // tile_t

    # ---- pad / repack operands (all zero padding is masked / inert) ---------
    x_p = jnp.zeros((B_pad, T_pad, D), bf16)
    x_p = x_p.at[:B, :T_run, :].set(x[:, :T_run, :].astype(bf16))
    lens = jnp.zeros((B_pad, 1), jnp.int32).at[:B, 0].set(x_len.astype(jnp.int32))

    wih_p = jnp.zeros((4, Hp, D), f32).at[:, :H, :].set(
        w_ih.astype(f32).reshape(4, H, D))
    wih_t = wih_p.reshape(G4, D).T.astype(bf16)                  # (D, 4Hp)
    whh_p = jnp.zeros((4, Hp, Hp), f32).at[:, :H, :H].set(
        w_hh.astype(f32).reshape(4, H, H))
    whh_t = whh_p.reshape(G4, Hp).T.astype(bf16)                 # (Hp, 4Hp)
    b_p = jnp.zeros((4, Hp), f32).at[:, :H].set(
        (b_ih + b_hh).astype(f32).reshape(4, H)).reshape(1, G4)  # f32 bias

    kernel = functools.partial(_lstm_kernel, tile_t=tile_t, hidden_pad=Hp,
                               unroll=(tile_t if tile_t <= 32 else 8))

    out_shapes = (
        jax.ShapeDtypeStruct((B_pad, T_pad, Hp), f32),
        jax.ShapeDtypeStruct((B_pad, Hp), f32),
        jax.ShapeDtypeStruct((B_pad, Hp), f32),
    )

    def _make_call(single_buffer_weights):
        wkw = ({"pipeline_mode": pl.Buffered(1)} if single_buffer_weights else {})
        grid_spec = pltpu.PrefetchScalarGridSpec(
            num_scalar_prefetch=0,
            grid=(n_bc, n_tc),
            in_specs=[
                pl.BlockSpec((TB, 1), lambda bc, tc: (bc, 0)),               # lens
                pl.BlockSpec((TB, tile_t, D), lambda bc, tc: (bc, tc, 0)),   # x
                pl.BlockSpec((D, G4), lambda bc, tc: (0, 0), **wkw),         # W_ih^T
                pl.BlockSpec((Hp, G4), lambda bc, tc: (0, 0), **wkw),        # W_hh^T
                pl.BlockSpec((1, G4), lambda bc, tc: (0, 0), **wkw),         # bias
            ],
            out_specs=[
                pl.BlockSpec((TB, tile_t, Hp), lambda bc, tc: (bc, tc, 0)),  # out
                pl.BlockSpec((TB, Hp), lambda bc, tc: (bc, 0)),              # h_T
                pl.BlockSpec((TB, Hp), lambda bc, tc: (bc, 0)),              # c_T
            ],
            scratch_shapes=[
                pltpu.VMEM((TB, tile_t, G4), f32),     # hoisted input projection
            ],
        )
        return pl.pallas_call(
            kernel,
            out_shape=out_shapes,
            grid_spec=grid_spec,
            compiler_params=pltpu.CompilerParams(
                dimension_semantics=("parallel", "arbitrary"),
                vmem_limit_bytes=int(vmem_limit),
            ),
        )

    try:
        res = _make_call(True)(lens, x_p, wih_t, whh_t, b_p)
        res = jax.block_until_ready(res)
    except Exception:
        # pl.Buffered(1) rejected by this jax version -> default buffering.
        res = _make_call(False)(lens, x_p, wih_t, whh_t, b_p)
    out_p, hT, cT = res

    if (B_pad, T_pad, Hp) == (B, int(max_len), H):
        out = out_p
    else:
        out = out_p[:B, :int(max_len), :H]
    ht = hT[:B, :H][None]
    ct = cT[:B, :H][None]
    return out, (ht, ct)


def _lstm_reference(x, x_len, w_ih, w_hh, b_ih, b_hh):
    """Pure-JAX masked LSTM reference (same semantics, f32 throughout)."""
    B, T, D = x.shape
    H = w_hh.shape[1]
    h = jnp.zeros((B, H), jnp.float32)
    c = jnp.zeros((B, H), jnp.float32)
    outs = []
    for t in range(T):
        gates = x[:, t] @ w_ih.T + h @ w_hh.T + b_ih + b_hh
        i = jax.nn.sigmoid(gates[:, 0 * H:1 * H])
        f = jax.nn.sigmoid(gates[:, 1 * H:2 * H])
        g = jnp.tanh(gates[:, 2 * H:3 * H])
        o = jax.nn.sigmoid(gates[:, 3 * H:4 * H])
        c_new = f * c + i * g
        h_new = o * jnp.tanh(c_new)
        valid = (t < x_len)[:, None]
        h = jnp.where(valid, h_new, h)
        c = jnp.where(valid, c_new, c)
        outs.append(jnp.where(valid, h_new, 0.0))
    out = jnp.stack(outs, axis=1)[:, :int(np.asarray(x_len).max())]
    return out, (h[None], c[None])


if __name__ == "__main__":
    # DynamicLSTM(input_size=16, hidden_size=32, num_layers=1, batch_first=True)
    B, T, D, H = 2, 8, 16, 32

    key = jax.random.PRNGKey(0)
    k_x, k1, k2, k3, k4 = jax.random.split(key, 5)

    bound = 1.0 / np.sqrt(H)   # PyTorch LSTM default init U(-1/sqrt(H), 1/sqrt(H))
    w_ih = jax.random.uniform(k1, (4 * H, D), jnp.float32, -bound, bound)
    w_hh = jax.random.uniform(k2, (4 * H, H), jnp.float32, -bound, bound)
    b_ih = jax.random.uniform(k3, (4 * H,), jnp.float32, -bound, bound)
    b_hh = jax.random.uniform(k4, (4 * H,), jnp.float32, -bound, bound)

    x = jax.random.normal(k_x, (B, T, D), jnp.float32)
    x_len = jnp.array([T, 5], dtype=jnp.int32)

    out, (ht, ct) = dynamic_lstm_pallas(x, x_len, w_ih, w_hh, b_ih, b_hh)
    jax.block_until_ready((out, ht, ct))

    out_r, (ht_r, ct_r) = _lstm_reference(x, x_len, w_ih, w_hh, b_ih, b_hh)
    # bf16 MXU inputs (f32 accumulation) -> tolerances loosened vs the f32 ref.
    np.testing.assert_allclose(np.asarray(out), np.asarray(out_r), atol=3e-2, rtol=3e-2)
    np.testing.assert_allclose(np.asarray(ht), np.asarray(ht_r), atol=3e-2, rtol=3e-2)
    np.testing.assert_allclose(np.asarray(ct), np.asarray(ct_r), atol=3e-2, rtol=3e-2)

    print("KERNEL_OK")
</pallas_src>

<mosaic_0001>
module attributes {stable_mosaic.version = 11 : i64} {
  func.func @_lstm_kernel(%arg0: i32, %arg1: i32, %arg2: memref<8x1xi32, #tpu.memory_space<vmem>>, %arg3: memref<8x8x16xbf16, #tpu.memory_space<vmem>>, %arg4: memref<16x512xbf16, #tpu.memory_space<vmem>>, %arg5: memref<128x512xbf16, #tpu.memory_space<vmem>>, %arg6: memref<1x512xf32, #tpu.memory_space<vmem>>, %arg7: memref<8x8x128xf32, #tpu.memory_space<vmem>>, %arg8: memref<8x128xf32, #tpu.memory_space<vmem>>, %arg9: memref<8x128xf32, #tpu.memory_space<vmem>>, %arg10: memref<8x8x512xf32, #tpu.memory_space<vmem>>) attributes {dimension_semantics = [#tpu.dimension_semantics<parallel>, #tpu.dimension_semantics<arbitrary>], iteration_bounds = array<i64: 1, 1>, scalar_prefetch = 0 : i64, scratch_operands = 1 : i64, tpu.core_type = #tpu.core_type<tc>, window_params = [{transform_indices = @transform_0, window_bounds = array<i64: 8, 1>}, {transform_indices = @transform_1, window_bounds = array<i64: 8, 8, 16>}, {pipeline_mode = #tpu.pipeline_mode<synchronous>, transform_indices = @transform_2, window_bounds = array<i64: 16, 512>}, {pipeline_mode = #tpu.pipeline_mode<synchronous>, transform_indices = @transform_3, window_bounds = array<i64: 128, 512>}, {pipeline_mode = #tpu.pipeline_mode<synchronous>, transform_indices = @transform_4, window_bounds = array<i64: 1, 512>}, {transform_indices = @transform_5, window_bounds = array<i64: 8, 8, 128>}, {transform_indices = @transform_6, window_bounds = array<i64: 8, 128>}, {transform_indices = @transform_7, window_bounds = array<i64: 8, 128>}]} {
    %c0_i32 = arith.constant 0 : i32
    %0 = arith.cmpi eq, %arg1, %c0_i32 : i32
    %1 = arith.extui %0 : i1 to i32
    %c0_i32_0 = arith.constant 0 : i32
    %2 = arith.cmpi ne, %1, %c0_i32_0 : i32
    scf.if %2 {
      %cst_96 = arith.constant 0.000000e+00 : f32
      %395 = vector.broadcast %cst_96 : f32 to vector<8x128xf32>
      %c0_97 = arith.constant 0 : index
      %c0_98 = arith.constant 0 : index
      %396 = vector.load %arg8[%c0_97, %c0_98] : memref<8x128xf32, #tpu.memory_space<vmem>>, vector<8x128xf32>
      tpu.vector_store %arg8[%c0_97, %c0_98], %395 {strides = array<i32>} : memref<8x128xf32, #tpu.memory_space<vmem>>, vector<8x128xf32>,
      %cst_99 = arith.constant 0.000000e+00 : f32
      %397 = vector.broadcast %cst_99 : f32 to vector<8x128xf32>
      %c0_100 = arith.constant 0 : index
      %c0_101 = arith.constant 0 : index
      %398 = vector.load %arg9[%c0_100, %c0_101] : memref<8x128xf32, #tpu.memory_space<vmem>>, vector<8x128xf32>
      tpu.vector_store %arg9[%c0_100, %c0_101], %397 {strides = array<i32>} : memref<8x128xf32, #tpu.memory_space<vmem>>, vector<8x128xf32>,
    } else {
    }
    %c0 = arith.constant 0 : index
    %c0_1 = arith.constant 0 : index
    %c0_2 = arith.constant 0 : index
    %3 = vector.load %arg3[%c0, %c0_1, %c0_2] : memref<8x8x16xbf16, #tpu.memory_space<vmem>>, vector<8x8x16xbf16>
    %4 = vector.shape_cast %3 : vector<8x8x16xbf16> to vector<64x16xbf16>
    %c0_3 = arith.constant 0 : index
    %c0_4 = arith.constant 0 : index
    %5 = vector.load %arg4[%c0_3, %c0_4] : memref<16x512xbf16, #tpu.memory_space<vmem>>, vector<16x512xbf16>
    %cst = arith.constant dense<0.000000e+00> : vector<64x512xf32>
    %6 = tpu.matmul %4, %5, %cst {dimension_numbers = #tpu.dot_dimension_numbers<[1], [0], [0], [1], [0, 0, 1, 1], [], []>} : vector<64x16xbf16>, vector<16x512xbf16>, vector<64x512xf32> -> vector<64x512xf32>
    %c0_5 = arith.constant 0 : index
    %c0_6 = arith.constant 0 : index
    %7 = vector.load %arg6[%c0_5, %c0_6] : memref<1x512xf32, #tpu.memory_space<vmem>>, vector<1x512xf32>
    %8 = vector.broadcast %7 : vector<1x512xf32> to vector<64x512xf32>
    %9 = arith.addf %6, %8 : vector<64x512xf32>
    %10 = vector.shape_cast %9 : vector<64x512xf32> to vector<8x8x512xf32>
    %c0_7 = arith.constant 0 : index
    %c0_8 = arith.constant 0 : index
    %c0_9 = arith.constant 0 : index
    %11 = vector.load %arg10[%c0_7, %c0_8, %c0_9] : memref<8x8x512xf32, #tpu.memory_space<vmem>>, vector<8x8x512xf32>
    tpu.vector_store %arg10[%c0_7, %c0_8, %c0_9], %10 {strides = array<i32>} : memref<8x8x512xf32, #tpu.memory_space<vmem>>, vector<8x8x512xf32>,
    %c0_10 = arith.constant 0 : index
    %c0_11 = arith.constant 0 : index
    %12 = vector.load %arg2[%c0_10, %c0_11] : memref<8x1xi32, #tpu.memory_space<vmem>>, vector<8x1xi32>
    %c0_12 = arith.constant 0 : index
    %c0_13 = arith.constant 0 : index
    %13 = vector.load %arg5[%c0_12, %c0_13] : memref<128x512xbf16, #tpu.memory_space<vmem>>, vector<128x512xbf16>
    %c8_i32 = arith.constant 8 : i32
    %14 = arith.muli %arg1, %c8_i32 : i32
    %c0_14 = arith.constant 0 : index
    %c0_15 = arith.constant 0 : index
    %15 = vector.load %arg8[%c0_14, %c0_15] : memref<8x128xf32, #tpu.memory_space<vmem>>, vector<8x128xf32>
    %c0_16 = arith.constant 0 : index
    %c0_17 = arith.constant 0 : index
    %16 = vector.load %arg9[%c0_16, %c0_17] : memref<8x128xf32, #tpu.memory_space<vmem>>, vector<8x128xf32>
    %c0_i32_18 = arith.constant 0 : i32
    %c0_19 = arith.constant 0 : index
    %17 = arith.index_cast %c0_i32_18 : i32 to index
    %c0_20 = arith.constant 0 : index
    %18 = vector.load %arg10[%c0_19, %17, %c0_20] : memref<8x8x512xf32, #tpu.memory_space<vmem>>, vector<8x1x512xf32>
    %19 = vector.shape_cast %18 : vector<8x1x512xf32> to vector<8x512xf32>
    %20 = arith.truncf %15 : vector<8x128xf32> to vector<8x128xbf16>
    %cst_21 = arith.constant dense<0.000000e+00> : vector<8x512xf32>
    %21 = tpu.matmul %20, %13, %cst_21 {dimension_numbers = #tpu.dot_dimension_numbers<[1], [0], [0], [1], [0, 0, 1, 1], [], []>} : vector<8x128xbf16>, vector<128x512xbf16>, vector<8x512xf32> -> vector<8x512xf32>
    %22 = arith.addf %19, %21 : vector<8x512xf32>
    %23 = vector.extract_strided_slice %22 {offsets = [0, 0], sizes = [8, 128], strides = [1, 1]} : vector<8x512xf32> to vector<8x128xf32>
    %24 = arith.negf %23 : vector<8x128xf32>
    %25 = math.exp %24 : vector<8x128xf32>
    %cst_22 = arith.constant 1.000000e+00 : f32
    %26 = vector.broadcast %cst_22 : f32 to vector<8x128xf32>
    %27 = arith.addf %26, %25 : vector<8x128xf32>
    %28 = arith.divf %26, %27 : vector<8x128xf32>
    %29 = vector.extract_strided_slice %22 {offsets = [0, 128], sizes = [8, 128], strides = [1, 1]} : vector<8x512xf32> to vector<8x128xf32>
    %30 = arith.negf %29 : vector<8x128xf32>
    %31 = math.exp %30 : vector<8x128xf32>
    %cst_23 = arith.constant 1.000000e+00 : f32
    %32 = vector.broadcast %cst_23 : f32 to vector<8x128xf32>
    %33 = arith.addf %32, %31 : vector<8x128xf32>
    %34 = arith.divf %32, %33 : vector<8x128xf32>
    %35 = vector.extract_strided_slice %22 {offsets = [0, 256], sizes = [8, 128], strides = [1, 1]} : vector<8x512xf32> to vector<8x128xf32>
    %36 = math.tanh %35 : vector<8x128xf32>
    %37 = vector.extract_strided_slice %22 {offsets = [0, 384], sizes = [8, 128], strides = [1, 1]} : vector<8x512xf32> to vector<8x128xf32>
    %38 = arith.negf %37 : vector<8x128xf32>
    %39 = math.exp %38 : vector<8x128xf32>
    %cst_24 = arith.constant 1.000000e+00 : f32
    %40 = vector.broadcast %cst_24 : f32 to vector<8x128xf32>
    %41 = arith.addf %40, %39 : vector<8x128xf32>
    %42 = arith.divf %40, %41 : vector<8x128xf32>
    %43 = arith.mulf %34, %16 : vector<8x128xf32>
    %44 = arith.mulf %28, %36 : vector<8x128xf32>
    %45 = arith.addf %43, %44 : vector<8x128xf32>
    %46 = math.tanh %45 : vector<8x128xf32>
    %47 = arith.mulf %42, %46 : vector<8x128xf32>
    %48 = arith.addi %14, %c0_i32_18 : i32
    %49 = vector.broadcast %48 : i32 to vector<8x1xi32>
    %50 = arith.cmpi slt, %49, %12 : vector<8x1xi32>
    %cst_25 = arith.constant 0.000000e+00 : f32
    %51 = vector.shape_cast %50 : vector<8x1xi1> to vector<8x1xi1>
    %52 = vector.broadcast %51 : vector<8x1xi1> to vector<8x128xi1>
    %53 = vector.broadcast %cst_25 : f32 to vector<8x128xf32>
    %54 = arith.select %52, %47, %53 : vector<8x128xi1>, vector<8x128xf32>
    %55 = vector.shape_cast %54 : vector<8x128xf32> to vector<8x1x128xf32>
    %c0_26 = arith.constant 0 : index
    %56 = arith.index_cast %c0_i32_18 : i32 to index
    %c0_27 = arith.constant 0 : index
    %57 = vector.load %arg7[%c0_26, %56, %c0_27] : memref<8x8x128xf32, #tpu.memory_space<vmem>>, vector<8x1x128xf32>
    tpu.vector_store %arg7[%c0_26, %56, %c0_27], %55 {strides = array<i32>} : memref<8x8x128xf32, #tpu.memory_space<vmem>>, vector<8x1x128xf32>,
    %58 = vector.shape_cast %50 : vector<8x1xi1> to vector<8x1xi1>
    %59 = vector.broadcast %58 : vector<8x1xi1> to vector<8x128xi1>
    %60 = arith.select %59, %47, %15 : vector<8x128xi1>, vector<8x128xf32>
    %61 = vector.shape_cast %50 : vector<8x1xi1> to vector<8x1xi1>
    %62 = vector.broadcast %61 : vector<8x1xi1> to vector<8x128xi1>
    %63 = arith.select %62, %45, %16 : vector<8x128xi1>, vector<8x128xf32>
    %c1_i32 = arith.constant 1 : i32
    %c0_28 = arith.constant 0 : index
    %64 = arith.index_cast %c1_i32 : i32 to index
    %c0_29 = arith.constant 0 : index
    %65 = vector.load %arg10[%c0_28, %64, %c0_29] : memref<8x8x512xf32, #tpu.memory_space<vmem>>, vector<8x1x512xf32>
    %66 = vector.shape_cast %65 : vector<8x1x512xf32> to vector<8x512xf32>
    %67 = arith.truncf %60 : vector<8x128xf32> to vector<8x128xbf16>
    %cst_30 = arith.constant dense<0.000000e+00> : vector<8x512xf32>
    %68 = tpu.matmul %67, %13, %cst_30 {dimension_numbers = #tpu.dot_dimension_numbers<[1], [0], [0], [1], [0, 0, 1, 1], [], []>} : vector<8x128xbf16>, vector<128x512xbf16>, vector<8x512xf32> -> vector<8x512xf32>
    %69 = arith.addf %66, %68 : vector<8x512xf32>
    %70 = vector.extract_strided_slice %69 {offsets = [0, 0], sizes = [8, 128], strides = [1, 1]} : vector<8x512xf32> to vector<8x128xf32>
    %71 = arith.negf %70 : vector<8x128xf32>
    %72 = math.exp %71 : vector<8x128xf32>
    %cst_31 = arith.constant 1.000000e+00 : f32
    %73 = vector.broadcast %cst_31 : f32 to vector<8x128xf32>
    %74 = arith.addf %73, %72 : vector<8x128xf32>
    %75 = arith.divf %73, %74 : vector<8x128xf32>
    %76 = vector.extract_strided_slice %69 {offsets = [0, 128], sizes = [8, 128], strides = [1, 1]} : vector<8x512xf32> to vector<8x128xf32>
    %77 = arith.negf %76 : vector<8x128xf32>
    %78 = math.exp %77 : vector<8x128xf32>
    %cst_32 = arith.constant 1.000000e+00 : f32
    %79 = vector.broadcast %cst_32 : f32 to vector<8x128xf32>
    %80 = arith.addf %79, %78 : vector<8x128xf32>
    %81 = arith.divf %79, %80 : vector<8x128xf32>
    %82 = vector.extract_strided_slice %69 {offsets = [0, 256], sizes = [8, 128], strides = [1, 1]} : vector<8x512xf32> to vector<8x128xf32>
    %83 = math.tanh %82 : vector<8x128xf32>
    %84 = vector.extract_strided_slice %69 {offsets = [0, 384], sizes = [8, 128], strides = [1, 1]} : vector<8x512xf32> to vector<8x128xf32>
    %85 = arith.negf %84 : vector<8x128xf32>
    %86 = math.exp %85 : vector<8x128xf32>
    %cst_33 = arith.constant 1.000000e+00 : f32
    %87 = vector.broadcast %cst_33 : f32 to vector<8x128xf32>
    %88 = arith.addf %87, %86 : vector<8x128xf32>
    %89 = arith.divf %87, %88 : vector<8x128xf32>
    %90 = arith.mulf %81, %63 : vector<8x128xf32>
    %91 = arith.mulf %75, %83 : vector<8x128xf32>
    %92 = arith.addf %90, %91 : vector<8x128xf32>
    %93 = math.tanh %92 : vector<8x128xf32>
    %94 = arith.mulf %89, %93 : vector<8x128xf32>
    %95 = arith.addi %14, %c1_i32 : i32
    %96 = vector.broadcast %95 : i32 to vector<8x1xi32>
    %97 = arith.cmpi slt, %96, %12 : vector<8x1xi32>
    %cst_34 = arith.constant 0.000000e+00 : f32
    %98 = vector.shape_cast %97 : vector<8x1xi1> to vector<8x1xi1>
    %99 = vector.broadcast %98 : vector<8x1xi1> to vector<8x128xi1>
    %100 = vector.broadcast %cst_34 : f32 to vector<8x128xf32>
    %101 = arith.select %99, %94, %100 : vector<8x128xi1>, vector<8x128xf32>
    %102 = vector.shape_cast %101 : vector<8x128xf32> to vector<8x1x128xf32>
    %c0_35 = arith.constant 0 : index
    %103 = arith.index_cast %c1_i32 : i32 to index
    %c0_36 = arith.constant 0 : index
    %104 = vector.load %arg7[%c0_35, %103, %c0_36] : memref<8x8x128xf32, #tpu.memory_space<vmem>>, vector<8x1x128xf32>
    tpu.vector_store %arg7[%c0_35, %103, %c0_36], %102 {strides = array<i32>} : memref<8x8x128xf32, #tpu.memory_space<vmem>>, vector<8x1x128xf32>,
    %105 = vector.shape_cast %97 : vector<8x1xi1> to vector<8x1xi1>
    %106 = vector.broadcast %105 : vector<8x1xi1> to vector<8x128xi1>
    %107 = arith.select %106, %94, %60 : vector<8x128xi1>, vector<8x128xf32>
    %108 = vector.shape_cast %97 : vector<8x1xi1> to vector<8x1xi1>
    %109 = vector.broadcast %108 : vector<8x1xi1> to vector<8x128xi1>
    %110 = arith.select %109, %92, %63 : vector<8x128xi1>, vector<8x128xf32>
    %c2_i32 = arith.constant 2 : i32
    %c0_37 = arith.constant 0 : index
    %111 = arith.index_cast %c2_i32 : i32 to index
    %c0_38 = arith.constant 0 : index
    %112 = vector.load %arg10[%c0_37, %111, %c0_38] : memref<8x8x512xf32, #tpu.memory_space<vmem>>, vector<8x1x512xf32>
    %113 = vector.shape_cast %112 : vector<8x1x512xf32> to vector<8x512xf32>
    %114 = arith.truncf %107 : vector<8x128xf32> to vector<8x128xbf16>
    %cst_39 = arith.constant dense<0.000000e+00> : vector<8x512xf32>
    %115 = tpu.matmul %114, %13, %cst_39 {dimension_numbers = #tpu.dot_dimension_numbers<[1], [0], [0], [1], [0, 0, 1, 1], [], []>} : vector<8x128xbf16>, vector<128x512xbf16>, vector<8x512xf32> -> vector<8x512xf32>
    %116 = arith.addf %113, %115 : vector<8x512xf32>
    %117 = vector.extract_strided_slice %116 {offsets = [0, 0], sizes = [8, 128], strides = [1, 1]} : vector<8x512xf32> to vector<8x128xf32>
    %118 = arith.negf %117 : vector<8x128xf32>
    %119 = math.exp %118 : vector<8x128xf32>
    %cst_40 = arith.constant 1.000000e+00 : f32
    %120 = vector.broadcast %cst_40 : f32 to vector<8x128xf32>
    %121 = arith.addf %120, %119 : vector<8x128xf32>
    %122 = arith.divf %120, %121 : vector<8x128xf32>
    %123 = vector.extract_strided_slice %116 {offsets = [0, 128], sizes = [8, 128], strides = [1, 1]} : vector<8x512xf32> to vector<8x128xf32>
    %124 = arith.negf %123 : vector<8x128xf32>
    %125 = math.exp %124 : vector<8x128xf32>
    %cst_41 = arith.constant 1.000000e+00 : f32
    %126 = vector.broadcast %cst_41 : f32 to vector<8x128xf32>
    %127 = arith.addf %126, %125 : vector<8x128xf32>
    %128 = arith.divf %126, %127 : vector<8x128xf32>
    %129 = vector.extract_strided_slice %116 {offsets = [0, 256], sizes = [8, 128], strides = [1, 1]} : vector<8x512xf32> to vector<8x128xf32>
    %130 = math.tanh %129 : vector<8x128xf32>
    %131 = vector.extract_strided_slice %116 {offsets = [0, 384], sizes = [8, 128], strides = [1, 1]} : vector<8x512xf32> to vector<8x128xf32>
    %132 = arith.negf %131 : vector<8x128xf32>
    %133 = math.exp %132 : vector<8x128xf32>
    %cst_42 = arith.constant 1.000000e+00 : f32
    %134 = vector.broadcast %cst_42 : f32 to vector<8x128xf32>
    %135 = arith.addf %134, %133 : vector<8x128xf32>
    %136 = arith.divf %134, %135 : vector<8x128xf32>
    %137 = arith.mulf %128, %110 : vector<8x128xf32>
    %138 = arith.mulf %122, %130 : vector<8x128xf32>
    %139 = arith.addf %137, %138 : vector<8x128xf32>
    %140 = math.tanh %139 : vector<8x128xf32>
    %141 = arith.mulf %136, %140 : vector<8x128xf32>
    %142 = arith.addi %14, %c2_i32 : i32
    %143 = vector.broadcast %142 : i32 to vector<8x1xi32>
    %144 = arith.cmpi slt, %143, %12 : vector<8x1xi32>
    %cst_43 = arith.constant 0.000000e+00 : f32
    %145 = vector.shape_cast %144 : vector<8x1xi1> to vector<8x1xi1>
    %146 = vector.broadcast %145 : vector<8x1xi1> to vector<8x128xi1>
    %147 = vector.broadcast %cst_43 : f32 to vector<8x128xf32>
    %148 = arith.select %146, %141, %147 : vector<8x128xi1>, vector<8x128xf32>
    %149 = vector.shape_cast %148 : vector<8x128xf32> to vector<8x1x128xf32>
    %c0_44 = arith.constant 0 : index
    %150 = arith.index_cast %c2_i32 : i32 to index
    %c0_45 = arith.constant 0 : index
    %151 = vector.load %arg7[%c0_44, %150, %c0_45] : memref<8x8x128xf32, #tpu.memory_space<vmem>>, vector<8x1x128xf32>
    tpu.vector_store %arg7[%c0_44, %150, %c0_45], %149 {strides = array<i32>} : memref<8x8x128xf32, #tpu.memory_space<vmem>>, vector<8x1x128xf32>,
    %152 = vector.shape_cast %144 : vector<8x1xi1> to vector<8x1xi1>
    %153 = vector.broadcast %152 : vector<8x1xi1> to vector<8x128xi1>
    %154 = arith.select %153, %141, %107 : vector<8x128xi1>, vector<8x128xf32>
    %155 = vector.shape_cast %144 : vector<8x1xi1> to vector<8x1xi1>
    %156 = vector.broadcast %155 : vector<8x1xi1> to vector<8x128xi1>
    %157 = arith.select %156, %139, %110 : vector<8x128xi1>, vector<8x128xf32>
    %c3_i32 = arith.constant 3 : i32
    %c0_46 = arith.constant 0 : index
    %158 = arith.index_cast %c3_i32 : i32 to index
    %c0_47 = arith.constant 0 : index
    %159 = vector.load %arg10[%c0_46, %158, %c0_47] : memref<8x8x512xf32, #tpu.memory_space<vmem>>, vector<8x1x512xf32>
    %160 = vector.shape_cast %159 : vector<8x1x512xf32> to vector<8x512xf32>
    %161 = arith.truncf %154 : vector<8x128xf32> to vector<8x128xbf16>
    %cst_48 = arith.constant dense<0.000000e+00> : vector<8x512xf32>
    %162 = tpu.matmul %161, %13, %cst_48 {dimension_numbers = #tpu.dot_dimension_numbers<[1], [0], [0], [1], [0, 0, 1, 1], [], []>} : vector<8x128xbf16>, vector<128x512xbf16>, vector<8x512xf32> -> vector<8x512xf32>
    %163 = arith.addf %160, %162 : vector<8x512xf32>
    %164 = vector.extract_strided_slice %163 {offsets = [0, 0], sizes = [8, 128], strides = [1, 1]} : vector<8x512xf32> to vector<8x128xf32>
    %165 = arith.negf %164 : vector<8x128xf32>
    %166 = math.exp %165 : vector<8x128xf32>
    %cst_49 = arith.constant 1.000000e+00 : f32
    %167 = vector.broadcast %cst_49 : f32 to vector<8x128xf32>
    %168 = arith.addf %167, %166 : vector<8x128xf32>
    %169 = arith.divf %167, %168 : vector<8x128xf32>
    %170 = vector.extract_strided_slice %163 {offsets = [0, 128], sizes = [8, 128], strides = [1, 1]} : vector<8x512xf32> to vector<8x128xf32>
    %171 = arith.negf %170 : vector<8x128xf32>
    %172 = math.exp %171 : vector<8x128xf32>
    %cst_50 = arith.constant 1.000000e+00 : f32
    %173 = vector.broadcast %cst_50 : f32 to vector<8x128xf32>
    %174 = arith.addf %173, %172 : vector<8x128xf32>
    %175 = arith.divf %173, %174 : vector<8x128xf32>
    %176 = vector.extract_strided_slice %163 {offsets = [0, 256], sizes = [8, 128], strides = [1, 1]} : vector<8x512xf32> to vector<8x128xf32>
    %177 = math.tanh %176 : vector<8x128xf32>
    %178 = vector.extract_strided_slice %163 {offsets = [0, 384], sizes = [8, 128], strides = [1, 1]} : vector<8x512xf32> to vector<8x128xf32>
    %179 = arith.negf %178 : vector<8x128xf32>
    %180 = math.exp %179 : vector<8x128xf32>
    %cst_51 = arith.constant 1.000000e+00 : f32
    %181 = vector.broadcast %cst_51 : f32 to vector<8x128xf32>
    %182 = arith.addf %181, %180 : vector<8x128xf32>
    %183 = arith.divf %181, %182 : vector<8x128xf32>
    %184 = arith.mulf %175, %157 : vector<8x128xf32>
    %185 = arith.mulf %169, %177 : vector<8x128xf32>
    %186 = arith.addf %184, %185 : vector<8x128xf32>
    %187 = math.tanh %186 : vector<8x128xf32>
    %188 = arith.mulf %183, %187 : vector<8x128xf32>
    %189 = arith.addi %14, %c3_i32 : i32
    %190 = vector.broadcast %189 : i32 to vector<8x1xi32>
    %191 = arith.cmpi slt, %190, %12 : vector<8x1xi32>
    %cst_52 = arith.constant 0.000000e+00 : f32
    %192 = vector.shape_cast %191 : vector<8x1xi1> to vector<8x1xi1>
    %193 = vector.broadcast %192 : vector<8x1xi1> to vector<8x128xi1>
    %194 = vector.broadcast %cst_52 : f32 to vector<8x128xf32>
    %195 = arith.select %193, %188, %194 : vector<8x128xi1>, vector<8x128xf32>
    %196 = vector.shape_cast %195 : vector<8x128xf32> to vector<8x1x128xf32>
    %c0_53 = arith.constant 0 : index
    %197 = arith.index_cast %c3_i32 : i32 to index
    %c0_54 = arith.constant 0 : index
    %198 = vector.load %arg7[%c0_53, %197, %c0_54] : memref<8x8x128xf32, #tpu.memory_space<vmem>>, vector<8x1x128xf32>
    tpu.vector_store %arg7[%c0_53, %197, %c0_54], %196 {strides = array<i32>} : memref<8x8x128xf32, #tpu.memory_space<vmem>>, vector<8x1x128xf32>,
    %199 = vector.shape_cast %191 : vector<8x1xi1> to vector<8x1xi1>
    %200 = vector.broadcast %199 : vector<8x1xi1> to vector<8x128xi1>
    %201 = arith.select %200, %188, %154 : vector<8x128xi1>, vector<8x128xf32>
    %202 = vector.shape_cast %191 : vector<8x1xi1> to vector<8x1xi1>
    %203 = vector.broadcast %202 : vector<8x1xi1> to vector<8x128xi1>
    %204 = arith.select %203, %186, %157 : vector<8x128xi1>, vector<8x128xf32>
    %c4_i32 = arith.constant 4 : i32
    %c0_55 = arith.constant 0 : index
    %205 = arith.index_cast %c4_i32 : i32 to index
    %c0_56 = arith.constant 0 : index
    %206 = vector.load %arg10[%c0_55, %205, %c0_56] : memref<8x8x512xf32, #tpu.memory_space<vmem>>, vector<8x1x512xf32>
    %207 = vector.shape_cast %206 : vector<8x1x512xf32> to vector<8x512xf32>
    %208 = arith.truncf %201 : vector<8x128xf32> to vector<8x128xbf16>
    %cst_57 = arith.constant dense<0.000000e+00> : vector<8x512xf32>
    %209 = tpu.matmul %208, %13, %cst_57 {dimension_numbers = #tpu.dot_dimension_numbers<[1], [0], [0], [1], [0, 0, 1, 1], [], []>} : vector<8x128xbf16>, vector<128x512xbf16>, vector<8x512xf32> -> vector<8x512xf32>
    %210 = arith.addf %207, %209 : vector<8x512xf32>
    %211 = vector.extract_strided_slice %210 {offsets = [0, 0], sizes = [8, 128], strides = [1, 1]} : vector<8x512xf32> to vector<8x128xf32>
    %212 = arith.negf %211 : vector<8x128xf32>
    %213 = math.exp %212 : vector<8x128xf32>
    %cst_58 = arith.constant 1.000000e+00 : f32
    %214 = vector.broadcast %cst_58 : f32 to vector<8x128xf32>
    %215 = arith.addf %214, %213 : vector<8x128xf32>
    %216 = arith.divf %214, %215 : vector<8x128xf32>
    %217 = vector.extract_strided_slice %210 {offsets = [0, 128], sizes = [8, 128], strides = [1, 1]} : vector<8x512xf32> to vector<8x128xf32>
    %218 = arith.negf %217 : vector<8x128xf32>
    %219 = math.exp %218 : vector<8x128xf32>
    %cst_59 = arith.constant 1.000000e+00 : f32
    %220 = vector.broadcast %cst_59 : f32 to vector<8x128xf32>
    %221 = arith.addf %220, %219 : vector<8x128xf32>
    %222 = arith.divf %220, %221 : vector<8x128xf32>
    %223 = vector.extract_strided_slice %210 {offsets = [0, 256], sizes = [8, 128], strides = [1, 1]} : vector<8x512xf32> to vector<8x128xf32>
    %224 = math.tanh %223 : vector<8x128xf32>
    %225 = vector.extract_strided_slice %210 {offsets = [0, 384], sizes = [8, 128], strides = [1, 1]} : vector<8x512xf32> to vector<8x128xf32>
    %226 = arith.negf %225 : vector<8x128xf32>
    %227 = math.exp %226 : vector<8x128xf32>
    %cst_60 = arith.constant 1.000000e+00 : f32
    %228 = vector.broadcast %cst_60 : f32 to vector<8x128xf32>
    %229 = arith.addf %228, %227 : vector<8x128xf32>
    %230 = arith.divf %228, %229 : vector<8x128xf32>
    %231 = arith.mulf %222, %204 : vector<8x128xf32>
    %232 = arith.mulf %216, %224 : vector<8x128xf32>
    %233 = arith.addf %231, %232 : vector<8x128xf32>
    %234 = math.tanh %233 : vector<8x128xf32>
    %235 = arith.mulf %230, %234 : vector<8x128xf32>
    %236 = arith.addi %14, %c4_i32 : i32
    %237 = vector.broadcast %236 : i32 to vector<8x1xi32>
    %238 = arith.cmpi slt, %237, %12 : vector<8x1xi32>
    %cst_61 = arith.constant 0.000000e+00 : f32
    %239 = vector.shape_cast %238 : vector<8x1xi1> to vector<8x1xi1>
    %240 = vector.broadcast %239 : vector<8x1xi1> to vector<8x128xi1>
    %241 = vector.broadcast %cst_61 : f32 to vector<8x128xf32>
    %242 = arith.select %240, %235, %241 : vector<8x128xi1>, vector<8x128xf32>
    %243 = vector.shape_cast %242 : vector<8x128xf32> to vector<8x1x128xf32>
    %c0_62 = arith.constant 0 : index
    %244 = arith.index_cast %c4_i32 : i32 to index
    %c0_63 = arith.constant 0 : index
    %245 = vector.load %arg7[%c0_62, %244, %c0_63] : memref<8x8x128xf32, #tpu.memory_space<vmem>>, vector<8x1x128xf32>
    tpu.vector_store %arg7[%c0_62, %244, %c0_63], %243 {strides = array<i32>} : memref<8x8x128xf32, #tpu.memory_space<vmem>>, vector<8x1x128xf32>,
    %246 = vector.shape_cast %238 : vector<8x1xi1> to vector<8x1xi1>
    %247 = vector.broadcast %246 : vector<8x1xi1> to vector<8x128xi1>
    %248 = arith.select %247, %235, %201 : vector<8x128xi1>, vector<8x128xf32>
    %249 = vector.shape_cast %238 : vector<8x1xi1> to vector<8x1xi1>
    %250 = vector.broadcast %249 : vector<8x1xi1> to vector<8x128xi1>
    %251 = arith.select %250, %233, %204 : vector<8x128xi1>, vector<8x128xf32>
    %c5_i32 = arith.constant 5 : i32
    %c0_64 = arith.constant 0 : index
    %252 = arith.index_cast %c5_i32 : i32 to index
    %c0_65 = arith.constant 0 : index
    %253 = vector.load %arg10[%c0_64, %252, %c0_65] : memref<8x8x512xf32, #tpu.memory_space<vmem>>, vector<8x1x512xf32>
    %254 = vector.shape_cast %253 : vector<8x1x512xf32> to vector<8x512xf32>
    %255 = arith.truncf %248 : vector<8x128xf32> to vector<8x128xbf16>
    %cst_66 = arith.constant dense<0.000000e+00> : vector<8x512xf32>
    %256 = tpu.matmul %255, %13, %cst_66 {dimension_numbers = #tpu.dot_dimension_numbers<[1], [0], [0], [1], [0, 0, 1, 1], [], []>} : vector<8x128xbf16>, vector<128x512xbf16>, vector<8x512xf32> -> vector<8x512xf32>
    %257 = arith.addf %254, %256 : vector<8x512xf32>
    %258 = vector.extract_strided_slice %257 {offsets = [0, 0], sizes = [8, 128], strides = [1, 1]} : vector<8x512xf32> to vector<8x128xf32>
    %259 = arith.negf %258 : vector<8x128xf32>
    %260 = math.exp %259 : vector<8x128xf32>
    %cst_67 = arith.constant 1.000000e+00 : f32
    %261 = vector.broadcast %cst_67 : f32 to vector<8x128xf32>
    %262 = arith.addf %261, %260 : vector<8x128xf32>
    %263 = arith.divf %261, %262 : vector<8x128xf32>
    %264 = vector.extract_strided_slice %257 {offsets = [0, 128], sizes = [8, 128], strides = [1, 1]} : vector<8x512xf32> to vector<8x128xf32>
    %265 = arith.negf %264 : vector<8x128xf32>
    %266 = math.exp %265 : vector<8x128xf32>
    %cst_68 = arith.constant 1.000000e+00 : f32
    %267 = vector.broadcast %cst_68 : f32 to vector<8x128xf32>
    %268 = arith.addf %267, %266 : vector<8x128xf32>
    %269 = arith.divf %267, %268 : vector<8x128xf32>
    %270 = vector.extract_strided_slice %257 {offsets = [0, 256], sizes = [8, 128], strides = [1, 1]} : vector<8x512xf32> to vector<8x128xf32>
    %271 = math.tanh %270 : vector<8x128xf32>
    %272 = vector.extract_strided_slice %257 {offsets = [0, 384], sizes = [8, 128], strides = [1, 1]} : vector<8x512xf32> to vector<8x128xf32>
    %273 = arith.negf %272 : vector<8x128xf32>
    %274 = math.exp %273 : vector<8x128xf32>
    %cst_69 = arith.constant 1.000000e+00 : f32
    %275 = vector.broadcast %cst_69 : f32 to vector<8x128xf32>
    %276 = arith.addf %275, %274 : vector<8x128xf32>
    %277 = arith.divf %275, %276 : vector<8x128xf32>
    %278 = arith.mulf %269, %251 : vector<8x128xf32>
    %279 = arith.mulf %263, %271 : vector<8x128xf32>
    %280 = arith.addf %278, %279 : vector<8x128xf32>
    %281 = math.tanh %280 : vector<8x128xf32>
    %282 = arith.mulf %277, %281 : vector<8x128xf32>
    %283 = arith.addi %14, %c5_i32 : i32
    %284 = vector.broadcast %283 : i32 to vector<8x1xi32>
    %285 = arith.cmpi slt, %284, %12 : vector<8x1xi32>
    %cst_70 = arith.constant 0.000000e+00 : f32
    %286 = vector.shape_cast %285 : vector<8x1xi1> to vector<8x1xi1>
    %287 = vector.broadcast %286 : vector<8x1xi1> to vector<8x128xi1>
    %288 = vector.broadcast %cst_70 : f32 to vector<8x128xf32>
    %289 = arith.select %287, %282, %288 : vector<8x128xi1>, vector<8x128xf32>
    %290 = vector.shape_cast %289 : vector<8x128xf32> to vector<8x1x128xf32>
    %c0_71 = arith.constant 0 : index
    %291 = arith.index_cast %c5_i32 : i32 to index
    %c0_72 = arith.constant 0 : index
    %292 = vector.load %arg7[%c0_71, %291, %c0_72] : memref<8x8x128xf32, #tpu.memory_space<vmem>>, vector<8x1x128xf32>
    tpu.vector_store %arg7[%c0_71, %291, %c0_72], %290 {strides = array<i32>} : memref<8x8x128xf32, #tpu.memory_space<vmem>>, vector<8x1x128xf32>,
    %293 = vector.shape_cast %285 : vector<8x1xi1> to vector<8x1xi1>
    %294 = vector.broadcast %293 : vector<8x1xi1> to vector<8x128xi1>
    %295 = arith.select %294, %282, %248 : vector<8x128xi1>, vector<8x128xf32>
    %296 = vector.shape_cast %285 : vector<8x1xi1> to vector<8x1xi1>
    %297 = vector.broadcast %296 : vector<8x1xi1> to vector<8x128xi1>
    %298 = arith.select %297, %280, %251 : vector<8x128xi1>, vector<8x128xf32>
    %c6_i32 = arith.constant 6 : i32
    %c0_73 = arith.constant 0 : index
    %299 = arith.index_cast %c6_i32 : i32 to index
    %c0_74 = arith.constant 0 : index
    %300 = vector.load %arg10[%c0_73, %299, %c0_74] : memref<8x8x512xf32, #tpu.memory_space<vmem>>, vector<8x1x512xf32>
    %301 = vector.shape_cast %300 : vector<8x1x512xf32> to vector<8x512xf32>
    %302 = arith.truncf %295 : vector<8x128xf32> to vector<8x128xbf16>
    %cst_75 = arith.constant dense<0.000000e+00> : vector<8x512xf32>
    %303 = tpu.matmul %302, %13, %cst_75 {dimension_numbers = #tpu.dot_dimension_numbers<[1], [0], [0], [1], [0, 0, 1, 1], [], []>} : vector<8x128xbf16>, vector<128x512xbf16>, vector<8x512xf32> -> vector<8x512xf32>
    %304 = arith.addf %301, %303 : vector<8x512xf32>
    %305 = vector.extract_strided_slice %304 {offsets = [0, 0], sizes = [8, 128], strides = [1, 1]} : vector<8x512xf32> to vector<8x128xf32>
    %306 = arith.negf %305 : vector<8x128xf32>
    %307 = math.exp %306 : vector<8x128xf32>
    %cst_76 = arith.constant 1.000000e+00 : f32
    %308 = vector.broadcast %cst_76 : f32 to vector<8x128xf32>
    %309 = arith.addf %308, %307 : vector<8x128xf32>
    %310 = arith.divf %308, %309 : vector<8x128xf32>
    %311 = vector.extract_strided_slice %304 {offsets = [0, 128], sizes = [8, 128], strides = [1, 1]} : vector<8x512xf32> to vector<8x128xf32>
    %312 = arith.negf %311 : vector<8x128xf32>
    %313 = math.exp %312 : vector<8x128xf32>
    %cst_77 = arith.constant 1.000000e+00 : f32
    %314 = vector.broadcast %cst_77 : f32 to vector<8x128xf32>
    %315 = arith.addf %314, %313 : vector<8x128xf32>
    %316 = arith.divf %314, %315 : vector<8x128xf32>
    %317 = vector.extract_strided_slice %304 {offsets = [0, 256], sizes = [8, 128], strides = [1, 1]} : vector<8x512xf32> to vector<8x128xf32>
    %318 = math.tanh %317 : vector<8x128xf32>
    %319 = vector.extract_strided_slice %304 {offsets = [0, 384], sizes = [8, 128], strides = [1, 1]} : vector<8x512xf32> to vector<8x128xf32>
    %320 = arith.negf %319 : vector<8x128xf32>
    %321 = math.exp %320 : vector<8x128xf32>
    %cst_78 = arith.constant 1.000000e+00 : f32
    %322 = vector.broadcast %cst_78 : f32 to vector<8x128xf32>
    %323 = arith.addf %322, %321 : vector<8x128xf32>
    %324 = arith.divf %322, %323 : vector<8x128xf32>
    %325 = arith.mulf %316, %298 : vector<8x128xf32>
    %326 = arith.mulf %310, %318 : vector<8x128xf32>
    %327 = arith.addf %325, %326 : vector<8x128xf32>
    %328 = math.tanh %327 : vector<8x128xf32>
    %329 = arith.mulf %324, %328 : vector<8x128xf32>
    %330 = arith.addi %14, %c6_i32 : i32
    %331 = vector.broadcast %330 : i32 to vector<8x1xi32>
    %332 = arith.cmpi slt, %331, %12 : vector<8x1xi32>
    %cst_79 = arith.constant 0.000000e+00 : f32
    %333 = vector.shape_cast %332 : vector<8x1xi1> to vector<8x1xi1>
    %334 = vector.broadcast %333 : vector<8x1xi1> to vector<8x128xi1>
    %335 = vector.broadcast %cst_79 : f32 to vector<8x128xf32>
    %336 = arith.select %334, %329, %335 : vector<8x128xi1>, vector<8x128xf32>
    %337 = vector.shape_cast %336 : vector<8x128xf32> to vector<8x1x128xf32>
    %c0_80 = arith.constant 0 : index
    %338 = arith.index_cast %c6_i32 : i32 to index
    %c0_81 = arith.constant 0 : index
    %339 = vector.load %arg7[%c0_80, %338, %c0_81] : memref<8x8x128xf32, #tpu.memory_space<vmem>>, vector<8x1x128xf32>
    tpu.vector_store %arg7[%c0_80, %338, %c0_81], %337 {strides = array<i32>} : memref<8x8x128xf32, #tpu.memory_space<vmem>>, vector<8x1x128xf32>,
    %340 = vector.shape_cast %332 : vector<8x1xi1> to vector<8x1xi1>
    %341 = vector.broadcast %340 : vector<8x1xi1> to vector<8x128xi1>
    %342 = arith.select %341, %329, %295 : vector<8x128xi1>, vector<8x128xf32>
    %343 = vector.shape_cast %332 : vector<8x1xi1> to vector<8x1xi1>
    %344 = vector.broadcast %343 : vector<8x1xi1> to vector<8x128xi1>
    %345 = arith.select %344, %327, %298 : vector<8x128xi1>, vector<8x128xf32>
    %c7_i32 = arith.constant 7 : i32
    %c0_82 = arith.constant 0 : index
    %346 = arith.index_cast %c7_i32 : i32 to index
    %c0_83 = arith.constant 0 : index
    %347 = vector.load %arg10[%c0_82, %346, %c0_83] : memref<8x8x512xf32, #tpu.memory_space<vmem>>, vector<8x1x512xf32>
    %348 = vector.shape_cast %347 : vector<8x1x512xf32> to vector<8x512xf32>
    %349 = arith.truncf %342 : vector<8x128xf32> to vector<8x128xbf16>
    %cst_84 = arith.constant dense<0.000000e+00> : vector<8x512xf32>
    %350 = tpu.matmul %349, %13, %cst_84 {dimension_numbers = #tpu.dot_dimension_numbers<[1], [0], [0], [1], [0, 0, 1, 1], [], []>} : vector<8x128xbf16>, vector<128x512xbf16>, vector<8x512xf32> -> vector<8x512xf32>
    %351 = arith.addf %348, %350 : vector<8x512xf32>
    %352 = vector.extract_strided_slice %351 {offsets = [0, 0], sizes = [8, 128], strides = [1, 1]} : vector<8x512xf32> to vector<8x128xf32>
    %353 = arith.negf %352 : vector<8x128xf32>
    %354 = math.exp %353 : vector<8x128xf32>
    %cst_85 = arith.constant 1.000000e+00 : f32
    %355 = vector.broadcast %cst_85 : f32 to vector<8x128xf32>
    %356 = arith.addf %355, %354 : vector<8x128xf32>
    %357 = arith.divf %355, %356 : vector<8x128xf32>
    %358 = vector.extract_strided_slice %351 {offsets = [0, 128], sizes = [8, 128], strides = [1, 1]} : vector<8x512xf32> to vector<8x128xf32>
    %359 = arith.negf %358 : vector<8x128xf32>
    %360 = math.exp %359 : vector<8x128xf32>
    %cst_86 = arith.constant 1.000000e+00 : f32
    %361 = vector.broadcast %cst_86 : f32 to vector<8x128xf32>
    %362 = arith.addf %361, %360 : vector<8x128xf32>
    %363 = arith.divf %361, %362 : vector<8x128xf32>
    %364 = vector.extract_strided_slice %351 {offsets = [0, 256], sizes = [8, 128], strides = [1, 1]} : vector<8x512xf32> to vector<8x128xf32>
    %365 = math.tanh %364 : vector<8x128xf32>
    %366 = vector.extract_strided_slice %351 {offsets = [0, 384], sizes = [8, 128], strides = [1, 1]} : vector<8x512xf32> to vector<8x128xf32>
    %367 = arith.negf %366 : vector<8x128xf32>
    %368 = math.exp %367 : vector<8x128xf32>
    %cst_87 = arith.constant 1.000000e+00 : f32
    %369 = vector.broadcast %cst_87 : f32 to vector<8x128xf32>
    %370 = arith.addf %369, %368 : vector<8x128xf32>
    %371 = arith.divf %369, %370 : vector<8x128xf32>
    %372 = arith.mulf %363, %345 : vector<8x128xf32>
    %373 = arith.mulf %357, %365 : vector<8x128xf32>
    %374 = arith.addf %372, %373 : vector<8x128xf32>
    %375 = math.tanh %374 : vector<8x128xf32>
    %376 = arith.mulf %371, %375 : vector<8x128xf32>
    %377 = arith.addi %14, %c7_i32 : i32
    %378 = vector.broadcast %377 : i32 to vector<8x1xi32>
    %379 = arith.cmpi slt, %378, %12 : vector<8x1xi32>
    %cst_88 = arith.constant 0.000000e+00 : f32
    %380 = vector.shape_cast %379 : vector<8x1xi1> to vector<8x1xi1>
    %381 = vector.broadcast %380 : vector<8x1xi1> to vector<8x128xi1>
    %382 = vector.broadcast %cst_88 : f32 to vector<8x128xf32>
    %383 = arith.select %381, %376, %382 : vector<8x128xi1>, vector<8x128xf32>
    %384 = vector.shape_cast %383 : vector<8x128xf32> to vector<8x1x128xf32>
    %c0_89 = arith.constant 0 : index
    %385 = arith.index_cast %c7_i32 : i32 to index
    %c0_90 = arith.constant 0 : index
    %386 = vector.load %arg7[%c0_89, %385, %c0_90] : memref<8x8x128xf32, #tpu.memory_space<vmem>>, vector<8x1x128xf32>
    tpu.vector_store %arg7[%c0_89, %385, %c0_90], %384 {strides = array<i32>} : memref<8x8x128xf32, #tpu.memory_space<vmem>>, vector<8x1x128xf32>,
    %387 = vector.shape_cast %379 : vector<8x1xi1> to vector<8x1xi1>
    %388 = vector.broadcast %387 : vector<8x1xi1> to vector<8x128xi1>
    %389 = arith.select %388, %376, %342 : vector<8x128xi1>, vector<8x128xf32>
    %390 = vector.shape_cast %379 : vector<8x1xi1> to vector<8x1xi1>
    %391 = vector.broadcast %390 : vector<8x1xi1> to vector<8x128xi1>
    %392 = arith.select %391, %374, %345 : vector<8x128xi1>, vector<8x128xf32>
    %c8_i32_91 = arith.constant 8 : i32
    %c0_92 = arith.constant 0 : index
    %c0_93 = arith.constant 0 : index
    %393 = vector.load %arg8[%c0_92, %c0_93] : memref<8x128xf32, #tpu.memory_space<vmem>>, vector<8x128xf32>
    tpu.vector_store %arg8[%c0_92, %c0_93], %389 {strides = array<i32>} : memref<8x128xf32, #tpu.memory_space<vmem>>, vector<8x128xf32>,
    %c0_94 = arith.constant 0 : index
    %c0_95 = arith.constant 0 : index
    %394 = vector.load %arg9[%c0_94, %c0_95] : memref<8x128xf32, #tpu.memory_space<vmem>>, vector<8x128xf32>
    tpu.vector_store %arg9[%c0_94, %c0_95], %392 {strides = array<i32>} : memref<8x128xf32, #tpu.memory_space<vmem>>, vector<8x128xf32>,
    return
  }
  func.func @transform_0(%arg0: i32, %arg1: i32) -> (i32, i32) {
    %c0_i32 = arith.constant 0 : i32
    %c0_i32_0 = arith.constant 0 : i32
    return %arg0, %c0_i32 : i32, i32
  }
  func.func @transform_1(%arg0: i32, %arg1: i32) -> (i32, i32, i32) {
    %c0_i32 = arith.constant 0 : i32
    %c0_i32_0 = arith.constant 0 : i32
    return %arg0, %arg1, %c0_i32 : i32, i32, i32
  }
  func.func @transform_2(%arg0: i32, %arg1: i32) -> (i32, i32) {
    %c0_i32 = arith.constant 0 : i32
    %c0_i32_0 = arith.constant 0 : i32
    %c0_i32_1 = arith.constant 0 : i32
    return %c0_i32, %c0_i32_0 : i32, i32
  }
  func.func @transform_3(%arg0: i32, %arg1: i32) -> (i32, i32) {
    %c0_i32 = arith.constant 0 : i32
    %c0_i32_0 = arith.constant 0 : i32
    %c0_i32_1 = arith.constant 0 : i32
    return %c0_i32, %c0_i32_0 : i32, i32
  }
  func.func @transform_4(%arg0: i32, %arg1: i32) -> (i32, i32) {
    %c0_i32 = arith.constant 0 : i32
    %c0_i32_0 = arith.constant 0 : i32
    %c0_i32_1 = arith.constant 0 : i32
    return %c0_i32, %c0_i32_0 : i32, i32
  }
  func.func @transform_5(%arg0: i32, %arg1: i32) -> (i32, i32, i32) {
    %c0_i32 = arith.constant 0 : i32
    %c0_i32_0 = arith.constant 0 : i32
    return %arg0, %arg1, %c0_i32 : i32, i32, i32
  }
  func.func @transform_6(%arg0: i32, %arg1: i32) -> (i32, i32) {
    %c0_i32 = arith.constant 0 : i32
    %c0_i32_0 = arith.constant 0 : i32
    return %arg0, %c0_i32 : i32, i32
  }
  func.func @transform_7(%arg0: i32, %arg1: i32) -> (i32, i32) {
    %c0_i32 = arith.constant 0 : i32
    %c0_i32_0 = arith.constant 0 : i32
    return %arg0, %c0_i32 : i32, i32
  }
}

module attributes {stable_mosaic.version = 11 : i64} {
  func.func @_lstm_kernel(%arg0: i32, %arg1: i32, %arg2: memref<8x1xi32, #tpu.memory_space<vmem>>, %arg3: memref<8x8x16xbf16, #tpu.memory_space<vmem>>, %arg4: memref<16x512xbf16, #tpu.memory_space<vmem>>, %arg5: memref<128x512xbf16, #tpu.memory_space<vmem>>, %arg6: memref<1x512xf32, #tpu.memory_space<vmem>>, %arg7: memref<8x8x128xf32, #tpu.memory_space<vmem>>, %arg8: memref<8x128xf32, #tpu.memory_space<vmem>>, %arg9: memref<8x128xf32, #tpu.memory_space<vmem>>, %arg10: memref<8x8x512xf32, #tpu.memory_space<vmem>>) attributes {dimension_semantics = [#tpu.dimension_semantics<parallel>, #tpu.dimension_semantics<arbitrary>], iteration_bounds = array<i64: 1, 1>, scalar_prefetch = 0 : i64, scratch_operands = 1 : i64, tpu.core_type = #tpu.core_type<tc>, window_params = [{transform_indices = @transform_0, window_bounds = array<i64: 8, 1>}, {transform_indices = @transform_1, window_bounds = array<i64: 8, 8, 16>}, {pipeline_mode = #tpu.pipeline_mode<synchronous>, transform_indices = @transform_2, window_bounds = array<i64: 16, 512>}, {pipeline_mode = #tpu.pipeline_mode<synchronous>, transform_indices = @transform_3, window_bounds = array<i64: 128, 512>}, {pipeline_mode = #tpu.pipeline_mode<synchronous>, transform_indices = @transform_4, window_bounds = array<i64: 1, 512>}, {transform_indices = @transform_5, window_bounds = array<i64: 8, 8, 128>}, {transform_indices = @transform_6, window_bounds = array<i64: 8, 128>}, {transform_indices = @transform_7, window_bounds = array<i64: 8, 128>}]} {
    %c0_i32 = arith.constant 0 : i32
    %0 = arith.cmpi eq, %arg1, %c0_i32 : i32
    %1 = arith.extui %0 : i1 to i32
    %c0_i32_0 = arith.constant 0 : i32
    %2 = arith.cmpi ne, %1, %c0_i32_0 : i32
    scf.if %2 {
      %cst_96 = arith.constant 0.000000e+00 : f32
      %395 = vector.broadcast %cst_96 : f32 to vector<8x128xf32>
      %c0_97 = arith.constant 0 : index
      %c0_98 = arith.constant 0 : index
      %396 = vector.load %arg8[%c0_97, %c0_98] : memref<8x128xf32, #tpu.memory_space<vmem>>, vector<8x128xf32>
      tpu.vector_store %arg8[%c0_97, %c0_98], %395 {strides = array<i32>} : memref<8x128xf32, #tpu.memory_space<vmem>>, vector<8x128xf32>,
      %cst_99 = arith.constant 0.000000e+00 : f32
      %397 = vector.broadcast %cst_99 : f32 to vector<8x128xf32>
      %c0_100 = arith.constant 0 : index
      %c0_101 = arith.constant 0 : index
      %398 = vector.load %arg9[%c0_100, %c0_101] : memref<8x128xf32, #tpu.memory_space<vmem>>, vector<8x128xf32>
      tpu.vector_store %arg9[%c0_100, %c0_101], %397 {strides = array<i32>} : memref<8x128xf32, #tpu.memory_space<vmem>>, vector<8x128xf32>,
    } else {
    }
    %c0 = arith.constant 0 : index
    %c0_1 = arith.constant 0 : index
    %c0_2 = arith.constant 0 : index
    %3 = vector.load %arg3[%c0, %c0_1, %c0_2] : memref<8x8x16xbf16, #tpu.memory_space<vmem>>, vector<8x8x16xbf16>
    %4 = vector.shape_cast %3 : vector<8x8x16xbf16> to vector<64x16xbf16>
    %c0_3 = arith.constant 0 : index
    %c0_4 = arith.constant 0 : index
    %5 = vector.load %arg4[%c0_3, %c0_4] : memref<16x512xbf16, #tpu.memory_space<vmem>>, vector<16x512xbf16>
    %cst = arith.constant dense<0.000000e+00> : vector<64x512xf32>
    %6 = tpu.matmul %4, %5, %cst {dimension_numbers = #tpu.dot_dimension_numbers<[1], [0], [0], [1], [0, 0, 1, 1], [], []>} : vector<64x16xbf16>, vector<16x512xbf16>, vector<64x512xf32> -> vector<64x512xf32>
    %c0_5 = arith.constant 0 : index
    %c0_6 = arith.constant 0 : index
    %7 = vector.load %arg6[%c0_5, %c0_6] : memref<1x512xf32, #tpu.memory_space<vmem>>, vector<1x512xf32>
    %8 = vector.broadcast %7 : vector<1x512xf32> to vector<64x512xf32>
    %9 = arith.addf %6, %8 : vector<64x512xf32>
    %10 = vector.shape_cast %9 : vector<64x512xf32> to vector<8x8x512xf32>
    %c0_7 = arith.constant 0 : index
    %c0_8 = arith.constant 0 : index
    %c0_9 = arith.constant 0 : index
    %11 = vector.load %arg10[%c0_7, %c0_8, %c0_9] : memref<8x8x512xf32, #tpu.memory_space<vmem>>, vector<8x8x512xf32>
    tpu.vector_store %arg10[%c0_7, %c0_8, %c0_9], %10 {strides = array<i32>} : memref<8x8x512xf32, #tpu.memory_space<vmem>>, vector<8x8x512xf32>,
    %c0_10 = arith.constant 0 : index
    %c0_11 = arith.constant 0 : index
    %12 = vector.load %arg2[%c0_10, %c0_11] : memref<8x1xi32, #tpu.memory_space<vmem>>, vector<8x1xi32>
    %c0_12 = arith.constant 0 : index
    %c0_13 = arith.constant 0 : index
    %13 = vector.load %arg5[%c0_12, %c0_13] : memref<128x512xbf16, #tpu.memory_space<vmem>>, vector<128x512xbf16>
    %c8_i32 = arith.constant 8 : i32
    %14 = arith.muli %arg1, %c8_i32 : i32
    %c0_14 = arith.constant 0 : index
    %c0_15 = arith.constant 0 : index
    %15 = vector.load %arg8[%c0_14, %c0_15] : memref<8x128xf32, #tpu.memory_space<vmem>>, vector<8x128xf32>
    %c0_16 = arith.constant 0 : index
    %c0_17 = arith.constant 0 : index
    %16 = vector.load %arg9[%c0_16, %c0_17] : memref<8x128xf32, #tpu.memory_space<vmem>>, vector<8x128xf32>
    %c0_i32_18 = arith.constant 0 : i32
    %c0_19 = arith.constant 0 : index
    %17 = arith.index_cast %c0_i32_18 : i32 to index
    %c0_20 = arith.constant 0 : index
    %18 = vector.load %arg10[%c0_19, %17, %c0_20] : memref<8x8x512xf32, #tpu.memory_space<vmem>>, vector<8x1x512xf32>
    %19 = vector.shape_cast %18 : vector<8x1x512xf32> to vector<8x512xf32>
    %20 = arith.truncf %15 : vector<8x128xf32> to vector<8x128xbf16>
    %cst_21 = arith.constant dense<0.000000e+00> : vector<8x512xf32>
    %21 = tpu.matmul %20, %13, %cst_21 {dimension_numbers = #tpu.dot_dimension_numbers<[1], [0], [0], [1], [0, 0, 1, 1], [], []>} : vector<8x128xbf16>, vector<128x512xbf16>, vector<8x512xf32> -> vector<8x512xf32>
    %22 = arith.addf %19, %21 : vector<8x512xf32>
    %23 = vector.extract_strided_slice %22 {offsets = [0, 0], sizes = [8, 128], strides = [1, 1]} : vector<8x512xf32> to vector<8x128xf32>
    %24 = arith.negf %23 : vector<8x128xf32>
    %25 = math.exp %24 : vector<8x128xf32>
    %cst_22 = arith.constant 1.000000e+00 : f32
    %26 = vector.broadcast %cst_22 : f32 to vector<8x128xf32>
    %27 = arith.addf %26, %25 : vector<8x128xf32>
    %28 = arith.divf %26, %27 : vector<8x128xf32>
    %29 = vector.extract_strided_slice %22 {offsets = [0, 128], sizes = [8, 128], strides = [1, 1]} : vector<8x512xf32> to vector<8x128xf32>
    %30 = arith.negf %29 : vector<8x128xf32>
    %31 = math.exp %30 : vector<8x128xf32>
    %cst_23 = arith.constant 1.000000e+00 : f32
    %32 = vector.broadcast %cst_23 : f32 to vector<8x128xf32>
    %33 = arith.addf %32, %31 : vector<8x128xf32>
    %34 = arith.divf %32, %33 : vector<8x128xf32>
    %35 = vector.extract_strided_slice %22 {offsets = [0, 256], sizes = [8, 128], strides = [1, 1]} : vector<8x512xf32> to vector<8x128xf32>
    %36 = math.tanh %35 : vector<8x128xf32>
    %37 = vector.extract_strided_slice %22 {offsets = [0, 384], sizes = [8, 128], strides = [1, 1]} : vector<8x512xf32> to vector<8x128xf32>
    %38 = arith.negf %37 : vector<8x128xf32>
    %39 = math.exp %38 : vector<8x128xf32>
    %cst_24 = arith.constant 1.000000e+00 : f32
    %40 = vector.broadcast %cst_24 : f32 to vector<8x128xf32>
    %41 = arith.addf %40, %39 : vector<8x128xf32>
    %42 = arith.divf %40, %41 : vector<8x128xf32>
    %43 = arith.mulf %34, %16 : vector<8x128xf32>
    %44 = arith.mulf %28, %36 : vector<8x128xf32>
    %45 = arith.addf %43, %44 : vector<8x128xf32>
    %46 = math.tanh %45 : vector<8x128xf32>
    %47 = arith.mulf %42, %46 : vector<8x128xf32>
    %48 = arith.addi %14, %c0_i32_18 : i32
    %49 = vector.broadcast %48 : i32 to vector<8x1xi32>
    %50 = arith.cmpi slt, %49, %12 : vector<8x1xi32>
    %cst_25 = arith.constant 0.000000e+00 : f32
    %51 = vector.shape_cast %50 : vector<8x1xi1> to vector<8x1xi1>
    %52 = vector.broadcast %51 : vector<8x1xi1> to vector<8x128xi1>
    %53 = vector.broadcast %cst_25 : f32 to vector<8x128xf32>
    %54 = arith.select %52, %47, %53 : vector<8x128xi1>, vector<8x128xf32>
    %55 = vector.shape_cast %54 : vector<8x128xf32> to vector<8x1x128xf32>
    %c0_26 = arith.constant 0 : index
    %56 = arith.index_cast %c0_i32_18 : i32 to index
    %c0_27 = arith.constant 0 : index
    %57 = vector.load %arg7[%c0_26, %56, %c0_27] : memref<8x8x128xf32, #tpu.memory_space<vmem>>, vector<8x1x128xf32>
    tpu.vector_store %arg7[%c0_26, %56, %c0_27], %55 {strides = array<i32>} : memref<8x8x128xf32, #tpu.memory_space<vmem>>, vector<8x1x128xf32>,
    %58 = vector.shape_cast %50 : vector<8x1xi1> to vector<8x1xi1>
    %59 = vector.broadcast %58 : vector<8x1xi1> to vector<8x128xi1>
    %60 = arith.select %59, %47, %15 : vector<8x128xi1>, vector<8x128xf32>
    %61 = vector.shape_cast %50 : vector<8x1xi1> to vector<8x1xi1>
    %62 = vector.broadcast %61 : vector<8x1xi1> to vector<8x128xi1>
    %63 = arith.select %62, %45, %16 : vector<8x128xi1>, vector<8x128xf32>
    %c1_i32 = arith.constant 1 : i32
    %c0_28 = arith.constant 0 : index
    %64 = arith.index_cast %c1_i32 : i32 to index
    %c0_29 = arith.constant 0 : index
    %65 = vector.load %arg10[%c0_28, %64, %c0_29] : memref<8x8x512xf32, #tpu.memory_space<vmem>>, vector<8x1x512xf32>
    %66 = vector.shape_cast %65 : vector<8x1x512xf32> to vector<8x512xf32>
    %67 = arith.truncf %60 : vector<8x128xf32> to vector<8x128xbf16>
    %cst_30 = arith.constant dense<0.000000e+00> : vector<8x512xf32>
    %68 = tpu.matmul %67, %13, %cst_30 {dimension_numbers = #tpu.dot_dimension_numbers<[1], [0], [0], [1], [0, 0, 1, 1], [], []>} : vector<8x128xbf16>, vector<128x512xbf16>, vector<8x512xf32> -> vector<8x512xf32>
    %69 = arith.addf %66, %68 : vector<8x512xf32>
    %70 = vector.extract_strided_slice %69 {offsets = [0, 0], sizes = [8, 128], strides = [1, 1]} : vector<8x512xf32> to vector<8x128xf32>
    %71 = arith.negf %70 : vector<8x128xf32>
    %72 = math.exp %71 : vector<8x128xf32>
    %cst_31 = arith.constant 1.000000e+00 : f32
    %73 = vector.broadcast %cst_31 : f32 to vector<8x128xf32>
    %74 = arith.addf %73, %72 : vector<8x128xf32>
    %75 = arith.divf %73, %74 : vector<8x128xf32>
    %76 = vector.extract_strided_slice %69 {offsets = [0, 128], sizes = [8, 128], strides = [1, 1]} : vector<8x512xf32> to vector<8x128xf32>
    %77 = arith.negf %76 : vector<8x128xf32>
    %78 = math.exp %77 : vector<8x128xf32>
    %cst_32 = arith.constant 1.000000e+00 : f32
    %79 = vector.broadcast %cst_32 : f32 to vector<8x128xf32>
    %80 = arith.addf %79, %78 : vector<8x128xf32>
    %81 = arith.divf %79, %80 : vector<8x128xf32>
    %82 = vector.extract_strided_slice %69 {offsets = [0, 256], sizes = [8, 128], strides = [1, 1]} : vector<8x512xf32> to vector<8x128xf32>
    %83 = math.tanh %82 : vector<8x128xf32>
    %84 = vector.extract_strided_slice %69 {offsets = [0, 384], sizes = [8, 128], strides = [1, 1]} : vector<8x512xf32> to vector<8x128xf32>
    %85 = arith.negf %84 : vector<8x128xf32>
    %86 = math.exp %85 : vector<8x128xf32>
    %cst_33 = arith.constant 1.000000e+00 : f32
    %87 = vector.broadcast %cst_33 : f32 to vector<8x128xf32>
    %88 = arith.addf %87, %86 : vector<8x128xf32>
    %89 = arith.divf %87, %88 : vector<8x128xf32>
    %90 = arith.mulf %81, %63 : vector<8x128xf32>
    %91 = arith.mulf %75, %83 : vector<8x128xf32>
    %92 = arith.addf %90, %91 : vector<8x128xf32>
    %93 = math.tanh %92 : vector<8x128xf32>
    %94 = arith.mulf %89, %93 : vector<8x128xf32>
    %95 = arith.addi %14, %c1_i32 : i32
    %96 = vector.broadcast %95 : i32 to vector<8x1xi32>
    %97 = arith.cmpi slt, %96, %12 : vector<8x1xi32>
    %cst_34 = arith.constant 0.000000e+00 : f32
    %98 = vector.shape_cast %97 : vector<8x1xi1> to vector<8x1xi1>
    %99 = vector.broadcast %98 : vector<8x1xi1> to vector<8x128xi1>
    %100 = vector.broadcast %cst_34 : f32 to vector<8x128xf32>
    %101 = arith.select %99, %94, %100 : vector<8x128xi1>, vector<8x128xf32>
    %102 = vector.shape_cast %101 : vector<8x128xf32> to vector<8x1x128xf32>
    %c0_35 = arith.constant 0 : index
    %103 = arith.index_cast %c1_i32 : i32 to index
    %c0_36 = arith.constant 0 : index
    %104 = vector.load %arg7[%c0_35, %103, %c0_36] : memref<8x8x128xf32, #tpu.memory_space<vmem>>, vector<8x1x128xf32>
    tpu.vector_store %arg7[%c0_35, %103, %c0_36], %102 {strides = array<i32>} : memref<8x8x128xf32, #tpu.memory_space<vmem>>, vector<8x1x128xf32>,
    %105 = vector.shape_cast %97 : vector<8x1xi1> to vector<8x1xi1>
    %106 = vector.broadcast %105 : vector<8x1xi1> to vector<8x128xi1>
    %107 = arith.select %106, %94, %60 : vector<8x128xi1>, vector<8x128xf32>
    %108 = vector.shape_cast %97 : vector<8x1xi1> to vector<8x1xi1>
    %109 = vector.broadcast %108 : vector<8x1xi1> to vector<8x128xi1>
    %110 = arith.select %109, %92, %63 : vector<8x128xi1>, vector<8x128xf32>
    %c2_i32 = arith.constant 2 : i32
    %c0_37 = arith.constant 0 : index
    %111 = arith.index_cast %c2_i32 : i32 to index
    %c0_38 = arith.constant 0 : index
    %112 = vector.load %arg10[%c0_37, %111, %c0_38] : memref<8x8x512xf32, #tpu.memory_space<vmem>>, vector<8x1x512xf32>
    %113 = vector.shape_cast %112 : vector<8x1x512xf32> to vector<8x512xf32>
    %114 = arith.truncf %107 : vector<8x128xf32> to vector<8x128xbf16>
    %cst_39 = arith.constant dense<0.000000e+00> : vector<8x512xf32>
    %115 = tpu.matmul %114, %13, %cst_39 {dimension_numbers = #tpu.dot_dimension_numbers<[1], [0], [0], [1], [0, 0, 1, 1], [], []>} : vector<8x128xbf16>, vector<128x512xbf16>, vector<8x512xf32> -> vector<8x512xf32>
    %116 = arith.addf %113, %115 : vector<8x512xf32>
    %117 = vector.extract_strided_slice %116 {offsets = [0, 0], sizes = [8, 128], strides = [1, 1]} : vector<8x512xf32> to vector<8x128xf32>
    %118 = arith.negf %117 : vector<8x128xf32>
    %119 = math.exp %118 : vector<8x128xf32>
    %cst_40 = arith.constant 1.000000e+00 : f32
    %120 = vector.broadcast %cst_40 : f32 to vector<8x128xf32>
    %121 = arith.addf %120, %119 : vector<8x128xf32>
    %122 = arith.divf %120, %121 : vector<8x128xf32>
    %123 = vector.extract_strided_slice %116 {offsets = [0, 128], sizes = [8, 128], strides = [1, 1]} : vector<8x512xf32> to vector<8x128xf32>
    %124 = arith.negf %123 : vector<8x128xf32>
    %125 = math.exp %124 : vector<8x128xf32>
    %cst_41 = arith.constant 1.000000e+00 : f32
    %126 = vector.broadcast %cst_41 : f32 to vector<8x128xf32>
    %127 = arith.addf %126, %125 : vector<8x128xf32>
    %128 = arith.divf %126, %127 : vector<8x128xf32>
    %129 = vector.extract_strided_slice %116 {offsets = [0, 256], sizes = [8, 128], strides = [1, 1]} : vector<8x512xf32> to vector<8x128xf32>
    %130 = math.tanh %129 : vector<8x128xf32>
    %131 = vector.extract_strided_slice %116 {offsets = [0, 384], sizes = [8, 128], strides = [1, 1]} : vector<8x512xf32> to vector<8x128xf32>
    %132 = arith.negf %131 : vector<8x128xf32>
    %133 = math.exp %132 : vector<8x128xf32>
    %cst_42 = arith.constant 1.000000e+00 : f32
    %134 = vector.broadcast %cst_42 : f32 to vector<8x128xf32>
    %135 = arith.addf %134, %133 : vector<8x128xf32>
    %136 = arith.divf %134, %135 : vector<8x128xf32>
    %137 = arith.mulf %128, %110 : vector<8x128xf32>
    %138 = arith.mulf %122, %130 : vector<8x128xf32>
    %139 = arith.addf %137, %138 : vector<8x128xf32>
    %140 = math.tanh %139 : vector<8x128xf32>
    %141 = arith.mulf %136, %140 : vector<8x128xf32>
    %142 = arith.addi %14, %c2_i32 : i32
    %143 = vector.broadcast %142 : i32 to vector<8x1xi32>
    %144 = arith.cmpi slt, %143, %12 : vector<8x1xi32>
    %cst_43 = arith.constant 0.000000e+00 : f32
    %145 = vector.shape_cast %144 : vector<8x1xi1> to vector<8x1xi1>
    %146 = vector.broadcast %145 : vector<8x1xi1> to vector<8x128xi1>
    %147 = vector.broadcast %cst_43 : f32 to vector<8x128xf32>
    %148 = arith.select %146, %141, %147 : vector<8x128xi1>, vector<8x128xf32>
    %149 = vector.shape_cast %148 : vector<8x128xf32> to vector<8x1x128xf32>
    %c0_44 = arith.constant 0 : index
    %150 = arith.index_cast %c2_i32 : i32 to index
    %c0_45 = arith.constant 0 : index
    %151 = vector.load %arg7[%c0_44, %150, %c0_45] : memref<8x8x128xf32, #tpu.memory_space<vmem>>, vector<8x1x128xf32>
    tpu.vector_store %arg7[%c0_44, %150, %c0_45], %149 {strides = array<i32>} : memref<8x8x128xf32, #tpu.memory_space<vmem>>, vector<8x1x128xf32>,
    %152 = vector.shape_cast %144 : vector<8x1xi1> to vector<8x1xi1>
    %153 = vector.broadcast %152 : vector<8x1xi1> to vector<8x128xi1>
    %154 = arith.select %153, %141, %107 : vector<8x128xi1>, vector<8x128xf32>
    %155 = vector.shape_cast %144 : vector<8x1xi1> to vector<8x1xi1>
    %156 = vector.broadcast %155 : vector<8x1xi1> to vector<8x128xi1>
    %157 = arith.select %156, %139, %110 : vector<8x128xi1>, vector<8x128xf32>
    %c3_i32 = arith.constant 3 : i32
    %c0_46 = arith.constant 0 : index
    %158 = arith.index_cast %c3_i32 : i32 to index
    %c0_47 = arith.constant 0 : index
    %159 = vector.load %arg10[%c0_46, %158, %c0_47] : memref<8x8x512xf32, #tpu.memory_space<vmem>>, vector<8x1x512xf32>
    %160 = vector.shape_cast %159 : vector<8x1x512xf32> to vector<8x512xf32>
    %161 = arith.truncf %154 : vector<8x128xf32> to vector<8x128xbf16>
    %cst_48 = arith.constant dense<0.000000e+00> : vector<8x512xf32>
    %162 = tpu.matmul %161, %13, %cst_48 {dimension_numbers = #tpu.dot_dimension_numbers<[1], [0], [0], [1], [0, 0, 1, 1], [], []>} : vector<8x128xbf16>, vector<128x512xbf16>, vector<8x512xf32> -> vector<8x512xf32>
    %163 = arith.addf %160, %162 : vector<8x512xf32>
    %164 = vector.extract_strided_slice %163 {offsets = [0, 0], sizes = [8, 128], strides = [1, 1]} : vector<8x512xf32> to vector<8x128xf32>
    %165 = arith.negf %164 : vector<8x128xf32>
    %166 = math.exp %165 : vector<8x128xf32>
    %cst_49 = arith.constant 1.000000e+00 : f32
    %167 = vector.broadcast %cst_49 : f32 to vector<8x128xf32>
    %168 = arith.addf %167, %166 : vector<8x128xf32>
    %169 = arith.divf %167, %168 : vector<8x128xf32>
    %170 = vector.extract_strided_slice %163 {offsets = [0, 128], sizes = [8, 128], strides = [1, 1]} : vector<8x512xf32> to vector<8x128xf32>
    %171 = arith.negf %170 : vector<8x128xf32>
    %172 = math.exp %171 : vector<8x128xf32>
    %cst_50 = arith.constant 1.000000e+00 : f32
    %173 = vector.broadcast %cst_50 : f32 to vector<8x128xf32>
    %174 = arith.addf %173, %172 : vector<8x128xf32>
    %175 = arith.divf %173, %174 : vector<8x128xf32>
    %176 = vector.extract_strided_slice %163 {offsets = [0, 256], sizes = [8, 128], strides = [1, 1]} : vector<8x512xf32> to vector<8x128xf32>
    %177 = math.tanh %176 : vector<8x128xf32>
    %178 = vector.extract_strided_slice %163 {offsets = [0, 384], sizes = [8, 128], strides = [1, 1]} : vector<8x512xf32> to vector<8x128xf32>
    %179 = arith.negf %178 : vector<8x128xf32>
    %180 = math.exp %179 : vector<8x128xf32>
    %cst_51 = arith.constant 1.000000e+00 : f32
    %181 = vector.broadcast %cst_51 : f32 to vector<8x128xf32>
    %182 = arith.addf %181, %180 : vector<8x128xf32>
    %183 = arith.divf %181, %182 : vector<8x128xf32>
    %184 = arith.mulf %175, %157 : vector<8x128xf32>
    %185 = arith.mulf %169, %177 : vector<8x128xf32>
    %186 = arith.addf %184, %185 : vector<8x128xf32>
    %187 = math.tanh %186 : vector<8x128xf32>
    %188 = arith.mulf %183, %187 : vector<8x128xf32>
    %189 = arith.addi %14, %c3_i32 : i32
    %190 = vector.broadcast %189 : i32 to vector<8x1xi32>
    %191 = arith.cmpi slt, %190, %12 : vector<8x1xi32>
    %cst_52 = arith.constant 0.000000e+00 : f32
    %192 = vector.shape_cast %191 : vector<8x1xi1> to vector<8x1xi1>
    %193 = vector.broadcast %192 : vector<8x1xi1> to vector<8x128xi1>
    %194 = vector.broadcast %cst_52 : f32 to vector<8x128xf32>
    %195 = arith.select %193, %188, %194 : vector<8x128xi1>, vector<8x128xf32>
    %196 = vector.shape_cast %195 : vector<8x128xf32> to vector<8x1x128xf32>
    %c0_53 = arith.constant 0 : index
    %197 = arith.index_cast %c3_i32 : i32 to index
    %c0_54 = arith.constant 0 : index
    %198 = vector.load %arg7[%c0_53, %197, %c0_54] : memref<8x8x128xf32, #tpu.memory_space<vmem>>, vector<8x1x128xf32>
    tpu.vector_store %arg7[%c0_53, %197, %c0_54], %196 {strides = array<i32>} : memref<8x8x128xf32, #tpu.memory_space<vmem>>, vector<8x1x128xf32>,
    %199 = vector.shape_cast %191 : vector<8x1xi1> to vector<8x1xi1>
    %200 = vector.broadcast %199 : vector<8x1xi1> to vector<8x128xi1>
    %201 = arith.select %200, %188, %154 : vector<8x128xi1>, vector<8x128xf32>
    %202 = vector.shape_cast %191 : vector<8x1xi1> to vector<8x1xi1>
    %203 = vector.broadcast %202 : vector<8x1xi1> to vector<8x128xi1>
    %204 = arith.select %203, %186, %157 : vector<8x128xi1>, vector<8x128xf32>
    %c4_i32 = arith.constant 4 : i32
    %c0_55 = arith.constant 0 : index
    %205 = arith.index_cast %c4_i32 : i32 to index
    %c0_56 = arith.constant 0 : index
    %206 = vector.load %arg10[%c0_55, %205, %c0_56] : memref<8x8x512xf32, #tpu.memory_space<vmem>>, vector<8x1x512xf32>
    %207 = vector.shape_cast %206 : vector<8x1x512xf32> to vector<8x512xf32>
    %208 = arith.truncf %201 : vector<8x128xf32> to vector<8x128xbf16>
    %cst_57 = arith.constant dense<0.000000e+00> : vector<8x512xf32>
    %209 = tpu.matmul %208, %13, %cst_57 {dimension_numbers = #tpu.dot_dimension_numbers<[1], [0], [0], [1], [0, 0, 1, 1], [], []>} : vector<8x128xbf16>, vector<128x512xbf16>, vector<8x512xf32> -> vector<8x512xf32>
    %210 = arith.addf %207, %209 : vector<8x512xf32>
    %211 = vector.extract_strided_slice %210 {offsets = [0, 0], sizes = [8, 128], strides = [1, 1]} : vector<8x512xf32> to vector<8x128xf32>
    %212 = arith.negf %211 : vector<8x128xf32>
    %213 = math.exp %212 : vector<8x128xf32>
    %cst_58 = arith.constant 1.000000e+00 : f32
    %214 = vector.broadcast %cst_58 : f32 to vector<8x128xf32>
    %215 = arith.addf %214, %213 : vector<8x128xf32>
    %216 = arith.divf %214, %215 : vector<8x128xf32>
    %217 = vector.extract_strided_slice %210 {offsets = [0, 128], sizes = [8, 128], strides = [1, 1]} : vector<8x512xf32> to vector<8x128xf32>
    %218 = arith.negf %217 : vector<8x128xf32>
    %219 = math.exp %218 : vector<8x128xf32>
    %cst_59 = arith.constant 1.000000e+00 : f32
    %220 = vector.broadcast %cst_59 : f32 to vector<8x128xf32>
    %221 = arith.addf %220, %219 : vector<8x128xf32>
    %222 = arith.divf %220, %221 : vector<8x128xf32>
    %223 = vector.extract_strided_slice %210 {offsets = [0, 256], sizes = [8, 128], strides = [1, 1]} : vector<8x512xf32> to vector<8x128xf32>
    %224 = math.tanh %223 : vector<8x128xf32>
    %225 = vector.extract_strided_slice %210 {offsets = [0, 384], sizes = [8, 128], strides = [1, 1]} : vector<8x512xf32> to vector<8x128xf32>
    %226 = arith.negf %225 : vector<8x128xf32>
    %227 = math.exp %226 : vector<8x128xf32>
    %cst_60 = arith.constant 1.000000e+00 : f32
    %228 = vector.broadcast %cst_60 : f32 to vector<8x128xf32>
    %229 = arith.addf %228, %227 : vector<8x128xf32>
    %230 = arith.divf %228, %229 : vector<8x128xf32>
    %231 = arith.mulf %222, %204 : vector<8x128xf32>
    %232 = arith.mulf %216, %224 : vector<8x128xf32>
    %233 = arith.addf %231, %232 : vector<8x128xf32>
    %234 = math.tanh %233 : vector<8x128xf32>
    %235 = arith.mulf %230, %234 : vector<8x128xf32>
    %236 = arith.addi %14, %c4_i32 : i32
    %237 = vector.broadcast %236 : i32 to vector<8x1xi32>
    %238 = arith.cmpi slt, %237, %12 : vector<8x1xi32>
    %cst_61 = arith.constant 0.000000e+00 : f32
    %239 = vector.shape_cast %238 : vector<8x1xi1> to vector<8x1xi1>
    %240 = vector.broadcast %239 : vector<8x1xi1> to vector<8x128xi1>
    %241 = vector.broadcast %cst_61 : f32 to vector<8x128xf32>
    %242 = arith.select %240, %235, %241 : vector<8x128xi1>, vector<8x128xf32>
    %243 = vector.shape_cast %242 : vector<8x128xf32> to vector<8x1x128xf32>
    %c0_62 = arith.constant 0 : index
    %244 = arith.index_cast %c4_i32 : i32 to index
    %c0_63 = arith.constant 0 : index
    %245 = vector.load %arg7[%c0_62, %244, %c0_63] : memref<8x8x128xf32, #tpu.memory_space<vmem>>, vector<8x1x128xf32>
    tpu.vector_store %arg7[%c0_62, %244, %c0_63], %243 {strides = array<i32>} : memref<8x8x128xf32, #tpu.memory_space<vmem>>, vector<8x1x128xf32>,
    %246 = vector.shape_cast %238 : vector<8x1xi1> to vector<8x1xi1>
    %247 = vector.broadcast %246 : vector<8x1xi1> to vector<8x128xi1>
    %248 = arith.select %247, %235, %201 : vector<8x128xi1>, vector<8x128xf32>
    %249 = vector.shape_cast %238 : vector<8x1xi1> to vector<8x1xi1>
    %250 = vector.broadcast %249 : vector<8x1xi1> to vector<8x128xi1>
    %251 = arith.select %250, %233, %204 : vector<8x128xi1>, vector<8x128xf32>
    %c5_i32 = arith.constant 5 : i32
    %c0_64 = arith.constant 0 : index
    %252 = arith.index_cast %c5_i32 : i32 to index
    %c0_65 = arith.constant 0 : index
    %253 = vector.load %arg10[%c0_64, %252, %c0_65] : memref<8x8x512xf32, #tpu.memory_space<vmem>>, vector<8x1x512xf32>
    %254 = vector.shape_cast %253 : vector<8x1x512xf32> to vector<8x512xf32>
    %255 = arith.truncf %248 : vector<8x128xf32> to vector<8x128xbf16>
    %cst_66 = arith.constant dense<0.000000e+00> : vector<8x512xf32>
    %256 = tpu.matmul %255, %13, %cst_66 {dimension_numbers = #tpu.dot_dimension_numbers<[1], [0], [0], [1], [0, 0, 1, 1], [], []>} : vector<8x128xbf16>, vector<128x512xbf16>, vector<8x512xf32> -> vector<8x512xf32>
    %257 = arith.addf %254, %256 : vector<8x512xf32>
    %258 = vector.extract_strided_slice %257 {offsets = [0, 0], sizes = [8, 128], strides = [1, 1]} : vector<8x512xf32> to vector<8x128xf32>
    %259 = arith.negf %258 : vector<8x128xf32>
    %260 = math.exp %259 : vector<8x128xf32>
    %cst_67 = arith.constant 1.000000e+00 : f32
    %261 = vector.broadcast %cst_67 : f32 to vector<8x128xf32>
    %262 = arith.addf %261, %260 : vector<8x128xf32>
    %263 = arith.divf %261, %262 : vector<8x128xf32>
    %264 = vector.extract_strided_slice %257 {offsets = [0, 128], sizes = [8, 128], strides = [1, 1]} : vector<8x512xf32> to vector<8x128xf32>
    %265 = arith.negf %264 : vector<8x128xf32>
    %266 = math.exp %265 : vector<8x128xf32>
    %cst_68 = arith.constant 1.000000e+00 : f32
    %267 = vector.broadcast %cst_68 : f32 to vector<8x128xf32>
    %268 = arith.addf %267, %266 : vector<8x128xf32>
    %269 = arith.divf %267, %268 : vector<8x128xf32>
    %270 = vector.extract_strided_slice %257 {offsets = [0, 256], sizes = [8, 128], strides = [1, 1]} : vector<8x512xf32> to vector<8x128xf32>
    %271 = math.tanh %270 : vector<8x128xf32>
    %272 = vector.extract_strided_slice %257 {offsets = [0, 384], sizes = [8, 128], strides = [1, 1]} : vector<8x512xf32> to vector<8x128xf32>
    %273 = arith.negf %272 : vector<8x128xf32>
    %274 = math.exp %273 : vector<8x128xf32>
    %cst_69 = arith.constant 1.000000e+00 : f32
    %275 = vector.broadcast %cst_69 : f32 to vector<8x128xf32>
    %276 = arith.addf %275, %274 : vector<8x128xf32>
    %277 = arith.divf %275, %276 : vector<8x128xf32>
    %278 = arith.mulf %269, %251 : vector<8x128xf32>
    %279 = arith.mulf %263, %271 : vector<8x128xf32>
    %280 = arith.addf %278, %279 : vector<8x128xf32>
    %281 = math.tanh %280 : vector<8x128xf32>
    %282 = arith.mulf %277, %281 : vector<8x128xf32>
    %283 = arith.addi %14, %c5_i32 : i32
    %284 = vector.broadcast %283 : i32 to vector<8x1xi32>
    %285 = arith.cmpi slt, %284, %12 : vector<8x1xi32>
    %cst_70 = arith.constant 0.000000e+00 : f32
    %286 = vector.shape_cast %285 : vector<8x1xi1> to vector<8x1xi1>
    %287 = vector.broadcast %286 : vector<8x1xi1> to vector<8x128xi1>
    %288 = vector.broadcast %cst_70 : f32 to vector<8x128xf32>
    %289 = arith.select %287, %282, %288 : vector<8x128xi1>, vector<8x128xf32>
    %290 = vector.shape_cast %289 : vector<8x128xf32> to vector<8x1x128xf32>
    %c0_71 = arith.constant 0 : index
    %291 = arith.index_cast %c5_i32 : i32 to index
    %c0_72 = arith.constant 0 : index
    %292 = vector.load %arg7[%c0_71, %291, %c0_72] : memref<8x8x128xf32, #tpu.memory_space<vmem>>, vector<8x1x128xf32>
    tpu.vector_store %arg7[%c0_71, %291, %c0_72], %290 {strides = array<i32>} : memref<8x8x128xf32, #tpu.memory_space<vmem>>, vector<8x1x128xf32>,
    %293 = vector.shape_cast %285 : vector<8x1xi1> to vector<8x1xi1>
    %294 = vector.broadcast %293 : vector<8x1xi1> to vector<8x128xi1>
    %295 = arith.select %294, %282, %248 : vector<8x128xi1>, vector<8x128xf32>
    %296 = vector.shape_cast %285 : vector<8x1xi1> to vector<8x1xi1>
    %297 = vector.broadcast %296 : vector<8x1xi1> to vector<8x128xi1>
    %298 = arith.select %297, %280, %251 : vector<8x128xi1>, vector<8x128xf32>
    %c6_i32 = arith.constant 6 : i32
    %c0_73 = arith.constant 0 : index
    %299 = arith.index_cast %c6_i32 : i32 to index
    %c0_74 = arith.constant 0 : index
    %300 = vector.load %arg10[%c0_73, %299, %c0_74] : memref<8x8x512xf32, #tpu.memory_space<vmem>>, vector<8x1x512xf32>
    %301 = vector.shape_cast %300 : vector<8x1x512xf32> to vector<8x512xf32>
    %302 = arith.truncf %295 : vector<8x128xf32> to vector<8x128xbf16>
    %cst_75 = arith.constant dense<0.000000e+00> : vector<8x512xf32>
    %303 = tpu.matmul %302, %13, %cst_75 {dimension_numbers = #tpu.dot_dimension_numbers<[1], [0], [0], [1], [0, 0, 1, 1], [], []>} : vector<8x128xbf16>, vector<128x512xbf16>, vector<8x512xf32> -> vector<8x512xf32>
    %304 = arith.addf %301, %303 : vector<8x512xf32>
    %305 = vector.extract_strided_slice %304 {offsets = [0, 0], sizes = [8, 128], strides = [1, 1]} : vector<8x512xf32> to vector<8x128xf32>
    %306 = arith.negf %305 : vector<8x128xf32>
    %307 = math.exp %306 : vector<8x128xf32>
    %cst_76 = arith.constant 1.000000e+00 : f32
    %308 = vector.broadcast %cst_76 : f32 to vector<8x128xf32>
    %309 = arith.addf %308, %307 : vector<8x128xf32>
    %310 = arith.divf %308, %309 : vector<8x128xf32>
    %311 = vector.extract_strided_slice %304 {offsets = [0, 128], sizes = [8, 128], strides = [1, 1]} : vector<8x512xf32> to vector<8x128xf32>
    %312 = arith.negf %311 : vector<8x128xf32>
    %313 = math.exp %312 : vector<8x128xf32>
    %cst_77 = arith.constant 1.000000e+00 : f32
    %314 = vector.broadcast %cst_77 : f32 to vector<8x128xf32>
    %315 = arith.addf %314, %313 : vector<8x128xf32>
    %316 = arith.divf %314, %315 : vector<8x128xf32>
    %317 = vector.extract_strided_slice %304 {offsets = [0, 256], sizes = [8, 128], strides = [1, 1]} : vector<8x512xf32> to vector<8x128xf32>
    %318 = math.tanh %317 : vector<8x128xf32>
    %319 = vector.extract_strided_slice %304 {offsets = [0, 384], sizes = [8, 128], strides = [1, 1]} : vector<8x512xf32> to vector<8x128xf32>
    %320 = arith.negf %319 : vector<8x128xf32>
    %321 = math.exp %320 : vector<8x128xf32>
    %cst_78 = arith.constant 1.000000e+00 : f32
    %322 = vector.broadcast %cst_78 : f32 to vector<8x128xf32>
    %323 = arith.addf %322, %321 : vector<8x128xf32>
    %324 = arith.divf %322, %323 : vector<8x128xf32>
    %325 = arith.mulf %316, %298 : vector<8x128xf32>
    %326 = arith.mulf %310, %318 : vector<8x128xf32>
    %327 = arith.addf %325, %326 : vector<8x128xf32>
    %328 = math.tanh %327 : vector<8x128xf32>
    %329 = arith.mulf %324, %328 : vector<8x128xf32>
    %330 = arith.addi %14, %c6_i32 : i32
    %331 = vector.broadcast %330 : i32 to vector<8x1xi32>
    %332 = arith.cmpi slt, %331, %12 : vector<8x1xi32>
    %cst_79 = arith.constant 0.000000e+00 : f32
    %333 = vector.shape_cast %332 : vector<8x1xi1> to vector<8x1xi1>
    %334 = vector.broadcast %333 : vector<8x1xi1> to vector<8x128xi1>
    %335 = vector.broadcast %cst_79 : f32 to vector<8x128xf32>
    %336 = arith.select %334, %329, %335 : vector<8x128xi1>, vector<8x128xf32>
    %337 = vector.shape_cast %336 : vector<8x128xf32> to vector<8x1x128xf32>
    %c0_80 = arith.constant 0 : index
    %338 = arith.index_cast %c6_i32 : i32 to index
    %c0_81 = arith.constant 0 : index
    %339 = vector.load %arg7[%c0_80, %338, %c0_81] : memref<8x8x128xf32, #tpu.memory_space<vmem>>, vector<8x1x128xf32>
    tpu.vector_store %arg7[%c0_80, %338, %c0_81], %337 {strides = array<i32>} : memref<8x8x128xf32, #tpu.memory_space<vmem>>, vector<8x1x128xf32>,
    %340 = vector.shape_cast %332 : vector<8x1xi1> to vector<8x1xi1>
    %341 = vector.broadcast %340 : vector<8x1xi1> to vector<8x128xi1>
    %342 = arith.select %341, %329, %295 : vector<8x128xi1>, vector<8x128xf32>
    %343 = vector.shape_cast %332 : vector<8x1xi1> to vector<8x1xi1>
    %344 = vector.broadcast %343 : vector<8x1xi1> to vector<8x128xi1>
    %345 = arith.select %344, %327, %298 : vector<8x128xi1>, vector<8x128xf32>
    %c7_i32 = arith.constant 7 : i32
    %c0_82 = arith.constant 0 : index
    %346 = arith.index_cast %c7_i32 : i32 to index
    %c0_83 = arith.constant 0 : index
    %347 = vector.load %arg10[%c0_82, %346, %c0_83] : memref<8x8x512xf32, #tpu.memory_space<vmem>>, vector<8x1x512xf32>
    %348 = vector.shape_cast %347 : vector<8x1x512xf32> to vector<8x512xf32>
    %349 = arith.truncf %342 : vector<8x128xf32> to vector<8x128xbf16>
    %cst_84 = arith.constant dense<0.000000e+00> : vector<8x512xf32>
    %350 = tpu.matmul %349, %13, %cst_84 {dimension_numbers = #tpu.dot_dimension_numbers<[1], [0], [0], [1], [0, 0, 1, 1], [], []>} : vector<8x128xbf16>, vector<128x512xbf16>, vector<8x512xf32> -> vector<8x512xf32>
    %351 = arith.addf %348, %350 : vector<8x512xf32>
    %352 = vector.extract_strided_slice %351 {offsets = [0, 0], sizes = [8, 128], strides = [1, 1]} : vector<8x512xf32> to vector<8x128xf32>
    %353 = arith.negf %352 : vector<8x128xf32>
    %354 = math.exp %353 : vector<8x128xf32>
    %cst_85 = arith.constant 1.000000e+00 : f32
    %355 = vector.broadcast %cst_85 : f32 to vector<8x128xf32>
    %356 = arith.addf %355, %354 : vector<8x128xf32>
    %357 = arith.divf %355, %356 : vector<8x128xf32>
    %358 = vector.extract_strided_slice %351 {offsets = [0, 128], sizes = [8, 128], strides = [1, 1]} : vector<8x512xf32> to vector<8x128xf32>
    %359 = arith.negf %358 : vector<8x128xf32>
    %360 = math.exp %359 : vector<8x128xf32>
    %cst_86 = arith.constant 1.000000e+00 : f32
    %361 = vector.broadcast %cst_86 : f32 to vector<8x128xf32>
    %362 = arith.addf %361, %360 : vector<8x128xf32>
    %363 = arith.divf %361, %362 : vector<8x128xf32>
    %364 = vector.extract_strided_slice %351 {offsets = [0, 256], sizes = [8, 128], strides = [1, 1]} : vector<8x512xf32> to vector<8x128xf32>
    %365 = math.tanh %364 : vector<8x128xf32>
    %366 = vector.extract_strided_slice %351 {offsets = [0, 384], sizes = [8, 128], strides = [1, 1]} : vector<8x512xf32> to vector<8x128xf32>
    %367 = arith.negf %366 : vector<8x128xf32>
    %368 = math.exp %367 : vector<8x128xf32>
    %cst_87 = arith.constant 1.000000e+00 : f32
    %369 = vector.broadcast %cst_87 : f32 to vector<8x128xf32>
    %370 = arith.addf %369, %368 : vector<8x128xf32>
    %371 = arith.divf %369, %370 : vector<8x128xf32>
    %372 = arith.mulf %363, %345 : vector<8x128xf32>
    %373 = arith.mulf %357, %365 : vector<8x128xf32>
    %374 = arith.addf %372, %373 : vector<8x128xf32>
    %375 = math.tanh %374 : vector<8x128xf32>
    %376 = arith.mulf %371, %375 : vector<8x128xf32>
    %377 = arith.addi %14, %c7_i32 : i32
    %378 = vector.broadcast %377 : i32 to vector<8x1xi32>
    %379 = arith.cmpi slt, %378, %12 : vector<8x1xi32>
    %cst_88 = arith.constant 0.000000e+00 : f32
    %380 = vector.shape_cast %379 : vector<8x1xi1> to vector<8x1xi1>
    %381 = vector.broadcast %380 : vector<8x1xi1> to vector<8x128xi1>
    %382 = vector.broadcast %cst_88 : f32 to vector<8x128xf32>
    %383 = arith.select %381, %376, %382 : vector<8x128xi1>, vector<8x128xf32>
    %384 = vector.shape_cast %383 : vector<8x128xf32> to vector<8x1x128xf32>
    %c0_89 = arith.constant 0 : index
    %385 = arith.index_cast %c7_i32 : i32 to index
    %c0_90 = arith.constant 0 : index
    %386 = vector.load %arg7[%c0_89, %385, %c0_90] : memref<8x8x128xf32, #tpu.memory_space<vmem>>, vector<8x1x128xf32>
    tpu.vector_store %arg7[%c0_89, %385, %c0_90], %384 {strides = array<i32>} : memref<8x8x128xf32, #tpu.memory_space<vmem>>, vector<8x1x128xf32>,
    %387 = vector.shape_cast %379 : vector<8x1xi1> to vector<8x1xi1>
    %388 = vector.broadcast %387 : vector<8x1xi1> to vector<8x128xi1>
    %389 = arith.select %388, %376, %342 : vector<8x128xi1>, vector<8x128xf32>
    %390 = vector.shape_cast %379 : vector<8x1xi1> to vector<8x1xi1>
    %391 = vector.broadcast %390 : vector<8x1xi1> to vector<8x128xi1>
    %392 = arith.select %391, %374, %345 : vector<8x128xi1>, vector<8x128xf32>
    %c8_i32_91 = arith.constant 8 : i32
    %c0_92 = arith.constant 0 : index
    %c0_93 = arith.constant 0 : index
    %393 = vector.load %arg8[%c0_92, %c0_93] : memref<8x128xf32, #tpu.memory_space<vmem>>, vector<8x128xf32>
    tpu.vector_store %arg8[%c0_92, %c0_93], %389 {strides = array<i32>} : memref<8x128xf32, #tpu.memory_space<vmem>>, vector<8x128xf32>,
    %c0_94 = arith.constant 0 : index
    %c0_95 = arith.constant 0 : index
    %394 = vector.load %arg9[%c0_94, %c0_95] : memref<8x128xf32, #tpu.memory_space<vmem>>, vector<8x128xf32>
    tpu.vector_store %arg9[%c0_94, %c0_95], %392 {strides = array<i32>} : memref<8x128xf32, #tpu.memory_space<vmem>>, vector<8x128xf32>,
    return
  }
  func.func @transform_0(%arg0: i32, %arg1: i32) -> (i32, i32) {
    %c0_i32 = arith.constant 0 : i32
    %c0_i32_0 = arith.constant 0 : i32
    return %arg0, %c0_i32 : i32, i32
  }
  func.func @transform_1(%arg0: i32, %arg1: i32) -> (i32, i32, i32) {
    %c0_i32 = arith.constant 0 : i32
    %c0_i32_0 = arith.constant 0 : i32
    return %arg0, %arg1, %c0_i32 : i32, i32, i32
  }
  func.func @transform_2(%arg0: i32, %arg1: i32) -> (i32, i32) {
    %c0_i32 = arith.constant 0 : i32
    %c0_i32_0 = arith.constant 0 : i32
    %c0_i32_1 = arith.constant 0 : i32
    return %c0_i32, %c0_i32_0 : i32, i32
  }
  func.func @transform_3(%arg0: i32, %arg1: i32) -> (i32, i32) {
    %c0_i32 = arith.constant 0 : i32
    %c0_i32_0 = arith.constant 0 : i32
    %c0_i32_1 = arith.constant 0 : i32
    return %c0_i32, %c0_i32_0 : i32, i32
  }
  func.func @transform_4(%arg0: i32, %arg1: i32) -> (i32, i32) {
    %c0_i32 = arith.constant 0 : i32
    %c0_i32_0 = arith.constant 0 : i32
    %c0_i32_1 = arith.constant 0 : i32
    return %c0_i32, %c0_i32_0 : i32, i32
  }
  func.func @transform_5(%arg0: i32, %arg1: i32) -> (i32, i32, i32) {
    %c0_i32 = arith.constant 0 : i32
    %c0_i32_0 = arith.constant 0 : i32
    return %arg0, %arg1, %c0_i32 : i32, i32, i32
  }
  func.func @transform_6(%arg0: i32, %arg1: i32) -> (i32, i32) {
    %c0_i32 = arith.constant 0 : i32
    %c0_i32_0 = arith.constant 0 : i32
    return %arg0, %c0_i32 : i32, i32
  }
  func.func @transform_7(%arg0: i32, %arg1: i32) -> (i32, i32) {
    %c0_i32 = arith.constant 0 : i32
    %c0_i32_0 = arith.constant 0 : i32
    return %arg0, %c0_i32 : i32, i32
  }
}

</mosaic_0001>

<bundles_post_ra>
// kernel: tpu_custom_call.1
= control target key start
LH: loop header
LB: loop body
LE: loop exit
PB: predicated region body
PF: predicated region fallthrough
CT: control target
= control target key end

     0   :  { %13 = vsyncpa [#allocation4], 0  ;;  %s9268_s0 = inlined_call_operand.vmem [shape: s32[8,1], index: 0, kind: input, shape index: {}]   ;;  %s9269_s1 = inlined_call_operand.hbm [shape: bf16[8,8,16], index: 1, kind: input, shape index: {}]   ;;  %s9270_s2 = inlined_call_operand.hbm [shape: bf16[16,512], index: 2, kind: input, shape index: {}]   ;;  %s9271_s3 = inlined_call_operand.hbm [shape: bf16[128,512], index: 3, kind: input, shape index: {}]   ;;  %s9272_s4 = inlined_call_operand.vmem [shape: f32[1,512], index: 4, kind: input, shape index: {}]   ;;  %s9273_s5 = inlined_call_operand.hbm [shape: f32[8,8,128], index: 5, kind: output, shape index: {0}]   ;;  %s9274_s6 = inlined_call_operand.hbm [shape: f32[8,128], index: 6, kind: output, shape index: {1}]   ;;  %s9275_s7 = inlined_call_operand.hbm [shape: f32[8,128], index: 7, kind: output, shape index: {2}]  }
   0x1   :  { %14 = vsyncpa [#allocation7], 0 }
   0x2   :  { %15 = vsyncpa [#allocation5], 0 }
   0x3   :  { %16 = vsyncpa [#allocation11], 0  ;;  %s7677_s24 = smov [#allocation6]  }
   0x4   :  { %s36_s25 = sshll.u32 %s7677_s24, 4  ;;  %s37_s25 = int_to_ptr.vmem [resolvable:$true] %s36_s25 }
   0x5   :  { %s7557_s26 = scalar_lea.vmem %s37_s25, 512  ;;  %p7562_p1 = scmp.lt.s32.totalorder %s37_s25, %s37_s25 }
   0x6   :  { %p7558_p0 = scmp.ne.s32.totalorder %s37_s25, %s7557_s26  ;;  %p7563_p2 = scmp.lt.s32.totalorder %s7557_s26, %s7557_s26 }
   0x8   :  { %p7564_p3 = por %p7563_p2, %p7562_p1 }
   0xa   :  { %p7565_p4 = pnand %p7564_p3, %p7558_p0 }
   0xc   :  { %7568 = shalt.err (!%p7565_p4)
}
   0xd   :  { %s7678_s27 = smov 256   ;;  %s7679_s28 = smov 16  }
   0xe   :  { %42 = dma.hbm_to_vmem [thread:$0]  %s9270_s2, 512, %s37_s25, [#allocation7], %s7678_s27, %s7678_s27, %s7679_s28  }
   0xf   :  { %s7680_s8 = smov [#allocation3]  }
  0x10   :  { %s24_s9 = sshll.u32 %s7680_s8, 4  ;;  %s25_s9 = int_to_ptr.vmem [resolvable:$true] %s24_s9 }
  0x11   :  { %s7577_s10 = scalar_lea.vmem %s25_s9, 512  ;;  %p7582_p6 = scmp.lt.s32.totalorder %s25_s9, %s25_s9 }
  0x12   :  { %p7578_p5 = scmp.ne.s32.totalorder %s25_s9, %s7577_s10  ;;  %p7583_p7 = scmp.lt.s32.totalorder %s7577_s10, %s7577_s10 }
  0x14   :  { %p7584_p8 = por %p7583_p7, %p7582_p6 }
  0x16   :  { %p7585_p9 = pnand %p7584_p8, %p7578_p5 }
  0x18   :  { %7588 = shalt.err (!%p7585_p9)
}
  0x19   :  { %s7681_s11 = smov 64   ;;  %s7682_s12 = smov 4  }
  0x1a   :  { %30 = dma.hbm_to_vmem [thread:$0]  %s9269_s1, 512, %s25_s9, [#allocation4], %s7681_s11, %s7681_s11, %s7682_s12  }
  0x1b   :  { %s7683_s15 = smov [#allocation8]  }
  0x1c   :  { %s48_s16 = sshll.u32 %s7683_s15, 4  ;;  %s49_s16 = int_to_ptr.vmem [resolvable:$true] %s48_s16 }
  0x1d   :  { %s7597_s2 = scalar_lea.vmem %s49_s16, 4096  ;;  %p7602_p11 = scmp.lt.s32.totalorder %s49_s16, %s49_s16 }
  0x1e   :  { %p7598_p10 = scmp.ne.s32.totalorder %s49_s16, %s7597_s2  ;;  %p7603_p12 = scmp.lt.s32.totalorder %s7597_s2, %s7597_s2 }
  0x20   :  { %p7604_p13 = por %p7603_p12, %p7602_p11 }
  0x22   :  { %p7605_p0 = pnand %p7604_p13, %p7598_p10 }
  0x24   :  { %7608 = shalt.err (!%p7605_p0)
}
  0x25   :  { %54 = dma.hbm_to_vmem [thread:$0]  %s9271_s3, 4096, %s49_s16, [#allocation7], %s7678_s27, %s7678_s27, %s7679_s28  }
  0x26   :  { %7669 = dma.done.wait [#allocation4], 512  }
  0x27   :  { %7670 = vsyncadd [#allocation4], 4294966784 }
  0x28   :  { %7671 = dma.done.wait [#allocation7], 4608  }
  0x29   :  { %7672 = vsyncadd [#allocation7], 4294962688  ;;  %v9276_v0 = vmov 0   ;;  %v6364_v1 = vld [vmem:[#allocation6 + $0x4] ss:$16 sps:$4 sm:$0xff]   ;;  %vm147_vm0 = vcmask 130048   ;;  %v87_v47 = vlaneseq }
  0x2a   :  { %192 = vmatprep.mubr.bf16.mxu0 %v9276_v0  ;;  %265 = vmatprep.mubr.bf16.mxu1 %v9276_v0  ;;  %v6366_v2 = vld [vmem:[#allocation6 + $0xc] ss:$16 sps:$4 sm:$0xff]   ;;  %v6368_v3 = vld [vmem:[#allocation6] ss:$16 sps:$4 sm:$0xff]   ;;  %v6369_v4 = vld [vmem:[#allocation6 + $0x8] ss:$16 sps:$4 sm:$0xff]  }
  0x2b   :  { %6362 = vset.pattern.permute.xlu0 %v9276_v0  ;;  %6363 = vset.pattern.permute.xlu1 %v9276_v0  ;;  %v6370_v5 = vld [vmem:[#allocation3] sm:$0xff]   ;;  %v7748_v7 = vld [vmem:[#allocation8 + $0xec] ss:$16 sps:$4 sm:$0xff]   ;;  %v7753_v9 = vld [vmem:[#allocation8 + $0xe8] ss:$16 sps:$4 sm:$0xff]   ;;  %v7685_v44 = vmov 0.0|0.0  }
  0x2c   :  { %174 = vmatprep.subr.bf16.mxu0 %v6364_v1  ;;  %247 = vmatprep.subr.bf16.mxu1 %v6366_v2  ;;  %v7746_v6 = vld [vmem:[#allocation8 + $0xe4] ss:$16 sps:$4 sm:$0xff]   ;;  %v7750_v8 = vld [vmem:[#allocation8 + $0xe0] ss:$16 sps:$4 sm:$0xff]   ;;  %v7761_v11 = vld [vmem:[#allocation8 + $0xcc] ss:$16 sps:$4 sm:$0xff]  }
  0x2d   :  { %175 = vmatpush1.bf16.msra.mxu0 %v6368_v3  ;;  %248 = vmatpush1.bf16.msra.mxu1 %v6369_v4  ;;  %v7757_v10 = vld [vmem:[#allocation8 + $0xc4] ss:$16 sps:$4 sm:$0xff]   ;;  %v7763_v12 = vld [vmem:[#allocation8 + $0xc0] ss:$16 sps:$4 sm:$0xff]   ;;  %v7765_v13 = vld [vmem:[#allocation8 + $0xc8] ss:$16 sps:$4 sm:$0xff]  }
  0x2e   :  { %550 = vmatprep.subr.bf16.mxu0 %v7746_v6  ;;  %591 = vmatprep.subr.bf16.mxu1 %v7748_v7  ;;  %v6383_v14 = vld [vmem:[#allocation3 + $0x8] sm:$0xff]   ;;  %v7771_v15 = vld [vmem:[#allocation8 + $0xa4] ss:$16 sps:$4 sm:$0xff]   ;;  %v7777_v17 = vld [vmem:[#allocation8 + $0xa0] ss:$16 sps:$4 sm:$0xff]   ;;  %v7877_v48 = vshrl.u32 %v87_v47, 7 }
  0x2f   :  { %v7774_v16 = vld [vmem:[#allocation8 + $0xac] ss:$16 sps:$4 sm:$0xff]   ;;  %v7779_v18 = vld [vmem:[#allocation8 + $0xa8] ss:$16 sps:$4 sm:$0xff]   ;;  %v7783_v19 = vld [vmem:[#allocation8 + $0x84] ss:$16 sps:$4 sm:$0xff]  }
  0x30   :  { %6075 = vmatmul.mubr.msk.bf16.vlgmr.msra.gmra.mxu0 %vm147_vm0, %v6370_v5  ;;  %6079 = vmatmul.mubr.msk.bf16.vlgmr.msra.gmra.mxu1 %vm147_vm0, %v6370_v5  ;;  %v7786_v20 = vld [vmem:[#allocation8 + $0x8c] ss:$16 sps:$4 sm:$0xff]   ;;  %v7790_v21 = vld [vmem:[#allocation8 + $0x80] ss:$16 sps:$4 sm:$0xff]   ;;  %v7793_v22 = vld [vmem:[#allocation8 + $0x88] ss:$16 sps:$4 sm:$0xff]  }
  0x31   :  { %551 = vmatpush1.bf16.msra.mxu0 %v7750_v8  ;;  %592 = vmatpush1.bf16.msra.mxu1 %v7753_v9  ;;  %v7798_v23 = vld [vmem:[#allocation8 + $0x64] ss:$16 sps:$4 sm:$0xff]   ;;  %v7802_v24 = vld [vmem:[#allocation8 + $0x6c] ss:$16 sps:$4 sm:$0xff]   ;;  %v7805_v26 = vld [vmem:[#allocation8 + $0x60] ss:$16 sps:$4 sm:$0xff]  }
  0x32   :  { %552 = vmatprep.subr.bf16.mxu0 %v7757_v10  ;;  %593 = vmatprep.subr.bf16.mxu1 %v7761_v11  ;;  %v6396_v25 = vld [vmem:[#allocation3 + $0x10] sm:$0xff]   ;;  %v7809_v27 = vld [vmem:[#allocation8 + $0x68] ss:$16 sps:$4 sm:$0xff]   ;;  %v7814_v29 = vld [vmem:[#allocation8 + $0x4c] ss:$16 sps:$4 sm:$0xff]   ;;  %v89_v49 = vsub.s32 0, %v7877_v48 }
  0x33   :  { %202 = vmatprep.mubr.bf16.mxu0 %v9276_v0  ;;  %275 = vmatprep.mubr.bf16.mxu1 %v9276_v0  ;;  %v7811_v28 = vld [vmem:[#allocation8 + $0x44] ss:$16 sps:$4 sm:$0xff]   ;;  %v7819_v30 = vld [vmem:[#allocation8 + $0x40] ss:$16 sps:$4 sm:$0xff]   ;;  %v7821_v31 = vld [vmem:[#allocation8 + $0x48] ss:$16 sps:$4 sm:$0xff]  }
  0x34   :  { %v7826_v32 = vld [vmem:[#allocation8 + $0x24] ss:$16 sps:$4 sm:$0xff]   ;;  %v7830_v33 = vld [vmem:[#allocation8 + $0x2c] ss:$16 sps:$4 sm:$0xff]   ;;  %v6414_v35 = vld [vmem:[#allocation8 + $0x20] ss:$16 sps:$4 sm:$0xff]  }
  0x35   :  { %553 = vmatpush1.bf16.msra.mxu0 %v7763_v12  ;;  %594 = vmatpush1.bf16.msra.mxu1 %v7765_v13  ;;  %v6409_v34 = vld [vmem:[#allocation3 + $0x18] sm:$0xff]   ;;  %v338_v36 = vld [vmem:[%s9268_s0] sm:$0xff]  ;;  %v97_v50 = vsub.s32 2, %v7877_v48  ;;  %v93_v52 = vsub.s32 1, %v7877_v48  ;;  %v101_v53 = vsub.s32 3, %v7877_v48  ;;  %s7689_s23 = smov [#allocation12]  }
  0x36   :  { %554 = vmatprep.subr.bf16.mxu0 %v7771_v15  ;;  %595 = vmatprep.subr.bf16.mxu1 %v7774_v16  ;;  %v6415_v37 = vld [vmem:[#allocation8 + $0x28] ss:$16 sps:$4 sm:$0xff]   ;;  %v6416_v38 = vld [vmem:[#allocation8 + $0x4] ss:$16 sps:$4 sm:$0xff]   ;;  %vm6139_vm1 = vcmp.gt.s32.totalorder %v338_v36, 0  ;;  %vm6168_vm2 = vcmp.gt.s32.totalorder %v338_v36, 1 }
  0x37   :  { %v6418_v39 = vld [vmem:[#allocation8 + $0xc] ss:$16 sps:$4 sm:$0xff]   ;;  %v6420_v40 = vld [vmem:[#allocation8] ss:$16 sps:$4 sm:$0xff]   ;;  %v1028_v41 = vsel %vm6139_vm1, 1, %v9276_v0  ;;  %v1714_v43 = vsel %vm6168_vm2, 1, %v9276_v0 }
  0x38   :  { %6076 = vmatmul.mubr.msk.bf16.gmra.mxu0 %vm147_vm0, %v6383_v14  ;;  %6080 = vmatmul.mubr.msk.bf16.gmra.mxu1 %vm147_vm0, %v6383_v14  ;;  %v6421_v42 = vld [vmem:[#allocation8 + $0x8] ss:$16 sps:$4 sm:$0xff]   ;;  %vm6255_vm3 = vcmp.gt.s32.totalorder %v338_v36, 4  ;;  %vm6313_vm4 = vcmp.gt.s32.totalorder %v338_v36, 6  ;;  %v85_v51 = vld [vmem:[%s9272_s4] sm:$0xf] }
  0x39   :  { %555 = vmatpush1.bf16.msra.mxu0 %v7777_v17  ;;  %212 = vmatprep.mubr.bf16.mxu0 %v9276_v0  ;;  %v3772_v45 = vsel %vm6255_vm3, 1, %v9276_v0  ;;  %v5144_v46 = vsel %vm6313_vm4, 1, %v9276_v0  ;;  %v7886_v54 = vrot.slane %v85_v51, %v89_v49  ;;  %v7888_v55 = vrot.slane %v85_v51, %v97_v50  ;;  %s6050_s24 = sshll.u32 %s7689_s23, 4  ;;  %s6051_s24 = int_to_ptr.vmem [resolvable:$true] %s6050_s24 }
  0x3a   :  { %596 = vmatpush1.bf16.msra.mxu1 %v7779_v18  ;;  %556 = vmatprep.subr.bf16.mxu0 %v7783_v19  ;;  %v7890_v56 = vrot.slane %v85_v51, %v93_v52  ;;  %v7892_v57 = vrot.slane %v85_v51, %v101_v53  ;;  %v7686_v47 = vmov 1966171168  }
  0x3b   :  { %597 = vmatprep.subr.bf16.mxu1 %v7786_v20  ;;  %285 = vmatprep.mubr.bf16.mxu1 %v9276_v0  ;;  %v641_v49 = vunpack.c.l.s4 %v7686_v47 }
  0x3c   :  { %1030 = vperm.xlu0 %6362, %v1028_v41  }
  0x3d   :  { %557 = vmatpush1.bf16.msra.mxu0 %v7790_v21 }
  0x3e   :  { %598 = vmatpush1.bf16.msra.mxu1 %v7793_v22  ;;  %558 = vmatprep.subr.bf16.mxu0 %v7798_v23 }
  0x3f   :  { %599 = vmatprep.subr.bf16.mxu1 %v7802_v24 }
  0x40   :  { %6077 = vmatmul.mubr.msk.bf16.gmra.mxu0 %vm147_vm0, %v6396_v25  ;;  %6081 = vmatmul.mubr.msk.bf16.gmra.mxu1 %vm147_vm0, %v6396_v25 }
  0x41   :  { %559 = vmatpush1.bf16.msra.mxu0 %v7805_v26  ;;  %222 = vmatprep.mubr.bf16.mxu0 %v9276_v0 }
  0x42   :  { %600 = vmatpush1.bf16.msra.mxu1 %v7809_v27  ;;  %560 = vmatprep.subr.bf16.mxu0 %v7811_v28 }
  0x43   :  { %601 = vmatprep.subr.bf16.mxu1 %v7814_v29  ;;  %295 = vmatprep.mubr.bf16.mxu1 %v9276_v0 }
  0x44   :  { %1716 = vperm.xlu0 %6362, %v1714_v43  }
  0x45   :  { %561 = vmatpush1.bf16.msra.mxu0 %v7819_v30 }
  0x46   :  { %602 = vmatpush1.bf16.msra.mxu1 %v7821_v31  ;;  %562 = vmatprep.subr.bf16.mxu0 %v7826_v32 }
  0x47   :  { %603 = vmatprep.subr.bf16.mxu1 %v7830_v33 }
  0x48   :  { %6078 = vmatmul.mubr.msk.bf16.gmra.mxu0 %vm147_vm0, %v6409_v34  ;;  %6082 = vmatmul.mubr.msk.bf16.gmra.mxu1 %vm147_vm0, %v6409_v34 }
  0x49   :  { %563 = vmatpush1.bf16.msra.mxu0 %v6414_v35  ;;  %582 = vmatprep.mubr.bf16.mxu0 %v9276_v0 }
  0x4a   :  { %604 = vmatpush1.bf16.msra.mxu1 %v6415_v37  ;;  %564 = vmatprep.subr.bf16.mxu0 %v6416_v38 }
  0x4b   :  { %605 = vmatprep.subr.bf16.mxu1 %v6418_v39  ;;  %623 = vmatprep.mubr.bf16.mxu1 %v9276_v0 }
  0x4c   :  { %3774 = vperm.xlu0 %6362, %v3772_v45  }
  0x4d   :  { %565 = vmatpush1.bf16.msra.mxu0 %v6420_v40 }
  0x4e   :  { %606 = vmatpush1.bf16.msra.mxu1 %v6421_v42  ;;  %1235 = vmatprep.subr.bf16.mxu0 %v7746_v6 }
  0x4f   :  { %1276 = vmatprep.subr.bf16.mxu1 %v7748_v7 }
  0x50   :  { %583 = vmatmul.mubr.bf16.vlgmr.msra.gmra.mxu0 %v7685_v44  ;;  %5146 = vperm.xlu0 %6362, %v5144_v46  }
  0x51   :  { %624 = vmatmul.mubr.bf16.vlgmr.msra.gmra.mxu1 %v7685_v44  ;;  %1236 = vmatpush1.bf16.msra.mxu0 %v7750_v8 }
  0x52   :  { %1277 = vmatpush1.bf16.msra.mxu1 %v7753_v9  ;;  %1237 = vmatprep.subr.bf16.mxu0 %v7757_v10 }
  0x53   :  { %1278 = vmatprep.subr.bf16.mxu1 %v7761_v11  ;;  %1267 = vmatprep.mubr.bf16.mxu0 %v9276_v0 }
  0x54   :  { %1308 = vmatprep.mubr.bf16.mxu1 %v9276_v0 }
  0x55   :  { %1238 = vmatpush1.bf16.msra.mxu0 %v7763_v12 }
  0x56   :  { %1279 = vmatpush1.bf16.msra.mxu1 %v7765_v13  ;;  %1239 = vmatprep.subr.bf16.mxu0 %v7771_v15 }
  0x57   :  { %1280 = vmatprep.subr.bf16.mxu1 %v7774_v16 }
  0x59   :  { %1240 = vmatpush1.bf16.msra.mxu0 %v7777_v17 }
  0x5a   :  { %1281 = vmatpush1.bf16.msra.mxu1 %v7779_v18  ;;  %1241 = vmatprep.subr.bf16.mxu0 %v7783_v19 }
  0x5b   :  { %1282 = vmatprep.subr.bf16.mxu1 %v7786_v20 }
  0x5d   :  { %1242 = vmatpush1.bf16.msra.mxu0 %v7790_v21 }
  0x5e   :  { %1283 = vmatpush1.bf16.msra.mxu1 %v7793_v22  ;;  %1243 = vmatprep.subr.bf16.mxu0 %v7798_v23 }
  0x5f   :  { %1284 = vmatprep.subr.bf16.mxu1 %v7802_v24 }
  0x61   :  { %1244 = vmatpush1.bf16.msra.mxu0 %v7805_v26 }
  0x62   :  { %1285 = vmatpush1.bf16.msra.mxu1 %v7809_v27  ;;  %1245 = vmatprep.subr.bf16.mxu0 %v7811_v28 }
  0x63   :  { %1286 = vmatprep.subr.bf16.mxu1 %v7814_v29 }
  0x65   :  { %1246 = vmatpush1.bf16.msra.mxu0 %v7819_v30 }
  0x66   :  { %1287 = vmatpush1.bf16.msra.mxu1 %v7821_v31  ;;  %1247 = vmatprep.subr.bf16.mxu0 %v7826_v32 }
  0x67   :  { %1288 = vmatprep.subr.bf16.mxu1 %v7830_v33 }
  0x69   :  { %1248 = vmatpush1.bf16.msra.mxu0 %v6414_v35 }
  0x6a   :  { %1289 = vmatpush1.bf16.msra.mxu1 %v6415_v37  ;;  %1249 = vmatprep.subr.bf16.mxu0 %v6416_v38 }
  0x6b   :  { %1290 = vmatprep.subr.bf16.mxu1 %v6418_v39 }
  0x6d   :  { %1250 = vmatpush1.bf16.msra.mxu0 %v6420_v40 }
  0x6e   :  { %1291 = vmatpush1.bf16.msra.mxu1 %v6421_v42  ;;  %1921 = vmatprep.subr.bf16.mxu0 %v7746_v6 }
  0x6f   :  { %1962 = vmatprep.subr.bf16.mxu1 %v7748_v7 }
  0xf0   :  { %v194_v58 = vpop.f32.mrf.mxu0  ;;  %v267_v59 = vpop.f32.mrf.mxu1 }
  0xf1   :  { %v195_v60 = vadd.f32 %v194_v58, %v7886_v54  ;;  %v268_v61 = vadd.f32 %v267_v59, %v7888_v55 }
  0xf2   :  { %v196_v62 = vpop.f32.mrf.mxu0  ;;  %v269_v63 = vpop.f32.mrf.mxu1 }
  0xf3   :  { %306 = vst [vmem:[#allocation2] sm:$0xff] %v195_v60  ;;  %308 = vst [vmem:[#allocation2 + $0x10] sm:$0xff] %v268_v61  ;;  %v197_v1 = vadd.f32 %v196_v62, %v7890_v56  ;;  %v270_v2 = vadd.f32 %v269_v63, %v7892_v57  ;;  %v642_v62 = vunpack.c.0.s8 %v641_v49 }
  0xf4   :  { %v198_v3 = vpop.f32.mrf.mxu0  ;;  %v271_v4 = vpop.f32.mrf.mxu1 }
  0xf5   :  { %307 = vst [vmem:[#allocation2 + $0x8] sm:$0xff] %v197_v1  ;;  %309 = vst [vmem:[#allocation2 + $0x18] sm:$0xff] %v270_v2  ;;  %v199_v5 = vadd.f32 %v198_v3, %v7886_v54  ;;  %v272_v6 = vadd.f32 %v271_v4, %v7888_v55 }
  0xf6   :  { %v200_v7 = vpop.f32.mrf.mxu0  ;;  %v273_v8 = vpop.f32.mrf.mxu1 }
  0xf7   :  { %310 = vst [vmem:[#allocation2 + $0x20] sm:$0xff] %v199_v5  ;;  %312 = vst [vmem:[#allocation2 + $0x30] sm:$0xff] %v272_v6  ;;  %v201_v9 = vadd.f32 %v200_v7, %v7890_v56  ;;  %v274_v10 = vadd.f32 %v273_v8, %v7892_v57  ;;  %v7927_v6 = vsub.s32 %v642_v62, %v7877_v48 }
  0xf8   :  { %v204_v11 = vpop.f32.mrf.mxu0  ;;  %v277_v12 = vpop.f32.mrf.mxu1 }
  0xf9   :  { %311 = vst [vmem:[#allocation2 + $0x28] sm:$0xff] %v201_v9  ;;  %313 = vst [vmem:[#allocation2 + $0x38] sm:$0xff] %v274_v10  ;;  %v205_v13 = vadd.f32 %v204_v11, %v7886_v54  ;;  %v278_v14 = vadd.f32 %v277_v12, %v7888_v55 }
  0xfa   :  { %v206_v15 = vpop.f32.mrf.mxu0  ;;  %v279_v16 = vpop.f32.mrf.mxu1 }
  0xfb   :  { %314 = vst [vmem:[#allocation2 + $0x40] sm:$0xff] %v205_v13  ;;  %316 = vst [vmem:[#allocation2 + $0x50] sm:$0xff] %v278_v14  ;;  %v207_v17 = vadd.f32 %v206_v15, %v7890_v56  ;;  %v280_v18 = vadd.f32 %v279_v16, %v7892_v57 }
  0xfc   :  { %v208_v19 = vpop.f32.mrf.mxu0  ;;  %v281_v20 = vpop.f32.mrf.mxu1 }
  0xfd   :  { %315 = vst [vmem:[#allocation2 + $0x48] sm:$0xff] %v207_v17  ;;  %317 = vst [vmem:[#allocation2 + $0x58] sm:$0xff] %v280_v18  ;;  %v209_v21 = vadd.f32 %v208_v19, %v7886_v54  ;;  %v282_v22 = vadd.f32 %v281_v20, %v7888_v55 }
  0xfe   :  { %v210_v23 = vpop.f32.mrf.mxu0  ;;  %v283_v24 = vpop.f32.mrf.mxu1 }
  0xff   :  { %318 = vst [vmem:[#allocation2 + $0x60] sm:$0xff] %v209_v21  ;;  %320 = vst [vmem:[#allocation2 + $0x70] sm:$0xff] %v282_v22  ;;  %v211_v25 = vadd.f32 %v210_v23, %v7890_v56  ;;  %v284_v26 = vadd.f32 %v283_v24, %v7892_v57  ;;  %v374_v24 = vld [vmem:[#allocation2] ss:$8 sm:$0xf] }
 0x100   :  { %v214_v27 = vpop.f32.mrf.mxu0  ;;  %v287_v28 = vpop.f32.mrf.mxu1 }
 0x101   :  { %319 = vst [vmem:[#allocation2 + $0x68] sm:$0xff] %v211_v25  ;;  %321 = vst [vmem:[#allocation2 + $0x78] sm:$0xff] %v284_v26  ;;  %v215_v29 = vadd.f32 %v214_v27, %v7886_v54  ;;  %v288_v30 = vadd.f32 %v287_v28, %v7888_v55  ;;  %v376_v25 = vld [vmem:[#allocation2 + $0x20] ss:$8 sm:$0xf] }
 0x102   :  { %v216_v31 = vpop.f32.mrf.mxu0  ;;  %v289_v32 = vpop.f32.mrf.mxu1 }
 0x103   :  { %322 = vst [vmem:[#allocation2 + $0x80] sm:$0xff] %v215_v29  ;;  %324 = vst [vmem:[#allocation2 + $0x90] sm:$0xff] %v288_v30  ;;  %v217_v33 = vadd.f32 %v216_v31, %v7890_v56  ;;  %v290_v34 = vadd.f32 %v289_v32, %v7892_v57 }
 0x104   :  { %v218_v35 = vpop.f32.mrf.mxu0  ;;  %v291_v36 = vpop.f32.mrf.mxu1  ;;  %v378_v26 = vld [vmem:[#allocation2 + $0x40] ss:$8 sm:$0xf] }
 0x105   :  { %323 = vst [vmem:[#allocation2 + $0x88] sm:$0xff] %v217_v33  ;;  %325 = vst [vmem:[#allocation2 + $0x98] sm:$0xff] %v290_v34  ;;  %v219_v37 = vadd.f32 %v218_v35, %v7886_v54  ;;  %v292_v38 = vadd.f32 %v291_v36, %v7888_v55 }
 0x106   :  { %v220_v39 = vpop.f32.mrf.mxu0  ;;  %v293_v40 = vpop.f32.mrf.mxu1 }
 0x107   :  { %326 = vst [vmem:[#allocation2 + $0xa0] sm:$0xff] %v219_v37  ;;  %328 = vst [vmem:[#allocation2 + $0xb0] sm:$0xff] %v292_v38  ;;  %v221_v41 = vadd.f32 %v220_v39, %v7890_v56  ;;  %v294_v42 = vadd.f32 %v293_v40, %v7892_v57 }
 0x108   :  { %v224_v43 = vpop.f32.mrf.mxu0  ;;  %v297_v44 = vpop.f32.mrf.mxu1  ;;  %v380_v32 = vld [vmem:[#allocation2 + $0x60] ss:$8 sm:$0xf] }
 0x109   :  { %327 = vst [vmem:[#allocation2 + $0xa8] sm:$0xff] %v221_v41  ;;  %329 = vst [vmem:[#allocation2 + $0xb8] sm:$0xff] %v294_v42  ;;  %v225_v45 = vadd.f32 %v224_v43, %v7886_v54  ;;  %v298_v46 = vadd.f32 %v297_v44, %v7888_v55 }
 0x10a   :  { %v226_v50 = vpop.f32.mrf.mxu0  ;;  %v299_v51 = vpop.f32.mrf.mxu1 }
 0x10b   :  { %330 = vst [vmem:[#allocation2 + $0xc0] sm:$0xff] %v225_v45  ;;  %332 = vst [vmem:[#allocation2 + $0xd0] sm:$0xff] %v298_v46  ;;  %v227_v52 = vadd.f32 %v226_v50, %v7890_v56  ;;  %v300_v53 = vadd.f32 %v299_v51, %v7892_v57 }
 0x10c   :  { %v228_v58 = vpop.f32.mrf.mxu0  ;;  %v301_v59 = vpop.f32.mrf.mxu1  ;;  %v382_v27 = vld [vmem:[#allocation2 + $0x80] ss:$8 sm:$0xf] }
 0x10d   :  { %331 = vst [vmem:[#allocation2 + $0xc8] sm:$0xff] %v227_v52  ;;  %333 = vst [vmem:[#allocation2 + $0xd8] sm:$0xff] %v300_v53  ;;  %v229_v60 = vadd.f32 %v228_v58, %v7886_v54  ;;  %v302_v61 = vadd.f32 %v301_v59, %v7888_v55 }
 0x10e   :  { %v230_v63 = vpop.f32.mrf.mxu0  ;;  %v303_v1 = vpop.f32.mrf.mxu1 }
 0x10f   :  { %334 = vst [vmem:[#allocation2 + $0xe0] sm:$0xff] %v229_v60  ;;  %336 = vst [vmem:[#allocation2 + $0xf0] sm:$0xff] %v302_v61  ;;  %v231_v2 = vadd.f32 %v230_v63, %v7890_v56  ;;  %v304_v3 = vadd.f32 %v303_v1, %v7892_v57 }
 0x110   :  { %v584_v4 = vpop.f32.mrf.mxu0  ;;  %v384_v33 = vld [vmem:[#allocation2 + $0xa0] ss:$8 sm:$0xf] }
 0x111   :  { %335 = vst [vmem:[#allocation2 + $0xe8] sm:$0xff] %v231_v2  ;;  %337 = vst [vmem:[#allocation2 + $0xf8] sm:$0xff] %v304_v3  ;;  %v625_v5 = vpop.f32.mrf.mxu1 }
 0x112   :  { %v586_v7 = vpop.f32.mrf.mxu0 }
 0x113   :  { %v636_v54 = vcombine.low %v584_v4, %v586_v7  ;;  %v637_v8 = vcombine.high %v584_v4, %v586_v7  ;;  %v627_v55 = vpop.f32.mrf.mxu1 }
 0x114   :  { %v638_v9 = vcombine.low %v625_v5, %v627_v55  ;;  %v639_v10 = vcombine.high %v625_v5, %v627_v55  ;;  %v588_v11 = vpop.f32.mrf.mxu0  ;;  %v386_v37 = vld [vmem:[#allocation2 + $0xc0] ss:$8 sm:$0xf] }
 0x115   :  { %v646_v12 = vrot.slane %v636_v54, %v7927_v6  ;;  %v653_v56 = vrot.slane %v637_v8, %v7927_v6  ;;  %v629_v13 = vpop.f32.mrf.mxu1 }
 0x116   :  { %v660_v57 = vrot.slane %v638_v9, %v7927_v6  ;;  %v667_v14 = vrot.slane %v639_v10, %v7927_v6  ;;  %v589_v15 = vpop.f32.mrf.mxu0 }
 0x117   :  { %v630_v16 = vpop.f32.mrf.mxu1 }
 0x118   :  { %v668_v48 = vcombine.low %v646_v12, %v660_v57  ;;  %v669_v17 = vcombine.high %v646_v12, %v660_v57  ;;  %v670_v18 = vcombine.low %v653_v56, %v667_v14  ;;  %v671_v19 = vcombine.high %v653_v56, %v667_v14  ;;  %v388_v38 = vld [vmem:[#allocation2 + $0xe0] ss:$8 sm:$0xf] }
 0x11a   :  { %v678_v20 = vrot.slane %v668_v48, %v7927_v6  ;;  %v685_v21 = vrot.slane %v670_v18, %v7927_v6  ;;  %v692_v22 = vrot.slane %v669_v17, %v7927_v6  ;;  %v699_v23 = vrot.slane %v671_v19, %v7927_v6 }
 0x11c   :  { %v700_v28 = vcombine.high %v678_v20, %v678_v20  ;;  %v701_v29 = vcombine.high %v685_v21, %v685_v21  ;;  %v702_v30 = vcombine.high %v692_v22, %v692_v22  ;;  %v703_v31 = vcombine.high %v699_v23, %v699_v23 }
 0x11d   :  { %v7937_v34 = vadd.f32 %v678_v20, %v374_v24  ;;  %v7939_v35 = vadd.f32 %v692_v22, %v376_v25  ;;  %v7941_v36 = vadd.f32 %v685_v21, %v382_v27  ;;  %v7947_v41 = vadd.f32 %v699_v23, %v384_v33 }
 0x11e   :  { %v7943_v39 = vadd.f32 %v700_v28, %v378_v26  ;;  %v7945_v40 = vadd.f32 %v702_v30, %v380_v32  ;;  %v7949_v42 = vadd.f32 %v701_v29, %v386_v37  ;;  %v7953_v45 = vadd.f32 %v703_v31, %v388_v38 }
 0x11f   :  { %v6115_v43 = vmul.f32 -1.442695, %v7937_v34  ;;  %v6116_v44 = vmul.f32 -1.442695, %v7939_v35  ;;  %v6119_v49 = vmul.f32 -1.442695, %v7941_v36 }
 0x120   :  { %v6117_v46 = vmul.f32 -1.442695, %v7943_v39  ;;  %v6118_v47 = vmul.f32 -1.442695, %v7945_v40  ;;  %v776_v50 = vrot.slane %v7937_v34, 1  ;;  %v777_v52 = vrot.slane %v7939_v35, 1 }
 0x121   :  { %6422 = vpow2.f32 %v6115_v43  ;;  %v6120_v51 = vmul.f32 -1.442695, %v7947_v41  ;;  %v6121_v53 = vmul.f32 -1.442695, %v7949_v42  ;;  %v778_v58 = vrot.slane %v7943_v39, 1 }
 0x122   :  { %6424 = vpow2.f32 %v6116_v44  ;;  %v6122_v59 = vmul.f32 -1.442695, %v7953_v45  ;;  %v779_v60 = vrot.slane %v7945_v40, 1  ;;  %v780_v61 = vrot.slane %v7941_v36, 1 }
 0x123   :  { %6426 = vpow2.f32 %v6117_v46  ;;  %v6123_v62 = vmul.f32 -1.442695, %v776_v50  ;;  %v781_v63 = vrot.slane %v7947_v41, 1  ;;  %v6124_v1 = vmul.f32 -1.442695, %v777_v52 }
 0x124   :  { %6428 = vpow2.f32 %v6118_v47  ;;  %v782_v2 = vrot.slane %v7949_v42, 1  ;;  %v6125_v3 = vmul.f32 -1.442695, %v778_v58  ;;  %v783_v4 = vrot.slane %v7953_v45, 1 }
 0x125   :  { %6430 = vpow2.f32 %v6119_v49  ;;  %v6126_v5 = vmul.f32 -1.442695, %v779_v60  ;;  %v6127_v7 = vmul.f32 -1.442695, %v780_v61  ;;  %v6128_v54 = vmul.f32 -1.442695, %v781_v63 }
 0x126   :  { %6432 = vpow2.f32 %v6120_v51  ;;  %v6129_v8 = vmul.f32 -1.442695, %v782_v2  ;;  %v6130_v55 = vmul.f32 -1.442695, %v783_v4  ;;  %v840_v44 = vrot.slane %v7937_v34, 2 }
 0x127   :  { %6434 = vpow2.f32 %v6121_v53  ;;  %v841_v49 = vrot.slane %v7939_v35, 2  ;;  %v842_v51 = vrot.slane %v7943_v39, 2  ;;  %v7687_v52 = vmov 0.0  }
 0x128   :  { %6436 = vpow2.f32 %v6122_v59  ;;  %v929_v53 = vcombine.high %v7687_v52, %v7687_v52  ;;  %v843_v59 = vrot.slane %v7945_v40, 2  ;;  %v936_v60 = vrot.slane %v7687_v52, %v7927_v6 }
 0x129   :  { %6438 = vpow2.f32 %v6123_v62  ;;  %v844_v62 = vrot.slane %v7941_v36, 2  ;;  %v864_v63 = vrot.slane %v7937_v34, 3  ;;  %v845_v2 = vrot.slane %v7947_v41, 2 }
 0x12a   :  { %6440 = vpow2.f32 %v6124_v1  ;;  %v847_v34 = vrot.slane %v7953_v45, 2 }
 0x12b   :  { %6442 = vpow2.f32 %v6125_v3  ;;  %v865_v3 = vrot.slane %v7939_v35, 3  ;;  %v868_v35 = vrot.slane %v7941_v36, 3 }
 0x12c   :  { %6444 = vpow2.f32 %v6126_v5  ;;  %v846_v5 = vrot.slane %v7949_v42, 2 }
 0x12d   :  { %6446 = vpow2.f32 %v6127_v7  ;;  %v866_v7 = vrot.slane %v7943_v39, 3  ;;  %v869_v39 = vrot.slane %v7947_v41, 3 }
 0x12e   :  { %v6423_v9 = vpop.eup %6422  ;;  %6448 = vpow2.f32 %v6128_v54  ;;  %v943_v54 = vrot.slane %v929_v53, %v7927_v6 }
 0x12f   :  { %v6425_v10 = vpop.eup %6424  ;;  %v744_v11 = vadd.f32 1.0, %v6423_v9  ;;  %6450 = vpow2.f32 %v6129_v8  ;;  %v944_v9 = vcombine.high %v936_v60, %v936_v60 }
 0x130   :  { %v6427_v12 = vpop.eup %6426  ;;  %v745_v56 = vadd.f32 1.0, %v6425_v10  ;;  %6452 = vpow2.f32 %v6130_v55  ;;  %v867_v55 = vrot.slane %v7945_v40, 3  ;;  %v945_v40 = vcombine.high %v943_v54, %v943_v54 }
 0x131   :  { %v6429_v13 = vpop.eup %6428  ;;  %v746_v57 = vadd.f32 1.0, %v6427_v12  ;;  %6454 = vrcp.f32 %v744_v11  ;;  %v6131_v11 = vmul.f32 -1.442695, %v864_v63  ;;  %v966_v36 = vrot.slane %v944_v9, %v7927_v6 }
 0x132   :  { %v6431_v14 = vpop.eup %6430  ;;  %v747_v15 = vadd.f32 1.0, %v6429_v13  ;;  %6456 = vrcp.f32 %v745_v56  ;;  %v6132_v56 = vmul.f32 -1.442695, %v865_v3  ;;  %v952_v13 = vrot.slane %v936_v60, %v7927_v6 }
 0x133   :  { %v6433_v16 = vpop.eup %6432  ;;  %v748_v48 = vadd.f32 1.0, %v6431_v14  ;;  %6458 = vrcp.f32 %v746_v57  ;;  %v870_v14 = vrot.slane %v7949_v42, 3 }
 0x134   :  { %v6435_v17 = vpop.eup %6434  ;;  %v749_v18 = vadd.f32 1.0, %v6433_v16  ;;  %6460 = vrcp.f32 %v747_v15  ;;  %v6133_v15 = vmul.f32 -1.442695, %v866_v7 }
 0x135   :  { %v6437_v19 = vpop.eup %6436  ;;  %v750_v20 = vadd.f32 1.0, %v6435_v17  ;;  %6462 = vrcp.f32 %v748_v48  ;;  %v871_v48 = vrot.slane %v7953_v45, 3  ;;  %v6134_v17 = vmul.f32 -1.442695, %v867_v55 }
 0x136   :  { %v6439_v21 = vpop.eup %6438  ;;  %v751_v22 = vadd.f32 1.0, %v6437_v19  ;;  %6464 = vrcp.f32 %v749_v18  ;;  %v6135_v19 = vmul.f32 -1.442695, %v868_v35  ;;  %v6137_v42 = vmul.f32 -1.442695, %v870_v14 }
 0x137   :  { %v6441_v23 = vpop.eup %6440  ;;  %6466 = vrcp.f32 %v750_v20  ;;  %v816_v24 = vadd.f32 1.0, %v6439_v21  ;;  %v6136_v20 = vmul.f32 -1.442695, %v869_v39  ;;  %v959_v21 = vrot.slane %v943_v54, %v7927_v6 }
 0x138   :  { %v6443_v25 = vpop.eup %6442  ;;  %6468 = vrcp.f32 %v751_v22  ;;  %v817_v26 = vadd.f32 1.0, %v6441_v23  ;;  %v973_v23 = vrot.slane %v945_v40, %v7927_v6  ;;  %v6138_v45 = vmul.f32 -1.442695, %v871_v48 }
 0x139   :  { %v6445_v27 = vpop.eup %6444  ;;  %v818_v28 = vadd.f32 1.0, %v6443_v25  ;;  %6470 = vrcp.f32 %v816_v24  ;;  %v974_v24 = vcombine.high %v952_v13, %v952_v13 }
 0x13a   :  { %v6447_v29 = vpop.eup %6446  ;;  %v819_v30 = vadd.f32 1.0, %v6445_v27  ;;  %6472 = vrcp.f32 %v817_v26  ;;  %v976_v26 = vcombine.high %v966_v36, %v966_v36 }
 0x13b   :  { %v6449_v31 = vpop.eup %6448  ;;  %v820_v32 = vadd.f32 1.0, %v6447_v29  ;;  %6474 = vrcp.f32 %v818_v28 }
 0x13c   :  { %v6451_v33 = vpop.eup %6450  ;;  %v821_v37 = vadd.f32 1.0, %v6449_v31  ;;  %6476 = vrcp.f32 %v819_v30  ;;  %v975_v30 = vcombine.high %v959_v21, %v959_v21 }
 0x13d   :  { %v6453_v38 = vpop.eup %6452  ;;  %v822_v43 = vadd.f32 1.0, %v6451_v33  ;;  %6478 = vrcp.f32 %v820_v32  ;;  %v977_v33 = vcombine.high %v973_v23, %v973_v23 }
 0x13e   :  { %v7970_v46 = vpop.eup %6454  ;;  %v823_v47 = vadd.f32 1.0, %v6453_v38  ;;  %6480 = vrcp.f32 %v821_v37 }
 0x13f   :  { %v7973_v50 = vpop.eup %6456  ;;  %6482 = vrcp.f32 %v822_v43 }
 0x140   :  { %v7976_v58 = vpop.eup %6458  ;;  %6484 = vrcp.f32 %v823_v47 }
 0x141   :  { %v7980_v61 = vpop.eup %6460  ;;  %6486 = vtanh.f32 %v840_v44 }
 0x142   :  { %v7984_v1 = vpop.eup %6462  ;;  %6488 = vtanh.f32 %v841_v49 }
 0x143   :  { %v7988_v4 = vpop.eup %6464  ;;  %6490 = vtanh.f32 %v842_v51 }
 0x144   :  { %v7993_v8 = vpop.eup %6466  ;;  %6492 = vtanh.f32 %v843_v59 }
 0x145   :  { %v7997_v10 = vpop.eup %6468  ;;  %6494 = vtanh.f32 %v844_v62 }
 0x146   :  { %v6471_v12 = vpop.eup %6470  ;;  %6496 = vtanh.f32 %v845_v2 }
 0x147   :  { %v6473_v57 = vpop.eup %6472  ;;  %6498 = vtanh.f32 %v846_v5  ;;  %v986_v28 = vmul.f32 %v6471_v12, %v952_v13 }
 0x148   :  { %v6475_v16 = vpop.eup %6474  ;;  %6500 = vtanh.f32 %v847_v34  ;;  %v987_v31 = vmul.f32 %v6473_v57, %v966_v36 }
 0x149   :  { %v6477_v18 = vpop.eup %6476  ;;  %6502 = vpow2.f32 %v6131_v11  ;;  %v988_v37 = vmul.f32 %v6475_v16, %v974_v24 }
 0x14a   :  { %v6479_v41 = vpop.eup %6478  ;;  %6504 = vpow2.f32 %v6132_v56  ;;  %v989_v44 = vmul.f32 %v6477_v18, %v976_v26 }
 0x14b   :  { %v6481_v22 = vpop.eup %6480  ;;  %6506 = vpow2.f32 %v6133_v15  ;;  %v990_v51 = vmul.f32 %v6479_v41, %v959_v21 }
 0x14c   :  { %v6483_v25 = vpop.eup %6482  ;;  %6508 = vpow2.f32 %v6134_v17  ;;  %v991_v60 = vmul.f32 %v6481_v22, %v973_v23 }
 0x14d   :  { %v6485_v27 = vpop.eup %6484  ;;  %6510 = vpow2.f32 %v6135_v19  ;;  %v992_v62 = vmul.f32 %v6483_v25, %v975_v30 }
 0x14e   :  { %v6487_v29 = vpop.eup %6486  ;;  %6512 = vpow2.f32 %v6136_v20  ;;  %v993_v5 = vmul.f32 %v6485_v27, %v977_v33 }
 0x14f   :  { %v6489_v32 = vpop.eup %6488  ;;  %6514 = vpow2.f32 %v6137_v42  ;;  %v994_v38 = vmul.f32 %v6487_v29, %v7970_v46 }
 0x150   :  { %v6491_v43 = vpop.eup %6490  ;;  %6516 = vpow2.f32 %v6138_v45  ;;  %v995_v47 = vmul.f32 %v6489_v32, %v7973_v50  ;;  %v1031_v45 = vpop.permute.xlu0 %1030 }
 0x151   :  { %v6493_v49 = vpop.eup %6492  ;;  %v996_v52 = vmul.f32 %v6491_v43, %v7976_v58  ;;  %v1002_v53 = vadd.f32 %v994_v38, %v986_v28  ;;  %vm1032_vm5 = vcmp.eq.s32.totalorder %v1031_v45, 1  ;;  %v8061_v45 = vld [vmem:[#allocation8 + $0xc8] ss:$16 sps:$4 sm:$0xff]  }
 0x152   :  { %v6495_v59 = vpop.eup %6494  ;;  %v997_v63 = vmul.f32 %v6493_v49, %v7980_v61  ;;  %v1003_v2 = vadd.f32 %v995_v47, %v987_v31  ;;  %vm7543_vm6 = vmpackc.low %vm1032_vm5, %vm1032_vm5 }
 0x153   :  { %v6497_v3 = vpop.eup %6496  ;;  %v998_v46 = vmul.f32 %v6495_v59, %v7984_v1  ;;  %v1004_v7 = vadd.f32 %v996_v52, %v988_v37  ;;  %6518 = vtanh.f32 %v1002_v53 }
 0x154   :  { %v6499_v54 = vpop.eup %6498  ;;  %v999_v50 = vmul.f32 %v6497_v3, %v7988_v4  ;;  %v1005_v34 = vadd.f32 %v997_v63, %v989_v44  ;;  %6520 = vtanh.f32 %v1003_v2  ;;  %v1167_v55 = vcombine.low %v1002_v53, %v1003_v2 }
 0x155   :  { %v6501_v58 = vpop.eup %6500  ;;  %v1000_v9 = vmul.f32 %v6499_v54, %v7993_v8  ;;  %v1006_v35 = vadd.f32 %v998_v46, %v990_v51  ;;  %6522 = vtanh.f32 %v1004_v7 }
 0x156   :  { %v6503_v11 = vpop.eup %6502  ;;  %v1001_v61 = vmul.f32 %v6501_v58, %v7997_v10  ;;  %v1007_v12 = vadd.f32 %v999_v50, %v991_v60  ;;  %6524 = vtanh.f32 %v1005_v34  ;;  %v1168_v39 = vcombine.low %v1004_v7, %v1005_v34 }
 0x157   :  { %v6505_v1 = vpop.eup %6504  ;;  %v904_v56 = vadd.f32 1.0, %v6503_v11  ;;  %v1008_v13 = vadd.f32 %v1000_v9, %v992_v62  ;;  %6526 = vtanh.f32 %v1006_v35  ;;  %v1177_v8 = vrot.slane %v1167_v55, %v7927_v6 }
 0x158   :  { %v6507_v57 = vpop.eup %6506  ;;  %v905_v4 = vadd.f32 1.0, %v6505_v1  ;;  %v1009_v14 = vadd.f32 %v1001_v61, %v993_v5  ;;  %6528 = vtanh.f32 %v1007_v12  ;;  %v1169_v15 = vcombine.low %v1006_v35, %v1007_v12 }
 0x159   :  { %v6509_v40 = vpop.eup %6508  ;;  %v906_v16 = vadd.f32 1.0, %v6507_v57  ;;  %6530 = vrcp.f32 %v904_v56  ;;  %v1184_v48 = vrot.slane %v1168_v39, %v7927_v6 }
 0x15a   :  { %v6511_v10 = vpop.eup %6510  ;;  %v907_v17 = vadd.f32 1.0, %v6509_v40  ;;  %6532 = vrcp.f32 %v905_v4  ;;  %v1170_v36 = vcombine.low %v1008_v13, %v1009_v14  ;;  %v1191_v22 = vrot.slane %v1169_v15, %v7927_v6 }
 0x15b   :  { %v6513_v18 = vpop.eup %6512  ;;  %v908_v19 = vadd.f32 1.0, %v6511_v10  ;;  %6534 = vrcp.f32 %v906_v16  ;;  %v1199_v41 = vcombine.low %v1177_v8, %v1184_v48 }
 0x15c   :  { %v6515_v20 = vpop.eup %6514  ;;  %v909_v21 = vadd.f32 1.0, %v6513_v18  ;;  %6536 = vrcp.f32 %v907_v17  ;;  %v1198_v42 = vrot.slane %v1170_v36, %v7927_v6  ;;  %v8041_v17 = vld [vmem:[#allocation8 + $0xe0] ss:$16 sps:$4 sm:$0xff]   ;;  %v8044_v36 = vld [vmem:[#allocation8 + $0xe8] ss:$16 sps:$4 sm:$0xff]  }
 0x15d   :  { %v6517_v23 = vpop.eup %6516  ;;  %v910_v24 = vadd.f32 1.0, %v6515_v20  ;;  %6538 = vrcp.f32 %v908_v19  ;;  %v1207_v27 = vrot.slane %v1199_v41, %v7927_v6 }
 0x15e   :  { %v911_v25 = vadd.f32 1.0, %v6517_v23  ;;  %6540 = vrcp.f32 %v909_v21  ;;  %v1200_v26 = vcombine.low %v1191_v22, %v1198_v42  ;;  %v8049_v21 = vld [vmem:[#allocation8 + $0xc4] ss:$16 sps:$4 sm:$0xff]   ;;  %v8052_v22 = vld [vmem:[#allocation8 + $0xcc] ss:$16 sps:$4 sm:$0xff]  }
 0x15f   :  { %6542 = vrcp.f32 %v910_v24 }
 0x160   :  { %v6519_v28 = vpop.eup %6518  ;;  %6544 = vrcp.f32 %v911_v25  ;;  %v1214_v29 = vrot.slane %v1200_v26, %v7927_v6  ;;  %v8058_v25 = vld [vmem:[#allocation8 + $0xc0] ss:$16 sps:$4 sm:$0xff]  }
 0x161   :  { %v6521_v30 = vpop.eup %6520  ;;  %6546 = vtanh.f32 %v1008_v13 }
 0x162   :  { %v6523_v31 = vpop.eup %6522  ;;  %6548 = vtanh.f32 %v1009_v14  ;;  %v1215_v32 = vcombine.low %v1207_v27, %v1214_v29  ;;  %v8064_v27 = vld [vmem:[#allocation8 + $0xa4] ss:$16 sps:$4 sm:$0xff]   ;;  %v8070_v29 = vld [vmem:[#allocation8 + $0xa0] ss:$16 sps:$4 sm:$0xff]  }
 0x163   :  { %v6525_v33 = vpop.eup %6524 }
 0x164   :  { %v6527_v37 = vpop.eup %6526  ;;  %v8022_v38 = vsel %vm1032_vm5, %v1215_v32, 0.0  ;;  %v8079_v32 = vld [vmem:[#allocation8 + $0x8c] ss:$16 sps:$4 sm:$0xff]  }
 0x165   :  { %v6529_v43 = vpop.eup %6528 }
 0x166   :  { %v6531_v44 = vpop.eup %6530 }
 0x167   :  { %v6533_v47 = vpop.eup %6532  ;;  %v1018_v51 = vmul.f32 %v6531_v44, %v6519_v28  ;;  %v8067_v28 = vld [vmem:[#allocation8 + $0xac] ss:$16 sps:$4 sm:$0xff]  }
 0x168   :  { %v6535_v49 = vpop.eup %6534  ;;  %v1019_v52 = vmul.f32 %v6533_v47, %v6521_v30  ;;  %v8073_v30 = vld [vmem:[#allocation8 + $0xa8] ss:$16 sps:$4 sm:$0xff]   ;;  %v8091_v44 = vld [vmem:[#allocation8 + $0x6c] ss:$16 sps:$4 sm:$0xff]   ;;  %v8094_v47 = vld [vmem:[#allocation8 + $0x60] ss:$16 sps:$4 sm:$0xff]  }
 0x169   :  { %v6537_v53 = vpop.eup %6536  ;;  %v1020_v59 = vmul.f32 %v6535_v49, %v6523_v31  ;;  %v8076_v31 = vld [vmem:[#allocation8 + $0x84] ss:$16 sps:$4 sm:$0xff]   ;;  %v8097_v49 = vld [vmem:[#allocation8 + $0x68] ss:$16 sps:$4 sm:$0xff]  }
 0x16a   :  { %v6539_v60 = vpop.eup %6538  ;;  %v1021_v62 = vmul.f32 %v6537_v53, %v6525_v33  ;;  %v1041_v46 = vcombine.low %v1018_v51, %v1019_v52  ;;  %v8082_v33 = vld [vmem:[#allocation8 + $0x80] ss:$16 sps:$4 sm:$0xff]   ;;  %v8100_v51 = vld [vmem:[#allocation8 + $0x44] ss:$16 sps:$4 sm:$0xff]   ;;  %v8103_v52 = vld [vmem:[#allocation8 + $0x4c] ss:$16 sps:$4 sm:$0xff]  }
 0x16b   :  { %v6541_v63 = vpop.eup %6540  ;;  %v1022_v3 = vmul.f32 %v6539_v60, %v6527_v37  ;;  %v8085_v37 = vld [vmem:[#allocation8 + $0x88] ss:$16 sps:$4 sm:$0xff]   ;;  %v8106_v53 = vld [vmem:[#allocation8 + $0x40] ss:$16 sps:$4 sm:$0xff]   ;;  %v8112_v60 = vld [vmem:[#allocation8 + $0x24] ss:$16 sps:$4 sm:$0xff]  }
 0x16c   :  { %v6543_v2 = vpop.eup %6542  ;;  %v1023_v5 = vmul.f32 %v6541_v63, %v6529_v43  ;;  %v1042_v7 = vcombine.low %v1020_v59, %v1021_v62  ;;  %v1051_v11 = vrot.slane %v1041_v46, %v7927_v6  ;;  %v8088_v43 = vld [vmem:[#allocation8 + $0x64] ss:$16 sps:$4 sm:$0xff]   ;;  %v8109_v59 = vld [vmem:[#allocation8 + $0x48] ss:$16 sps:$4 sm:$0xff]   ;;  %9308 = vst [vmem:[#allocation17_spill] sm:$0xff] %v8112_v60 }
 0x16d   :  { %v6545_v54 = vpop.eup %6544  ;;  %v8115_v62 = vld [vmem:[#allocation8 + $0x2c] ss:$16 sps:$4 sm:$0xff]   ;;  %v8118_v63 = vld [vmem:[#allocation8 + $0x20] ss:$16 sps:$4 sm:$0xff]  }
 0x16e   :  { %v6547_v50 = vpop.eup %6546  ;;  %v1058_v34 = vrot.slane %v1042_v7, %v7927_v6  ;;  %v1043_v35 = vcombine.low %v1022_v3, %v1023_v5  ;;  %9309 = vst [vmem:[#allocation18_spill] sm:$0xff] %v8115_v62  ;;  %9310 = vst [vmem:[#allocation19_spill] sm:$0xff] %v8118_v63  ;;  %v8124_v3 = vld [vmem:[#allocation8 + $0x4] ss:$16 sps:$4 sm:$0xff]   ;;  %v8127_v5 = vld [vmem:[#allocation8 + $0xc] ss:$16 sps:$4 sm:$0xff]  }
 0x16f   :  { %v6549_v55 = vpop.eup %6548  ;;  %v1024_v58 = vmul.f32 %v6547_v50, %v6543_v2  ;;  %v8121_v2 = vld [vmem:[#allocation8 + $0x28] ss:$16 sps:$4 sm:$0xff]   ;;  %9312 = vst [vmem:[#allocation21_spill] sm:$0xff] %v8124_v3  ;;  %9313 = vst [vmem:[#allocation22_spill] sm:$0xff] %v8127_v5  ;;  %v8130_v46 = vld [vmem:[#allocation8] ss:$16 sps:$4 sm:$0xff]  }
 0x170   :  { %v1025_v9 = vmul.f32 %v6549_v55, %v6545_v54  ;;  %v1073_v12 = vcombine.low %v1051_v11, %v1058_v34  ;;  %v1065_v39 = vrot.slane %v1043_v35, %v7927_v6  ;;  %9311 = vst [vmem:[#allocation20_spill] sm:$0xff] %v8121_v2  ;;  %9314 = vst [vmem:[#allocation23_spill] sm:$0xff] %v8130_v46  ;;  %v8133_v7 = vld [vmem:[#allocation8 + $0x8] ss:$16 sps:$4 sm:$0xff]   ;;  %v8136_v54 = vld [vmem:[#allocation8 + $0xe4] ss:$16 sps:$4 sm:$0xff]  }
 0x171   :  { %9315 = vst [vmem:[#allocation24_spill] sm:$0xff] %v8133_v7  ;;  %9316 = vst [vmem:[#allocation25_spill] sm:$0xff] %v8136_v54  ;;  %v8139_v50 = vld [vmem:[#allocation8 + $0xec] ss:$16 sps:$4 sm:$0xff]   ;;  %v7478_v34 = vld [vmem:[%s9268_s0] sm:$0xff]  ;;  %s7688_s0 = smov [#allocation10]  }
 0x172   :  { %v1044_v61 = vcombine.low %v1024_v58, %v1025_v9  ;;  %v1081_v13 = vrot.slane %v1073_v12, %v7927_v6  ;;  %9317 = vst [vmem:[#allocation26_spill] sm:$0xff] %v8139_v50  ;;  %vm6197_vm7 = vcmp.gt.s32.totalorder %v7478_v34, 2  ;;  %vm6226_vm8 = vcmp.gt.s32.totalorder %v7478_v34, 3  ;;  %s6040_s22 = sshll.u32 %s7688_s0, 4  ;;  %s6041_s22 = int_to_ptr.vmem [resolvable:$true] %s6040_s22 }
 0x173   :  { %v2400_v55 = vsel %vm6197_vm7, 1, %v9276_v0  ;;  %v3086_v58 = vsel %vm6226_vm8, 1, %v9276_v0  ;;  %vm6284_vm9 = vcmp.gt.s32.totalorder %v7478_v34, 5  ;;  %vm6342_vm10 = vcmp.gt.s32.totalorder %v7478_v34, 7  ;;  %s7609_s25 = scalar_lea.vmem %s6041_s22, 128  ;;  %p7614_p2 = scmp.lt.s32.totalorder %s6041_s22, %s6041_s22 }
 0x174   :  { %v1072_v1 = vrot.slane %v1044_v61, %v7927_v6  ;;  %2402 = vperm.xlu1 %6363, %v2400_v55   ;;  %v4458_v9 = vsel %vm6284_vm9, 1, %v9276_v0  ;;  %v5830_v61 = vsel %vm6342_vm10, 1, %v9276_v0  ;;  %v1219_v55 = vld [vmem:[#allocation2 + $0x1] ss:$8 sm:$0xf]  ;;  %p7610_p1 = scmp.ne.s32.totalorder %s6041_s22, %s7609_s25  ;;  %p7615_p3 = scmp.lt.s32.totalorder %s7609_s25, %s7609_s25 }
 0x176   :  { %v1074_v56 = vcombine.low %v1065_v39, %v1072_v1  ;;  %p7616_p4 = por %p7615_p3, %p7614_p2 }
 0x178   :  { %v1088_v57 = vrot.slane %v1074_v56, %v7927_v6  ;;  %3088 = vperm.xlu1 %6363, %v3086_v58   ;;  %v1221_v58 = vld [vmem:[#allocation2 + $0x21] ss:$8 sm:$0xf]  ;;  %p7617_p5 = pnand %p7616_p4, %p7610_p1 }
 0x17a   :  { %v1089_v4 = vcombine.low %v1081_v13, %v1088_v57 }
 0x17c   :  { %v8031_v14 = vsel %vm1032_vm5, %v1089_v4, 0.0  ;;  %v7544_v10 = vpack.c.bf16 %v1089_v4, %v1089_v4  ;;  %4460 = vperm.xlu1 %6363, %v4458_v9   ;;  %v1223_v9 = vld [vmem:[#allocation2 + $0x41] ss:$8 sm:$0xf] }
 0x17d   :  { %v1093_v15 = vcombine.high %v8031_v14, %v8031_v14  ;;  %v1100_v40 = vrot.slane %v8031_v14, %v7927_v6 }
 0x17e   :  { %7545 = vmatmul.mubr.msk.bf16.vlgmr.msra.gmra.mxu0 %vm7543_vm6, %v7544_v10  ;;  %7548 = vmatmul.mubr.msk.bf16.vlgmr.msra.gmra.mxu1 %vm7543_vm6, %v7544_v10 }
 0x17f   :  { %v1107_v16 = vrot.slane %v1093_v15, %v7927_v6  ;;  %v1108_v8 = vcombine.high %v1100_v40, %v1100_v40  ;;  %v1116_v48 = vrot.slane %v1100_v40, %v7927_v6  ;;  %6140 = vst.sshfl [vmem:[#allocation9] sm:$0x1 pattern:$0x73625140] %v1100_v40  ;;  %1922 = vmatpush1.bf16.msra.mxu0 %v8041_v17 }
 0x180   :  { %1963 = vmatpush1.bf16.msra.mxu1 %v8044_v36  ;;  %1923 = vmatprep.subr.bf16.mxu0 %v8049_v21 }
 0x181   :  { %v1109_v18 = vcombine.high %v1107_v16, %v1107_v16  ;;  %v1123_v19 = vrot.slane %v1107_v16, %v7927_v6  ;;  %v1130_v41 = vrot.slane %v1108_v8, %v7927_v6  ;;  %v1138_v20 = vcombine.high %v1116_v48, %v1116_v48  ;;  %6141 = vst.sshfl [vmem:[#allocation9 + $0x8] sm:$0x1 pattern:$0x73625140] %v1108_v8 }
 0x182   :  { %6142 = vst.sshfl [vmem:[#allocation9 + $0x20] sm:$0x1 pattern:$0x73625140] %v1107_v16  ;;  %1964 = vmatprep.subr.bf16.mxu1 %v8052_v22  ;;  %1953 = vmatprep.mubr.bf16.mxu0 %v9276_v0 }
 0x183   :  { %v1137_v42 = vrot.slane %v1109_v18, %v7927_v6  ;;  %v1139_v23 = vcombine.high %v1123_v19, %v1123_v19  ;;  %v1140_v24 = vcombine.high %v1130_v41, %v1130_v41  ;;  %1152 = vst [vmem:[#allocation9 + $0x10] sm:$0x1] %v1138_v20  ;;  %6143 = vst.sshfl [vmem:[#allocation9 + $0x28] sm:$0x1 pattern:$0x73625140] %v1109_v18  ;;  %1994 = vmatprep.mubr.bf16.mxu1 %v9276_v0 }
 0x184   :  { %1924 = vmatpush1.bf16.msra.mxu0 %v8058_v25  ;;  %1965 = vmatpush1.bf16.msra.mxu1 %v8061_v45 }
 0x185   :  { %v1141_v26 = vcombine.high %v1137_v42, %v1137_v42  ;;  %1153 = vst [vmem:[#allocation9 + $0x18] sm:$0x1] %v1140_v24  ;;  %1156 = vst [vmem:[#allocation9 + $0x30] sm:$0x1] %v1139_v23  ;;  %1925 = vmatprep.subr.bf16.mxu0 %v8064_v27  ;;  %1966 = vmatprep.subr.bf16.mxu1 %v8067_v28 }
 0x186   :  { %5832 = vperm.xlu1 %6363, %v5830_v61  }
 0x187   :  { %1157 = vst [vmem:[#allocation9 + $0x38] sm:$0x1] %v1141_v26 }
 0x188   :  { %1926 = vmatpush1.bf16.msra.mxu0 %v8070_v29  ;;  %1967 = vmatpush1.bf16.msra.mxu1 %v8073_v30 }
 0x189   :  { %1927 = vmatprep.subr.bf16.mxu0 %v8076_v31  ;;  %1968 = vmatprep.subr.bf16.mxu1 %v8079_v32 }
 0x18c   :  { %1928 = vmatpush1.bf16.msra.mxu0 %v8082_v33  ;;  %1969 = vmatpush1.bf16.msra.mxu1 %v8085_v37 }
 0x18d   :  { %1929 = vmatprep.subr.bf16.mxu0 %v8088_v43  ;;  %1970 = vmatprep.subr.bf16.mxu1 %v8091_v44 }
 0x190   :  { %1930 = vmatpush1.bf16.msra.mxu0 %v8094_v47  ;;  %1971 = vmatpush1.bf16.msra.mxu1 %v8097_v49 }
 0x191   :  { %1931 = vmatprep.subr.bf16.mxu0 %v8100_v51  ;;  %1972 = vmatprep.subr.bf16.mxu1 %v8103_v52 }
 0x194   :  { %1932 = vmatpush1.bf16.msra.mxu0 %v8106_v53  ;;  %1973 = vmatpush1.bf16.msra.mxu1 %v8109_v59 }
 0x195   :  { %1933 = vmatprep.subr.bf16.mxu0 %v8112_v60  ;;  %1974 = vmatprep.subr.bf16.mxu1 %v8115_v62 }
 0x198   :  { %1934 = vmatpush1.bf16.msra.mxu0 %v8118_v63  ;;  %1975 = vmatpush1.bf16.msra.mxu1 %v8121_v2 }
 0x199   :  { %1935 = vmatprep.subr.bf16.mxu0 %v8124_v3  ;;  %1976 = vmatprep.subr.bf16.mxu1 %v8127_v5 }
 0x19c   :  { %1936 = vmatpush1.bf16.msra.mxu0 %v8130_v46  ;;  %1977 = vmatpush1.bf16.msra.mxu1 %v8133_v7 }
 0x19d   :  { %2607 = vmatprep.subr.bf16.mxu0 %v8136_v54  ;;  %2648 = vmatprep.subr.bf16.mxu1 %v8139_v50 }
 0x23e   :  { %v1269_v35 = vpop.f32.mrf.mxu0  ;;  %v1310_v11 = vpop.f32.mrf.mxu1 }
 0x240   :  { %v1271_v12 = vpop.f32.mrf.mxu0  ;;  %v1312_v39 = vpop.f32.mrf.mxu1 }
 0x241   :  { %v1321_v1 = vcombine.low %v1269_v35, %v1271_v12  ;;  %v1322_v56 = vcombine.high %v1269_v35, %v1271_v12  ;;  %v1323_v13 = vcombine.low %v1310_v11, %v1312_v39  ;;  %v1324_v57 = vcombine.high %v1310_v11, %v1312_v39  ;;  %v1227_v35 = vld [vmem:[#allocation2 + $0x81] ss:$8 sm:$0xf] }
 0x242   :  { %v1273_v4 = vpop.f32.mrf.mxu0  ;;  %v1314_v15 = vpop.f32.mrf.mxu1 }
 0x243   :  { %v1331_v40 = vrot.slane %v1321_v1, %v7927_v6  ;;  %v1338_v16 = vrot.slane %v1322_v56, %v7927_v6  ;;  %v1345_v8 = vrot.slane %v1323_v13, %v7927_v6  ;;  %v1352_v48 = vrot.slane %v1324_v57, %v7927_v6  ;;  %v1225_v1 = vld [vmem:[#allocation2 + $0x61] ss:$8 sm:$0xf] }
 0x244   :  { %v1274_v10 = vpop.f32.mrf.mxu0  ;;  %v1315_v18 = vpop.f32.mrf.mxu1  ;;  %v1229_v56 = vld [vmem:[#allocation2 + $0xa1] ss:$8 sm:$0xf] }
 0x245   :  { %v1353_v19 = vcombine.low %v1331_v40, %v1345_v8  ;;  %v1354_v41 = vcombine.high %v1331_v40, %v1345_v8  ;;  %v1355_v20 = vcombine.low %v1338_v16, %v1352_v48  ;;  %v1356_v42 = vcombine.high %v1338_v16, %v1352_v48  ;;  %v1231_v15 = vld [vmem:[#allocation2 + $0xc1] ss:$8 sm:$0xf] }
 0x246   :  { %v1233_v40 = vld [vmem:[#allocation2 + $0xe1] ss:$8 sm:$0xf] }
 0x247   :  { %v1363_v23 = vrot.slane %v1353_v19, %v7927_v6  ;;  %v1370_v24 = vrot.slane %v1355_v20, %v7927_v6  ;;  %v1377_v26 = vrot.slane %v1354_v41, %v7927_v6  ;;  %v1384_v34 = vrot.slane %v1356_v42, %v7927_v6 }
 0x249   :  { %v1385_v11 = vcombine.high %v1363_v23, %v1363_v23  ;;  %v1386_v61 = vcombine.high %v1370_v24, %v1370_v24  ;;  %v1387_v12 = vcombine.high %v1377_v26, %v1377_v26  ;;  %v1388_v39 = vcombine.high %v1384_v34, %v1384_v34 }
 0x24a   :  { %v8157_v13 = vadd.f32 %v1363_v23, %v1219_v55  ;;  %v8159_v57 = vadd.f32 %v1377_v26, %v1221_v58  ;;  %v8161_v4 = vadd.f32 %v1370_v24, %v1227_v35  ;;  %v8167_v48 = vadd.f32 %v1384_v34, %v1229_v56 }
 0x24b   :  { %v8163_v16 = vadd.f32 %v1385_v11, %v1223_v9  ;;  %v8165_v8 = vadd.f32 %v1387_v12, %v1225_v1  ;;  %v8169_v10 = vadd.f32 %v1386_v61, %v1231_v15  ;;  %v8173_v41 = vadd.f32 %v1388_v39, %v1233_v40 }
 0x24c   :  { %v6144_v18 = vmul.f32 -1.442695, %v8157_v13  ;;  %v6145_v19 = vmul.f32 -1.442695, %v8159_v57  ;;  %v6148_v23 = vmul.f32 -1.442695, %v8161_v4 }
 0x24d   :  { %v6146_v20 = vmul.f32 -1.442695, %v8163_v16  ;;  %v6147_v42 = vmul.f32 -1.442695, %v8165_v8  ;;  %v1461_v24 = vrot.slane %v8157_v13, 1  ;;  %v1462_v34 = vrot.slane %v8159_v57, 1 }
 0x24e   :  { %6550 = vpow2.f32 %v6144_v18  ;;  %v6149_v26 = vmul.f32 -1.442695, %v8167_v48  ;;  %v6150_v55 = vmul.f32 -1.442695, %v8169_v10  ;;  %v1463_v58 = vrot.slane %v8163_v16, 1 }
 0x24f   :  { %6552 = vpow2.f32 %v6145_v19  ;;  %v6151_v9 = vmul.f32 -1.442695, %v8173_v41  ;;  %v1464_v35 = vrot.slane %v8165_v8, 1  ;;  %v1465_v11 = vrot.slane %v8161_v4, 1 }
 0x250   :  { %6554 = vpow2.f32 %v6146_v20  ;;  %v6152_v61 = vmul.f32 -1.442695, %v1461_v24  ;;  %v1466_v12 = vrot.slane %v8167_v48, 1  ;;  %v6153_v39 = vmul.f32 -1.442695, %v1462_v34 }
 0x251   :  { %6556 = vpow2.f32 %v6147_v42  ;;  %v1467_v1 = vrot.slane %v8169_v10, 1  ;;  %v6154_v56 = vmul.f32 -1.442695, %v1463_v58  ;;  %v1468_v15 = vrot.slane %v8173_v41, 1 }
 0x252   :  { %6558 = vpow2.f32 %v6148_v23  ;;  %v6155_v40 = vmul.f32 -1.442695, %v1464_v35  ;;  %v6156_v18 = vmul.f32 -1.442695, %v1465_v11  ;;  %v6157_v19 = vmul.f32 -1.442695, %v1466_v12 }
 0x253   :  { %6560 = vpow2.f32 %v6149_v26  ;;  %v6158_v20 = vmul.f32 -1.442695, %v1467_v1  ;;  %v6159_v42 = vmul.f32 -1.442695, %v1468_v15  ;;  %v1556_v5 = vrot.slane %v8173_v41, 3 }
 0x254   :  { %6562 = vpow2.f32 %v6150_v55 }
 0x255   :  { %6564 = vpow2.f32 %v6151_v9 }
 0x256   :  { %6566 = vpow2.f32 %v6152_v61 }
 0x257   :  { %6568 = vpow2.f32 %v6153_v39 }
 0x258   :  { %6570 = vpow2.f32 %v6154_v56 }
 0x259   :  { %6572 = vpow2.f32 %v6155_v40 }
 0x25a   :  { %6574 = vpow2.f32 %v6156_v18 }
 0x25b   :  { %v6551_v23 = vpop.eup %6550  ;;  %6576 = vpow2.f32 %v6157_v19 }
 0x25c   :  { %v6553_v24 = vpop.eup %6552  ;;  %v1429_v26 = vadd.f32 1.0, %v6551_v23  ;;  %6578 = vpow2.f32 %v6158_v20 }
 0x25d   :  { %v6555_v34 = vpop.eup %6554  ;;  %v1430_v55 = vadd.f32 1.0, %v6553_v24  ;;  %6580 = vpow2.f32 %v6159_v42 }
 0x25e   :  { %v6557_v58 = vpop.eup %6556  ;;  %v1431_v9 = vadd.f32 1.0, %v6555_v34  ;;  %6582 = vrcp.f32 %v1429_v26 }
 0x25f   :  { %v6559_v35 = vpop.eup %6558  ;;  %v1432_v11 = vadd.f32 1.0, %v6557_v58  ;;  %6584 = vrcp.f32 %v1430_v55 }
 0x260   :  { %v6561_v61 = vpop.eup %6560  ;;  %v1433_v12 = vadd.f32 1.0, %v6559_v35  ;;  %6586 = vrcp.f32 %v1431_v9 }
 0x261   :  { %v6563_v39 = vpop.eup %6562  ;;  %v1434_v1 = vadd.f32 1.0, %v6561_v61  ;;  %6588 = vrcp.f32 %v1432_v11 }
 0x262   :  { %v6565_v56 = vpop.eup %6564  ;;  %v1435_v15 = vadd.f32 1.0, %v6563_v39  ;;  %6590 = vrcp.f32 %v1433_v12  ;;  %v1525_v39 = vrot.slane %v8157_v13, 2 }
 0x263   :  { %v6567_v40 = vpop.eup %6566  ;;  %v1436_v18 = vadd.f32 1.0, %v6565_v56  ;;  %6592 = vrcp.f32 %v1434_v1 }
 0x264   :  { %v6569_v19 = vpop.eup %6568  ;;  %6594 = vrcp.f32 %v1435_v15  ;;  %v1501_v20 = vadd.f32 1.0, %v6567_v40  ;;  %v1526_v15 = vrot.slane %v8159_v57, 2 }
 0x265   :  { %v6571_v42 = vpop.eup %6570  ;;  %6596 = vrcp.f32 %v1436_v18  ;;  %v1502_v23 = vadd.f32 1.0, %v6569_v19  ;;  %v1527_v18 = vrot.slane %v8163_v16, 2 }
 0x266   :  { %v6573_v24 = vpop.eup %6572  ;;  %v1503_v26 = vadd.f32 1.0, %v6571_v42  ;;  %6598 = vrcp.f32 %v1501_v20  ;;  %v1528_v20 = vrot.slane %v8165_v8, 2 }
 0x267   :  { %v6575_v34 = vpop.eup %6574  ;;  %v1504_v55 = vadd.f32 1.0, %v6573_v24  ;;  %6600 = vrcp.f32 %v1502_v23  ;;  %v1614_v23 = vcombine.high %v8022_v38, %v8022_v38  ;;  %v1529_v24 = vrot.slane %v8161_v4, 2 }
 0x268   :  { %v6577_v58 = vpop.eup %6576  ;;  %v1505_v9 = vadd.f32 1.0, %v6575_v34  ;;  %6602 = vrcp.f32 %v1503_v26  ;;  %v1549_v26 = vrot.slane %v8157_v13, 3  ;;  %v1532_v13 = vrot.slane %v8173_v41, 2 }
 0x269   :  { %v6579_v35 = vpop.eup %6578  ;;  %v1506_v11 = vadd.f32 1.0, %v6577_v58  ;;  %6604 = vrcp.f32 %v1504_v55  ;;  %v1621_v55 = vrot.slane %v8022_v38, %v7927_v6  ;;  %v1530_v58 = vrot.slane %v8167_v48, 2 }
 0x26a   :  { %v6581_v61 = vpop.eup %6580  ;;  %v1507_v12 = vadd.f32 1.0, %v6579_v35  ;;  %6606 = vrcp.f32 %v1505_v9  ;;  %v1550_v9 = vrot.slane %v8159_v57, 3  ;;  %v1553_v57 = vrot.slane %v8161_v4, 3 }
 0x26b   :  { %v8190_v1 = vpop.eup %6582  ;;  %v1508_v56 = vadd.f32 1.0, %v6581_v61  ;;  %6608 = vrcp.f32 %v1506_v11  ;;  %v1531_v11 = vrot.slane %v8169_v10, 2  ;;  %v1551_v61 = vrot.slane %v8163_v16, 3 }
 0x26c   :  { %v8193_v40 = vpop.eup %6584  ;;  %6610 = vrcp.f32 %v1507_v12  ;;  %v6160_v0 = vmul.f32 -1.442695, %v1549_v26  ;;  %v1629_v54 = vcombine.high %v1621_v55, %v1621_v55  ;;  %v1554_v16 = vrot.slane %v8167_v48, 3 }
 0x26d   :  { %v8196_v19 = vpop.eup %6586  ;;  %6612 = vrcp.f32 %v1508_v56  ;;  %v6162_v46 = vmul.f32 -1.442695, %v1551_v61  ;;  %v1637_v4 = vrot.slane %v1621_v55, %v7927_v6  ;;  %v6164_v26 = vmul.f32 -1.442695, %v1553_v57 }
 0x26e   :  { %v8199_v42 = vpop.eup %6588  ;;  %6614 = vtanh.f32 %v1525_v39  ;;  %v1552_v39 = vrot.slane %v8165_v8, 3  ;;  %v1651_v48 = vrot.slane %v1629_v54, %v7927_v6  ;;  %v6167_v41 = vmul.f32 -1.442695, %v1556_v5 }
 0x26f   :  { %v8205_v34 = vpop.eup %6590  ;;  %6616 = vtanh.f32 %v1526_v15  ;;  %v1628_v15 = vrot.slane %v1614_v23, %v7927_v6  ;;  %v1659_v63 = vcombine.high %v1637_v4, %v1637_v4 }
 0x270   :  { %v8211_v35 = vpop.eup %6592  ;;  %6618 = vtanh.f32 %v1527_v18  ;;  %v6161_v18 = vmul.f32 -1.442695, %v1550_v9  ;;  %v6163_v23 = vmul.f32 -1.442695, %v1552_v39  ;;  %v6165_v9 = vmul.f32 -1.442695, %v1554_v16 }
 0x271   :  { %v8215_v12 = vpop.eup %6594  ;;  %6620 = vtanh.f32 %v1528_v20  ;;  %v1555_v20 = vrot.slane %v8169_v10, 3  ;;  %v1630_v3 = vcombine.high %v1628_v15, %v1628_v15  ;;  %v1661_v57 = vcombine.high %v1651_v48, %v1651_v48 }
 0x272   :  { %v8219_v56 = vpop.eup %6596  ;;  %6622 = vtanh.f32 %v1529_v24 }
 0x273   :  { %v6599_v50 = vpop.eup %6598  ;;  %6624 = vtanh.f32 %v1530_v58  ;;  %v6166_v10 = vmul.f32 -1.442695, %v1555_v20  ;;  %v1658_v2 = vrot.slane %v1630_v3, %v7927_v6 }
 0x274   :  { %v6601_v7 = vpop.eup %6600  ;;  %6626 = vtanh.f32 %v1531_v11 }
 0x275   :  { %v6603_v8 = vpop.eup %6602  ;;  %6628 = vtanh.f32 %v1532_v13  ;;  %v1644_v13 = vrot.slane %v1628_v15, %v7927_v6  ;;  %v1672_v54 = vmul.f32 %v6601_v7, %v1651_v48  ;;  %v1662_v3 = vcombine.high %v1658_v2, %v1658_v2 }
 0x276   :  { %v6605_v24 = vpop.eup %6604  ;;  %6630 = vpow2.f32 %v6160_v0  ;;  %v1671_v0 = vmul.f32 %v6599_v50, %v1637_v4  ;;  %v1673_v16 = vmul.f32 %v6603_v8, %v1659_v63 }
 0x277   :  { %v6607_v58 = vpop.eup %6606  ;;  %6632 = vpow2.f32 %v6161_v18  ;;  %v1660_v62 = vcombine.high %v1644_v13, %v1644_v13  ;;  %v1674_v15 = vmul.f32 %v6605_v24, %v1661_v57 }
 0x278   :  { %v6609_v11 = vpop.eup %6608  ;;  %6634 = vpow2.f32 %v6162_v46  ;;  %v1675_v60 = vmul.f32 %v6607_v58, %v1644_v13 }
 0x279   :  { %v6611_v61 = vpop.eup %6610  ;;  %6636 = vpow2.f32 %v6163_v23 }
 0x27a   :  { %v6613_v39 = vpop.eup %6612  ;;  %6638 = vpow2.f32 %v6164_v26  ;;  %v1677_v7 = vmul.f32 %v6611_v61, %v1660_v62 }
 0x27b   :  { %v6615_v55 = vpop.eup %6614  ;;  %6640 = vpow2.f32 %v6165_v9  ;;  %v1676_v9 = vmul.f32 %v6609_v11, %v1658_v2 }
 0x27c   :  { %v6617_v18 = vpop.eup %6616  ;;  %6642 = vpow2.f32 %v6166_v10  ;;  %v1679_v46 = vmul.f32 %v6615_v55, %v8190_v1  ;;  %v1678_v1 = vmul.f32 %v6613_v39, %v1662_v3 }
 0x27d   :  { %v6619_v20 = vpop.eup %6618  ;;  %6644 = vpow2.f32 %v6167_v41  ;;  %v1680_v5 = vmul.f32 %v6617_v18, %v8193_v40 }
 0x27e   :  { %v6621_v23 = vpop.eup %6620  ;;  %v1681_v50 = vmul.f32 %v6619_v20, %v8196_v19  ;;  %v1687_v4 = vadd.f32 %v1679_v46, %v1671_v0 }
 0x27f   :  { %v6623_v26 = vpop.eup %6622  ;;  %v1682_v48 = vmul.f32 %v6621_v23, %v8199_v42  ;;  %v1688_v63 = vadd.f32 %v1680_v5, %v1672_v54 }
 0x280   :  { %v6625_v8 = vpop.eup %6624  ;;  %v1683_v10 = vmul.f32 %v6623_v26, %v8205_v34  ;;  %v1689_v41 = vadd.f32 %v1681_v50, %v1673_v16  ;;  %6646 = vtanh.f32 %v1687_v4 }
 0x281   :  { %v6627_v24 = vpop.eup %6626  ;;  %v1684_v40 = vmul.f32 %v6625_v8, %v8211_v35  ;;  %v1690_v55 = vadd.f32 %v1682_v48, %v1674_v15  ;;  %6648 = vtanh.f32 %v1688_v63  ;;  %v1853_v58 = vcombine.low %v1687_v4, %v1688_v63 }
 0x282   :  { %v6629_v19 = vpop.eup %6628  ;;  %v1685_v13 = vmul.f32 %v6627_v24, %v8215_v12  ;;  %v1691_v2 = vadd.f32 %v1683_v10, %v1675_v60  ;;  %6650 = vtanh.f32 %v1689_v41 }
 0x283   :  { %v6631_v62 = vpop.eup %6630  ;;  %v1686_v42 = vmul.f32 %v6629_v19, %v8219_v56  ;;  %v1692_v11 = vadd.f32 %v1684_v40, %v1676_v9  ;;  %6652 = vtanh.f32 %v1690_v55  ;;  %v1854_v61 = vcombine.low %v1689_v41, %v1690_v55  ;;  %v1717_v55 = vpop.permute.xlu0 %1716 }
 0x284   :  { %v6633_v34 = vpop.eup %6632  ;;  %v1589_v39 = vadd.f32 1.0, %v6631_v62  ;;  %v1693_v0 = vadd.f32 %v1685_v13, %v1677_v7  ;;  %6654 = vtanh.f32 %v1691_v2  ;;  %v1863_v60 = vrot.slane %v1853_v58, %v7927_v6 }
 0x285   :  { %v6635_v57 = vpop.eup %6634  ;;  %v1590_v35 = vadd.f32 1.0, %v6633_v34  ;;  %v1694_v54 = vadd.f32 %v1686_v42, %v1678_v1  ;;  %6656 = vtanh.f32 %v1692_v11  ;;  %v1855_v18 = vcombine.low %v1691_v2, %v1692_v11 }
 0x286   :  { %v6637_v16 = vpop.eup %6636  ;;  %v1591_v46 = vadd.f32 1.0, %v6635_v57  ;;  %6658 = vrcp.f32 %v1589_v39  ;;  %v1870_v12 = vrot.slane %v1854_v61, %v7927_v6  ;;  %vm1718_vm11 = vcmp.eq.s32.totalorder %v1717_v55, 1 }
 0x287   :  { %v6639_v56 = vpop.eup %6638  ;;  %v1592_v20 = vadd.f32 1.0, %v6637_v16  ;;  %6660 = vrcp.f32 %v1590_v35  ;;  %v1856_v15 = vcombine.low %v1693_v0, %v1694_v54  ;;  %v1877_v26 = vrot.slane %v1855_v18, %v7927_v6 }
 0x288   :  { %v6641_v5 = vpop.eup %6640  ;;  %v1593_v23 = vadd.f32 1.0, %v6639_v56  ;;  %6662 = vrcp.f32 %v1591_v46  ;;  %v1885_v3 = vcombine.low %v1863_v60, %v1870_v12 }
 0x289   :  { %v6643_v50 = vpop.eup %6642  ;;  %v1594_v4 = vadd.f32 1.0, %v6641_v5  ;;  %6664 = vrcp.f32 %v1592_v20  ;;  %v1884_v9 = vrot.slane %v1856_v15, %v7927_v6 }
 0x28a   :  { %v6645_v7 = vpop.eup %6644  ;;  %v1595_v48 = vadd.f32 1.0, %v6643_v50  ;;  %6666 = vrcp.f32 %v1593_v23  ;;  %v1893_v1 = vrot.slane %v1885_v3, %v7927_v6 }
 0x28b   :  { %v1596_v63 = vadd.f32 1.0, %v6645_v7  ;;  %6668 = vrcp.f32 %v1594_v4  ;;  %v1886_v8 = vcombine.low %v1877_v26, %v1884_v9 }
 0x28c   :  { %6670 = vrcp.f32 %v1595_v48 }
 0x28d   :  { %v6647_v10 = vpop.eup %6646  ;;  %6672 = vrcp.f32 %v1596_v63  ;;  %v1900_v41 = vrot.slane %v1886_v8, %v7927_v6 }
 0x28e   :  { %v6649_v24 = vpop.eup %6648  ;;  %6674 = vtanh.f32 %v1693_v0 }
 0x28f   :  { %v6651_v40 = vpop.eup %6650  ;;  %6676 = vtanh.f32 %v1694_v54  ;;  %v1901_v58 = vcombine.low %v1893_v1, %v1900_v41 }
 0x290   :  { %v6653_v19 = vpop.eup %6652 }
 0x291   :  { %v6655_v13 = vpop.eup %6654  ;;  %v8246_v2 = vsel %vm1718_vm11, %v1901_v58, %v8022_v38 }
 0x292   :  { %v6657_v62 = vpop.eup %6656 }
 0x293   :  { %v6659_v42 = vpop.eup %6658 }
 0x294   :  { %v6661_v11 = vpop.eup %6660  ;;  %v1703_v34 = vmul.f32 %v6659_v42, %v6647_v10 }
 0x295   :  { %v6663_v61 = vpop.eup %6662  ;;  %v1704_v39 = vmul.f32 %v6661_v11, %v6649_v24 }
 0x296   :  { %v6665_v57 = vpop.eup %6664  ;;  %v1705_v35 = vmul.f32 %v6663_v61, %v6651_v40 }
 0x297   :  { %v6667_v0 = vpop.eup %6666  ;;  %v1706_v18 = vmul.f32 %v6665_v57, %v6653_v19  ;;  %v1727_v12 = vcombine.low %v1703_v34, %v1704_v39  ;;  %v9318_v34 = vmov 0  }
 0x298   :  { %v6669_v16 = vpop.eup %6668  ;;  %v1707_v46 = vmul.f32 %v6667_v0, %v6655_v13 }
 0x299   :  { %v6671_v54 = vpop.eup %6670  ;;  %v1708_v60 = vmul.f32 %v6669_v16, %v6657_v62  ;;  %v1728_v56 = vcombine.low %v1705_v35, %v1706_v18  ;;  %v1737_v4 = vrot.slane %v1727_v12, %v7927_v6 }
 0x29a   :  { %v6673_v20 = vpop.eup %6672 }
 0x29b   :  { %v6675_v15 = vpop.eup %6674  ;;  %v1744_v38 = vrot.slane %v1728_v56, %v7927_v6  ;;  %v1729_v50 = vcombine.low %v1707_v46, %v1708_v60 }
 0x29c   :  { %v6677_v5 = vpop.eup %6676  ;;  %v1709_v23 = vmul.f32 %v6675_v15, %v6671_v54 }
 0x29d   :  { %v1710_v3 = vmul.f32 %v6677_v5, %v6673_v20  ;;  %v1759_v9 = vcombine.low %v1737_v4, %v1744_v38  ;;  %v1751_v7 = vrot.slane %v1729_v50, %v7927_v6  ;;  %v1907_v50 = vld [vmem:[#allocation2 + $0x22] ss:$8 sm:$0xf] }
 0x29e   :  { %v1909_v4 = vld [vmem:[#allocation2 + $0x42] ss:$8 sm:$0xf] }
 0x29f   :  { %v1730_v26 = vcombine.low %v1709_v23, %v1710_v3  ;;  %v1767_v8 = vrot.slane %v1759_v9, %v7927_v6  ;;  %v1905_v3 = vld [vmem:[#allocation2 + $0x2] ss:$8 sm:$0xf] }
 0x2a1   :  { %v1758_v48 = vrot.slane %v1730_v26, %v7927_v6  ;;  %v1913_v26 = vld [vmem:[#allocation2 + $0x82] ss:$8 sm:$0xf] }
 0x2a3   :  { %v1760_v63 = vcombine.low %v1751_v7, %v1758_v48 }
 0x2a5   :  { %v1774_v1 = vrot.slane %v1760_v63, %v7927_v6 }
 0x2a7   :  { %v1775_v10 = vcombine.low %v1767_v8, %v1774_v1  ;;  %v1911_v8 = vld [vmem:[#allocation2 + $0x62] ss:$8 sm:$0xf] }
 0x2a8   :  { %v1915_v1 = vld [vmem:[#allocation2 + $0xa2] ss:$8 sm:$0xf] }
 0x2a9   :  { %v1777_v41 = vsel %vm1718_vm11, %v1775_v10, 0.0  ;;  %v8257_v24 = vsel %vm1718_vm11, %v1775_v10, %v8031_v14 }
 0x2aa   :  { %v1779_v40 = vcombine.high %v1777_v41, %v1777_v41  ;;  %v1786_v58 = vrot.slane %v1777_v41, %v7927_v6  ;;  %v1920_v19 = vpack.c.bf16 %v8257_v24, %v8257_v24 }
 0x2ac   :  { %v1793_v13 = vrot.slane %v1779_v40, %v7927_v6  ;;  %v1794_v62 = vcombine.high %v1786_v58, %v1786_v58  ;;  %v1802_v42 = vrot.slane %v1786_v58, %v7927_v6  ;;  %6169 = vst.sshfl [vmem:[#allocation9 + $0x1] sm:$0x1 pattern:$0x73625140] %v1786_v58  ;;  %1954 = vmatmul.mubr.bf16.vlgmr.msra.gmra.mxu0 %v1920_v19 }
 0x2ad   :  { %1995 = vmatmul.mubr.bf16.vlgmr.msra.gmra.mxu1 %v1920_v19  ;;  %2608 = vmatpush1.bf16.msra.mxu0 %v8041_v17  ;;  %v1917_v58 = vld [vmem:[#allocation2 + $0xc2] ss:$8 sm:$0xf] }
 0x2ae   :  { %2649 = vmatpush1.bf16.msra.mxu1 %v8044_v36  ;;  %v1795_v14 = vcombine.high %v1793_v13, %v1793_v13  ;;  %v1809_v55 = vrot.slane %v1793_v13, %v7927_v6  ;;  %v1816_v11 = vrot.slane %v1794_v62, %v7927_v6  ;;  %v1824_v61 = vcombine.high %v1802_v42, %v1802_v42  ;;  %v1919_v19 = vld [vmem:[#allocation2 + $0xe2] ss:$8 sm:$0xf] }
 0x2af   :  { %6170 = vst.sshfl [vmem:[#allocation9 + $0x9] sm:$0x1 pattern:$0x73625140] %v1794_v62  ;;  %2609 = vmatprep.subr.bf16.mxu0 %v8049_v21  ;;  %2650 = vmatprep.subr.bf16.mxu1 %v8052_v22  ;;  %v9319_v21 = vld [vmem:[#allocation17_spill] sm:$0xff]  ;;  %v9320_v22 = vld [vmem:[#allocation18_spill] sm:$0xff] }
 0x2b0   :  { %6171 = vst.sshfl [vmem:[#allocation9 + $0x21] sm:$0x1 pattern:$0x73625140] %v1793_v13  ;;  %2639 = vmatprep.mubr.bf16.mxu0 %v9318_v34  ;;  %v1823_v39 = vrot.slane %v1795_v14, %v7927_v6  ;;  %v1825_v57 = vcombine.high %v1809_v55, %v1809_v55  ;;  %v1826_v17 = vcombine.high %v1816_v11, %v1816_v11  ;;  %1838 = vst [vmem:[#allocation9 + $0x11] sm:$0x1] %v1824_v61 }
 0x2b1   :  { %6172 = vst.sshfl [vmem:[#allocation9 + $0x29] sm:$0x1 pattern:$0x73625140] %v1795_v14  ;;  %2680 = vmatprep.mubr.bf16.mxu1 %v9318_v34  ;;  %2610 = vmatpush1.bf16.msra.mxu0 %v8058_v25  ;;  %v9321_v25 = vld [vmem:[#allocation19_spill] sm:$0xff] }
 0x2b2   :  { %2651 = vmatpush1.bf16.msra.mxu1 %v8061_v45  ;;  %v1827_v36 = vcombine.high %v1823_v39, %v1823_v39  ;;  %1839 = vst [vmem:[#allocation9 + $0x19] sm:$0x1] %v1826_v17  ;;  %1842 = vst [vmem:[#allocation9 + $0x31] sm:$0x1] %v1825_v57  ;;  %2611 = vmatprep.subr.bf16.mxu0 %v8064_v27  ;;  %v9322_v45 = vld [vmem:[#allocation20_spill] sm:$0xff]  ;;  %v9323_v27 = vld [vmem:[#allocation21_spill] sm:$0xff] }
 0x2b3   :  { %2652 = vmatprep.subr.bf16.mxu1 %v8067_v28  ;;  %v9324_v28 = vld [vmem:[#allocation22_spill] sm:$0xff] }
 0x2b4   :  { %1843 = vst [vmem:[#allocation9 + $0x39] sm:$0x1] %v1827_v36 }
 0x2b5   :  { %2612 = vmatpush1.bf16.msra.mxu0 %v8070_v29  ;;  %v9325_v29 = vld [vmem:[#allocation23_spill] sm:$0xff] }
 0x2b6   :  { %2653 = vmatpush1.bf16.msra.mxu1 %v8073_v30  ;;  %2613 = vmatprep.subr.bf16.mxu0 %v8076_v31  ;;  %v9326_v30 = vld [vmem:[#allocation24_spill] sm:$0xff]  ;;  %v9327_v31 = vld [vmem:[#allocation25_spill] sm:$0xff] }
 0x2b7   :  { %2654 = vmatprep.subr.bf16.mxu1 %v8079_v32  ;;  %v9328_v32 = vld [vmem:[#allocation26_spill] sm:$0xff] }
 0x2b9   :  { %2614 = vmatpush1.bf16.msra.mxu0 %v8082_v33 }
 0x2ba   :  { %2655 = vmatpush1.bf16.msra.mxu1 %v8085_v37  ;;  %2615 = vmatprep.subr.bf16.mxu0 %v8088_v43 }
 0x2bb   :  { %2656 = vmatprep.subr.bf16.mxu1 %v8091_v44 }
 0x2bd   :  { %2616 = vmatpush1.bf16.msra.mxu0 %v8094_v47 }
 0x2be   :  { %2657 = vmatpush1.bf16.msra.mxu1 %v8097_v49  ;;  %2617 = vmatprep.subr.bf16.mxu0 %v8100_v51 }
 0x2bf   :  { %2658 = vmatprep.subr.bf16.mxu1 %v8103_v52 }
 0x2c1   :  { %2618 = vmatpush1.bf16.msra.mxu0 %v8106_v53 }
 0x2c2   :  { %2659 = vmatpush1.bf16.msra.mxu1 %v8109_v59  ;;  %2619 = vmatprep.subr.bf16.mxu0 %v9319_v21 }
 0x2c3   :  { %2660 = vmatprep.subr.bf16.mxu1 %v9320_v22 }
 0x2c5   :  { %2620 = vmatpush1.bf16.msra.mxu0 %v9321_v25 }
 0x2c6   :  { %2661 = vmatpush1.bf16.msra.mxu1 %v9322_v45  ;;  %2621 = vmatprep.subr.bf16.mxu0 %v9323_v27 }
 0x2c7   :  { %2662 = vmatprep.subr.bf16.mxu1 %v9324_v28 }
 0x2c9   :  { %2622 = vmatpush1.bf16.msra.mxu0 %v9325_v29 }
 0x2ca   :  { %2663 = vmatpush1.bf16.msra.mxu1 %v9326_v30  ;;  %3293 = vmatprep.subr.bf16.mxu0 %v9327_v31 }
 0x2cb   :  { %3334 = vmatprep.subr.bf16.mxu1 %v9328_v32 }
 0x36c   :  { %v1955_v33 = vpop.f32.mrf.mxu0 }
 0x36d   :  { %v1996_v37 = vpop.f32.mrf.mxu1 }
 0x36e   :  { %v1957_v43 = vpop.f32.mrf.mxu0 }
 0x36f   :  { %v1998_v44 = vpop.f32.mrf.mxu1  ;;  %v2007_v47 = vcombine.low %v1955_v33, %v1957_v43  ;;  %v2008_v49 = vcombine.high %v1955_v33, %v1957_v43 }
 0x370   :  { %v2009_v51 = vcombine.low %v1996_v37, %v1998_v44  ;;  %v2010_v52 = vcombine.high %v1996_v37, %v1998_v44  ;;  %v1959_v53 = vpop.f32.mrf.mxu0 }
 0x371   :  { %v2000_v59 = vpop.f32.mrf.mxu1  ;;  %v2017_v35 = vrot.slane %v2007_v47, %v7927_v6  ;;  %v2024_v0 = vrot.slane %v2008_v49, %v7927_v6 }
 0x372   :  { %v2031_v18 = vrot.slane %v2009_v51, %v7927_v6  ;;  %v2038_v16 = vrot.slane %v2010_v52, %v7927_v6  ;;  %v1960_v54 = vpop.f32.mrf.mxu0 }
 0x373   :  { %v2001_v46 = vpop.f32.mrf.mxu1 }
 0x374   :  { %v2039_v60 = vcombine.low %v2017_v35, %v2031_v18  ;;  %v2040_v12 = vcombine.high %v2017_v35, %v2031_v18  ;;  %v2041_v56 = vcombine.low %v2024_v0, %v2038_v16  ;;  %v2042_v20 = vcombine.high %v2024_v0, %v2038_v16 }
 0x376   :  { %v2049_v15 = vrot.slane %v2039_v60, %v7927_v6  ;;  %v2056_v38 = vrot.slane %v2041_v56, %v7927_v6  ;;  %v2063_v5 = vrot.slane %v2040_v12, %v7927_v6  ;;  %v2070_v23 = vrot.slane %v2042_v20, %v7927_v6 }
 0x378   :  { %v2071_v9 = vcombine.high %v2049_v15, %v2049_v15  ;;  %v2072_v7 = vcombine.high %v2056_v38, %v2056_v38  ;;  %v2073_v48 = vcombine.high %v2063_v5, %v2063_v5  ;;  %v2074_v63 = vcombine.high %v2070_v23, %v2070_v23 }
 0x379   :  { %v8309_v10 = vadd.f32 %v2049_v15, %v1905_v3  ;;  %v8311_v41 = vadd.f32 %v2063_v5, %v1907_v50  ;;  %v8313_v40 = vadd.f32 %v2056_v38, %v1913_v26  ;;  %v8319_v42 = vadd.f32 %v2070_v23, %v1915_v1 }
 0x37a   :  { %v8315_v13 = vadd.f32 %v2071_v9, %v1909_v4  ;;  %v8317_v62 = vadd.f32 %v2073_v48, %v1911_v8  ;;  %v8321_v14 = vadd.f32 %v2072_v7, %v1917_v58  ;;  %v8325_v61 = vadd.f32 %v2074_v63, %v1919_v19 }
 0x37b   :  { %v6173_v55 = vmul.f32 -1.442695, %v8309_v10  ;;  %v6174_v11 = vmul.f32 -1.442695, %v8311_v41  ;;  %v6177_v17 = vmul.f32 -1.442695, %v8313_v40 }
 0x37c   :  { %v6175_v39 = vmul.f32 -1.442695, %v8315_v13  ;;  %v6176_v57 = vmul.f32 -1.442695, %v8317_v62  ;;  %v2147_v36 = vrot.slane %v8309_v10, 1  ;;  %v2148_v22 = vrot.slane %v8311_v41, 1 }
 0x37d   :  { %6678 = vpow2.f32 %v6173_v55  ;;  %v6178_v21 = vmul.f32 -1.442695, %v8319_v42  ;;  %v6179_v25 = vmul.f32 -1.442695, %v8321_v14  ;;  %v2149_v45 = vrot.slane %v8315_v13, 1 }
 0x37e   :  { %6680 = vpow2.f32 %v6174_v11  ;;  %v6180_v27 = vmul.f32 -1.442695, %v8325_v61  ;;  %v2150_v28 = vrot.slane %v8317_v62, 1  ;;  %v2151_v29 = vrot.slane %v8313_v40, 1 }
 0x37f   :  { %6682 = vpow2.f32 %v6175_v39  ;;  %v6181_v30 = vmul.f32 -1.442695, %v2147_v36  ;;  %v2152_v31 = vrot.slane %v8319_v42, 1  ;;  %v6182_v32 = vmul.f32 -1.442695, %v2148_v22 }
 0x380   :  { %6684 = vpow2.f32 %v6176_v57  ;;  %v2153_v33 = vrot.slane %v8321_v14, 1  ;;  %v6183_v37 = vmul.f32 -1.442695, %v2149_v45  ;;  %v2154_v43 = vrot.slane %v8325_v61, 1 }
 0x381   :  { %6686 = vpow2.f32 %v6177_v17  ;;  %v6184_v44 = vmul.f32 -1.442695, %v2150_v28  ;;  %v6185_v47 = vmul.f32 -1.442695, %v2151_v29  ;;  %v6186_v49 = vmul.f32 -1.442695, %v2152_v31 }
 0x382   :  { %6688 = vpow2.f32 %v6178_v21  ;;  %v6187_v51 = vmul.f32 -1.442695, %v2153_v33  ;;  %v6188_v52 = vmul.f32 -1.442695, %v2154_v43  ;;  %v2211_v57 = vrot.slane %v8309_v10, 2 }
 0x383   :  { %6690 = vpow2.f32 %v6179_v25  ;;  %v2212_v21 = vrot.slane %v8311_v41, 2  ;;  %v2213_v25 = vrot.slane %v8315_v13, 2  ;;  %v2215_v29 = vrot.slane %v8313_v40, 2 }
 0x384   :  { %6692 = vpow2.f32 %v6180_v27  ;;  %v2214_v27 = vrot.slane %v8317_v62, 2  ;;  %v2300_v31 = vcombine.high %v8246_v2, %v8246_v2  ;;  %v2216_v33 = vrot.slane %v8319_v42, 2 }
 0x385   :  { %6694 = vpow2.f32 %v6181_v30  ;;  %v2235_v30 = vrot.slane %v8309_v10, 3  ;;  %v2307_v43 = vrot.slane %v8246_v2, %v7927_v6  ;;  %v2237_v10 = vrot.slane %v8315_v13, 3 }
 0x386   :  { %6696 = vpow2.f32 %v6182_v32 }
 0x387   :  { %6698 = vpow2.f32 %v6183_v37  ;;  %v2236_v37 = vrot.slane %v8311_v41, 3  ;;  %v2239_v41 = vrot.slane %v8313_v40, 3 }
 0x388   :  { %6700 = vpow2.f32 %v6184_v44 }
 0x389   :  { %6702 = vpow2.f32 %v6185_v47  ;;  %v2217_v47 = vrot.slane %v8321_v14, 2  ;;  %v6190_v13 = vmul.f32 -1.442695, %v2236_v37 }
 0x38a   :  { %v6679_v53 = vpop.eup %6678  ;;  %6704 = vpow2.f32 %v6186_v49 }
 0x38b   :  { %v6681_v59 = vpop.eup %6680  ;;  %v2115_v35 = vadd.f32 1.0, %v6679_v53  ;;  %6706 = vpow2.f32 %v6187_v51  ;;  %v2218_v51 = vrot.slane %v8325_v61, 2 }
 0x38c   :  { %v6683_v0 = vpop.eup %6682  ;;  %v2116_v18 = vadd.f32 1.0, %v6681_v59  ;;  %6708 = vpow2.f32 %v6188_v52  ;;  %v2238_v52 = vrot.slane %v8317_v62, 3  ;;  %v6189_v59 = vmul.f32 -1.442695, %v2235_v30 }
 0x38d   :  { %v6685_v16 = vpop.eup %6684  ;;  %v2117_v54 = vadd.f32 1.0, %v6683_v0  ;;  %6710 = vrcp.f32 %v2115_v35  ;;  %v2314_v35 = vrot.slane %v2300_v31, %v7927_v6 }
 0x38e   :  { %v6687_v46 = vpop.eup %6686  ;;  %v2118_v60 = vadd.f32 1.0, %v6685_v16  ;;  %6712 = vrcp.f32 %v2116_v18  ;;  %v2240_v18 = vrot.slane %v8319_v42, 3  ;;  %v2315_v16 = vcombine.high %v2307_v43, %v2307_v43 }
 0x38f   :  { %v6689_v12 = vpop.eup %6688  ;;  %v2119_v56 = vadd.f32 1.0, %v6687_v46  ;;  %6714 = vrcp.f32 %v2117_v54  ;;  %v2241_v46 = vrot.slane %v8321_v14, 3 }
 0x390   :  { %v6691_v20 = vpop.eup %6690  ;;  %v2120_v15 = vadd.f32 1.0, %v6689_v12  ;;  %6716 = vrcp.f32 %v2118_v60  ;;  %v6191_v60 = vmul.f32 -1.442695, %v2237_v10  ;;  %v2242_v12 = vrot.slane %v8325_v61, 3 }
 0x391   :  { %v6693_v38 = vpop.eup %6692  ;;  %v2121_v5 = vadd.f32 1.0, %v6691_v20  ;;  %6718 = vrcp.f32 %v2119_v56  ;;  %v6192_v56 = vmul.f32 -1.442695, %v2238_v52  ;;  %v6193_v20 = vmul.f32 -1.442695, %v2239_v41 }
 0x392   :  { %v6695_v23 = vpop.eup %6694  ;;  %v2122_v3 = vadd.f32 1.0, %v6693_v38  ;;  %6720 = vrcp.f32 %v2120_v15  ;;  %v2316_v15 = vcombine.high %v2314_v35, %v2314_v35  ;;  %v2323_v38 = vrot.slane %v2307_v43, %v7927_v6 }
 0x393   :  { %v6697_v50 = vpop.eup %6696  ;;  %6722 = vrcp.f32 %v2121_v5  ;;  %v2187_v4 = vadd.f32 1.0, %v6695_v23  ;;  %v6194_v42 = vmul.f32 -1.442695, %v2240_v18  ;;  %v2337_v23 = vrot.slane %v2315_v16, %v7927_v6 }
 0x394   :  { %v6699_v26 = vpop.eup %6698  ;;  %6724 = vrcp.f32 %v2122_v3  ;;  %v2188_v9 = vadd.f32 1.0, %v6697_v50  ;;  %v6195_v14 = vmul.f32 -1.442695, %v2241_v46  ;;  %v2330_v61 = vrot.slane %v2314_v35, %v7927_v6 }
 0x395   :  { %v6701_v7 = vpop.eup %6700  ;;  %v2189_v48 = vadd.f32 1.0, %v6699_v26  ;;  %6726 = vrcp.f32 %v2187_v4  ;;  %v6196_v4 = vmul.f32 -1.442695, %v2242_v12 }
 0x396   :  { %v6703_v63 = vpop.eup %6702  ;;  %v2190_v8 = vadd.f32 1.0, %v6701_v7  ;;  %6728 = vrcp.f32 %v2188_v9  ;;  %v2344_v9 = vrot.slane %v2316_v15, %v7927_v6  ;;  %v2345_v7 = vcombine.high %v2323_v38, %v2323_v38 }
 0x397   :  { %v6705_v1 = vpop.eup %6704  ;;  %v2191_v58 = vadd.f32 1.0, %v6703_v63  ;;  %6730 = vrcp.f32 %v2189_v48 }
 0x398   :  { %v6707_v19 = vpop.eup %6706  ;;  %v2192_v55 = vadd.f32 1.0, %v6705_v1  ;;  %6732 = vrcp.f32 %v2190_v8  ;;  %v2347_v8 = vcombine.high %v2337_v23, %v2337_v23 }
 0x399   :  { %v6709_v11 = vpop.eup %6708  ;;  %v2193_v39 = vadd.f32 1.0, %v6707_v19  ;;  %6734 = vrcp.f32 %v2191_v58 }
 0x39a   :  { %v8342_v17 = vpop.eup %6710  ;;  %v2194_v36 = vadd.f32 1.0, %v6709_v11  ;;  %6736 = vrcp.f32 %v2192_v55 }
 0x39b   :  { %v8345_v22 = vpop.eup %6712  ;;  %6738 = vrcp.f32 %v2193_v39  ;;  %v2346_v39 = vcombine.high %v2330_v61, %v2330_v61 }
 0x39c   :  { %v8348_v45 = vpop.eup %6714  ;;  %6740 = vrcp.f32 %v2194_v36 }
 0x39d   :  { %v8351_v28 = vpop.eup %6716  ;;  %6742 = vtanh.f32 %v2211_v57 }
 0x39e   :  { %v8357_v32 = vpop.eup %6718  ;;  %6744 = vtanh.f32 %v2212_v21 }
 0x39f   :  { %v8363_v44 = vpop.eup %6720  ;;  %6746 = vtanh.f32 %v2213_v25  ;;  %v2348_v25 = vcombine.high %v2344_v9, %v2344_v9 }
 0x3a0   :  { %v8367_v49 = vpop.eup %6722  ;;  %6748 = vtanh.f32 %v2214_v27 }
 0x3a1   :  { %v8371_v53 = vpop.eup %6724  ;;  %6750 = vtanh.f32 %v2215_v29 }
 0x3a2   :  { %v6727_v0 = vpop.eup %6726  ;;  %6752 = vtanh.f32 %v2216_v33 }
 0x3a3   :  { %v6729_v54 = vpop.eup %6728  ;;  %6754 = vtanh.f32 %v2217_v47  ;;  %v2357_v48 = vmul.f32 %v6727_v0, %v2323_v38 }
 0x3a4   :  { %v6731_v62 = vpop.eup %6730  ;;  %6756 = vtanh.f32 %v2218_v51  ;;  %v2358_v1 = vmul.f32 %v6729_v54, %v2337_v23 }
 0x3a5   :  { %v6733_v40 = vpop.eup %6732  ;;  %6758 = vpow2.f32 %v6189_v59  ;;  %v2359_v19 = vmul.f32 %v6731_v62, %v2345_v7 }
 0x3a6   :  { %v6735_v5 = vpop.eup %6734  ;;  %6760 = vpow2.f32 %v6190_v13  ;;  %v2360_v57 = vmul.f32 %v6733_v40, %v2347_v8 }
 0x3a7   :  { %v6737_v3 = vpop.eup %6736  ;;  %6762 = vpow2.f32 %v6191_v60  ;;  %v2361_v27 = vmul.f32 %v6735_v5, %v2330_v61 }
 0x3a8   :  { %v6739_v50 = vpop.eup %6738  ;;  %6764 = vpow2.f32 %v6192_v56  ;;  %v2362_v33 = vmul.f32 %v6737_v3, %v2344_v9 }
 0x3a9   :  { %v6741_v26 = vpop.eup %6740  ;;  %6766 = vpow2.f32 %v6193_v20  ;;  %v2363_v37 = vmul.f32 %v6739_v50, %v2346_v39 }
 0x3aa   :  { %v6743_v63 = vpop.eup %6742  ;;  %6768 = vpow2.f32 %v6194_v42 }
 0x3ab   :  { %v6745_v58 = vpop.eup %6744  ;;  %6770 = vpow2.f32 %v6195_v14  ;;  %v2365_v55 = vmul.f32 %v6743_v63, %v8342_v17  ;;  %v2364_v17 = vmul.f32 %v6741_v26, %v2348_v25 }
 0x3ac   :  { %v6747_v11 = vpop.eup %6746  ;;  %6772 = vpow2.f32 %v6196_v4  ;;  %v2366_v36 = vmul.f32 %v6745_v58, %v8345_v22 }
 0x3ad   :  { %v6749_v21 = vpop.eup %6748  ;;  %v2367_v29 = vmul.f32 %v6747_v11, %v8348_v45  ;;  %v2373_v30 = vadd.f32 %v2365_v55, %v2357_v48  ;;  %v2403_v48 = vpop.permute.xlu1 %2402 }
 0x3ae   :  { %v6751_v31 = vpop.eup %6750  ;;  %v2368_v43 = vmul.f32 %v6749_v21, %v8351_v28  ;;  %v2374_v47 = vadd.f32 %v2366_v36, %v2358_v1  ;;  %vm2404_vm12 = vcmp.eq.s32.totalorder %v2403_v48, 1  ;;  %v8433_v48 = vld [vmem:[#allocation8 + $0xc0] ss:$16 sps:$4 sm:$0xff]  }
 0x3af   :  { %v6753_v10 = vpop.eup %6752  ;;  %v2369_v51 = vmul.f32 %v6751_v31, %v8357_v32  ;;  %v2375_v52 = vadd.f32 %v2367_v29, %v2359_v19  ;;  %6774 = vtanh.f32 %v2373_v30 }
 0x3b0   :  { %v6755_v41 = vpop.eup %6754  ;;  %v2370_v22 = vmul.f32 %v6753_v10, %v8363_v44  ;;  %v2376_v59 = vadd.f32 %v2368_v43, %v2360_v57  ;;  %6776 = vtanh.f32 %v2374_v47  ;;  %v2539_v35 = vcombine.low %v2373_v30, %v2374_v47 }
 0x3b1   :  { %v6757_v45 = vpop.eup %6756  ;;  %v2371_v0 = vmul.f32 %v6755_v41, %v8367_v49  ;;  %v2377_v18 = vadd.f32 %v2369_v51, %v2361_v27  ;;  %6778 = vtanh.f32 %v2375_v52 }
 0x3b2   :  { %v6759_v13 = vpop.eup %6758  ;;  %v2372_v28 = vmul.f32 %v6757_v45, %v8371_v53  ;;  %v2378_v16 = vadd.f32 %v2370_v22, %v2362_v33  ;;  %6780 = vtanh.f32 %v2376_v59  ;;  %v2540_v54 = vcombine.low %v2375_v52, %v2376_v59 }
 0x3b3   :  { %v6761_v32 = vpop.eup %6760  ;;  %v2275_v46 = vadd.f32 1.0, %v6759_v13  ;;  %v2379_v60 = vadd.f32 %v2371_v0, %v2363_v37  ;;  %6782 = vtanh.f32 %v2377_v18  ;;  %v2549_v49 = vrot.slane %v2539_v35, %v7927_v6 }
 0x3b4   :  { %v6763_v62 = vpop.eup %6762  ;;  %v2276_v44 = vadd.f32 1.0, %v6761_v32  ;;  %v2380_v12 = vadd.f32 %v2372_v28, %v2364_v17  ;;  %6784 = vtanh.f32 %v2378_v16  ;;  %v2541_v56 = vcombine.low %v2377_v18, %v2378_v16 }
 0x3b5   :  { %v6765_v40 = vpop.eup %6764  ;;  %v2277_v20 = vadd.f32 1.0, %v6763_v62  ;;  %6786 = vrcp.f32 %v2275_v46  ;;  %v2556_v15 = vrot.slane %v2540_v54, %v7927_v6 }
 0x3b6   :  { %v6767_v53 = vpop.eup %6766  ;;  %v2278_v38 = vadd.f32 1.0, %v6765_v40  ;;  %6788 = vrcp.f32 %v2276_v44  ;;  %v2542_v5 = vcombine.low %v2379_v60, %v2380_v12  ;;  %v2563_v4 = vrot.slane %v2541_v56, %v7927_v6 }
 0x3b7   :  { %v6769_v42 = vpop.eup %6768  ;;  %v2279_v23 = vadd.f32 1.0, %v6767_v53  ;;  %6790 = vrcp.f32 %v2277_v20  ;;  %v2571_v3 = vcombine.low %v2549_v49, %v2556_v15 }
 0x3b8   :  { %v6771_v14 = vpop.eup %6770  ;;  %v2280_v50 = vadd.f32 1.0, %v6769_v42  ;;  %6792 = vrcp.f32 %v2278_v38  ;;  %v2570_v61 = vrot.slane %v2542_v5, %v7927_v6  ;;  %v8416_v42 = vld [vmem:[#allocation8 + $0xe0] ss:$16 sps:$4 sm:$0xff]  }
 0x3b9   :  { %v6773_v26 = vpop.eup %6772  ;;  %v2281_v9 = vadd.f32 1.0, %v6771_v14  ;;  %6794 = vrcp.f32 %v2279_v23  ;;  %v2579_v8 = vrot.slane %v2571_v3, %v7927_v6 }
 0x3ba   :  { %v2282_v7 = vadd.f32 1.0, %v6773_v26  ;;  %6796 = vrcp.f32 %v2280_v50  ;;  %v2572_v63 = vcombine.low %v2563_v4, %v2570_v61  ;;  %v8424_v4 = vld [vmem:[#allocation8 + $0xc4] ss:$16 sps:$4 sm:$0xff]   ;;  %v8427_v61 = vld [vmem:[#allocation8 + $0xcc] ss:$16 sps:$4 sm:$0xff]  }
 0x3bb   :  { %6798 = vrcp.f32 %v2281_v9 }
 0x3bc   :  { %v6775_v1 = vpop.eup %6774  ;;  %6800 = vrcp.f32 %v2282_v7  ;;  %v2586_v58 = vrot.slane %v2572_v63, %v7927_v6  ;;  %v8436_v63 = vld [vmem:[#allocation8 + $0xc8] ss:$16 sps:$4 sm:$0xff]  }
 0x3bd   :  { %v6777_v19 = vpop.eup %6776  ;;  %6802 = vtanh.f32 %v2379_v60 }
 0x3be   :  { %v6779_v55 = vpop.eup %6778  ;;  %6804 = vtanh.f32 %v2380_v12  ;;  %v2587_v11 = vcombine.low %v2579_v8, %v2586_v58  ;;  %v8442_v58 = vld [vmem:[#allocation8 + $0xac] ss:$16 sps:$4 sm:$0xff]  }
 0x3bf   :  { %v6781_v39 = vpop.eup %6780 }
 0x3c0   :  { %v6783_v57 = vpop.eup %6782  ;;  %v8398_v36 = vsel %vm2404_vm12, %v2587_v11, %v8246_v2  ;;  %v8451_v11 = vld [vmem:[#allocation8 + $0x84] ss:$16 sps:$4 sm:$0xff]  }
 0x3c1   :  { %v6785_v21 = vpop.eup %6784 }
 0x3c2   :  { %v6787_v25 = vpop.eup %6786 }
 0x3c3   :  { %v6789_v27 = vpop.eup %6788  ;;  %v2389_v30 = vmul.f32 %v6787_v25, %v6775_v1  ;;  %v8439_v1 = vld [vmem:[#allocation8 + $0xa4] ss:$16 sps:$4 sm:$0xff]  }
 0x3c4   :  { %v6791_v29 = vpop.eup %6790  ;;  %v2390_v31 = vmul.f32 %v6789_v27, %v6777_v19  ;;  %v8445_v19 = vld [vmem:[#allocation8 + $0xa0] ss:$16 sps:$4 sm:$0xff]   ;;  %v8463_v25 = vld [vmem:[#allocation8 + $0x64] ss:$16 sps:$4 sm:$0xff]   ;;  %v8466_v27 = vld [vmem:[#allocation8 + $0x6c] ss:$16 sps:$4 sm:$0xff]  }
 0x3c5   :  { %v6793_v33 = vpop.eup %6792  ;;  %v2391_v37 = vmul.f32 %v6791_v29, %v6779_v55  ;;  %v8448_v55 = vld [vmem:[#allocation8 + $0xa8] ss:$16 sps:$4 sm:$0xff]   ;;  %v8469_v29 = vld [vmem:[#allocation8 + $0x60] ss:$16 sps:$4 sm:$0xff]  }
 0x3c6   :  { %v6795_v43 = vpop.eup %6794  ;;  %v2392_v47 = vmul.f32 %v6793_v33, %v6781_v39  ;;  %v2413_v41 = vcombine.low %v2389_v30, %v2390_v31  ;;  %v8454_v39 = vld [vmem:[#allocation8 + $0x8c] ss:$16 sps:$4 sm:$0xff]   ;;  %v8472_v30 = vld [vmem:[#allocation8 + $0x68] ss:$16 sps:$4 sm:$0xff]   ;;  %v8475_v31 = vld [vmem:[#allocation8 + $0x44] ss:$16 sps:$4 sm:$0xff]  }
 0x3c7   :  { %v6797_v10 = vpop.eup %6796  ;;  %v2393_v51 = vmul.f32 %v6795_v43, %v6783_v57  ;;  %v8457_v57 = vld [vmem:[#allocation8 + $0x80] ss:$16 sps:$4 sm:$0xff]   ;;  %v8478_v33 = vld [vmem:[#allocation8 + $0x4c] ss:$16 sps:$4 sm:$0xff]   ;;  %v8484_v43 = vld [vmem:[#allocation8 + $0x48] ss:$16 sps:$4 sm:$0xff]  }
 0x3c8   :  { %v6799_v17 = vpop.eup %6798  ;;  %v2394_v52 = vmul.f32 %v6797_v10, %v6785_v21  ;;  %v2414_v22 = vcombine.low %v2391_v37, %v2392_v47  ;;  %v2423_v28 = vrot.slane %v2413_v41, %v7927_v6  ;;  %v8460_v21 = vld [vmem:[#allocation8 + $0x88] ss:$16 sps:$4 sm:$0xff]   ;;  %v8481_v37 = vld [vmem:[#allocation8 + $0x40] ss:$16 sps:$4 sm:$0xff]   ;;  %9329 = vst [vmem:[#allocation17_spill] sm:$0xff] %v8484_v43 }
 0x3c9   :  { %v6801_v59 = vpop.eup %6800  ;;  %v8487_v47 = vld [vmem:[#allocation8 + $0x24] ss:$16 sps:$4 sm:$0xff]   ;;  %v8490_v10 = vld [vmem:[#allocation8 + $0x2c] ss:$16 sps:$4 sm:$0xff]  }
 0x3ca   :  { %v6803_v35 = vpop.eup %6802  ;;  %v2430_v2 = vrot.slane %v2414_v22, %v7927_v6  ;;  %v2415_v13 = vcombine.low %v2393_v51, %v2394_v52  ;;  %9330 = vst [vmem:[#allocation18_spill] sm:$0xff] %v8487_v47  ;;  %9331 = vst [vmem:[#allocation19_spill] sm:$0xff] %v8490_v10  ;;  %v8496_v51 = vld [vmem:[#allocation8 + $0x28] ss:$16 sps:$4 sm:$0xff]   ;;  %v8499_v52 = vld [vmem:[#allocation8 + $0x4] ss:$16 sps:$4 sm:$0xff]  }
 0x3cb   :  { %v6805_v45 = vpop.eup %6804  ;;  %v2395_v0 = vmul.f32 %v6803_v35, %v6799_v17  ;;  %v8493_v17 = vld [vmem:[#allocation8 + $0x20] ss:$16 sps:$4 sm:$0xff]   ;;  %9333 = vst [vmem:[#allocation21_spill] sm:$0xff] %v8496_v51  ;;  %9334 = vst [vmem:[#allocation22_spill] sm:$0xff] %v8499_v52  ;;  %v8502_v41 = vld [vmem:[#allocation8 + $0xc] ss:$16 sps:$4 sm:$0xff]  }
 0x3cc   :  { %v2396_v18 = vmul.f32 %v6805_v45, %v6801_v59  ;;  %v2445_v54 = vcombine.low %v2423_v28, %v2430_v2  ;;  %v2437_v32 = vrot.slane %v2415_v13, %v7927_v6  ;;  %9332 = vst [vmem:[#allocation20_spill] sm:$0xff] %v8493_v17  ;;  %9335 = vst [vmem:[#allocation23_spill] sm:$0xff] %v8502_v41  ;;  %v8505_v22 = vld [vmem:[#allocation8] ss:$16 sps:$4 sm:$0xff]   ;;  %v8508_v59 = vld [vmem:[#allocation8 + $0x8] ss:$16 sps:$4 sm:$0xff]  }
 0x3cd   :  { %9336 = vst [vmem:[#allocation24_spill] sm:$0xff] %v8505_v22  ;;  %9337 = vst [vmem:[#allocation25_spill] sm:$0xff] %v8508_v59  ;;  %v8511_v35 = vld [vmem:[#allocation8 + $0xe4] ss:$16 sps:$4 sm:$0xff]   ;;  %v8514_v2 = vld [vmem:[#allocation8 + $0xec] ss:$16 sps:$4 sm:$0xff]  }
 0x3ce   :  { %v2416_v16 = vcombine.low %v2395_v0, %v2396_v18  ;;  %v2453_v62 = vrot.slane %v2445_v54, %v7927_v6  ;;  %9338 = vst [vmem:[#allocation26_spill] sm:$0xff] %v8511_v35  ;;  %9339 = vst [vmem:[#allocation27_spill] sm:$0xff] %v8514_v2 }
 0x3d0   :  { %v2444_v46 = vrot.slane %v2416_v16, %v7927_v6 }
 0x3d2   :  { %v2446_v60 = vcombine.low %v2437_v32, %v2444_v46 }
 0x3d4   :  { %v2460_v44 = vrot.slane %v2446_v60, %v7927_v6 }
 0x3d6   :  { %v2461_v12 = vcombine.low %v2453_v62, %v2460_v44 }
 0x3d8   :  { %v2463_v56 = vsel %vm2404_vm12, %v2461_v12, 0.0  ;;  %v8409_v40 = vsel %vm2404_vm12, %v2461_v12, %v8257_v24  ;;  %v8419_v24 = vld [vmem:[#allocation8 + $0xe8] ss:$16 sps:$4 sm:$0xff]  }
 0x3d9   :  { %v2465_v20 = vcombine.high %v2463_v56, %v2463_v56  ;;  %v2472_v49 = vrot.slane %v2463_v56, %v7927_v6  ;;  %v2606_v15 = vpack.c.bf16 %v8409_v40, %v8409_v40 }
 0x3db   :  { %v2479_v53 = vrot.slane %v2465_v20, %v7927_v6  ;;  %v2480_v38 = vcombine.high %v2472_v49, %v2472_v49  ;;  %v2488_v5 = vrot.slane %v2472_v49, %v7927_v6  ;;  %6198 = vst.sshfl [vmem:[#allocation9 + $0x2] sm:$0x1 pattern:$0x73625140] %v2472_v49  ;;  %2640 = vmatmul.mubr.bf16.vlgmr.msra.gmra.mxu0 %v2606_v15 }
 0x3dc   :  { %2681 = vmatmul.mubr.bf16.vlgmr.msra.gmra.mxu1 %v2606_v15  ;;  %3294 = vmatpush1.bf16.msra.mxu0 %v8416_v42 }
 0x3dd   :  { %3335 = vmatpush1.bf16.msra.mxu1 %v8419_v24  ;;  %v2481_v23 = vcombine.high %v2479_v53, %v2479_v53  ;;  %v2495_v3 = vrot.slane %v2479_v53, %v7927_v6  ;;  %v2502_v14 = vrot.slane %v2480_v38, %v7927_v6  ;;  %v2510_v50 = vcombine.high %v2488_v5, %v2488_v5 }
 0x3de   :  { %6199 = vst.sshfl [vmem:[#allocation9 + $0xa] sm:$0x1 pattern:$0x73625140] %v2480_v38  ;;  %3295 = vmatprep.subr.bf16.mxu0 %v8424_v4  ;;  %3336 = vmatprep.subr.bf16.mxu1 %v8427_v61 }
 0x3df   :  { %6200 = vst.sshfl [vmem:[#allocation9 + $0x22] sm:$0x1 pattern:$0x73625140] %v2479_v53  ;;  %3325 = vmatprep.mubr.bf16.mxu0 %v9318_v34  ;;  %v2509_v26 = vrot.slane %v2481_v23, %v7927_v6  ;;  %v2511_v9 = vcombine.high %v2495_v3, %v2495_v3  ;;  %v2512_v7 = vcombine.high %v2502_v14, %v2502_v14  ;;  %2524 = vst [vmem:[#allocation9 + $0x12] sm:$0x1] %v2510_v50 }
 0x3e0   :  { %6201 = vst.sshfl [vmem:[#allocation9 + $0x2a] sm:$0x1 pattern:$0x73625140] %v2481_v23  ;;  %3366 = vmatprep.mubr.bf16.mxu1 %v9318_v34  ;;  %3296 = vmatpush1.bf16.msra.mxu0 %v8433_v48 }
 0x3e1   :  { %3337 = vmatpush1.bf16.msra.mxu1 %v8436_v63  ;;  %v2513_v8 = vcombine.high %v2509_v26, %v2509_v26  ;;  %2525 = vst [vmem:[#allocation9 + $0x1a] sm:$0x1] %v2512_v7  ;;  %2528 = vst [vmem:[#allocation9 + $0x32] sm:$0x1] %v2511_v9  ;;  %3297 = vmatprep.subr.bf16.mxu0 %v8439_v1 }
 0x3e2   :  { %3338 = vmatprep.subr.bf16.mxu1 %v8442_v58  ;;  %v2591_v26 = vld [vmem:[#allocation2 + $0x3] ss:$8 sm:$0xf] }
 0x3e3   :  { %2529 = vst [vmem:[#allocation9 + $0x3a] sm:$0x1] %v2513_v8  ;;  %v2593_v9 = vld [vmem:[#allocation2 + $0x23] ss:$8 sm:$0xf] }
 0x3e4   :  { %3298 = vmatpush1.bf16.msra.mxu0 %v8445_v19  ;;  %v2595_v7 = vld [vmem:[#allocation2 + $0x43] ss:$8 sm:$0xf] }
 0x3e5   :  { %3339 = vmatpush1.bf16.msra.mxu1 %v8448_v55  ;;  %3299 = vmatprep.subr.bf16.mxu0 %v8451_v11  ;;  %v2599_v8 = vld [vmem:[#allocation2 + $0x83] ss:$8 sm:$0xf] }
 0x3e6   :  { %3340 = vmatprep.subr.bf16.mxu1 %v8454_v39 }
 0x3e8   :  { %3300 = vmatpush1.bf16.msra.mxu0 %v8457_v57 }
 0x3e9   :  { %3341 = vmatpush1.bf16.msra.mxu1 %v8460_v21  ;;  %3301 = vmatprep.subr.bf16.mxu0 %v8463_v25 }
 0x3ea   :  { %3342 = vmatprep.subr.bf16.mxu1 %v8466_v27 }
 0x3ec   :  { %3302 = vmatpush1.bf16.msra.mxu0 %v8469_v29 }
 0x3ed   :  { %3343 = vmatpush1.bf16.msra.mxu1 %v8472_v30  ;;  %3303 = vmatprep.subr.bf16.mxu0 %v8475_v31 }
 0x3ee   :  { %3344 = vmatprep.subr.bf16.mxu1 %v8478_v33 }
 0x3f0   :  { %3304 = vmatpush1.bf16.msra.mxu0 %v8481_v37 }
 0x3f1   :  { %3345 = vmatpush1.bf16.msra.mxu1 %v8484_v43  ;;  %3305 = vmatprep.subr.bf16.mxu0 %v8487_v47 }
 0x3f2   :  { %3346 = vmatprep.subr.bf16.mxu1 %v8490_v10 }
 0x3f4   :  { %3306 = vmatpush1.bf16.msra.mxu0 %v8493_v17 }
 0x3f5   :  { %3347 = vmatpush1.bf16.msra.mxu1 %v8496_v51  ;;  %3307 = vmatprep.subr.bf16.mxu0 %v8499_v52 }
 0x3f6   :  { %3348 = vmatprep.subr.bf16.mxu1 %v8502_v41 }
 0x3f8   :  { %3308 = vmatpush1.bf16.msra.mxu0 %v8505_v22 }
 0x3f9   :  { %3349 = vmatpush1.bf16.msra.mxu1 %v8508_v59  ;;  %3979 = vmatprep.subr.bf16.mxu0 %v8511_v35 }
 0x3fa   :  { %4020 = vmatprep.subr.bf16.mxu1 %v8514_v2 }
 0x49b   :  { %v2641_v45 = vpop.f32.mrf.mxu0 }
 0x49c   :  { %v2682_v0 = vpop.f32.mrf.mxu1 }
 0x49d   :  { %v2643_v18 = vpop.f32.mrf.mxu0 }
 0x49e   :  { %v2684_v13 = vpop.f32.mrf.mxu1  ;;  %v2693_v28 = vcombine.low %v2641_v45, %v2643_v18  ;;  %v2694_v16 = vcombine.high %v2641_v45, %v2643_v18 }
 0x49f   :  { %v2695_v54 = vcombine.low %v2682_v0, %v2684_v13  ;;  %v2696_v32 = vcombine.high %v2682_v0, %v2684_v13  ;;  %v2645_v46 = vpop.f32.mrf.mxu0 }
 0x4a0   :  { %v2686_v60 = vpop.f32.mrf.mxu1  ;;  %v2703_v62 = vrot.slane %v2693_v28, %v7927_v6  ;;  %v2710_v44 = vrot.slane %v2694_v16, %v7927_v6  ;;  %v2597_v28 = vld [vmem:[#allocation2 + $0x63] ss:$8 sm:$0xf] }
 0x4a1   :  { %v2717_v12 = vrot.slane %v2695_v54, %v7927_v6  ;;  %v2724_v56 = vrot.slane %v2696_v32, %v7927_v6  ;;  %v2646_v20 = vpop.f32.mrf.mxu0  ;;  %v2601_v16 = vld [vmem:[#allocation2 + $0xa3] ss:$8 sm:$0xf] }
 0x4a2   :  { %v2687_v49 = vpop.f32.mrf.mxu1  ;;  %v2603_v60 = vld [vmem:[#allocation2 + $0xc3] ss:$8 sm:$0xf] }
 0x4a3   :  { %v2725_v15 = vcombine.low %v2703_v62, %v2717_v12  ;;  %v2726_v53 = vcombine.high %v2703_v62, %v2717_v12  ;;  %v2727_v38 = vcombine.low %v2710_v44, %v2724_v56  ;;  %v2728_v5 = vcombine.high %v2710_v44, %v2724_v56  ;;  %v2605_v62 = vld [vmem:[#allocation2 + $0xe3] ss:$8 sm:$0xf] }
 0x4a5   :  { %v2735_v23 = vrot.slane %v2725_v15, %v7927_v6  ;;  %v2742_v3 = vrot.slane %v2727_v38, %v7927_v6  ;;  %v2749_v14 = vrot.slane %v2726_v53, %v7927_v6  ;;  %v2756_v50 = vrot.slane %v2728_v5, %v7927_v6 }
 0x4a7   :  { %v2757_v45 = vcombine.high %v2735_v23, %v2735_v23  ;;  %v2758_v0 = vcombine.high %v2742_v3, %v2742_v3  ;;  %v2759_v18 = vcombine.high %v2749_v14, %v2749_v14  ;;  %v2760_v13 = vcombine.high %v2756_v50, %v2756_v50 }
 0x4a8   :  { %v8525_v54 = vadd.f32 %v2735_v23, %v2591_v26  ;;  %v8527_v32 = vadd.f32 %v2749_v14, %v2593_v9  ;;  %v8529_v46 = vadd.f32 %v2742_v3, %v2599_v8  ;;  %v8535_v56 = vadd.f32 %v2756_v50, %v2601_v16 }
 0x4a9   :  { %v8531_v44 = vadd.f32 %v2757_v45, %v2595_v7  ;;  %v8533_v12 = vadd.f32 %v2759_v18, %v2597_v28  ;;  %v8537_v20 = vadd.f32 %v2758_v0, %v2603_v60  ;;  %v8541_v53 = vadd.f32 %v2760_v13, %v2605_v62 }
 0x4aa   :  { %v6202_v49 = vmul.f32 -1.442695, %v8525_v54  ;;  %v6203_v15 = vmul.f32 -1.442695, %v8527_v32  ;;  %v6206_v23 = vmul.f32 -1.442695, %v8529_v46 }
 0x4ab   :  { %v6204_v38 = vmul.f32 -1.442695, %v8531_v44  ;;  %v6205_v5 = vmul.f32 -1.442695, %v8533_v12  ;;  %v2833_v3 = vrot.slane %v8525_v54, 1  ;;  %v2834_v50 = vrot.slane %v8527_v32, 1 }
 0x4ac   :  { %6806 = vpow2.f32 %v6202_v49  ;;  %v6207_v14 = vmul.f32 -1.442695, %v8535_v56  ;;  %v6208_v26 = vmul.f32 -1.442695, %v8537_v20  ;;  %v2835_v9 = vrot.slane %v8531_v44, 1 }
 0x4ad   :  { %6808 = vpow2.f32 %v6203_v15  ;;  %v6209_v7 = vmul.f32 -1.442695, %v8541_v53  ;;  %v2836_v8 = vrot.slane %v8533_v12, 1  ;;  %v2837_v45 = vrot.slane %v8529_v46, 1 }
 0x4ae   :  { %6810 = vpow2.f32 %v6204_v38  ;;  %v6210_v0 = vmul.f32 -1.442695, %v2833_v3  ;;  %v2838_v18 = vrot.slane %v8535_v56, 1  ;;  %v6211_v13 = vmul.f32 -1.442695, %v2834_v50 }
 0x4af   :  { %6812 = vpow2.f32 %v6205_v5  ;;  %v2839_v28 = vrot.slane %v8537_v20, 1  ;;  %v6212_v16 = vmul.f32 -1.442695, %v2835_v9  ;;  %v2840_v60 = vrot.slane %v8541_v53, 1 }
 0x4b0   :  { %6814 = vpow2.f32 %v6206_v23  ;;  %v6213_v62 = vmul.f32 -1.442695, %v2836_v8  ;;  %v6214_v49 = vmul.f32 -1.442695, %v2837_v45  ;;  %v6215_v15 = vmul.f32 -1.442695, %v2838_v18 }
 0x4b1   :  { %6816 = vpow2.f32 %v6207_v14  ;;  %v6216_v38 = vmul.f32 -1.442695, %v2839_v28  ;;  %v6217_v5 = vmul.f32 -1.442695, %v2840_v60  ;;  %v2928_v52 = vrot.slane %v8541_v53, 3 }
 0x4b2   :  { %6818 = vpow2.f32 %v6208_v26 }
 0x4b3   :  { %6820 = vpow2.f32 %v6209_v7 }
 0x4b4   :  { %6822 = vpow2.f32 %v6210_v0 }
 0x4b5   :  { %6824 = vpow2.f32 %v6211_v13 }
 0x4b6   :  { %6826 = vpow2.f32 %v6212_v16 }
 0x4b7   :  { %6828 = vpow2.f32 %v6213_v62 }
 0x4b8   :  { %6830 = vpow2.f32 %v6214_v49 }
 0x4b9   :  { %v6807_v23 = vpop.eup %6806  ;;  %6832 = vpow2.f32 %v6215_v15 }
 0x4ba   :  { %v6809_v3 = vpop.eup %6808  ;;  %v2801_v14 = vadd.f32 1.0, %v6807_v23  ;;  %6834 = vpow2.f32 %v6216_v38 }
 0x4bb   :  { %v6811_v50 = vpop.eup %6810  ;;  %v2802_v26 = vadd.f32 1.0, %v6809_v3  ;;  %6836 = vpow2.f32 %v6217_v5 }
 0x4bc   :  { %v6813_v9 = vpop.eup %6812  ;;  %v2803_v7 = vadd.f32 1.0, %v6811_v50  ;;  %6838 = vrcp.f32 %v2801_v14 }
 0x4bd   :  { %v6815_v8 = vpop.eup %6814  ;;  %v2804_v45 = vadd.f32 1.0, %v6813_v9  ;;  %6840 = vrcp.f32 %v2802_v26 }
 0x4be   :  { %v6817_v0 = vpop.eup %6816  ;;  %v2805_v18 = vadd.f32 1.0, %v6815_v8  ;;  %6842 = vrcp.f32 %v2803_v7 }
 0x4bf   :  { %v6819_v13 = vpop.eup %6818  ;;  %v2806_v28 = vadd.f32 1.0, %v6817_v0  ;;  %6844 = vrcp.f32 %v2804_v45 }
 0x4c0   :  { %v6821_v16 = vpop.eup %6820  ;;  %v2807_v60 = vadd.f32 1.0, %v6819_v13  ;;  %6846 = vrcp.f32 %v2805_v18  ;;  %v2897_v13 = vrot.slane %v8525_v54, 2 }
 0x4c1   :  { %v6823_v62 = vpop.eup %6822  ;;  %v2808_v49 = vadd.f32 1.0, %v6821_v16  ;;  %6848 = vrcp.f32 %v2806_v28 }
 0x4c2   :  { %v6825_v15 = vpop.eup %6824  ;;  %6850 = vrcp.f32 %v2807_v60  ;;  %v2873_v38 = vadd.f32 1.0, %v6823_v62  ;;  %v2898_v60 = vrot.slane %v8527_v32, 2 }
 0x4c3   :  { %v6827_v5 = vpop.eup %6826  ;;  %6852 = vrcp.f32 %v2808_v49  ;;  %v2874_v23 = vadd.f32 1.0, %v6825_v15  ;;  %v2899_v49 = vrot.slane %v8531_v44, 2 }
 0x4c4   :  { %v6829_v3 = vpop.eup %6828  ;;  %v2875_v14 = vadd.f32 1.0, %v6827_v5  ;;  %6854 = vrcp.f32 %v2873_v38  ;;  %v2900_v38 = vrot.slane %v8533_v12, 2 }
 0x4c5   :  { %v6831_v50 = vpop.eup %6830  ;;  %v2876_v26 = vadd.f32 1.0, %v6829_v3  ;;  %6856 = vrcp.f32 %v2874_v23  ;;  %v2986_v23 = vcombine.high %v8398_v36, %v8398_v36  ;;  %v2901_v3 = vrot.slane %v8529_v46, 2 }
 0x4c6   :  { %v6833_v9 = vpop.eup %6832  ;;  %v2877_v7 = vadd.f32 1.0, %v6831_v50  ;;  %6858 = vrcp.f32 %v2875_v14  ;;  %v2921_v14 = vrot.slane %v8525_v54, 3  ;;  %v2904_v54 = vrot.slane %v8541_v53, 2 }
 0x4c7   :  { %v6835_v8 = vpop.eup %6834  ;;  %v2878_v45 = vadd.f32 1.0, %v6833_v9  ;;  %6860 = vrcp.f32 %v2876_v26  ;;  %v2993_v26 = vrot.slane %v8398_v36, %v7927_v6  ;;  %v2902_v9 = vrot.slane %v8535_v56, 2 }
 0x4c8   :  { %v6837_v0 = vpop.eup %6836  ;;  %v2879_v18 = vadd.f32 1.0, %v6835_v8  ;;  %6862 = vrcp.f32 %v2877_v7  ;;  %v2922_v7 = vrot.slane %v8527_v32, 3  ;;  %v2925_v32 = vrot.slane %v8529_v46, 3 }
 0x4c9   :  { %v8558_v28 = vpop.eup %6838  ;;  %v2880_v16 = vadd.f32 1.0, %v6837_v0  ;;  %6864 = vrcp.f32 %v2878_v45  ;;  %v2903_v45 = vrot.slane %v8537_v20, 2  ;;  %v2923_v0 = vrot.slane %v8531_v44, 3 }
 0x4ca   :  { %v8561_v62 = vpop.eup %6840  ;;  %6866 = vrcp.f32 %v2879_v18  ;;  %v6218_v2 = vmul.f32 -1.442695, %v2921_v14  ;;  %v3001_v59 = vcombine.high %v2993_v26, %v2993_v26  ;;  %v2926_v44 = vrot.slane %v8535_v56, 3 }
 0x4cb   :  { %v8564_v15 = vpop.eup %6842  ;;  %6868 = vrcp.f32 %v2880_v16  ;;  %v6220_v41 = vmul.f32 -1.442695, %v2923_v0  ;;  %v3009_v46 = vrot.slane %v2993_v26, %v7927_v6  ;;  %v6222_v14 = vmul.f32 -1.442695, %v2925_v32 }
 0x4cc   :  { %v8567_v5 = vpop.eup %6844  ;;  %6870 = vtanh.f32 %v2897_v13  ;;  %v2924_v13 = vrot.slane %v8533_v12, 3  ;;  %v3023_v56 = vrot.slane %v3001_v59, %v7927_v6  ;;  %v6225_v53 = vmul.f32 -1.442695, %v2928_v52 }
 0x4cd   :  { %v8573_v50 = vpop.eup %6846  ;;  %6872 = vtanh.f32 %v2898_v60  ;;  %v3000_v60 = vrot.slane %v2986_v23, %v7927_v6  ;;  %v3031_v10 = vcombine.high %v3009_v46, %v3009_v46 }
 0x4ce   :  { %v8579_v8 = vpop.eup %6848  ;;  %6874 = vtanh.f32 %v2899_v49  ;;  %v6219_v49 = vmul.f32 -1.442695, %v2922_v7  ;;  %v6221_v23 = vmul.f32 -1.442695, %v2924_v13  ;;  %v6223_v7 = vmul.f32 -1.442695, %v2926_v44 }
 0x4cf   :  { %v8583_v18 = vpop.eup %6850  ;;  %6876 = vtanh.f32 %v2900_v38  ;;  %v2927_v38 = vrot.slane %v8537_v20, 3  ;;  %v3002_v51 = vcombine.high %v3000_v60, %v3000_v60  ;;  %v3033_v32 = vcombine.high %v3023_v56, %v3023_v56 }
 0x4d0   :  { %v8587_v16 = vpop.eup %6852  ;;  %6878 = vtanh.f32 %v2901_v3 }
 0x4d1   :  { %v6855_v35 = vpop.eup %6854  ;;  %6880 = vtanh.f32 %v2902_v9  ;;  %v6224_v20 = vmul.f32 -1.442695, %v2927_v38  ;;  %v3030_v17 = vrot.slane %v3002_v51, %v7927_v6 }
 0x4d2   :  { %v6857_v22 = vpop.eup %6856  ;;  %6882 = vtanh.f32 %v2903_v45 }
 0x4d3   :  { %v6859_v12 = vpop.eup %6858  ;;  %6884 = vtanh.f32 %v2904_v54  ;;  %v3016_v54 = vrot.slane %v3000_v60, %v7927_v6  ;;  %v3044_v59 = vmul.f32 %v6857_v22, %v3023_v56  ;;  %v3034_v51 = vcombine.high %v3030_v17, %v3030_v17 }
 0x4d4   :  { %v6861_v3 = vpop.eup %6860  ;;  %6886 = vpow2.f32 %v6218_v2  ;;  %v3043_v2 = vmul.f32 %v6855_v35, %v3009_v46  ;;  %v3045_v44 = vmul.f32 %v6859_v12, %v3031_v10 }
 0x4d5   :  { %v6863_v9 = vpop.eup %6862  ;;  %6888 = vpow2.f32 %v6219_v49  ;;  %v3032_v47 = vcombine.high %v3016_v54, %v3016_v54  ;;  %v3046_v60 = vmul.f32 %v6861_v3, %v3033_v32 }
 0x4d6   :  { %v6865_v45 = vpop.eup %6864  ;;  %6890 = vpow2.f32 %v6220_v41  ;;  %v3047_v43 = vmul.f32 %v6863_v9, %v3016_v54 }
 0x4d7   :  { %v6867_v0 = vpop.eup %6866  ;;  %6892 = vpow2.f32 %v6221_v23 }
 0x4d8   :  { %v6869_v13 = vpop.eup %6868  ;;  %6894 = vpow2.f32 %v6222_v14  ;;  %v3049_v12 = vmul.f32 %v6867_v0, %v3032_v47 }
 0x4d9   :  { %v6871_v26 = vpop.eup %6870  ;;  %6896 = vpow2.f32 %v6223_v7  ;;  %v3048_v7 = vmul.f32 %v6865_v45, %v3030_v17 }
 0x4da   :  { %v6873_v49 = vpop.eup %6872  ;;  %6898 = vpow2.f32 %v6224_v20  ;;  %v3051_v41 = vmul.f32 %v6871_v26, %v8558_v28  ;;  %v3050_v28 = vmul.f32 %v6869_v13, %v3034_v51 }
 0x4db   :  { %v6875_v38 = vpop.eup %6874  ;;  %6900 = vpow2.f32 %v6225_v53  ;;  %v3052_v52 = vmul.f32 %v6873_v49, %v8561_v62 }
 0x4dc   :  { %v6877_v23 = vpop.eup %6876  ;;  %v3053_v35 = vmul.f32 %v6875_v38, %v8564_v15  ;;  %v3059_v46 = vadd.f32 %v3051_v41, %v3043_v2 }
 0x4dd   :  { %v6879_v14 = vpop.eup %6878  ;;  %v3054_v22 = vmul.f32 %v6877_v23, %v8567_v5  ;;  %v3060_v56 = vadd.f32 %v3052_v52, %v3044_v59 }
 0x4de   :  { %v6881_v10 = vpop.eup %6880  ;;  %v3055_v20 = vmul.f32 %v6879_v14, %v8573_v50  ;;  %v3061_v53 = vadd.f32 %v3053_v35, %v3045_v44  ;;  %6902 = vtanh.f32 %v3059_v46 }
 0x4df   :  { %v6883_v3 = vpop.eup %6882  ;;  %v3056_v62 = vmul.f32 %v6881_v10, %v8579_v8  ;;  %v3062_v26 = vadd.f32 %v3054_v22, %v3046_v60  ;;  %v3225_v9 = vcombine.low %v3059_v46, %v3060_v56  ;;  %6904 = vtanh.f32 %v3060_v56 }
 0x4e0   :  { %v6885_v54 = vpop.eup %6884  ;;  %v3057_v15 = vmul.f32 %v6883_v3, %v8583_v18  ;;  %v3063_v2 = vadd.f32 %v3055_v20, %v3047_v43  ;;  %6906 = vtanh.f32 %v3061_v53 }
 0x4e1   :  { %v6887_v17 = vpop.eup %6886  ;;  %v3058_v5 = vmul.f32 %v6885_v54, %v8587_v16  ;;  %v3064_v45 = vadd.f32 %v3056_v62, %v3048_v7  ;;  %v3226_v47 = vcombine.low %v3061_v53, %v3062_v26  ;;  %v3235_v43 = vrot.slane %v3225_v9, %v7927_v6  ;;  %v3089_v62 = vpop.permute.xlu1 %3088 }
 0x4e2   :  { %v6889_v0 = vpop.eup %6888  ;;  %v2961_v50 = vadd.f32 1.0, %v6887_v17  ;;  %v3065_v13 = vadd.f32 %v3057_v15, %v3049_v12  ;;  %6908 = vtanh.f32 %v3063_v2  ;;  %vm3090_vm13 = vcmp.eq.s32.totalorder %v3089_v62, 1 }
 0x4e3   :  { %v6891_v32 = vpop.eup %6890  ;;  %v2962_v8 = vadd.f32 1.0, %v6889_v0  ;;  %v3066_v59 = vadd.f32 %v3058_v5, %v3050_v28  ;;  %6910 = vtanh.f32 %v3064_v45  ;;  %v3227_v49 = vcombine.low %v3063_v2, %v3064_v45 }
 0x4e4   :  { %v6893_v44 = vpop.eup %6892  ;;  %v2963_v41 = vadd.f32 1.0, %v6891_v32  ;;  %6912 = vrcp.f32 %v2961_v50  ;;  %v3242_v18 = vrot.slane %v3226_v47, %v7927_v6 }
 0x4e5   :  { %v6895_v16 = vpop.eup %6894  ;;  %v2964_v38 = vadd.f32 1.0, %v6893_v44  ;;  %6914 = vrcp.f32 %v2962_v8  ;;  %v3228_v60 = vcombine.low %v3065_v13, %v3066_v59  ;;  %v3249_v14 = vrot.slane %v3227_v49, %v7927_v6 }
 0x4e6   :  { %v6897_v52 = vpop.eup %6896  ;;  %v2965_v23 = vadd.f32 1.0, %v6895_v16  ;;  %6916 = vrcp.f32 %v2963_v41  ;;  %v3257_v51 = vcombine.low %v3235_v43, %v3242_v18 }
 0x4e7   :  { %v6899_v35 = vpop.eup %6898  ;;  %v2966_v46 = vadd.f32 1.0, %v6897_v52  ;;  %6918 = vrcp.f32 %v2964_v38  ;;  %v3256_v7 = vrot.slane %v3228_v60, %v7927_v6 }
 0x4e8   :  { %v6901_v22 = vpop.eup %6900  ;;  %v2967_v56 = vadd.f32 1.0, %v6899_v35  ;;  %6920 = vrcp.f32 %v2965_v23  ;;  %v3265_v28 = vrot.slane %v3257_v51, %v7927_v6 }
 0x4e9   :  { %v2968_v10 = vadd.f32 1.0, %v6901_v22  ;;  %6922 = vrcp.f32 %v2966_v46  ;;  %v3258_v12 = vcombine.low %v3249_v14, %v3256_v7 }
 0x4ea   :  { %6924 = vrcp.f32 %v2967_v56 }
 0x4eb   :  { %6926 = vrcp.f32 %v2968_v10  ;;  %v3272_v20 = vrot.slane %v3258_v12, %v7927_v6  ;;  %v6903_v53 = vpop.eup %6902 }
 0x4ec   :  { %6928 = vtanh.f32 %v3062_v26  ;;  %v6905_v3 = vpop.eup %6904 }
 0x4ed   :  { %v3273_v9 = vcombine.low %v3265_v28, %v3272_v20  ;;  %6930 = vtanh.f32 %v3065_v13  ;;  %v6907_v54 = vpop.eup %6906 }
 0x4ee   :  { %6932 = vtanh.f32 %v3066_v59 }
 0x4ef   :  { %v6909_v15 = vpop.eup %6908  ;;  %v8614_v2 = vsel %vm3090_vm13, %v3273_v9, %v8398_v36 }
 0x4f0   :  { %v6911_v17 = vpop.eup %6910 }
 0x4f1   :  { %v6913_v5 = vpop.eup %6912 }
 0x4f2   :  { %v6915_v45 = vpop.eup %6914  ;;  %v3075_v26 = vmul.f32 %v6913_v5, %v6903_v53 }
 0x4f3   :  { %v6917_v47 = vpop.eup %6916  ;;  %v3076_v8 = vmul.f32 %v6915_v45, %v6905_v3 }
 0x4f4   :  { %v6919_v0 = vpop.eup %6918  ;;  %v3077_v13 = vmul.f32 %v6917_v47, %v6907_v54 }
 0x4f5   :  { %v6921_v50 = vpop.eup %6920  ;;  %v3099_v38 = vcombine.low %v3075_v26, %v3076_v8 }
 0x4f6   :  { %v6923_v32 = vpop.eup %6922  ;;  %v3079_v41 = vmul.f32 %v6921_v50, %v6909_v15 }
 0x4f7   :  { %v6925_v49 = vpop.eup %6924  ;;  %v3080_v43 = vmul.f32 %v6923_v32, %v6911_v17  ;;  %v3109_v46 = vrot.slane %v3099_v38, %v7927_v6 }
 0x4f8   :  { %v6927_v44 = vpop.eup %6926 }
 0x4f9   :  { %v6929_v59 = vpop.eup %6928  ;;  %v3101_v51 = vcombine.low %v3079_v41, %v3080_v43 }
 0x4fa   :  { %v6931_v18 = vpop.eup %6930  ;;  %v3078_v16 = vmul.f32 %v6929_v59, %v6919_v0 }
 0x4fb   :  { %v6933_v36 = vpop.eup %6932  ;;  %v3081_v60 = vmul.f32 %v6931_v18, %v6925_v49  ;;  %v3123_v7 = vrot.slane %v3101_v51, %v7927_v6 }
 0x4fc   :  { %v3082_v52 = vmul.f32 %v6933_v36, %v6927_v44  ;;  %v3100_v23 = vcombine.low %v3077_v13, %v3078_v16 }
 0x4fe   :  { %v3102_v35 = vcombine.low %v3081_v60, %v3082_v52  ;;  %v3116_v14 = vrot.slane %v3100_v23, %v7927_v6 }
 0x500   :  { %v3130_v22 = vrot.slane %v3102_v35, %v7927_v6  ;;  %v3131_v56 = vcombine.low %v3109_v46, %v3116_v14  ;;  %v3277_v35 = vld [vmem:[#allocation2 + $0x4] ss:$8 sm:$0xf] }
 0x501   :  { %v3279_v46 = vld [vmem:[#allocation2 + $0x24] ss:$8 sm:$0xf] }
 0x502   :  { %v3132_v10 = vcombine.low %v3123_v7, %v3130_v22  ;;  %v3139_v12 = vrot.slane %v3131_v56, %v7927_v6  ;;  %v3281_v14 = vld [vmem:[#allocation2 + $0x44] ss:$8 sm:$0xf] }
 0x503   :  { %v3285_v7 = vld [vmem:[#allocation2 + $0x84] ss:$8 sm:$0xf] }
 0x504   :  { %v3146_v28 = vrot.slane %v3132_v10, %v7927_v6 }
 0x506   :  { %v3147_v20 = vcombine.low %v3139_v12, %v3146_v28  ;;  %v3283_v28 = vld [vmem:[#allocation2 + $0x64] ss:$8 sm:$0xf] }
 0x508   :  { %v3149_v53 = vsel %vm3090_vm13, %v3147_v20, 0.0  ;;  %v8625_v3 = vsel %vm3090_vm13, %v3147_v20, %v8409_v40  ;;  %v3287_v20 = vld [vmem:[#allocation2 + $0xa4] ss:$8 sm:$0xf] }
 0x509   :  { %v3151_v9 = vcombine.high %v3149_v53, %v3149_v53  ;;  %v3158_v54 = vrot.slane %v3149_v53, %v7927_v6  ;;  %v3292_v15 = vpack.c.bf16 %v8625_v3, %v8625_v3 }
 0x50b   :  { %v3165_v17 = vrot.slane %v3151_v9, %v7927_v6  ;;  %v3166_v5 = vcombine.high %v3158_v54, %v3158_v54  ;;  %v3174_v45 = vrot.slane %v3158_v54, %v7927_v6  ;;  %6227 = vst.sshfl [vmem:[#allocation9 + $0x3] sm:$0x1 pattern:$0x73625140] %v3158_v54  ;;  %3326 = vmatmul.mubr.bf16.vlgmr.msra.gmra.mxu0 %v3292_v15 }
 0x50c   :  { %3367 = vmatmul.mubr.bf16.vlgmr.msra.gmra.mxu1 %v3292_v15  ;;  %3980 = vmatpush1.bf16.msra.mxu0 %v8416_v42  ;;  %v3289_v15 = vld [vmem:[#allocation2 + $0xc4] ss:$8 sm:$0xf] }
 0x50d   :  { %4021 = vmatpush1.bf16.msra.mxu1 %v8419_v24  ;;  %v3167_v40 = vcombine.high %v3165_v17, %v3165_v17  ;;  %v3181_v62 = vrot.slane %v3165_v17, %v7927_v6  ;;  %v3188_v47 = vrot.slane %v3166_v5, %v7927_v6  ;;  %v3196_v0 = vcombine.high %v3174_v45, %v3174_v45 }
 0x50e   :  { %6228 = vst.sshfl [vmem:[#allocation9 + $0xb] sm:$0x1 pattern:$0x73625140] %v3166_v5  ;;  %3981 = vmatprep.subr.bf16.mxu0 %v8424_v4  ;;  %4022 = vmatprep.subr.bf16.mxu1 %v8427_v61  ;;  %v9340_v4 = vld [vmem:[#allocation17_spill] sm:$0xff]  ;;  %v9341_v61 = vld [vmem:[#allocation18_spill] sm:$0xff] }
 0x50f   :  { %6229 = vst.sshfl [vmem:[#allocation9 + $0x23] sm:$0x1 pattern:$0x73625140] %v3165_v17  ;;  %4011 = vmatprep.mubr.bf16.mxu0 %v9318_v34  ;;  %v3195_v50 = vrot.slane %v3167_v40, %v7927_v6  ;;  %v3197_v32 = vcombine.high %v3181_v62, %v3181_v62  ;;  %v3198_v42 = vcombine.high %v3188_v47, %v3188_v47  ;;  %3210 = vst [vmem:[#allocation9 + $0x13] sm:$0x1] %v3196_v0 }
 0x510   :  { %6230 = vst.sshfl [vmem:[#allocation9 + $0x2b] sm:$0x1 pattern:$0x73625140] %v3167_v40  ;;  %4052 = vmatprep.mubr.bf16.mxu1 %v9318_v34  ;;  %3982 = vmatpush1.bf16.msra.mxu0 %v8433_v48  ;;  %v9342_v48 = vld [vmem:[#allocation19_spill] sm:$0xff] }
 0x511   :  { %4023 = vmatpush1.bf16.msra.mxu1 %v8436_v63  ;;  %v3199_v24 = vcombine.high %v3195_v50, %v3195_v50  ;;  %3211 = vst [vmem:[#allocation9 + $0x1b] sm:$0x1] %v3198_v42  ;;  %3214 = vst [vmem:[#allocation9 + $0x33] sm:$0x1] %v3197_v32  ;;  %3983 = vmatprep.subr.bf16.mxu0 %v8439_v1  ;;  %v9343_v63 = vld [vmem:[#allocation20_spill] sm:$0xff]  ;;  %v9344_v1 = vld [vmem:[#allocation21_spill] sm:$0xff] }
 0x512   :  { %4024 = vmatprep.subr.bf16.mxu1 %v8442_v58  ;;  %v9345_v58 = vld [vmem:[#allocation22_spill] sm:$0xff] }
 0x513   :  { %3215 = vst [vmem:[#allocation9 + $0x3b] sm:$0x1] %v3199_v24  ;;  %v3291_v17 = vld [vmem:[#allocation2 + $0xe4] ss:$8 sm:$0xf] }
 0x514   :  { %3984 = vmatpush1.bf16.msra.mxu0 %v8445_v19  ;;  %v9346_v19 = vld [vmem:[#allocation23_spill] sm:$0xff] }
 0x515   :  { %4025 = vmatpush1.bf16.msra.mxu1 %v8448_v55  ;;  %3985 = vmatprep.subr.bf16.mxu0 %v8451_v11  ;;  %v9347_v55 = vld [vmem:[#allocation24_spill] sm:$0xff]  ;;  %v9348_v11 = vld [vmem:[#allocation25_spill] sm:$0xff] }
 0x516   :  { %4026 = vmatprep.subr.bf16.mxu1 %v8454_v39  ;;  %v9349_v39 = vld [vmem:[#allocation26_spill] sm:$0xff] }
 0x518   :  { %3986 = vmatpush1.bf16.msra.mxu0 %v8457_v57  ;;  %v9350_v57 = vld [vmem:[#allocation27_spill] sm:$0xff] }
 0x519   :  { %4027 = vmatpush1.bf16.msra.mxu1 %v8460_v21  ;;  %3987 = vmatprep.subr.bf16.mxu0 %v8463_v25 }
 0x51a   :  { %4028 = vmatprep.subr.bf16.mxu1 %v8466_v27 }
 0x51c   :  { %3988 = vmatpush1.bf16.msra.mxu0 %v8469_v29 }
 0x51d   :  { %4029 = vmatpush1.bf16.msra.mxu1 %v8472_v30  ;;  %3989 = vmatprep.subr.bf16.mxu0 %v8475_v31 }
 0x51e   :  { %4030 = vmatprep.subr.bf16.mxu1 %v8478_v33 }
 0x520   :  { %3990 = vmatpush1.bf16.msra.mxu0 %v8481_v37 }
 0x521   :  { %4031 = vmatpush1.bf16.msra.mxu1 %v9340_v4  ;;  %3991 = vmatprep.subr.bf16.mxu0 %v9341_v61 }
 0x522   :  { %4032 = vmatprep.subr.bf16.mxu1 %v9342_v48 }
 0x524   :  { %3992 = vmatpush1.bf16.msra.mxu0 %v9343_v63 }
 0x525   :  { %4033 = vmatpush1.bf16.msra.mxu1 %v9344_v1  ;;  %3993 = vmatprep.subr.bf16.mxu0 %v9345_v58 }
 0x526   :  { %4034 = vmatprep.subr.bf16.mxu1 %v9346_v19 }
 0x528   :  { %3994 = vmatpush1.bf16.msra.mxu0 %v9347_v55 }
 0x529   :  { %4035 = vmatpush1.bf16.msra.mxu1 %v9348_v11  ;;  %4665 = vmatprep.subr.bf16.mxu0 %v9349_v39 }
 0x52a   :  { %4706 = vmatprep.subr.bf16.mxu1 %v9350_v57 }
 0x5cb   :  { %v3327_v21 = vpop.f32.mrf.mxu0 }
 0x5cc   :  { %v3368_v25 = vpop.f32.mrf.mxu1 }
 0x5cd   :  { %v3329_v27 = vpop.f32.mrf.mxu0 }
 0x5ce   :  { %v3370_v29 = vpop.f32.mrf.mxu1  ;;  %v3379_v30 = vcombine.low %v3327_v21, %v3329_v27  ;;  %v3380_v31 = vcombine.high %v3327_v21, %v3329_v27 }
 0x5cf   :  { %v3381_v33 = vcombine.low %v3368_v25, %v3370_v29  ;;  %v3382_v37 = vcombine.high %v3368_v25, %v3370_v29  ;;  %v3331_v26 = vpop.f32.mrf.mxu0 }
 0x5d0   :  { %v3372_v8 = vpop.f32.mrf.mxu1  ;;  %v3389_v49 = vrot.slane %v3379_v30, %v7927_v6  ;;  %v3396_v44 = vrot.slane %v3380_v31, %v7927_v6 }
 0x5d1   :  { %v3403_v13 = vrot.slane %v3381_v33, %v7927_v6  ;;  %v3410_v41 = vrot.slane %v3382_v37, %v7927_v6  ;;  %v3332_v43 = vpop.f32.mrf.mxu0 }
 0x5d2   :  { %v3373_v59 = vpop.f32.mrf.mxu1 }
 0x5d3   :  { %v3411_v18 = vcombine.low %v3389_v49, %v3403_v13  ;;  %v3412_v16 = vcombine.high %v3389_v49, %v3403_v13  ;;  %v3413_v38 = vcombine.low %v3396_v44, %v3410_v41  ;;  %v3414_v36 = vcombine.high %v3396_v44, %v3410_v41 }
 0x5d5   :  { %v3421_v60 = vrot.slane %v3411_v18, %v7927_v6  ;;  %v3428_v52 = vrot.slane %v3413_v38, %v7927_v6  ;;  %v3435_v23 = vrot.slane %v3412_v16, %v7927_v6  ;;  %v3442_v51 = vrot.slane %v3414_v36, %v7927_v6 }
 0x5d7   :  { %v3443_v22 = vcombine.high %v3421_v60, %v3421_v60  ;;  %v3444_v56 = vcombine.high %v3428_v52, %v3428_v52  ;;  %v3445_v10 = vcombine.high %v3435_v23, %v3435_v23  ;;  %v3446_v12 = vcombine.high %v3442_v51, %v3442_v51 }
 0x5d8   :  { %v8677_v53 = vadd.f32 %v3421_v60, %v3277_v35  ;;  %v8679_v9 = vadd.f32 %v3435_v23, %v3279_v46  ;;  %v8681_v54 = vadd.f32 %v3428_v52, %v3285_v7  ;;  %v8687_v40 = vadd.f32 %v3442_v51, %v3287_v20 }
 0x5d9   :  { %v8683_v5 = vadd.f32 %v3443_v22, %v3281_v14  ;;  %v8685_v45 = vadd.f32 %v3445_v10, %v3283_v28  ;;  %v8689_v62 = vadd.f32 %v3444_v56, %v3289_v15  ;;  %v8693_v50 = vadd.f32 %v3446_v12, %v3291_v17 }
 0x5da   :  { %v6231_v47 = vmul.f32 -1.442695, %v8677_v53  ;;  %v6232_v0 = vmul.f32 -1.442695, %v8679_v9  ;;  %v6235_v24 = vmul.f32 -1.442695, %v8681_v54 }
 0x5db   :  { %v6233_v32 = vmul.f32 -1.442695, %v8683_v5  ;;  %v6234_v42 = vmul.f32 -1.442695, %v8685_v45  ;;  %v3519_v4 = vrot.slane %v8677_v53, 1  ;;  %v3520_v48 = vrot.slane %v8679_v9, 1 }
 0x5dc   :  { %6934 = vpow2.f32 %v6231_v47  ;;  %v6236_v61 = vmul.f32 -1.442695, %v8687_v40  ;;  %v6237_v63 = vmul.f32 -1.442695, %v8689_v62  ;;  %v3521_v1 = vrot.slane %v8683_v5, 1 }
 0x5dd   :  { %6936 = vpow2.f32 %v6232_v0  ;;  %v6238_v58 = vmul.f32 -1.442695, %v8693_v50  ;;  %v3522_v19 = vrot.slane %v8685_v45, 1  ;;  %v3523_v55 = vrot.slane %v8681_v54, 1 }
 0x5de   :  { %6938 = vpow2.f32 %v6233_v32  ;;  %v6239_v11 = vmul.f32 -1.442695, %v3519_v4  ;;  %v3524_v39 = vrot.slane %v8687_v40, 1  ;;  %v6240_v57 = vmul.f32 -1.442695, %v3520_v48 }
 0x5df   :  { %6940 = vpow2.f32 %v6234_v42  ;;  %v3525_v21 = vrot.slane %v8689_v62, 1  ;;  %v6241_v25 = vmul.f32 -1.442695, %v3521_v1  ;;  %v3526_v27 = vrot.slane %v8693_v50, 1 }
 0x5e0   :  { %6942 = vpow2.f32 %v6235_v24  ;;  %v6242_v29 = vmul.f32 -1.442695, %v3522_v19  ;;  %v6243_v30 = vmul.f32 -1.442695, %v3523_v55  ;;  %v6244_v31 = vmul.f32 -1.442695, %v3524_v39 }
 0x5e1   :  { %6944 = vpow2.f32 %v6236_v61  ;;  %v6245_v33 = vmul.f32 -1.442695, %v3525_v21  ;;  %v6246_v37 = vmul.f32 -1.442695, %v3526_v27  ;;  %v3583_v42 = vrot.slane %v8677_v53, 2 }
 0x5e2   :  { %6946 = vpow2.f32 %v6237_v63  ;;  %v3584_v61 = vrot.slane %v8679_v9, 2  ;;  %v3585_v63 = vrot.slane %v8683_v5, 2  ;;  %v3587_v55 = vrot.slane %v8681_v54, 2 }
 0x5e3   :  { %6948 = vpow2.f32 %v6238_v58  ;;  %v3586_v58 = vrot.slane %v8685_v45, 2  ;;  %v3672_v39 = vcombine.high %v8614_v2, %v8614_v2  ;;  %v3588_v21 = vrot.slane %v8687_v40, 2 }
 0x5e4   :  { %6950 = vpow2.f32 %v6239_v11  ;;  %v3607_v11 = vrot.slane %v8677_v53, 3  ;;  %v3679_v27 = vrot.slane %v8614_v2, %v7927_v6  ;;  %v3609_v53 = vrot.slane %v8683_v5, 3 }
 0x5e5   :  { %6952 = vpow2.f32 %v6240_v57 }
 0x5e6   :  { %6954 = vpow2.f32 %v6241_v25  ;;  %v3608_v25 = vrot.slane %v8679_v9, 3  ;;  %v3611_v9 = vrot.slane %v8681_v54, 3 }
 0x5e7   :  { %6956 = vpow2.f32 %v6242_v29 }
 0x5e8   :  { %6958 = vpow2.f32 %v6243_v30  ;;  %v3589_v30 = vrot.slane %v8689_v62, 2  ;;  %v6248_v5 = vmul.f32 -1.442695, %v3608_v25 }
 0x5e9   :  { %v6935_v26 = vpop.eup %6934  ;;  %6960 = vpow2.f32 %v6244_v31 }
 0x5ea   :  { %v6937_v8 = vpop.eup %6936  ;;  %v3487_v49 = vadd.f32 1.0, %v6935_v26  ;;  %6962 = vpow2.f32 %v6245_v33  ;;  %v3590_v33 = vrot.slane %v8693_v50, 2 }
 0x5eb   :  { %v6939_v44 = vpop.eup %6938  ;;  %v3488_v13 = vadd.f32 1.0, %v6937_v8  ;;  %6964 = vpow2.f32 %v6246_v37  ;;  %v3610_v37 = vrot.slane %v8685_v45, 3  ;;  %v6247_v8 = vmul.f32 -1.442695, %v3607_v11 }
 0x5ec   :  { %v6941_v41 = vpop.eup %6940  ;;  %v3489_v43 = vadd.f32 1.0, %v6939_v44  ;;  %6966 = vrcp.f32 %v3487_v49  ;;  %v3686_v49 = vrot.slane %v3672_v39, %v7927_v6 }
 0x5ed   :  { %v6943_v59 = vpop.eup %6942  ;;  %v3490_v18 = vadd.f32 1.0, %v6941_v41  ;;  %6968 = vrcp.f32 %v3488_v13  ;;  %v3612_v13 = vrot.slane %v8687_v40, 3  ;;  %v3687_v41 = vcombine.high %v3679_v27, %v3679_v27 }
 0x5ee   :  { %v6945_v16 = vpop.eup %6944  ;;  %v3491_v38 = vadd.f32 1.0, %v6943_v59  ;;  %6970 = vrcp.f32 %v3489_v43  ;;  %v3613_v59 = vrot.slane %v8689_v62, 3 }
 0x5ef   :  { %v6947_v36 = vpop.eup %6946  ;;  %v3492_v60 = vadd.f32 1.0, %v6945_v16  ;;  %6972 = vrcp.f32 %v3490_v18  ;;  %v6249_v18 = vmul.f32 -1.442695, %v3609_v53  ;;  %v3614_v16 = vrot.slane %v8693_v50, 3 }
 0x5f0   :  { %v6949_v52 = vpop.eup %6948  ;;  %v3493_v23 = vadd.f32 1.0, %v6947_v36  ;;  %6974 = vrcp.f32 %v3491_v38  ;;  %v6250_v38 = vmul.f32 -1.442695, %v3610_v37  ;;  %v6251_v36 = vmul.f32 -1.442695, %v3611_v9 }
 0x5f1   :  { %v6951_v51 = vpop.eup %6950  ;;  %v3494_v35 = vadd.f32 1.0, %v6949_v52  ;;  %6976 = vrcp.f32 %v3492_v60  ;;  %v3688_v60 = vcombine.high %v3686_v49, %v3686_v49  ;;  %v3695_v52 = vrot.slane %v3679_v27, %v7927_v6 }
 0x5f2   :  { %v6953_v46 = vpop.eup %6952  ;;  %6978 = vrcp.f32 %v3493_v23  ;;  %v3559_v14 = vadd.f32 1.0, %v6951_v51  ;;  %v6252_v40 = vmul.f32 -1.442695, %v3612_v13  ;;  %v3709_v51 = vrot.slane %v3687_v41, %v7927_v6 }
 0x5f3   :  { %v6955_v7 = vpop.eup %6954  ;;  %6980 = vrcp.f32 %v3494_v35  ;;  %v3560_v22 = vadd.f32 1.0, %v6953_v46  ;;  %v6253_v62 = vmul.f32 -1.442695, %v3613_v59  ;;  %v3702_v50 = vrot.slane %v3686_v49, %v7927_v6 }
 0x5f4   :  { %v6957_v56 = vpop.eup %6956  ;;  %v3561_v10 = vadd.f32 1.0, %v6955_v7  ;;  %6982 = vrcp.f32 %v3559_v14  ;;  %v6254_v14 = vmul.f32 -1.442695, %v3614_v16 }
 0x5f5   :  { %v6959_v12 = vpop.eup %6958  ;;  %v3562_v28 = vadd.f32 1.0, %v6957_v56  ;;  %6984 = vrcp.f32 %v3560_v22  ;;  %v3716_v22 = vrot.slane %v3688_v60, %v7927_v6  ;;  %v3717_v56 = vcombine.high %v3695_v52, %v3695_v52 }
 0x5f6   :  { %v6961_v20 = vpop.eup %6960  ;;  %v3563_v15 = vadd.f32 1.0, %v6959_v12  ;;  %6986 = vrcp.f32 %v3561_v10 }
 0x5f7   :  { %v6963_v17 = vpop.eup %6962  ;;  %v3564_v47 = vadd.f32 1.0, %v6961_v20  ;;  %6988 = vrcp.f32 %v3562_v28  ;;  %v3719_v28 = vcombine.high %v3709_v51, %v3709_v51 }
 0x5f8   :  { %v6965_v0 = vpop.eup %6964  ;;  %v3565_v32 = vadd.f32 1.0, %v6963_v17  ;;  %6990 = vrcp.f32 %v3563_v15 }
 0x5f9   :  { %v8710_v24 = vpop.eup %6966  ;;  %v3566_v4 = vadd.f32 1.0, %v6965_v0  ;;  %6992 = vrcp.f32 %v3564_v47 }
 0x5fa   :  { %v8713_v48 = vpop.eup %6968  ;;  %6994 = vrcp.f32 %v3565_v32  ;;  %v3718_v32 = vcombine.high %v3702_v50, %v3702_v50 }
 0x5fb   :  { %v8716_v1 = vpop.eup %6970  ;;  %6996 = vrcp.f32 %v3566_v4 }
 0x5fc   :  { %v8719_v19 = vpop.eup %6972  ;;  %6998 = vtanh.f32 %v3583_v42 }
 0x5fd   :  { %v8725_v57 = vpop.eup %6974  ;;  %7000 = vtanh.f32 %v3584_v61 }
 0x5fe   :  { %v8731_v29 = vpop.eup %6976  ;;  %7002 = vtanh.f32 %v3585_v63  ;;  %v3720_v63 = vcombine.high %v3716_v22, %v3716_v22 }
 0x5ff   :  { %v8735_v31 = vpop.eup %6978  ;;  %7004 = vtanh.f32 %v3586_v58 }
 0x600   :  { %v8739_v26 = vpop.eup %6980  ;;  %7006 = vtanh.f32 %v3587_v55 }
 0x601   :  { %v6983_v44 = vpop.eup %6982  ;;  %7008 = vtanh.f32 %v3588_v21 }
 0x602   :  { %v6985_v43 = vpop.eup %6984  ;;  %7010 = vtanh.f32 %v3589_v30  ;;  %v3729_v10 = vmul.f32 %v6983_v44, %v3695_v52 }
 0x603   :  { %v6987_v45 = vpop.eup %6986  ;;  %7012 = vtanh.f32 %v3590_v33  ;;  %v3730_v20 = vmul.f32 %v6985_v43, %v3709_v51 }
 0x604   :  { %v6989_v54 = vpop.eup %6988  ;;  %7014 = vpow2.f32 %v6247_v8  ;;  %v3731_v17 = vmul.f32 %v6987_v45, %v3717_v56 }
 0x605   :  { %v6991_v23 = vpop.eup %6990  ;;  %7016 = vpow2.f32 %v6248_v5  ;;  %v3732_v42 = vmul.f32 %v6989_v54, %v3719_v28 }
 0x606   :  { %v6993_v35 = vpop.eup %6992  ;;  %7018 = vpow2.f32 %v6249_v18  ;;  %v3733_v58 = vmul.f32 %v6991_v23, %v3702_v50 }
 0x607   :  { %v6995_v46 = vpop.eup %6994  ;;  %7020 = vpow2.f32 %v6250_v38  ;;  %v3734_v21 = vmul.f32 %v6993_v35, %v3716_v22 }
 0x608   :  { %v6997_v7 = vpop.eup %6996  ;;  %7022 = vpow2.f32 %v6251_v36  ;;  %v3735_v53 = vmul.f32 %v6995_v46, %v3718_v32 }
 0x609   :  { %v6999_v12 = vpop.eup %6998  ;;  %7024 = vpow2.f32 %v6252_v40 }
 0x60a   :  { %v7001_v15 = vpop.eup %7000  ;;  %7026 = vpow2.f32 %v6253_v62  ;;  %v3737_v47 = vmul.f32 %v6999_v12, %v8710_v24  ;;  %v3736_v24 = vmul.f32 %v6997_v7, %v3720_v63 }
 0x60b   :  { %v7003_v0 = vpop.eup %7002  ;;  %7028 = vpow2.f32 %v6254_v14  ;;  %v3738_v4 = vmul.f32 %v7001_v15, %v8713_v48 }
 0x60c   :  { %v7005_v61 = vpop.eup %7004  ;;  %v3739_v55 = vmul.f32 %v7003_v0, %v8716_v1  ;;  %v3745_v11 = vadd.f32 %v3737_v47, %v3729_v10 }
 0x60d   :  { %v7007_v39 = vpop.eup %7006  ;;  %v3740_v25 = vmul.f32 %v7005_v61, %v8719_v19  ;;  %v3746_v27 = vadd.f32 %v3738_v4, %v3730_v20 }
 0x60e   :  { %v7009_v30 = vpop.eup %7008  ;;  %v3741_v33 = vmul.f32 %v7007_v39, %v8725_v57  ;;  %v3747_v37 = vadd.f32 %v3739_v55, %v3731_v17  ;;  %7030 = vtanh.f32 %v3745_v11  ;;  %v3775_v17 = vpop.permute.xlu0 %3774 }
 0x60f   :  { %v7011_v9 = vpop.eup %7010  ;;  %v3742_v48 = vmul.f32 %v7009_v30, %v8731_v29  ;;  %v3748_v8 = vadd.f32 %v3740_v25, %v3732_v42  ;;  %v3911_v49 = vcombine.low %v3745_v11, %v3746_v27  ;;  %7032 = vtanh.f32 %v3746_v27 }
 0x610   :  { %v7013_v44 = vpop.eup %7012  ;;  %v3743_v1 = vmul.f32 %v7011_v9, %v8735_v31  ;;  %v3749_v13 = vadd.f32 %v3741_v33, %v3733_v58  ;;  %7034 = vtanh.f32 %v3747_v37  ;;  %vm3776_vm14 = vcmp.eq.s32.totalorder %v3775_v17, 1  ;;  %v8813_v17 = vld [vmem:[#allocation8 + $0xa0] ss:$16 sps:$4 sm:$0xff]  }
 0x611   :  { %v7015_v5 = vpop.eup %7014  ;;  %v3744_v19 = vmul.f32 %v7013_v44, %v8739_v26  ;;  %v3750_v41 = vadd.f32 %v3742_v48, %v3734_v21  ;;  %v3912_v43 = vcombine.low %v3747_v37, %v3748_v8  ;;  %v3921_v31 = vrot.slane %v3911_v49, %v7927_v6 }
 0x612   :  { %v7017_v59 = vpop.eup %7016  ;;  %v3647_v57 = vadd.f32 1.0, %v7015_v5  ;;  %v3751_v18 = vadd.f32 %v3743_v1, %v3735_v53  ;;  %7036 = vtanh.f32 %v3749_v13 }
 0x613   :  { %v7019_v45 = vpop.eup %7018  ;;  %v3648_v29 = vadd.f32 1.0, %v7017_v59  ;;  %v3752_v16 = vadd.f32 %v3744_v19, %v3736_v24  ;;  %7038 = vtanh.f32 %v3750_v41  ;;  %v3913_v38 = vcombine.low %v3749_v13, %v3750_v41 }
 0x614   :  { %v7021_v54 = vpop.eup %7020  ;;  %v3649_v36 = vadd.f32 1.0, %v7019_v45  ;;  %7040 = vrcp.f32 %v3647_v57  ;;  %v3928_v60 = vrot.slane %v3912_v43, %v7927_v6 }
 0x615   :  { %v7023_v26 = vpop.eup %7022  ;;  %v3650_v52 = vadd.f32 1.0, %v7021_v54  ;;  %7042 = vrcp.f32 %v3648_v29  ;;  %v3914_v23 = vcombine.low %v3751_v18, %v3752_v16  ;;  %v3935_v14 = vrot.slane %v3913_v38, %v7927_v6 }
 0x616   :  { %v7025_v40 = vpop.eup %7024  ;;  %v3651_v51 = vadd.f32 1.0, %v7023_v26  ;;  %7044 = vrcp.f32 %v3649_v36  ;;  %v3943_v35 = vcombine.low %v3921_v31, %v3928_v60 }
 0x617   :  { %v7027_v62 = vpop.eup %7026  ;;  %v3652_v46 = vadd.f32 1.0, %v7025_v40  ;;  %7046 = vrcp.f32 %v3650_v52  ;;  %v3942_v50 = vrot.slane %v3914_v23, %v7927_v6  ;;  %v8784_v40 = vld [vmem:[#allocation8 + $0xe0] ss:$16 sps:$4 sm:$0xff]  }
 0x618   :  { %v7029_v7 = vpop.eup %7028  ;;  %v3653_v22 = vadd.f32 1.0, %v7027_v62  ;;  %7048 = vrcp.f32 %v3651_v51  ;;  %v3951_v12 = vrot.slane %v3943_v35, %v7927_v6 }
 0x619   :  { %v3654_v56 = vadd.f32 1.0, %v7029_v7  ;;  %7050 = vrcp.f32 %v3652_v46  ;;  %v3944_v10 = vcombine.low %v3935_v14, %v3942_v50  ;;  %v8792_v14 = vld [vmem:[#allocation8 + $0xc4] ss:$16 sps:$4 sm:$0xff]   ;;  %v8795_v50 = vld [vmem:[#allocation8 + $0xcc] ss:$16 sps:$4 sm:$0xff]  }
 0x61a   :  { %7052 = vrcp.f32 %v3653_v22 }
 0x61b   :  { %7054 = vrcp.f32 %v3654_v56  ;;  %v3958_v28 = vrot.slane %v3944_v10, %v7927_v6  ;;  %v7031_v20 = vpop.eup %7030  ;;  %v8801_v10 = vld [vmem:[#allocation8 + $0xc0] ss:$16 sps:$4 sm:$0xff]  }
 0x61c   :  { %7056 = vtanh.f32 %v3748_v8  ;;  %v7033_v15 = vpop.eup %7032 }
 0x61d   :  { %v3959_v47 = vcombine.low %v3951_v12, %v3958_v28  ;;  %7058 = vtanh.f32 %v3751_v18  ;;  %v7035_v0 = vpop.eup %7034  ;;  %v8804_v12 = vld [vmem:[#allocation8 + $0xc8] ss:$16 sps:$4 sm:$0xff]  }
 0x61e   :  { %7060 = vtanh.f32 %v3752_v16 }
 0x61f   :  { %v7037_v32 = vpop.eup %7036  ;;  %v8766_v42 = vsel %vm3776_vm14, %v3959_v47, %v8614_v2  ;;  %v8816_v47 = vld [vmem:[#allocation8 + $0xa8] ss:$16 sps:$4 sm:$0xff]  }
 0x620   :  { %v7039_v4 = vpop.eup %7038 }
 0x621   :  { %v7041_v61 = vpop.eup %7040 }
 0x622   :  { %v7043_v63 = vpop.eup %7042  ;;  %v3761_v21 = vmul.f32 %v7041_v61, %v7031_v20  ;;  %v8807_v20 = vld [vmem:[#allocation8 + $0xa4] ss:$16 sps:$4 sm:$0xff]   ;;  %v8828_v61 = vld [vmem:[#allocation8 + $0x88] ss:$16 sps:$4 sm:$0xff]  }
 0x623   :  { %v7045_v58 = vpop.eup %7044  ;;  %v3762_v25 = vmul.f32 %v7043_v63, %v7033_v15  ;;  %v8810_v15 = vld [vmem:[#allocation8 + $0xac] ss:$16 sps:$4 sm:$0xff]   ;;  %v8831_v63 = vld [vmem:[#allocation8 + $0x64] ss:$16 sps:$4 sm:$0xff]  }
 0x624   :  { %v7047_v55 = vpop.eup %7046  ;;  %v3763_v53 = vmul.f32 %v7045_v58, %v7035_v0  ;;  %v8819_v0 = vld [vmem:[#allocation8 + $0x84] ss:$16 sps:$4 sm:$0xff]   ;;  %v8834_v58 = vld [vmem:[#allocation8 + $0x6c] ss:$16 sps:$4 sm:$0xff]  }
 0x625   :  { %v7049_v11 = vpop.eup %7048  ;;  %v3785_v8 = vcombine.low %v3761_v21, %v3762_v25  ;;  %v8846_v21 = vld [vmem:[#allocation8 + $0x4c] ss:$16 sps:$4 sm:$0xff]   ;;  %v8849_v25 = vld [vmem:[#allocation8 + $0x40] ss:$16 sps:$4 sm:$0xff]  }
 0x626   :  { %v7051_v39 = vpop.eup %7050  ;;  %v3765_v24 = vmul.f32 %v7049_v11, %v7037_v32  ;;  %v8822_v32 = vld [vmem:[#allocation8 + $0x8c] ss:$16 sps:$4 sm:$0xff]   ;;  %v8840_v11 = vld [vmem:[#allocation8 + $0x68] ss:$16 sps:$4 sm:$0xff]  }
 0x627   :  { %v7053_v27 = vpop.eup %7052  ;;  %v3766_v33 = vmul.f32 %v7051_v39, %v7039_v4  ;;  %v3795_v19 = vrot.slane %v3785_v8, %v7927_v6  ;;  %v8825_v4 = vld [vmem:[#allocation8 + $0x80] ss:$16 sps:$4 sm:$0xff]   ;;  %v8843_v39 = vld [vmem:[#allocation8 + $0x44] ss:$16 sps:$4 sm:$0xff]   ;;  %v8876_v8 = vld [vmem:[#allocation8 + $0x8] ss:$16 sps:$4 sm:$0xff]  }
 0x628   :  { %v7055_v30 = vpop.eup %7054  ;;  %9359 = vst [vmem:[#allocation25_spill] sm:$0xff] %v8876_v8 }
 0x629   :  { %v7057_v37 = vpop.eup %7056  ;;  %v3787_v13 = vcombine.low %v3765_v24, %v3766_v33  ;;  %v8861_v24 = vld [vmem:[#allocation8 + $0x20] ss:$16 sps:$4 sm:$0xff]   ;;  %v8864_v33 = vld [vmem:[#allocation8 + $0x28] ss:$16 sps:$4 sm:$0xff]  }
 0x62a   :  { %v7059_v9 = vpop.eup %7058  ;;  %v3764_v48 = vmul.f32 %v7057_v37, %v7047_v55  ;;  %v8837_v55 = vld [vmem:[#allocation8 + $0x60] ss:$16 sps:$4 sm:$0xff]   ;;  %9354 = vst [vmem:[#allocation20_spill] sm:$0xff] %v8861_v24  ;;  %9355 = vst [vmem:[#allocation21_spill] sm:$0xff] %v8864_v33  ;;  %v8867_v37 = vld [vmem:[#allocation8 + $0x4] ss:$16 sps:$4 sm:$0xff]  }
 0x62b   :  { %v7061_v2 = vpop.eup %7060  ;;  %v3767_v49 = vmul.f32 %v7059_v9, %v7053_v27  ;;  %v3809_v43 = vrot.slane %v3787_v13, %v7927_v6  ;;  %v8852_v27 = vld [vmem:[#allocation8 + $0x48] ss:$16 sps:$4 sm:$0xff]   ;;  %9356 = vst [vmem:[#allocation22_spill] sm:$0xff] %v8867_v37  ;;  %v8870_v9 = vld [vmem:[#allocation8 + $0xc] ss:$16 sps:$4 sm:$0xff]  }
 0x62c   :  { %v3768_v44 = vmul.f32 %v7061_v2, %v7055_v30  ;;  %v3786_v1 = vcombine.low %v3763_v53, %v3764_v48  ;;  %9351 = vst [vmem:[#allocation17_spill] sm:$0xff] %v8852_v27  ;;  %v8855_v30 = vld [vmem:[#allocation8 + $0x24] ss:$16 sps:$4 sm:$0xff]   ;;  %v8858_v53 = vld [vmem:[#allocation8 + $0x2c] ss:$16 sps:$4 sm:$0xff]   ;;  %9357 = vst [vmem:[#allocation23_spill] sm:$0xff] %v8870_v9 }
 0x62d   :  { %9352 = vst [vmem:[#allocation18_spill] sm:$0xff] %v8855_v30  ;;  %9353 = vst [vmem:[#allocation19_spill] sm:$0xff] %v8858_v53  ;;  %v8873_v48 = vld [vmem:[#allocation8] ss:$16 sps:$4 sm:$0xff]   ;;  %v7541_v2 = vld [vmem:[#allocation8 + $0xe4] ss:$16 sps:$4 sm:$0xff]  }
 0x62e   :  { %v3788_v5 = vcombine.low %v3767_v49, %v3768_v44  ;;  %v3802_v41 = vrot.slane %v3786_v1, %v7927_v6  ;;  %9358 = vst [vmem:[#allocation24_spill] sm:$0xff] %v8873_v48  ;;  %v7542_v49 = vld [vmem:[#allocation8 + $0xec] ss:$16 sps:$4 sm:$0xff]  }
 0x630   :  { %v3816_v59 = vrot.slane %v3788_v5, %v7927_v6  ;;  %v3817_v57 = vcombine.low %v3795_v19, %v3802_v41 }
 0x632   :  { %v3818_v18 = vcombine.low %v3809_v43, %v3816_v59  ;;  %v3825_v45 = vrot.slane %v3817_v57, %v7927_v6 }
 0x634   :  { %v3832_v29 = vrot.slane %v3818_v18, %v7927_v6 }
 0x636   :  { %v3833_v16 = vcombine.low %v3825_v45, %v3832_v29 }
 0x638   :  { %v3835_v38 = vsel %vm3776_vm14, %v3833_v16, 0.0  ;;  %v8777_v54 = vsel %vm3776_vm14, %v3833_v16, %v8625_v3  ;;  %v8787_v3 = vld [vmem:[#allocation8 + $0xe8] ss:$16 sps:$4 sm:$0xff]  }
 0x639   :  { %v3837_v36 = vcombine.high %v3835_v38, %v3835_v38  ;;  %v3844_v31 = vrot.slane %v3835_v38, %v7927_v6  ;;  %v3978_v60 = vpack.c.bf16 %v8777_v54, %v8777_v54 }
 0x63b   :  { %v3851_v26 = vrot.slane %v3837_v36, %v7927_v6  ;;  %v3852_v52 = vcombine.high %v3844_v31, %v3844_v31  ;;  %v3860_v23 = vrot.slane %v3844_v31, %v7927_v6  ;;  %6256 = vst.sshfl [vmem:[#allocation9 + $0x4] sm:$0x1 pattern:$0x73625140] %v3844_v31  ;;  %4012 = vmatmul.mubr.bf16.vlgmr.msra.gmra.mxu0 %v3978_v60 }
 0x63c   :  { %4053 = vmatmul.mubr.bf16.vlgmr.msra.gmra.mxu1 %v3978_v60  ;;  %4666 = vmatpush1.bf16.msra.mxu0 %v8784_v40 }
 0x63d   :  { %4707 = vmatpush1.bf16.msra.mxu1 %v8787_v3  ;;  %v3853_v51 = vcombine.high %v3851_v26, %v3851_v26  ;;  %v3867_v35 = vrot.slane %v3851_v26, %v7927_v6  ;;  %v3874_v62 = vrot.slane %v3852_v52, %v7927_v6  ;;  %v3882_v46 = vcombine.high %v3860_v23, %v3860_v23 }
 0x63e   :  { %6257 = vst.sshfl [vmem:[#allocation9 + $0xc] sm:$0x1 pattern:$0x73625140] %v3852_v52  ;;  %4667 = vmatprep.subr.bf16.mxu0 %v8792_v14  ;;  %4708 = vmatprep.subr.bf16.mxu1 %v8795_v50 }
 0x63f   :  { %6258 = vst.sshfl [vmem:[#allocation9 + $0x24] sm:$0x1 pattern:$0x73625140] %v3851_v26  ;;  %4697 = vmatprep.mubr.bf16.mxu0 %v9318_v34  ;;  %v3881_v7 = vrot.slane %v3853_v51, %v7927_v6  ;;  %v3883_v22 = vcombine.high %v3867_v35, %v3867_v35  ;;  %v3884_v56 = vcombine.high %v3874_v62, %v3874_v62  ;;  %3896 = vst [vmem:[#allocation9 + $0x14] sm:$0x1] %v3882_v46 }
 0x640   :  { %6259 = vst.sshfl [vmem:[#allocation9 + $0x2c] sm:$0x1 pattern:$0x73625140] %v3853_v51  ;;  %4738 = vmatprep.mubr.bf16.mxu1 %v9318_v34  ;;  %4668 = vmatpush1.bf16.msra.mxu0 %v8801_v10 }
 0x641   :  { %4709 = vmatpush1.bf16.msra.mxu1 %v8804_v12  ;;  %v3885_v28 = vcombine.high %v3881_v7, %v3881_v7  ;;  %3897 = vst [vmem:[#allocation9 + $0x1c] sm:$0x1] %v3884_v56  ;;  %3900 = vst [vmem:[#allocation9 + $0x34] sm:$0x1] %v3883_v22  ;;  %4669 = vmatprep.subr.bf16.mxu0 %v8807_v20 }
 0x642   :  { %4710 = vmatprep.subr.bf16.mxu1 %v8810_v15  ;;  %v3963_v7 = vld [vmem:[#allocation2 + $0x5] ss:$8 sm:$0xf] }
 0x643   :  { %3901 = vst [vmem:[#allocation9 + $0x3c] sm:$0x1] %v3885_v28  ;;  %v3965_v22 = vld [vmem:[#allocation2 + $0x25] ss:$8 sm:$0xf] }
 0x644   :  { %4670 = vmatpush1.bf16.msra.mxu0 %v8813_v17  ;;  %v3967_v56 = vld [vmem:[#allocation2 + $0x45] ss:$8 sm:$0xf] }
 0x645   :  { %4711 = vmatpush1.bf16.msra.mxu1 %v8816_v47  ;;  %4671 = vmatprep.subr.bf16.mxu0 %v8819_v0  ;;  %v3971_v28 = vld [vmem:[#allocation2 + $0x85] ss:$8 sm:$0xf] }
 0x646   :  { %4712 = vmatprep.subr.bf16.mxu1 %v8822_v32 }
 0x648   :  { %4672 = vmatpush1.bf16.msra.mxu0 %v8825_v4 }
 0x649   :  { %4713 = vmatpush1.bf16.msra.mxu1 %v8828_v61  ;;  %4673 = vmatprep.subr.bf16.mxu0 %v8831_v63 }
 0x64a   :  { %4714 = vmatprep.subr.bf16.mxu1 %v8834_v58 }
 0x64c   :  { %4674 = vmatpush1.bf16.msra.mxu0 %v8837_v55 }
 0x64d   :  { %4715 = vmatpush1.bf16.msra.mxu1 %v8840_v11  ;;  %4675 = vmatprep.subr.bf16.mxu0 %v8843_v39 }
 0x64e   :  { %4716 = vmatprep.subr.bf16.mxu1 %v8846_v21 }
 0x650   :  { %4676 = vmatpush1.bf16.msra.mxu0 %v8849_v25 }
 0x651   :  { %4717 = vmatpush1.bf16.msra.mxu1 %v8852_v27  ;;  %4677 = vmatprep.subr.bf16.mxu0 %v8855_v30 }
 0x652   :  { %4718 = vmatprep.subr.bf16.mxu1 %v8858_v53 }
 0x654   :  { %4678 = vmatpush1.bf16.msra.mxu0 %v8861_v24 }
 0x655   :  { %4719 = vmatpush1.bf16.msra.mxu1 %v8864_v33  ;;  %4679 = vmatprep.subr.bf16.mxu0 %v8867_v37 }
 0x656   :  { %4720 = vmatprep.subr.bf16.mxu1 %v8870_v9 }
 0x658   :  { %4680 = vmatpush1.bf16.msra.mxu0 %v8873_v48 }
 0x659   :  { %4721 = vmatpush1.bf16.msra.mxu1 %v8876_v8  ;;  %5351 = vmatprep.subr.bf16.mxu0 %v7541_v2 }
 0x65a   :  { %5392 = vmatprep.subr.bf16.mxu1 %v7542_v49 }
 0x6fb   :  { %v4013_v44 = vpop.f32.mrf.mxu0 }
 0x6fc   :  { %v4054_v1 = vpop.f32.mrf.mxu1 }
 0x6fd   :  { %v4015_v13 = vpop.f32.mrf.mxu0 }
 0x6fe   :  { %v4056_v5 = vpop.f32.mrf.mxu1  ;;  %v4065_v19 = vcombine.low %v4013_v44, %v4015_v13  ;;  %v4066_v41 = vcombine.high %v4013_v44, %v4015_v13  ;;  %v3969_v13 = vld [vmem:[#allocation2 + $0x65] ss:$8 sm:$0xf] }
 0x6ff   :  { %v4067_v43 = vcombine.low %v4054_v1, %v4056_v5  ;;  %v4068_v59 = vcombine.high %v4054_v1, %v4056_v5  ;;  %v4017_v57 = vpop.f32.mrf.mxu0  ;;  %v3973_v5 = vld [vmem:[#allocation2 + $0xa5] ss:$8 sm:$0xf] }
 0x700   :  { %v4058_v18 = vpop.f32.mrf.mxu1  ;;  %v4075_v45 = vrot.slane %v4065_v19, %v7927_v6  ;;  %v4082_v29 = vrot.slane %v4066_v41, %v7927_v6  ;;  %v3977_v57 = vld [vmem:[#allocation2 + $0xe5] ss:$8 sm:$0xf] }
 0x701   :  { %v4089_v16 = vrot.slane %v4067_v43, %v7927_v6  ;;  %v4096_v38 = vrot.slane %v4068_v59, %v7927_v6  ;;  %v4018_v36 = vpop.f32.mrf.mxu0  ;;  %v3975_v59 = vld [vmem:[#allocation2 + $0xc5] ss:$8 sm:$0xf] }
 0x702   :  { %v4059_v31 = vpop.f32.mrf.mxu1 }
 0x703   :  { %v4097_v60 = vcombine.low %v4075_v45, %v4089_v16  ;;  %v4098_v26 = vcombine.high %v4075_v45, %v4089_v16  ;;  %v4099_v52 = vcombine.low %v4082_v29, %v4096_v38  ;;  %v4100_v23 = vcombine.high %v4082_v29, %v4096_v38 }
 0x705   :  { %v4107_v51 = vrot.slane %v4097_v60, %v7927_v6  ;;  %v4114_v35 = vrot.slane %v4099_v52, %v7927_v6  ;;  %v4121_v62 = vrot.slane %v4098_v26, %v7927_v6  ;;  %v4128_v46 = vrot.slane %v4100_v23, %v7927_v6 }
 0x707   :  { %v4129_v2 = vcombine.high %v4107_v51, %v4107_v51  ;;  %v4130_v49 = vcombine.high %v4114_v35, %v4114_v35  ;;  %v4131_v44 = vcombine.high %v4121_v62, %v4121_v62  ;;  %v4132_v1 = vcombine.high %v4128_v46, %v4128_v46 }
 0x708   :  { %v8887_v19 = vadd.f32 %v4107_v51, %v3963_v7  ;;  %v8889_v41 = vadd.f32 %v4121_v62, %v3965_v22  ;;  %v8891_v43 = vadd.f32 %v4114_v35, %v3971_v28  ;;  %v8897_v29 = vadd.f32 %v4128_v46, %v3973_v5 }
 0x709   :  { %v8893_v18 = vadd.f32 %v4129_v2, %v3967_v56  ;;  %v8895_v45 = vadd.f32 %v4131_v44, %v3969_v13  ;;  %v8899_v16 = vadd.f32 %v4130_v49, %v3975_v59  ;;  %v8903_v31 = vadd.f32 %v4132_v1, %v3977_v57 }
 0x70a   :  { %v6260_v38 = vmul.f32 -1.442695, %v8887_v19  ;;  %v6261_v36 = vmul.f32 -1.442695, %v8889_v41  ;;  %v6264_v52 = vmul.f32 -1.442695, %v8891_v43 }
 0x70b   :  { %v6262_v60 = vmul.f32 -1.442695, %v8893_v18  ;;  %v6263_v26 = vmul.f32 -1.442695, %v8895_v45  ;;  %v4205_v23 = vrot.slane %v8887_v19, 1  ;;  %v4206_v35 = vrot.slane %v8889_v41, 1 }
 0x70c   :  { %7062 = vpow2.f32 %v6260_v38  ;;  %v6265_v51 = vmul.f32 -1.442695, %v8897_v29  ;;  %v6266_v62 = vmul.f32 -1.442695, %v8899_v16  ;;  %v4207_v46 = vrot.slane %v8893_v18, 1 }
 0x70d   :  { %7064 = vpow2.f32 %v6261_v36  ;;  %v6267_v7 = vmul.f32 -1.442695, %v8903_v31  ;;  %v4208_v22 = vrot.slane %v8895_v45, 1  ;;  %v4209_v56 = vrot.slane %v8891_v43, 1 }
 0x70e   :  { %7066 = vpow2.f32 %v6262_v60  ;;  %v6268_v28 = vmul.f32 -1.442695, %v4205_v23  ;;  %v4210_v2 = vrot.slane %v8897_v29, 1  ;;  %v6269_v49 = vmul.f32 -1.442695, %v4206_v35 }
 0x70f   :  { %7068 = vpow2.f32 %v6263_v26  ;;  %v4211_v44 = vrot.slane %v8899_v16, 1  ;;  %v6270_v1 = vmul.f32 -1.442695, %v4207_v46  ;;  %v4212_v13 = vrot.slane %v8903_v31, 1 }
 0x710   :  { %7070 = vpow2.f32 %v6264_v52  ;;  %v6271_v5 = vmul.f32 -1.442695, %v4208_v22  ;;  %v6272_v59 = vmul.f32 -1.442695, %v4209_v56  ;;  %v6273_v57 = vmul.f32 -1.442695, %v4210_v2 }
 0x711   :  { %7072 = vpow2.f32 %v6265_v51  ;;  %v6274_v38 = vmul.f32 -1.442695, %v4211_v44  ;;  %v6275_v36 = vmul.f32 -1.442695, %v4212_v13 }
 0x712   :  { %7074 = vpow2.f32 %v6266_v62 }
 0x713   :  { %7076 = vpow2.f32 %v6267_v7 }
 0x714   :  { %7078 = vpow2.f32 %v6268_v28 }
 0x715   :  { %7080 = vpow2.f32 %v6269_v49 }
 0x716   :  { %7082 = vpow2.f32 %v6270_v1 }
 0x717   :  { %7084 = vpow2.f32 %v6271_v5 }
 0x718   :  { %7086 = vpow2.f32 %v6272_v59 }
 0x719   :  { %v7063_v60 = vpop.eup %7062  ;;  %7088 = vpow2.f32 %v6273_v57 }
 0x71a   :  { %v7065_v26 = vpop.eup %7064  ;;  %v4173_v52 = vadd.f32 1.0, %v7063_v60  ;;  %7090 = vpow2.f32 %v6274_v38 }
 0x71b   :  { %v7067_v23 = vpop.eup %7066  ;;  %v4174_v51 = vadd.f32 1.0, %v7065_v26  ;;  %7092 = vpow2.f32 %v6275_v36 }
 0x71c   :  { %v7069_v35 = vpop.eup %7068  ;;  %v4175_v62 = vadd.f32 1.0, %v7067_v23  ;;  %7094 = vrcp.f32 %v4173_v52 }
 0x71d   :  { %v7071_v46 = vpop.eup %7070  ;;  %v4176_v7 = vadd.f32 1.0, %v7069_v35  ;;  %7096 = vrcp.f32 %v4174_v51 }
 0x71e   :  { %v7073_v22 = vpop.eup %7072  ;;  %v4177_v56 = vadd.f32 1.0, %v7071_v46  ;;  %7098 = vrcp.f32 %v4175_v62 }
 0x71f   :  { %v7075_v28 = vpop.eup %7074  ;;  %v4178_v2 = vadd.f32 1.0, %v7073_v22  ;;  %7100 = vrcp.f32 %v4176_v7  ;;  %v4269_v22 = vrot.slane %v8887_v19, 2 }
 0x720   :  { %v7077_v49 = vpop.eup %7076  ;;  %v4179_v44 = vadd.f32 1.0, %v7075_v28  ;;  %7102 = vrcp.f32 %v4177_v56 }
 0x721   :  { %v7079_v1 = vpop.eup %7078  ;;  %v4180_v13 = vadd.f32 1.0, %v7077_v49  ;;  %7104 = vrcp.f32 %v4178_v2  ;;  %v4270_v2 = vrot.slane %v8889_v41, 2 }
 0x722   :  { %v7081_v5 = vpop.eup %7080  ;;  %7106 = vrcp.f32 %v4179_v44  ;;  %v4245_v59 = vadd.f32 1.0, %v7079_v1  ;;  %v4271_v44 = vrot.slane %v8893_v18, 2 }
 0x723   :  { %v7083_v57 = vpop.eup %7082  ;;  %7108 = vrcp.f32 %v4180_v13  ;;  %v4246_v38 = vadd.f32 1.0, %v7081_v5  ;;  %v4272_v13 = vrot.slane %v8895_v45, 2 }
 0x724   :  { %v7085_v36 = vpop.eup %7084  ;;  %v4247_v60 = vadd.f32 1.0, %v7083_v57  ;;  %7110 = vrcp.f32 %v4245_v59  ;;  %v4273_v59 = vrot.slane %v8891_v43, 2  ;;  %v4293_v57 = vrot.slane %v8887_v19, 3 }
 0x725   :  { %v7087_v26 = vpop.eup %7086  ;;  %v4248_v52 = vadd.f32 1.0, %v7085_v36  ;;  %7112 = vrcp.f32 %v4246_v38  ;;  %v4358_v38 = vcombine.high %v8766_v42, %v8766_v42  ;;  %v4295_v19 = vrot.slane %v8893_v18, 3 }
 0x726   :  { %v7089_v23 = vpop.eup %7088  ;;  %v4249_v51 = vadd.f32 1.0, %v7087_v26  ;;  %7114 = vrcp.f32 %v4247_v60  ;;  %v4274_v60 = vrot.slane %v8897_v29, 2  ;;  %v4294_v26 = vrot.slane %v8889_v41, 3 }
 0x727   :  { %v7091_v35 = vpop.eup %7090  ;;  %v4250_v62 = vadd.f32 1.0, %v7089_v23  ;;  %7116 = vrcp.f32 %v4248_v52  ;;  %v4365_v52 = vrot.slane %v8766_v42, %v7927_v6  ;;  %v4297_v41 = vrot.slane %v8891_v43, 3 }
 0x728   :  { %v7093_v46 = vpop.eup %7092  ;;  %v4251_v7 = vadd.f32 1.0, %v7091_v35  ;;  %7118 = vrcp.f32 %v4249_v51  ;;  %v4275_v51 = vrot.slane %v8899_v16, 2  ;;  %v6277_v18 = vmul.f32 -1.442695, %v4294_v26 }
 0x729   :  { %v8920_v56 = vpop.eup %7094  ;;  %v4252_v28 = vadd.f32 1.0, %v7093_v46  ;;  %7120 = vrcp.f32 %v4250_v62  ;;  %v4276_v62 = vrot.slane %v8903_v31, 2  ;;  %v4296_v46 = vrot.slane %v8895_v45, 3 }
 0x72a   :  { %v8923_v49 = vpop.eup %7096  ;;  %7122 = vrcp.f32 %v4251_v7  ;;  %v4373_v8 = vcombine.high %v4365_v52, %v4365_v52  ;;  %v6278_v9 = vmul.f32 -1.442695, %v4295_v19 }
 0x72b   :  { %v8926_v1 = vpop.eup %7098  ;;  %7124 = vrcp.f32 %v4252_v28  ;;  %v4372_v28 = vrot.slane %v4358_v38, %v7927_v6  ;;  %v6279_v37 = vmul.f32 -1.442695, %v4296_v46 }
 0x72c   :  { %v8929_v5 = vpop.eup %7100  ;;  %7126 = vtanh.f32 %v4269_v22  ;;  %v6276_v22 = vmul.f32 -1.442695, %v4293_v57  ;;  %v6280_v57 = vmul.f32 -1.442695, %v4297_v41  ;;  %v4395_v26 = vrot.slane %v4373_v8, %v7927_v6 }
 0x72d   :  { %v8935_v36 = vpop.eup %7102  ;;  %7128 = vtanh.f32 %v4270_v2  ;;  %v4374_v38 = vcombine.high %v4372_v28, %v4372_v28 }
 0x72e   :  { %v8941_v23 = vpop.eup %7104  ;;  %7130 = vtanh.f32 %v4271_v44  ;;  %v4298_v44 = vrot.slane %v8897_v29, 3 }
 0x72f   :  { %v8945_v35 = vpop.eup %7106  ;;  %7132 = vtanh.f32 %v4272_v13  ;;  %v4299_v13 = vrot.slane %v8899_v16, 3  ;;  %v4402_v41 = vrot.slane %v4374_v38, %v7927_v6 }
 0x730   :  { %v8949_v7 = vpop.eup %7108  ;;  %7134 = vtanh.f32 %v4273_v59  ;;  %v4300_v59 = vrot.slane %v8903_v31, 3  ;;  %v6281_v29 = vmul.f32 -1.442695, %v4298_v44  ;;  %v4388_v31 = vrot.slane %v4372_v28, %v7927_v6 }
 0x731   :  { %v7111_v2 = vpop.eup %7110  ;;  %7136 = vtanh.f32 %v4274_v60  ;;  %v4381_v60 = vrot.slane %v4365_v52, %v7927_v6  ;;  %v6282_v16 = vmul.f32 -1.442695, %v4299_v13  ;;  %v4406_v30 = vcombine.high %v4402_v41, %v4402_v41 }
 0x732   :  { %v7113_v48 = vpop.eup %7112  ;;  %7138 = vtanh.f32 %v4275_v51 }
 0x733   :  { %v7115_v45 = vpop.eup %7114  ;;  %7140 = vtanh.f32 %v4276_v62  ;;  %v6283_v62 = vmul.f32 -1.442695, %v4300_v59  ;;  %v4415_v24 = vmul.f32 %v7111_v2, %v4381_v60  ;;  %v4416_v44 = vmul.f32 %v7113_v48, %v4395_v26 }
 0x734   :  { %v7117_v43 = vpop.eup %7116  ;;  %7142 = vpow2.f32 %v6276_v22  ;;  %v4403_v22 = vcombine.high %v4381_v60, %v4381_v60 }
 0x735   :  { %v7119_v33 = vpop.eup %7118  ;;  %7144 = vpow2.f32 %v6277_v18  ;;  %v4405_v18 = vcombine.high %v4395_v26, %v4395_v26 }
 0x736   :  { %v7121_v51 = vpop.eup %7120  ;;  %7146 = vpow2.f32 %v6278_v9  ;;  %v4417_v8 = vmul.f32 %v7115_v45, %v4403_v22  ;;  %v4419_v38 = vmul.f32 %v7119_v33, %v4388_v31 }
 0x737   :  { %v7123_v19 = vpop.eup %7122  ;;  %7148 = vpow2.f32 %v6279_v37  ;;  %v4404_v37 = vcombine.high %v4388_v31, %v4388_v31  ;;  %v4418_v59 = vmul.f32 %v7117_v43, %v4405_v18  ;;  %v4420_v27 = vmul.f32 %v7121_v51, %v4402_v41 }
 0x738   :  { %v7125_v46 = vpop.eup %7124  ;;  %7150 = vpow2.f32 %v6280_v57 }
 0x739   :  { %v7127_v52 = vpop.eup %7126  ;;  %7152 = vpow2.f32 %v6281_v29 }
 0x73a   :  { %v7129_v53 = vpop.eup %7128  ;;  %7154 = vpow2.f32 %v6282_v16  ;;  %v4423_v9 = vmul.f32 %v7127_v52, %v8920_v56  ;;  %v4421_v16 = vmul.f32 %v7123_v19, %v4404_v37  ;;  %v4422_v56 = vmul.f32 %v7125_v46, %v4406_v30 }
 0x73b   :  { %v7131_v13 = vpop.eup %7130  ;;  %7156 = vpow2.f32 %v6283_v62  ;;  %v4424_v28 = vmul.f32 %v7129_v53, %v8923_v49 }
 0x73c   :  { %v7133_v57 = vpop.eup %7132  ;;  %v4425_v2 = vmul.f32 %v7131_v13, %v8926_v1  ;;  %v4431_v60 = vadd.f32 %v4423_v9, %v4415_v24 }
 0x73d   :  { %v7135_v29 = vpop.eup %7134  ;;  %v4426_v48 = vmul.f32 %v7133_v57, %v8929_v5  ;;  %v4432_v26 = vadd.f32 %v4424_v28, %v4416_v44 }
 0x73e   :  { %v7137_v45 = vpop.eup %7136  ;;  %v4427_v62 = vmul.f32 %v7135_v29, %v8935_v36  ;;  %v4433_v22 = vadd.f32 %v4425_v2, %v4417_v8  ;;  %7158 = vtanh.f32 %v4431_v60 }
 0x73f   :  { %v7139_v43 = vpop.eup %7138  ;;  %v4428_v53 = vmul.f32 %v7137_v45, %v8941_v23  ;;  %v4434_v49 = vadd.f32 %v4426_v48, %v4418_v59  ;;  %v4597_v33 = vcombine.low %v4431_v60, %v4432_v26  ;;  %7160 = vtanh.f32 %v4432_v26 }
 0x740   :  { %v7141_v31 = vpop.eup %7140  ;;  %v4429_v24 = vmul.f32 %v7139_v43, %v8945_v35  ;;  %v4435_v1 = vadd.f32 %v4427_v62, %v4419_v38  ;;  %7162 = vtanh.f32 %v4433_v22 }
 0x741   :  { %v7143_v51 = vpop.eup %7142  ;;  %v4430_v5 = vmul.f32 %v7141_v31, %v8949_v7  ;;  %v4436_v41 = vadd.f32 %v4428_v53, %v4420_v27  ;;  %v4598_v19 = vcombine.low %v4433_v22, %v4434_v49  ;;  %v4607_v35 = vrot.slane %v4597_v33, %v7927_v6  ;;  %v4461_v53 = vpop.permute.xlu1 %4460 }
 0x742   :  { %v7145_v30 = vpop.eup %7144  ;;  %v4333_v36 = vadd.f32 1.0, %v7143_v51  ;;  %v4437_v46 = vadd.f32 %v4429_v24, %v4421_v16  ;;  %7164 = vtanh.f32 %v4435_v1  ;;  %vm4462_vm15 = vcmp.eq.s32.totalorder %v4461_v53, 1 }
 0x743   :  { %v7147_v52 = vpop.eup %7146  ;;  %v4334_v23 = vadd.f32 1.0, %v7145_v30  ;;  %v4438_v18 = vadd.f32 %v4430_v5, %v4422_v56  ;;  %7166 = vtanh.f32 %v4436_v41  ;;  %v4599_v44 = vcombine.low %v4435_v1, %v4436_v41 }
 0x744   :  { %v7149_v8 = vpop.eup %7148  ;;  %v4335_v9 = vadd.f32 1.0, %v7147_v52  ;;  %7168 = vrcp.f32 %v4333_v36  ;;  %v4614_v13 = vrot.slane %v4598_v19, %v7927_v6 }
 0x745   :  { %v7151_v7 = vpop.eup %7150  ;;  %v4336_v27 = vadd.f32 1.0, %v7149_v8  ;;  %7170 = vrcp.f32 %v4334_v23  ;;  %v4600_v37 = vcombine.low %v4437_v46, %v4438_v18  ;;  %v4621_v60 = vrot.slane %v4599_v44, %v7927_v6 }
 0x746   :  { %v7153_v59 = vpop.eup %7152  ;;  %v4337_v28 = vadd.f32 1.0, %v7151_v7  ;;  %7172 = vrcp.f32 %v4335_v9  ;;  %v4629_v57 = vcombine.low %v4607_v35, %v4614_v13 }
 0x747   :  { %v7155_v38 = vpop.eup %7154  ;;  %v4338_v2 = vadd.f32 1.0, %v7153_v59  ;;  %7174 = vrcp.f32 %v4336_v27  ;;  %v4628_v29 = vrot.slane %v4600_v37, %v7927_v6 }
 0x748   :  { %v7157_v48 = vpop.eup %7156  ;;  %v4339_v26 = vadd.f32 1.0, %v7155_v38  ;;  %7176 = vrcp.f32 %v4337_v28  ;;  %v4637_v56 = vrot.slane %v4629_v57, %v7927_v6 }
 0x749   :  { %v4340_v45 = vadd.f32 1.0, %v7157_v48  ;;  %7178 = vrcp.f32 %v4338_v2  ;;  %v4630_v16 = vcombine.low %v4621_v60, %v4628_v29 }
 0x74a   :  { %7180 = vrcp.f32 %v4339_v26 }
 0x74b   :  { %7182 = vrcp.f32 %v4340_v45  ;;  %v4644_v62 = vrot.slane %v4630_v16, %v7927_v6  ;;  %v7159_v22 = vpop.eup %7158 }
 0x74c   :  { %7184 = vtanh.f32 %v4434_v49  ;;  %v7161_v43 = vpop.eup %7160 }
 0x74d   :  { %v4645_v33 = vcombine.low %v4637_v56, %v4644_v62  ;;  %7186 = vtanh.f32 %v4437_v46  ;;  %v7163_v31 = vpop.eup %7162 }
 0x74e   :  { %7188 = vtanh.f32 %v4438_v18 }
 0x74f   :  { %v7165_v24 = vpop.eup %7164  ;;  %v8976_v1 = vsel %vm4462_vm15, %v4645_v33, %v8766_v42 }
 0x750   :  { %v7167_v51 = vpop.eup %7166 }
 0x751   :  { %v7169_v5 = vpop.eup %7168 }
 0x752   :  { %v7171_v41 = vpop.eup %7170  ;;  %v4447_v49 = vmul.f32 %v7169_v5, %v7159_v22 }
 0x753   :  { %v7173_v19 = vpop.eup %7172  ;;  %v4448_v23 = vmul.f32 %v7171_v41, %v7161_v43 }
 0x754   :  { %v7175_v30 = vpop.eup %7174  ;;  %v4449_v46 = vmul.f32 %v7173_v19, %v7163_v31 }
 0x755   :  { %v7177_v36 = vpop.eup %7176  ;;  %v4471_v27 = vcombine.low %v4447_v49, %v4448_v23 }
 0x756   :  { %v7179_v52 = vpop.eup %7178  ;;  %v4451_v9 = vmul.f32 %v7177_v36, %v7165_v24 }
 0x757   :  { %v7181_v44 = vpop.eup %7180  ;;  %v4452_v35 = vmul.f32 %v7179_v52, %v7167_v51  ;;  %v4481_v2 = vrot.slane %v4471_v27, %v7927_v6 }
 0x758   :  { %v7183_v8 = vpop.eup %7182 }
 0x759   :  { %v7185_v18 = vpop.eup %7184  ;;  %v4473_v57 = vcombine.low %v4451_v9, %v4452_v35 }
 0x75a   :  { %v7187_v13 = vpop.eup %7186  ;;  %v4450_v7 = vmul.f32 %v7185_v18, %v7175_v30 }
 0x75b   :  { %v7189_v42 = vpop.eup %7188  ;;  %v4453_v37 = vmul.f32 %v7187_v13, %v7181_v44  ;;  %v4495_v29 = vrot.slane %v4473_v57, %v7927_v6  ;;  %v4653_v57 = vld [vmem:[#allocation2 + $0x46] ss:$8 sm:$0xf] }
 0x75c   :  { %v4454_v59 = vmul.f32 %v7189_v42, %v7183_v8  ;;  %v4472_v28 = vcombine.low %v4449_v46, %v4450_v7 }
 0x75e   :  { %v4474_v38 = vcombine.low %v4453_v37, %v4454_v59  ;;  %v4488_v60 = vrot.slane %v4472_v28, %v7927_v6  ;;  %v4649_v59 = vld [vmem:[#allocation2 + $0x6] ss:$8 sm:$0xf] }
 0x75f   :  { %v4651_v28 = vld [vmem:[#allocation2 + $0x26] ss:$8 sm:$0xf] }
 0x760   :  { %v4502_v48 = vrot.slane %v4474_v38, %v7927_v6  ;;  %v4503_v26 = vcombine.low %v4481_v2, %v4488_v60  ;;  %v4657_v38 = vld [vmem:[#allocation2 + $0x86] ss:$8 sm:$0xf] }
 0x762   :  { %v4504_v45 = vcombine.low %v4495_v29, %v4502_v48  ;;  %v4511_v16 = vrot.slane %v4503_v26, %v7927_v6  ;;  %v4655_v26 = vld [vmem:[#allocation2 + $0x66] ss:$8 sm:$0xf] }
 0x764   :  { %v4518_v56 = vrot.slane %v4504_v45, %v7927_v6  ;;  %v4659_v45 = vld [vmem:[#allocation2 + $0xa6] ss:$8 sm:$0xf] }
 0x766   :  { %v4519_v62 = vcombine.low %v4511_v16, %v4518_v56 }
 0x768   :  { %v4521_v22 = vsel %vm4462_vm15, %v4519_v62, 0.0  ;;  %v8987_v43 = vsel %vm4462_vm15, %v4519_v62, %v8777_v54 }
 0x769   :  { %v4523_v33 = vcombine.high %v4521_v22, %v4521_v22  ;;  %v4530_v31 = vrot.slane %v4521_v22, %v7927_v6  ;;  %v4664_v24 = vpack.c.bf16 %v8987_v43, %v8987_v43  ;;  %v4661_v22 = vld [vmem:[#allocation2 + $0xc6] ss:$8 sm:$0xf] }
 0x76b   :  { %v4537_v51 = vrot.slane %v4523_v33, %v7927_v6  ;;  %v4538_v5 = vcombine.high %v4530_v31, %v4530_v31  ;;  %v4546_v41 = vrot.slane %v4530_v31, %v7927_v6  ;;  %6285 = vst.sshfl [vmem:[#allocation9 + $0x5] sm:$0x1 pattern:$0x73625140] %v4530_v31  ;;  %4698 = vmatmul.mubr.bf16.vlgmr.msra.gmra.mxu0 %v4664_v24 }
 0x76c   :  { %4739 = vmatmul.mubr.bf16.vlgmr.msra.gmra.mxu1 %v4664_v24  ;;  %5352 = vmatpush1.bf16.msra.mxu0 %v8784_v40  ;;  %v4663_v33 = vld [vmem:[#allocation2 + $0xe6] ss:$8 sm:$0xf] }
 0x76d   :  { %5393 = vmatpush1.bf16.msra.mxu1 %v8787_v3  ;;  %v4539_v54 = vcombine.high %v4537_v51, %v4537_v51  ;;  %v4553_v53 = vrot.slane %v4537_v51, %v7927_v6  ;;  %v4560_v19 = vrot.slane %v4538_v5, %v7927_v6  ;;  %v4568_v30 = vcombine.high %v4546_v41, %v4546_v41 }
 0x76e   :  { %6286 = vst.sshfl [vmem:[#allocation9 + $0xd] sm:$0x1 pattern:$0x73625140] %v4538_v5  ;;  %5353 = vmatprep.subr.bf16.mxu0 %v8792_v14  ;;  %5394 = vmatprep.subr.bf16.mxu1 %v8795_v50  ;;  %v9361_v14 = vld [vmem:[#allocation18_spill] sm:$0xff]  ;;  %v9362_v50 = vld [vmem:[#allocation19_spill] sm:$0xff] }
 0x76f   :  { %6287 = vst.sshfl [vmem:[#allocation9 + $0x25] sm:$0x1 pattern:$0x73625140] %v4537_v51  ;;  %5383 = vmatprep.mubr.bf16.mxu0 %v9318_v34  ;;  %v4567_v36 = vrot.slane %v4539_v54, %v7927_v6  ;;  %v4569_v52 = vcombine.high %v4553_v53, %v4553_v53  ;;  %v4570_v40 = vcombine.high %v4560_v19, %v4560_v19  ;;  %4582 = vst [vmem:[#allocation9 + $0x15] sm:$0x1] %v4568_v30 }
 0x770   :  { %6288 = vst.sshfl [vmem:[#allocation9 + $0x2d] sm:$0x1 pattern:$0x73625140] %v4539_v54  ;;  %5424 = vmatprep.mubr.bf16.mxu1 %v9318_v34  ;;  %5354 = vmatpush1.bf16.msra.mxu0 %v8801_v10  ;;  %v9360_v34 = vld [vmem:[#allocation17_spill] sm:$0xff]  ;;  %v9363_v10 = vld [vmem:[#allocation20_spill] sm:$0xff] }
 0x771   :  { %5395 = vmatpush1.bf16.msra.mxu1 %v8804_v12  ;;  %v4571_v3 = vcombine.high %v4567_v36, %v4567_v36  ;;  %4583 = vst [vmem:[#allocation9 + $0x1d] sm:$0x1] %v4570_v40  ;;  %4586 = vst [vmem:[#allocation9 + $0x35] sm:$0x1] %v4569_v52  ;;  %5355 = vmatprep.subr.bf16.mxu0 %v8807_v20  ;;  %v9364_v12 = vld [vmem:[#allocation21_spill] sm:$0xff]  ;;  %v9365_v20 = vld [vmem:[#allocation22_spill] sm:$0xff] }
 0x772   :  { %5396 = vmatprep.subr.bf16.mxu1 %v8810_v15  ;;  %v9366_v15 = vld [vmem:[#allocation23_spill] sm:$0xff] }
 0x773   :  { %4587 = vst [vmem:[#allocation9 + $0x3d] sm:$0x1] %v4571_v3 }
 0x774   :  { %5356 = vmatpush1.bf16.msra.mxu0 %v8813_v17  ;;  %v9367_v17 = vld [vmem:[#allocation24_spill] sm:$0xff] }
 0x775   :  { %5397 = vmatpush1.bf16.msra.mxu1 %v8816_v47  ;;  %5357 = vmatprep.subr.bf16.mxu0 %v8819_v0  ;;  %v9368_v47 = vld [vmem:[#allocation25_spill] sm:$0xff] }
 0x776   :  { %5398 = vmatprep.subr.bf16.mxu1 %v8822_v32 }
 0x778   :  { %5358 = vmatpush1.bf16.msra.mxu0 %v8825_v4 }
 0x779   :  { %5399 = vmatpush1.bf16.msra.mxu1 %v8828_v61  ;;  %5359 = vmatprep.subr.bf16.mxu0 %v8831_v63 }
 0x77a   :  { %5400 = vmatprep.subr.bf16.mxu1 %v8834_v58 }
 0x77c   :  { %5360 = vmatpush1.bf16.msra.mxu0 %v8837_v55 }
 0x77d   :  { %5401 = vmatpush1.bf16.msra.mxu1 %v8840_v11  ;;  %5361 = vmatprep.subr.bf16.mxu0 %v8843_v39 }
 0x77e   :  { %5402 = vmatprep.subr.bf16.mxu1 %v8846_v21 }
 0x780   :  { %5362 = vmatpush1.bf16.msra.mxu0 %v8849_v25 }
 0x781   :  { %5403 = vmatpush1.bf16.msra.mxu1 %v9360_v34  ;;  %5363 = vmatprep.subr.bf16.mxu0 %v9361_v14 }
 0x782   :  { %5404 = vmatprep.subr.bf16.mxu1 %v9362_v50 }
 0x784   :  { %5364 = vmatpush1.bf16.msra.mxu0 %v9363_v10 }
 0x785   :  { %5405 = vmatpush1.bf16.msra.mxu1 %v9364_v12  ;;  %5365 = vmatprep.subr.bf16.mxu0 %v9365_v20 }
 0x786   :  { %5406 = vmatprep.subr.bf16.mxu1 %v9366_v15 }
 0x788   :  { %5366 = vmatpush1.bf16.msra.mxu0 %v9367_v17 }
 0x789   :  { %5407 = vmatpush1.bf16.msra.mxu1 %v9368_v47 }
 0x82b   :  { %v4699_v0 = vpop.f32.mrf.mxu0 }
 0x82c   :  { %v4740_v32 = vpop.f32.mrf.mxu1 }
 0x82d   :  { %v4701_v4 = vpop.f32.mrf.mxu0 }
 0x82e   :  { %v4742_v61 = vpop.f32.mrf.mxu1  ;;  %v4751_v63 = vcombine.low %v4699_v0, %v4701_v4  ;;  %v4752_v58 = vcombine.high %v4699_v0, %v4701_v4 }
 0x82f   :  { %v4753_v55 = vcombine.low %v4740_v32, %v4742_v61  ;;  %v4754_v11 = vcombine.high %v4740_v32, %v4742_v61  ;;  %v4703_v39 = vpop.f32.mrf.mxu0 }
 0x830   :  { %v4744_v21 = vpop.f32.mrf.mxu1  ;;  %v4761_v25 = vrot.slane %v4751_v63, %v7927_v6  ;;  %v4768_v49 = vrot.slane %v4752_v58, %v7927_v6 }
 0x831   :  { %v4775_v23 = vrot.slane %v4753_v55, %v7927_v6  ;;  %v4782_v44 = vrot.slane %v4754_v11, %v7927_v6  ;;  %v4704_v8 = vpop.f32.mrf.mxu0 }
 0x832   :  { %v4745_v46 = vpop.f32.mrf.mxu1 }
 0x833   :  { %v4783_v9 = vcombine.low %v4761_v25, %v4775_v23  ;;  %v4784_v35 = vcombine.high %v4761_v25, %v4775_v23  ;;  %v4785_v18 = vcombine.low %v4768_v49, %v4782_v44  ;;  %v4786_v13 = vcombine.high %v4768_v49, %v4782_v44 }
 0x835   :  { %v4793_v7 = vrot.slane %v4783_v9, %v7927_v6  ;;  %v4800_v27 = vrot.slane %v4785_v18, %v7927_v6  ;;  %v4807_v42 = vrot.slane %v4784_v35, %v7927_v6  ;;  %v4814_v37 = vrot.slane %v4786_v13, %v7927_v6 }
 0x837   :  { %v4815_v2 = vcombine.high %v4793_v7, %v4793_v7  ;;  %v4816_v60 = vcombine.high %v4800_v27, %v4800_v27  ;;  %v4817_v29 = vcombine.high %v4807_v42, %v4807_v42  ;;  %v4818_v48 = vcombine.high %v4814_v37, %v4814_v37 }
 0x838   :  { %v9037_v16 = vadd.f32 %v4793_v7, %v4649_v59  ;;  %v9039_v56 = vadd.f32 %v4807_v42, %v4651_v28  ;;  %v9041_v62 = vadd.f32 %v4800_v27, %v4657_v38  ;;  %v9047_v51 = vadd.f32 %v4814_v37, %v4659_v45 }
 0x839   :  { %v9043_v31 = vadd.f32 %v4815_v2, %v4653_v57  ;;  %v9045_v24 = vadd.f32 %v4817_v29, %v4655_v26  ;;  %v9049_v5 = vadd.f32 %v4816_v60, %v4661_v22  ;;  %v9053_v53 = vadd.f32 %v4818_v48, %v4663_v33 }
 0x83a   :  { %v6289_v41 = vmul.f32 -1.442695, %v9037_v16  ;;  %v6290_v54 = vmul.f32 -1.442695, %v9039_v56  ;;  %v6293_v36 = vmul.f32 -1.442695, %v9041_v62 }
 0x83b   :  { %v6291_v19 = vmul.f32 -1.442695, %v9043_v31  ;;  %v6292_v30 = vmul.f32 -1.442695, %v9045_v24  ;;  %v4891_v52 = vrot.slane %v9037_v16, 1  ;;  %v4892_v3 = vrot.slane %v9039_v56, 1 }
 0x83c   :  { %7190 = vpow2.f32 %v6289_v41  ;;  %v6294_v40 = vmul.f32 -1.442695, %v9047_v51  ;;  %v6295_v34 = vmul.f32 -1.442695, %v9049_v5  ;;  %v4893_v14 = vrot.slane %v9043_v31, 1 }
 0x83d   :  { %7192 = vpow2.f32 %v6290_v54  ;;  %v6296_v50 = vmul.f32 -1.442695, %v9053_v53  ;;  %v4894_v10 = vrot.slane %v9045_v24, 1  ;;  %v4895_v12 = vrot.slane %v9041_v62, 1 }
 0x83e   :  { %7194 = vpow2.f32 %v6291_v19  ;;  %v6297_v20 = vmul.f32 -1.442695, %v4891_v52  ;;  %v4896_v15 = vrot.slane %v9047_v51, 1  ;;  %v6298_v17 = vmul.f32 -1.442695, %v4892_v3 }
 0x83f   :  { %7196 = vpow2.f32 %v6292_v30  ;;  %v4897_v47 = vrot.slane %v9049_v5, 1  ;;  %v6299_v0 = vmul.f32 -1.442695, %v4893_v14  ;;  %v4898_v32 = vrot.slane %v9053_v53, 1 }
 0x840   :  { %7198 = vpow2.f32 %v6293_v36  ;;  %v6300_v4 = vmul.f32 -1.442695, %v4894_v10  ;;  %v6301_v61 = vmul.f32 -1.442695, %v4895_v12  ;;  %v6302_v63 = vmul.f32 -1.442695, %v4896_v15 }
 0x841   :  { %7200 = vpow2.f32 %v6294_v40  ;;  %v6303_v58 = vmul.f32 -1.442695, %v4897_v47  ;;  %v6304_v55 = vmul.f32 -1.442695, %v4898_v32  ;;  %v4955_v19 = vrot.slane %v9037_v16, 2 }
 0x842   :  { %7202 = vpow2.f32 %v6295_v34  ;;  %v4956_v52 = vrot.slane %v9039_v56, 2  ;;  %v4957_v3 = vrot.slane %v9043_v31, 2  ;;  %v4958_v14 = vrot.slane %v9045_v24, 2 }
 0x843   :  { %7204 = vpow2.f32 %v6296_v50  ;;  %v4959_v10 = vrot.slane %v9041_v62, 2  ;;  %v4979_v12 = vrot.slane %v9037_v16, 3  ;;  %v4980_v47 = vrot.slane %v9039_v56, 3 }
 0x844   :  { %7206 = vpow2.f32 %v6297_v20  ;;  %v5044_v20 = vcombine.high %v8976_v1, %v8976_v1  ;;  %v4981_v16 = vrot.slane %v9043_v31, 3  ;;  %v4983_v56 = vrot.slane %v9041_v62, 3 }
 0x845   :  { %7208 = vpow2.f32 %v6298_v17  ;;  %v4960_v17 = vrot.slane %v9047_v51, 2  ;;  %v6306_v31 = vmul.f32 -1.442695, %v4980_v47 }
 0x846   :  { %7210 = vpow2.f32 %v6299_v0  ;;  %v5051_v0 = vrot.slane %v8976_v1, %v7927_v6 }
 0x847   :  { %7212 = vpow2.f32 %v6300_v4  ;;  %v4961_v4 = vrot.slane %v9049_v5, 2 }
 0x848   :  { %7214 = vpow2.f32 %v6301_v61 }
 0x849   :  { %v7191_v11 = vpop.eup %7190  ;;  %7216 = vpow2.f32 %v6302_v63  ;;  %v4962_v63 = vrot.slane %v9053_v53, 2 }
 0x84a   :  { %v7193_v39 = vpop.eup %7192  ;;  %v4859_v21 = vadd.f32 1.0, %v7191_v11  ;;  %7218 = vpow2.f32 %v6303_v58  ;;  %v4982_v58 = vrot.slane %v9045_v24, 3  ;;  %v6305_v11 = vmul.f32 -1.442695, %v4979_v12 }
 0x84b   :  { %v7195_v25 = vpop.eup %7194  ;;  %v4860_v49 = vadd.f32 1.0, %v7193_v39  ;;  %7220 = vpow2.f32 %v6304_v55  ;;  %v5058_v39 = vrot.slane %v5044_v20, %v7927_v6 }
 0x84c   :  { %v7197_v23 = vpop.eup %7196  ;;  %v4861_v44 = vadd.f32 1.0, %v7195_v25  ;;  %7222 = vrcp.f32 %v4859_v21  ;;  %v4984_v25 = vrot.slane %v9047_v51, 3 }
 0x84d   :  { %v7199_v8 = vpop.eup %7198  ;;  %v4862_v46 = vadd.f32 1.0, %v7197_v23  ;;  %7224 = vrcp.f32 %v4860_v49  ;;  %v5059_v49 = vcombine.high %v5051_v0, %v5051_v0 }
 0x84e   :  { %v7201_v9 = vpop.eup %7200  ;;  %v4863_v35 = vadd.f32 1.0, %v7199_v8  ;;  %7226 = vrcp.f32 %v4861_v44  ;;  %v4985_v44 = vrot.slane %v9049_v5, 3  ;;  %v6307_v8 = vmul.f32 -1.442695, %v4981_v16 }
 0x84f   :  { %v7203_v18 = vpop.eup %7202  ;;  %v4864_v13 = vadd.f32 1.0, %v7201_v9  ;;  %7228 = vrcp.f32 %v4862_v46  ;;  %v4986_v46 = vrot.slane %v9053_v53, 3  ;;  %v6308_v9 = vmul.f32 -1.442695, %v4982_v58 }
 0x850   :  { %v7205_v7 = vpop.eup %7204  ;;  %v4865_v27 = vadd.f32 1.0, %v7203_v18  ;;  %7230 = vrcp.f32 %v4863_v35  ;;  %v6309_v35 = vmul.f32 -1.442695, %v4983_v56  ;;  %v5060_v18 = vcombine.high %v5058_v39, %v5058_v39 }
 0x851   :  { %v7207_v42 = vpop.eup %7206  ;;  %v4866_v37 = vadd.f32 1.0, %v7205_v7  ;;  %7232 = vrcp.f32 %v4864_v13  ;;  %v5067_v13 = vrot.slane %v5051_v0, %v7927_v6  ;;  %v6310_v51 = vmul.f32 -1.442695, %v4984_v25 }
 0x852   :  { %v7209_v59 = vpop.eup %7208  ;;  %7234 = vrcp.f32 %v4865_v27  ;;  %v4931_v28 = vadd.f32 1.0, %v7207_v42  ;;  %v5081_v27 = vrot.slane %v5059_v49, %v7927_v6  ;;  %v6311_v5 = vmul.f32 -1.442695, %v4985_v44 }
 0x853   :  { %v7211_v57 = vpop.eup %7210  ;;  %7236 = vrcp.f32 %v4866_v37  ;;  %v4932_v38 = vadd.f32 1.0, %v7209_v59  ;;  %v6312_v59 = vmul.f32 -1.442695, %v4986_v46  ;;  %v5074_v53 = vrot.slane %v5058_v39, %v7927_v6 }
 0x854   :  { %v7213_v2 = vpop.eup %7212  ;;  %v4933_v60 = vadd.f32 1.0, %v7211_v57  ;;  %7238 = vrcp.f32 %v4931_v28  ;;  %v5088_v57 = vrot.slane %v5060_v18, %v7927_v6 }
 0x855   :  { %v7215_v29 = vpop.eup %7214  ;;  %v4934_v48 = vadd.f32 1.0, %v7213_v2  ;;  %7240 = vrcp.f32 %v4932_v38  ;;  %v5089_v38 = vcombine.high %v5067_v13, %v5067_v13 }
 0x856   :  { %v7217_v26 = vpop.eup %7216  ;;  %v4935_v45 = vadd.f32 1.0, %v7215_v29  ;;  %7242 = vrcp.f32 %v4933_v60  ;;  %v5091_v29 = vcombine.high %v5081_v27, %v5081_v27 }
 0x857   :  { %v7219_v22 = vpop.eup %7218  ;;  %v4936_v33 = vadd.f32 1.0, %v7217_v26  ;;  %7244 = vrcp.f32 %v4934_v48 }
 0x858   :  { %v7221_v41 = vpop.eup %7220  ;;  %v4937_v54 = vadd.f32 1.0, %v7219_v22  ;;  %7246 = vrcp.f32 %v4935_v45 }
 0x859   :  { %v9070_v30 = vpop.eup %7222  ;;  %v4938_v36 = vadd.f32 1.0, %v7221_v41  ;;  %7248 = vrcp.f32 %v4936_v33  ;;  %v5090_v41 = vcombine.high %v5074_v53, %v5074_v53 }
 0x85a   :  { %v9073_v40 = vpop.eup %7224  ;;  %7250 = vrcp.f32 %v4937_v54 }
 0x85b   :  { %v9076_v34 = vpop.eup %7226  ;;  %7252 = vrcp.f32 %v4938_v36 }
 0x85c   :  { %v9079_v50 = vpop.eup %7228  ;;  %7254 = vtanh.f32 %v4955_v19 }
 0x85d   :  { %v9085_v15 = vpop.eup %7230  ;;  %7256 = vtanh.f32 %v4956_v52  ;;  %v5092_v52 = vcombine.high %v5088_v57, %v5088_v57 }
 0x85e   :  { %v9091_v32 = vpop.eup %7232  ;;  %7258 = vtanh.f32 %v4957_v3 }
 0x85f   :  { %v9095_v61 = vpop.eup %7234  ;;  %7260 = vtanh.f32 %v4958_v14 }
 0x860   :  { %v9099_v55 = vpop.eup %7236  ;;  %7262 = vtanh.f32 %v4959_v10 }
 0x861   :  { %v7239_v21 = vpop.eup %7238  ;;  %7264 = vtanh.f32 %v4960_v17 }
 0x862   :  { %v7241_v23 = vpop.eup %7240  ;;  %7266 = vtanh.f32 %v4961_v4  ;;  %v5101_v2 = vmul.f32 %v7239_v21, %v5067_v13 }
 0x863   :  { %v7243_v24 = vpop.eup %7242  ;;  %7268 = vtanh.f32 %v4962_v63  ;;  %v5102_v48 = vmul.f32 %v7241_v23, %v5081_v27 }
 0x864   :  { %v7245_v62 = vpop.eup %7244  ;;  %7270 = vpow2.f32 %v6305_v11  ;;  %v5103_v45 = vmul.f32 %v7243_v24, %v5089_v38 }
 0x865   :  { %v7247_v7 = vpop.eup %7246  ;;  %7272 = vpow2.f32 %v6306_v31  ;;  %v5104_v54 = vmul.f32 %v7245_v62, %v5091_v29 }
 0x866   :  { %v7249_v42 = vpop.eup %7248  ;;  %7274 = vpow2.f32 %v6307_v8  ;;  %v5105_v3 = vmul.f32 %v7247_v7, %v5074_v53 }
 0x867   :  { %v7251_v37 = vpop.eup %7250  ;;  %7276 = vpow2.f32 %v6308_v9  ;;  %v5106_v20 = vmul.f32 %v7249_v42, %v5088_v57 }
 0x868   :  { %v7253_v28 = vpop.eup %7252  ;;  %7278 = vpow2.f32 %v6309_v35  ;;  %v5107_v4 = vmul.f32 %v7251_v37, %v5090_v41 }
 0x869   :  { %v7255_v60 = vpop.eup %7254  ;;  %7280 = vpow2.f32 %v6310_v51 }
 0x86a   :  { %v7257_v26 = vpop.eup %7256  ;;  %7282 = vpow2.f32 %v6311_v5  ;;  %v5109_v22 = vmul.f32 %v7255_v60, %v9070_v30  ;;  %v5108_v30 = vmul.f32 %v7253_v28, %v5092_v52  ;;  %v5147_v60 = vpop.permute.xlu0 %5146 }
 0x86b   :  { %v7259_v33 = vpop.eup %7258  ;;  %7284 = vpow2.f32 %v6312_v59  ;;  %v5110_v19 = vmul.f32 %v7257_v26, %v9073_v40  ;;  %vm5148_vm0 = vcmp.eq.s32.totalorder %v5147_v60, 1 }
 0x86c   :  { %v7261_v36 = vpop.eup %7260  ;;  %v5111_v14 = vmul.f32 %v7259_v33, %v9076_v34  ;;  %v5117_v10 = vadd.f32 %v5109_v22, %v5101_v2 }
 0x86d   :  { %v7263_v12 = vpop.eup %7262  ;;  %v5112_v17 = vmul.f32 %v7261_v36, %v9079_v50  ;;  %v5118_v47 = vadd.f32 %v5110_v19, %v5102_v48 }
 0x86e   :  { %v7265_v0 = vpop.eup %7264  ;;  %v5113_v16 = vmul.f32 %v7263_v12, %v9085_v15  ;;  %v5119_v63 = vadd.f32 %v5111_v14, %v5103_v45  ;;  %7286 = vtanh.f32 %v5117_v10 }
 0x86f   :  { %v7267_v58 = vpop.eup %7266  ;;  %v5114_v40 = vmul.f32 %v7265_v0, %v9091_v32  ;;  %v5120_v56 = vadd.f32 %v5112_v17, %v5104_v54  ;;  %v5283_v11 = vcombine.low %v5117_v10, %v5118_v47  ;;  %7288 = vtanh.f32 %v5118_v47 }
 0x870   :  { %v7269_v39 = vpop.eup %7268  ;;  %v5115_v34 = vmul.f32 %v7267_v58, %v9095_v61  ;;  %v5121_v21 = vadd.f32 %v5113_v16, %v5105_v3  ;;  %7290 = vtanh.f32 %v5119_v63 }
 0x871   :  { %v7271_v25 = vpop.eup %7270  ;;  %v5116_v50 = vmul.f32 %v7269_v39, %v9099_v55  ;;  %v5122_v31 = vadd.f32 %v5114_v40, %v5106_v20  ;;  %v5284_v49 = vcombine.low %v5119_v63, %v5120_v56  ;;  %v5293_v61 = vrot.slane %v5283_v11, %v7927_v6 }
 0x872   :  { %v7273_v23 = vpop.eup %7272  ;;  %v5019_v15 = vadd.f32 1.0, %v7271_v25  ;;  %v5123_v44 = vadd.f32 %v5115_v34, %v5107_v4  ;;  %7292 = vtanh.f32 %v5121_v21 }
 0x873   :  { %v7275_v8 = vpop.eup %7274  ;;  %v5020_v32 = vadd.f32 1.0, %v7273_v23  ;;  %v5124_v24 = vadd.f32 %v5116_v50, %v5108_v30  ;;  %7294 = vtanh.f32 %v5122_v31  ;;  %v5285_v46 = vcombine.low %v5121_v21, %v5122_v31 }
 0x874   :  { %v7277_v9 = vpop.eup %7276  ;;  %v5021_v62 = vadd.f32 1.0, %v7275_v8  ;;  %7296 = vrcp.f32 %v5019_v15  ;;  %v5300_v35 = vrot.slane %v5284_v49, %v7927_v6 }
 0x875   :  { %v7279_v55 = vpop.eup %7278  ;;  %v5022_v18 = vadd.f32 1.0, %v7277_v9  ;;  %7298 = vrcp.f32 %v5020_v32  ;;  %v5286_v13 = vcombine.low %v5123_v44, %v5124_v24  ;;  %v5307_v37 = vrot.slane %v5285_v46, %v7927_v6 }
 0x876   :  { %v7281_v7 = vpop.eup %7280  ;;  %v5023_v51 = vadd.f32 1.0, %v7279_v55  ;;  %7300 = vrcp.f32 %v5021_v62  ;;  %v5315_v27 = vcombine.low %v5293_v61, %v5300_v35 }
 0x877   :  { %v7283_v42 = vpop.eup %7282  ;;  %v5024_v5 = vadd.f32 1.0, %v7281_v7  ;;  %7302 = vrcp.f32 %v5022_v18  ;;  %v5314_v59 = vrot.slane %v5286_v13, %v7927_v6 }
 0x878   :  { %v7285_v53 = vpop.eup %7284  ;;  %v5025_v28 = vadd.f32 1.0, %v7283_v42  ;;  %7304 = vrcp.f32 %v5023_v51  ;;  %v5323_v2 = vrot.slane %v5315_v27, %v7927_v6 }
 0x879   :  { %v5026_v57 = vadd.f32 1.0, %v7285_v53  ;;  %7306 = vrcp.f32 %v5024_v5  ;;  %v5316_v38 = vcombine.low %v5307_v37, %v5314_v59 }
 0x87a   :  { %7308 = vrcp.f32 %v5025_v28 }
 0x87b   :  { %7310 = vrcp.f32 %v5026_v57  ;;  %v5330_v29 = vrot.slane %v5316_v38, %v7927_v6  ;;  %v7287_v48 = vpop.eup %7286 }
 0x87c   :  { %7312 = vtanh.f32 %v5120_v56  ;;  %v7289_v26 = vpop.eup %7288 }
 0x87d   :  { %v5331_v45 = vcombine.low %v5323_v2, %v5330_v29  ;;  %7314 = vtanh.f32 %v5123_v44  ;;  %v7291_v22 = vpop.eup %7290 }
 0x87e   :  { %7316 = vtanh.f32 %v5124_v24 }
 0x87f   :  { %v7293_v33 = vpop.eup %7292  ;;  %v9126_v41 = vsel %vm5148_vm0, %v5331_v45, %v8976_v1 }
 0x880   :  { %v7295_v54 = vpop.eup %7294 }
 0x881   :  { %v7297_v19 = vpop.eup %7296 }
 0x882   :  { %v7299_v36 = vpop.eup %7298  ;;  %v5133_v12 = vmul.f32 %v7297_v19, %v7287_v48 }
 0x883   :  { %v7301_v52 = vpop.eup %7300  ;;  %v5134_v20 = vmul.f32 %v7299_v36, %v7289_v26 }
 0x884   :  { %v7303_v3 = vpop.eup %7302  ;;  %v5135_v0 = vmul.f32 %v7301_v52, %v7291_v22 }
 0x885   :  { %v7305_v14 = vpop.eup %7304  ;;  %v5157_v40 = vcombine.low %v5133_v12, %v5134_v20 }
 0x886   :  { %v7307_v10 = vpop.eup %7306  ;;  %v5137_v4 = vmul.f32 %v7305_v14, %v7293_v33 }
 0x887   :  { %v7309_v17 = vpop.eup %7308  ;;  %v5138_v30 = vmul.f32 %v7307_v10, %v7295_v54  ;;  %v5167_v25 = vrot.slane %v5157_v40, %v7927_v6 }
 0x888   :  { %v7311_v47 = vpop.eup %7310 }
 0x889   :  { %v7313_v16 = vpop.eup %7312  ;;  %v5159_v34 = vcombine.low %v5137_v4, %v5138_v30  ;;  %v5337_v4 = vld [vmem:[#allocation2 + $0x27] ss:$8 sm:$0xf] }
 0x88a   :  { %v7315_v63 = vpop.eup %7314  ;;  %v5136_v58 = vmul.f32 %v7313_v16, %v7303_v3  ;;  %v5339_v30 = vld [vmem:[#allocation2 + $0x47] ss:$8 sm:$0xf] }
 0x88b   :  { %v7317_v1 = vpop.eup %7316  ;;  %v5139_v56 = vmul.f32 %v7315_v63, %v7309_v17  ;;  %v5181_v31 = vrot.slane %v5159_v34, %v7927_v6  ;;  %v5343_v16 = vld [vmem:[#allocation2 + $0x87] ss:$8 sm:$0xf] }
 0x88c   :  { %v5140_v11 = vmul.f32 %v7317_v1, %v7311_v47  ;;  %v5158_v39 = vcombine.low %v5135_v0, %v5136_v58  ;;  %v5335_v0 = vld [vmem:[#allocation2 + $0x7] ss:$8 sm:$0xf] }
 0x88e   :  { %v5160_v21 = vcombine.low %v5139_v56, %v5140_v11  ;;  %v5174_v50 = vrot.slane %v5158_v39, %v7927_v6  ;;  %v5341_v56 = vld [vmem:[#allocation2 + $0x67] ss:$8 sm:$0xf] }
 0x88f   :  { %v5345_v11 = vld [vmem:[#allocation2 + $0xa7] ss:$8 sm:$0xf] }
 0x890   :  { %v5188_v49 = vrot.slane %v5160_v21, %v7927_v6  ;;  %v5189_v23 = vcombine.low %v5167_v25, %v5174_v50  ;;  %v5347_v25 = vld [vmem:[#allocation2 + $0xc7] ss:$8 sm:$0xf] }
 0x891   :  { %v5349_v50 = vld [vmem:[#allocation2 + $0xe7] ss:$8 sm:$0xf] }
 0x892   :  { %v5190_v15 = vcombine.low %v5181_v31, %v5188_v49  ;;  %v5197_v44 = vrot.slane %v5189_v23, %v7927_v6 }
 0x894   :  { %v5204_v8 = vrot.slane %v5190_v15, %v7927_v6 }
 0x896   :  { %v5205_v32 = vcombine.low %v5197_v44, %v5204_v8 }
 0x898   :  { %v5207_v24 = vsel %vm5148_vm0, %v5205_v32, 0.0  ;;  %v9137_v46 = vsel %vm5148_vm0, %v5205_v32, %v8987_v43 }
 0x899   :  { %v5209_v9 = vcombine.high %v5207_v24, %v5207_v24  ;;  %v5216_v62 = vrot.slane %v5207_v24, %v7927_v6  ;;  %v5350_v61 = vpack.c.bf16 %v9137_v46, %v9137_v46 }
 0x89b   :  { %v5223_v35 = vrot.slane %v5209_v9, %v7927_v6  ;;  %v5224_v55 = vcombine.high %v5216_v62, %v5216_v62  ;;  %v5232_v18 = vrot.slane %v5216_v62, %v7927_v6  ;;  %6314 = vst.sshfl [vmem:[#allocation9 + $0x6] sm:$0x1 pattern:$0x73625140] %v5216_v62  ;;  %5384 = vmatmul.mubr.bf16.vlgmr.msra.gmra.mxu0 %v5350_v61 }
 0x89c   :  { %5425 = vmatmul.mubr.bf16.vlgmr.msra.gmra.mxu1 %v5350_v61 }
 0x89d   :  { %v5225_v13 = vcombine.high %v5223_v35, %v5223_v35  ;;  %v5239_v7 = vrot.slane %v5223_v35, %v7927_v6  ;;  %v5246_v43 = vrot.slane %v5224_v55, %v7927_v6  ;;  %v5254_v51 = vcombine.high %v5232_v18, %v5232_v18  ;;  %6315 = vst.sshfl [vmem:[#allocation9 + $0xe] sm:$0x1 pattern:$0x73625140] %v5224_v55 }
 0x89e   :  { %6316 = vst.sshfl [vmem:[#allocation9 + $0x26] sm:$0x1 pattern:$0x73625140] %v5223_v35 }
 0x89f   :  { %v5253_v27 = vrot.slane %v5225_v13, %v7927_v6  ;;  %v5255_v42 = vcombine.high %v5239_v7, %v5239_v7  ;;  %v5256_v5 = vcombine.high %v5246_v43, %v5246_v43  ;;  %5268 = vst [vmem:[#allocation9 + $0x16] sm:$0x1] %v5254_v51  ;;  %6317 = vst.sshfl [vmem:[#allocation9 + $0x2e] sm:$0x1 pattern:$0x73625140] %v5225_v13 }
 0x8a1   :  { %v5257_v37 = vcombine.high %v5253_v27, %v5253_v27  ;;  %5269 = vst [vmem:[#allocation9 + $0x1e] sm:$0x1] %v5256_v5  ;;  %5272 = vst [vmem:[#allocation9 + $0x36] sm:$0x1] %v5255_v42 }
 0x8a3   :  { %5273 = vst [vmem:[#allocation9 + $0x3e] sm:$0x1] %v5257_v37 }
 0x95b   :  { %v5385_v59 = vpop.f32.mrf.mxu0 }
 0x95c   :  { %v5426_v53 = vpop.f32.mrf.mxu1 }
 0x95d   :  { %v5387_v28 = vpop.f32.mrf.mxu0 }
 0x95e   :  { %v5428_v57 = vpop.f32.mrf.mxu1  ;;  %v5437_v38 = vcombine.low %v5385_v59, %v5387_v28  ;;  %v5438_v2 = vcombine.high %v5385_v59, %v5387_v28 }
 0x95f   :  { %v5439_v60 = vcombine.low %v5426_v53, %v5428_v57  ;;  %v5440_v29 = vcombine.high %v5426_v53, %v5428_v57  ;;  %v5389_v48 = vpop.f32.mrf.mxu0 }
 0x960   :  { %v5430_v26 = vpop.f32.mrf.mxu1  ;;  %v5447_v45 = vrot.slane %v5437_v38, %v7927_v6  ;;  %v5454_v22 = vrot.slane %v5438_v2, %v7927_v6 }
 0x961   :  { %v5461_v33 = vrot.slane %v5439_v60, %v7927_v6  ;;  %v5468_v54 = vrot.slane %v5440_v29, %v7927_v6  ;;  %v5390_v19 = vpop.f32.mrf.mxu0 }
 0x962   :  { %v5431_v36 = vpop.f32.mrf.mxu1 }
 0x963   :  { %v5469_v52 = vcombine.low %v5447_v45, %v5461_v33  ;;  %v5470_v3 = vcombine.high %v5447_v45, %v5461_v33  ;;  %v5471_v14 = vcombine.low %v5454_v22, %v5468_v54  ;;  %v5472_v10 = vcombine.high %v5454_v22, %v5468_v54 }
 0x965   :  { %v5479_v12 = vrot.slane %v5469_v52, %v7927_v6  ;;  %v5486_v20 = vrot.slane %v5471_v14, %v7927_v6  ;;  %v5493_v17 = vrot.slane %v5470_v3, %v7927_v6  ;;  %v5500_v47 = vrot.slane %v5472_v10, %v7927_v6 }
 0x967   :  { %v5501_v63 = vcombine.high %v5479_v12, %v5479_v12  ;;  %v5502_v58 = vcombine.high %v5486_v20, %v5486_v20  ;;  %v5503_v40 = vcombine.high %v5493_v17, %v5493_v17  ;;  %v5504_v1 = vcombine.high %v5500_v47, %v5500_v47 }
 0x968   :  { %v9155_v39 = vadd.f32 %v5479_v12, %v5335_v0  ;;  %v9157_v34 = vadd.f32 %v5493_v17, %v5337_v4  ;;  %v9159_v21 = vadd.f32 %v5486_v20, %v5343_v16  ;;  %v9165_v23 = vadd.f32 %v5500_v47, %v5345_v11 }
 0x969   :  { %v9161_v31 = vadd.f32 %v5501_v63, %v5339_v30  ;;  %v9163_v49 = vadd.f32 %v5503_v40, %v5341_v56  ;;  %v9167_v15 = vadd.f32 %v5502_v58, %v5347_v25  ;;  %v9171_v32 = vadd.f32 %v5504_v1, %v5349_v50 }
 0x96a   :  { %v6318_v44 = vmul.f32 -1.442695, %v9155_v39  ;;  %v6319_v8 = vmul.f32 -1.442695, %v9157_v34  ;;  %v6322_v62 = vmul.f32 -1.442695, %v9159_v21 }
 0x96b   :  { %v6320_v24 = vmul.f32 -1.442695, %v9161_v31  ;;  %v6321_v9 = vmul.f32 -1.442695, %v9163_v49  ;;  %v5577_v61 = vrot.slane %v9155_v39, 1  ;;  %v5578_v55 = vrot.slane %v9157_v34, 1 }
 0x96c   :  { %7318 = vpow2.f32 %v6318_v44  ;;  %v6323_v35 = vmul.f32 -1.442695, %v9165_v23  ;;  %v6324_v18 = vmul.f32 -1.442695, %v9167_v15  ;;  %v5579_v13 = vrot.slane %v9161_v31, 1 }
 0x96d   :  { %7320 = vpow2.f32 %v6319_v8  ;;  %v6325_v7 = vmul.f32 -1.442695, %v9171_v32  ;;  %v5580_v43 = vrot.slane %v9163_v49, 1  ;;  %v5581_v51 = vrot.slane %v9159_v21, 1 }
 0x96e   :  { %7322 = vpow2.f32 %v6320_v24  ;;  %v6326_v27 = vmul.f32 -1.442695, %v5577_v61  ;;  %v5582_v42 = vrot.slane %v9165_v23, 1  ;;  %v6327_v5 = vmul.f32 -1.442695, %v5578_v55 }
 0x96f   :  { %7324 = vpow2.f32 %v6321_v9  ;;  %v5583_v37 = vrot.slane %v9167_v15, 1  ;;  %v6328_v59 = vmul.f32 -1.442695, %v5579_v13  ;;  %v5584_v53 = vrot.slane %v9171_v32, 1 }
 0x970   :  { %7326 = vpow2.f32 %v6322_v62  ;;  %v6329_v28 = vmul.f32 -1.442695, %v5580_v43  ;;  %v6330_v57 = vmul.f32 -1.442695, %v5581_v51  ;;  %v6331_v38 = vmul.f32 -1.442695, %v5582_v42 }
 0x971   :  { %7328 = vpow2.f32 %v6323_v35  ;;  %v6332_v2 = vmul.f32 -1.442695, %v5583_v37  ;;  %v6333_v60 = vmul.f32 -1.442695, %v5584_v53  ;;  %v5641_v24 = vrot.slane %v9155_v39, 2 }
 0x972   :  { %7330 = vpow2.f32 %v6324_v18  ;;  %v5642_v61 = vrot.slane %v9157_v34, 2  ;;  %v5643_v55 = vrot.slane %v9161_v31, 2  ;;  %v5644_v13 = vrot.slane %v9163_v49, 2 }
 0x973   :  { %7332 = vpow2.f32 %v6325_v7  ;;  %v5645_v43 = vrot.slane %v9159_v21, 2  ;;  %v5665_v51 = vrot.slane %v9155_v39, 3  ;;  %v5666_v37 = vrot.slane %v9157_v34, 3 }
 0x974   :  { %7334 = vpow2.f32 %v6326_v27  ;;  %v5730_v27 = vcombine.high %v9126_v41, %v9126_v41  ;;  %v5667_v39 = vrot.slane %v9161_v31, 3  ;;  %v5669_v34 = vrot.slane %v9159_v21, 3 }
 0x975   :  { %7336 = vpow2.f32 %v6327_v5  ;;  %v5646_v5 = vrot.slane %v9165_v23, 2  ;;  %v6335_v31 = vmul.f32 -1.442695, %v5666_v37 }
 0x976   :  { %7338 = vpow2.f32 %v6328_v59  ;;  %v5737_v59 = vrot.slane %v9126_v41, %v7927_v6 }
 0x977   :  { %7340 = vpow2.f32 %v6329_v28  ;;  %v5647_v28 = vrot.slane %v9167_v15, 2 }
 0x978   :  { %7342 = vpow2.f32 %v6330_v57 }
 0x979   :  { %v7319_v29 = vpop.eup %7318  ;;  %7344 = vpow2.f32 %v6331_v38  ;;  %v5648_v38 = vrot.slane %v9171_v32, 2 }
 0x97a   :  { %v7321_v48 = vpop.eup %7320  ;;  %v5545_v26 = vadd.f32 1.0, %v7319_v29  ;;  %7346 = vpow2.f32 %v6332_v2  ;;  %v5668_v2 = vrot.slane %v9163_v49, 3  ;;  %v6334_v29 = vmul.f32 -1.442695, %v5665_v51 }
 0x97b   :  { %v7323_v45 = vpop.eup %7322  ;;  %v5546_v22 = vadd.f32 1.0, %v7321_v48  ;;  %7348 = vpow2.f32 %v6333_v60  ;;  %v5744_v48 = vrot.slane %v5730_v27, %v7927_v6 }
 0x97c   :  { %v7325_v33 = vpop.eup %7324  ;;  %v5547_v54 = vadd.f32 1.0, %v7323_v45  ;;  %7350 = vrcp.f32 %v5545_v26  ;;  %v5670_v45 = vrot.slane %v9165_v23, 3 }
 0x97d   :  { %v7327_v19 = vpop.eup %7326  ;;  %v5548_v36 = vadd.f32 1.0, %v7325_v33  ;;  %7352 = vrcp.f32 %v5546_v22  ;;  %v5745_v22 = vcombine.high %v5737_v59, %v5737_v59 }
 0x97e   :  { %v7329_v52 = vpop.eup %7328  ;;  %v5549_v3 = vadd.f32 1.0, %v7327_v19  ;;  %7354 = vrcp.f32 %v5547_v54  ;;  %v5671_v54 = vrot.slane %v9167_v15, 3  ;;  %v6336_v19 = vmul.f32 -1.442695, %v5667_v39 }
 0x97f   :  { %v7331_v14 = vpop.eup %7330  ;;  %v5550_v10 = vadd.f32 1.0, %v7329_v52  ;;  %7356 = vrcp.f32 %v5548_v36  ;;  %v5672_v36 = vrot.slane %v9171_v32, 3  ;;  %v6337_v52 = vmul.f32 -1.442695, %v5668_v2 }
 0x980   :  { %v7333_v12 = vpop.eup %7332  ;;  %v5551_v20 = vadd.f32 1.0, %v7331_v14  ;;  %7358 = vrcp.f32 %v5549_v3  ;;  %v6338_v3 = vmul.f32 -1.442695, %v5669_v34  ;;  %v5753_v14 = vrot.slane %v5737_v59, %v7927_v6 }
 0x981   :  { %v7335_v17 = vpop.eup %7334  ;;  %v5552_v47 = vadd.f32 1.0, %v7333_v12  ;;  %7360 = vrcp.f32 %v5550_v10  ;;  %v6339_v23 = vmul.f32 -1.442695, %v5670_v45  ;;  %v5746_v12 = vcombine.high %v5744_v48, %v5744_v48 }
 0x982   :  { %v7337_v0 = vpop.eup %7336  ;;  %7362 = vrcp.f32 %v5551_v20  ;;  %v5617_v4 = vadd.f32 1.0, %v7335_v17  ;;  %v5767_v20 = vrot.slane %v5745_v22, %v7927_v6  ;;  %v6340_v15 = vmul.f32 -1.442695, %v5671_v54 }
 0x983   :  { %v7339_v30 = vpop.eup %7338  ;;  %7364 = vrcp.f32 %v5552_v47  ;;  %v5618_v16 = vadd.f32 1.0, %v7337_v0  ;;  %v6341_v0 = vmul.f32 -1.442695, %v5672_v36  ;;  %v5760_v32 = vrot.slane %v5744_v48, %v7927_v6 }
 0x984   :  { %v7341_v63 = vpop.eup %7340  ;;  %v5619_v58 = vadd.f32 1.0, %v7339_v30  ;;  %7366 = vrcp.f32 %v5617_v4 }
 0x985   :  { %v7343_v40 = vpop.eup %7342  ;;  %v5620_v1 = vadd.f32 1.0, %v7341_v63  ;;  %7368 = vrcp.f32 %v5618_v16  ;;  %v5775_v16 = vcombine.high %v5753_v14, %v5753_v14 }
 0x986   :  { %v7345_v56 = vpop.eup %7344  ;;  %v5621_v11 = vadd.f32 1.0, %v7343_v40  ;;  %7370 = vrcp.f32 %v5619_v58  ;;  %v5774_v58 = vrot.slane %v5746_v12, %v7927_v6 }
 0x987   :  { %v7347_v25 = vpop.eup %7346  ;;  %v5622_v50 = vadd.f32 1.0, %v7345_v56  ;;  %7372 = vrcp.f32 %v5620_v1  ;;  %v5777_v1 = vcombine.high %v5767_v20, %v5767_v20 }
 0x988   :  { %v7349_v44 = vpop.eup %7348  ;;  %v5623_v8 = vadd.f32 1.0, %v7347_v25  ;;  %7374 = vrcp.f32 %v5621_v11  ;;  %v5778_v37 = vcombine.high %v5774_v58, %v5774_v58 }
 0x989   :  { %v9188_v9 = vpop.eup %7350  ;;  %v5624_v62 = vadd.f32 1.0, %v7349_v44  ;;  %7376 = vrcp.f32 %v5622_v50 }
 0x98a   :  { %v9191_v35 = vpop.eup %7352  ;;  %7378 = vrcp.f32 %v5623_v8 }
 0x98b   :  { %v9194_v18 = vpop.eup %7354  ;;  %7380 = vrcp.f32 %v5624_v62 }
 0x98c   :  { %v9197_v7 = vpop.eup %7356  ;;  %7382 = vtanh.f32 %v5641_v24 }
 0x98d   :  { %v9203_v42 = vpop.eup %7358  ;;  %7384 = vtanh.f32 %v5642_v61 }
 0x98e   :  { %v9209_v53 = vpop.eup %7360  ;;  %7386 = vtanh.f32 %v5643_v55 }
 0x98f   :  { %v9213_v57 = vpop.eup %7362  ;;  %7388 = vtanh.f32 %v5644_v13  ;;  %v5776_v13 = vcombine.high %v5760_v32, %v5760_v32 }
 0x990   :  { %v9217_v60 = vpop.eup %7364  ;;  %7390 = vtanh.f32 %v5645_v43 }
 0x991   :  { %v7367_v26 = vpop.eup %7366  ;;  %7392 = vtanh.f32 %v5646_v5 }
 0x992   :  { %v7369_v33 = vpop.eup %7368  ;;  %7394 = vtanh.f32 %v5647_v28  ;;  %v5787_v30 = vmul.f32 %v7367_v26, %v5753_v14 }
 0x993   :  { %v7371_v49 = vpop.eup %7370  ;;  %7396 = vtanh.f32 %v5648_v38  ;;  %v5788_v40 = vmul.f32 %v7369_v33, %v5767_v20 }
 0x994   :  { %v7373_v21 = vpop.eup %7372  ;;  %7398 = vpow2.f32 %v6334_v29  ;;  %v5789_v25 = vmul.f32 %v7371_v49, %v5775_v16 }
 0x995   :  { %v7375_v10 = vpop.eup %7374  ;;  %7400 = vpow2.f32 %v6335_v31  ;;  %v5790_v8 = vmul.f32 %v7373_v21, %v5777_v1 }
 0x996   :  { %v7377_v17 = vpop.eup %7376  ;;  %7402 = vpow2.f32 %v6336_v19  ;;  %v5791_v62 = vmul.f32 %v7375_v10, %v5760_v32 }
 0x997   :  { %v7379_v47 = vpop.eup %7378  ;;  %7404 = vpow2.f32 %v6337_v52  ;;  %v5792_v51 = vmul.f32 %v7377_v17, %v5774_v58 }
 0x998   :  { %v7381_v4 = vpop.eup %7380  ;;  %7406 = vpow2.f32 %v6338_v3  ;;  %v5793_v28 = vmul.f32 %v7379_v47, %v5776_v13 }
 0x999   :  { %v7383_v63 = vpop.eup %7382  ;;  %7408 = vpow2.f32 %v6339_v23  ;;  %v5794_v2 = vmul.f32 %v7381_v4, %v5778_v37 }
 0x99a   :  { %v7385_v56 = vpop.eup %7384  ;;  %7410 = vpow2.f32 %v6340_v15  ;;  %v5795_v11 = vmul.f32 %v7383_v63, %v9188_v9 }
 0x99b   :  { %v7387_v50 = vpop.eup %7386  ;;  %7412 = vpow2.f32 %v6341_v0  ;;  %v5796_v44 = vmul.f32 %v7385_v56, %v9191_v35 }
 0x99c   :  { %v7389_v24 = vpop.eup %7388  ;;  %v5797_v61 = vmul.f32 %v7387_v50, %v9194_v18  ;;  %v5803_v55 = vadd.f32 %v5795_v11, %v5787_v30 }
 0x99d   :  { %v7391_v43 = vpop.eup %7390  ;;  %v5798_v27 = vmul.f32 %v7389_v24, %v9197_v7  ;;  %v5804_v5 = vadd.f32 %v5796_v44, %v5788_v40  ;;  %v5833_v40 = vpop.permute.xlu1 %5832 }
 0x99e   :  { %v7393_v59 = vpop.eup %7392  ;;  %v5799_v9 = vmul.f32 %v7391_v43, %v9203_v42  ;;  %v5805_v39 = vadd.f32 %v5797_v61, %v5789_v25  ;;  %7414 = vtanh.f32 %v5803_v55  ;;  %vm5834_vm1 = vcmp.eq.s32.totalorder %v5833_v40, 1 }
 0x99f   :  { %v7395_v35 = vpop.eup %7394  ;;  %v5800_v38 = vmul.f32 %v7393_v59, %v9209_v53  ;;  %v5806_v34 = vadd.f32 %v5798_v27, %v5790_v8  ;;  %7416 = vtanh.f32 %v5804_v5  ;;  %v5969_v7 = vcombine.low %v5803_v55, %v5804_v5 }
 0x9a0   :  { %v7397_v18 = vpop.eup %7396  ;;  %v5801_v29 = vmul.f32 %v7395_v35, %v9213_v57  ;;  %v5807_v48 = vadd.f32 %v5799_v9, %v5791_v62  ;;  %7418 = vtanh.f32 %v5805_v39 }
 0x9a1   :  { %v7399_v26 = vpop.eup %7398  ;;  %v5802_v45 = vmul.f32 %v7397_v18, %v9217_v60  ;;  %v5808_v31 = vadd.f32 %v5800_v38, %v5792_v51  ;;  %7420 = vtanh.f32 %v5806_v34  ;;  %v5970_v42 = vcombine.low %v5805_v39, %v5806_v34 }
 0x9a2   :  { %v7401_v22 = vpop.eup %7400  ;;  %v5705_v33 = vadd.f32 1.0, %v7399_v26  ;;  %v5809_v54 = vadd.f32 %v5801_v29, %v5793_v28  ;;  %7422 = vtanh.f32 %v5807_v48  ;;  %v5979_v21 = vrot.slane %v5969_v7, %v7927_v6 }
 0x9a3   :  { %v7403_v53 = vpop.eup %7402  ;;  %v5706_v19 = vadd.f32 1.0, %v7401_v22  ;;  %v5810_v49 = vadd.f32 %v5802_v45, %v5794_v2  ;;  %7424 = vtanh.f32 %v5808_v31  ;;  %v5971_v36 = vcombine.low %v5807_v48, %v5808_v31 }
 0x9a4   :  { %v7405_v52 = vpop.eup %7404  ;;  %v5707_v57 = vadd.f32 1.0, %v7403_v53  ;;  %7426 = vrcp.f32 %v5705_v33  ;;  %v5986_v3 = vrot.slane %v5970_v42, %v7927_v6 }
 0x9a5   :  { %v7407_v60 = vpop.eup %7406  ;;  %v5708_v14 = vadd.f32 1.0, %v7405_v52  ;;  %7428 = vrcp.f32 %v5706_v19  ;;  %v5972_v10 = vcombine.low %v5809_v54, %v5810_v49  ;;  %v5993_v47 = vrot.slane %v5971_v36, %v7927_v6 }
 0x9a6   :  { %v7409_v23 = vpop.eup %7408  ;;  %v5709_v12 = vadd.f32 1.0, %v7407_v60  ;;  %7430 = vrcp.f32 %v5707_v57  ;;  %v6001_v20 = vcombine.low %v5979_v21, %v5986_v3 }
 0x9a7   :  { %v7411_v17 = vpop.eup %7410  ;;  %v5710_v15 = vadd.f32 1.0, %v7409_v23  ;;  %7432 = vrcp.f32 %v5708_v14  ;;  %v6000_v0 = vrot.slane %v5972_v10, %v7927_v6 }
 0x9a8   :  { %v7413_v4 = vpop.eup %7412  ;;  %v5711_v32 = vadd.f32 1.0, %v7411_v17  ;;  %7434 = vrcp.f32 %v5709_v12  ;;  %v6009_v63 = vrot.slane %v6001_v20, %v7927_v6 }
 0x9a9   :  { %v5712_v30 = vadd.f32 1.0, %v7413_v4  ;;  %7436 = vrcp.f32 %v5710_v15  ;;  %v6002_v16 = vcombine.low %v5993_v47, %v6000_v0 }
 0x9aa   :  { %7438 = vrcp.f32 %v5711_v32 }
 0x9ab   :  { %v7415_v58 = vpop.eup %7414  ;;  %7440 = vrcp.f32 %v5712_v30  ;;  %v6016_v1 = vrot.slane %v6002_v16, %v7927_v6 }
 0x9ac   :  { %v7417_v56 = vpop.eup %7416  ;;  %7442 = vtanh.f32 %v5809_v54 }
 0x9ad   :  { %v7419_v11 = vpop.eup %7418  ;;  %7444 = vtanh.f32 %v5810_v49  ;;  %v6017_v25 = vcombine.low %v6009_v63, %v6016_v1 }
 0x9ae   :  { %v7421_v50 = vpop.eup %7420 }
 0x9af   :  { %v7423_v44 = vpop.eup %7422  ;;  %v6019_v8 = vsel %vm5834_vm1, %v6017_v25, %v9126_v41 }
 0x9b0   :  { %v7425_v24 = vpop.eup %7424  ;;  %6021 = vst [vmem:[#allocation12] sm:$0xff] %v6019_v8 }
 0x9b1   :  { %v7427_v62 = vpop.eup %7426 }
 0x9b2   :  { %v7429_v61 = vpop.eup %7428  ;;  %v5819_v13 = vmul.f32 %v7427_v62, %v7415_v58 }
 0x9b3   :  { %v7431_v55 = vpop.eup %7430  ;;  %v5820_v43 = vmul.f32 %v7429_v61, %v7417_v56 }
 0x9b4   :  { %v7433_v51 = vpop.eup %7432  ;;  %v5821_v27 = vmul.f32 %v7431_v55, %v7419_v11 }
 0x9b5   :  { %v7435_v5 = vpop.eup %7434  ;;  %v5822_v37 = vmul.f32 %v7433_v51, %v7421_v50  ;;  %v5843_v35 = vcombine.low %v5819_v13, %v5820_v43 }
 0x9b6   :  { %v7437_v59 = vpop.eup %7436  ;;  %v5823_v28 = vmul.f32 %v7435_v5, %v7423_v44 }
 0x9b7   :  { %v7439_v9 = vpop.eup %7438  ;;  %v5824_v39 = vmul.f32 %v7437_v59, %v7425_v24  ;;  %v5844_v38 = vcombine.low %v5821_v27, %v5822_v37  ;;  %v5853_v26 = vrot.slane %v5843_v35, %v7927_v6 }
 0x9b8   :  { %v7441_v2 = vpop.eup %7440 }
 0x9b9   :  { %v7443_v34 = vpop.eup %7442  ;;  %v5860_v41 = vrot.slane %v5844_v38, %v7927_v6  ;;  %v5845_v7 = vcombine.low %v5823_v28, %v5824_v39 }
 0x9ba   :  { %v7445_v18 = vpop.eup %7444  ;;  %v5825_v29 = vmul.f32 %v7443_v34, %v7439_v9 }
 0x9bb   :  { %v5826_v48 = vmul.f32 %v7445_v18, %v7441_v2  ;;  %v5875_v31 = vcombine.low %v5853_v26, %v5860_v41  ;;  %v5867_v42 = vrot.slane %v5845_v7, %v7927_v6 }
 0x9bd   :  { %v5846_v45 = vcombine.low %v5825_v29, %v5826_v48  ;;  %v5883_v54 = vrot.slane %v5875_v31, %v7927_v6 }
 0x9bf   :  { %v5874_v22 = vrot.slane %v5846_v45, %v7927_v6 }
 0x9c1   :  { %v5876_v33 = vcombine.low %v5867_v42, %v5874_v22 }
 0x9c3   :  { %v5890_v53 = vrot.slane %v5876_v33, %v7927_v6 }
 0x9c5   :  { %v5891_v19 = vcombine.low %v5883_v54, %v5890_v53 }
 0x9c7   :  { %v5893_v49 = vsel %vm5834_vm1, %v5891_v19, 0.0  ;;  %v5960_v36 = vsel %vm5834_vm1, %v5891_v19, %v9137_v46 }
 0x9c8   :  { %v5895_v52 = vcombine.high %v5893_v49, %v5893_v49  ;;  %v5902_v57 = vrot.slane %v5893_v49, %v7927_v6  ;;  %6020 = vst [vmem:[#allocation10] sm:$0xff] %v5960_v36 }
 0x9c9   :  { %7620 = shalt.err (!%p7617_p5)
}
 0x9ca   :  { %6043 = dma.vmem_to_hbm [thread:$0]  %s6041_s22, 128, %s9274_s6, [#allocation11]   ;;  %v5909_v21 = vrot.slane %v5895_v52, %v7927_v6  ;;  %v5910_v3 = vcombine.high %v5902_v57, %v5902_v57  ;;  %v5918_v46 = vrot.slane %v5902_v57, %v7927_v6  ;;  %6343 = vst.sshfl [vmem:[#allocation9 + $0x7] sm:$0x1 pattern:$0x73625140] %v5902_v57 }
 0x9cb   :  { %s7629_s28 = scalar_lea.vmem %s6051_s24, 128  ;;  %p7634_p7 = scmp.lt.s32.totalorder %s6051_s24, %s6051_s24 }
 0x9cc   :  { %p7630_p6 = scmp.ne.s32.totalorder %s6051_s24, %s7629_s28  ;;  %p7635_p8 = scmp.lt.s32.totalorder %s7629_s28, %s7629_s28 }
 0x9ce   :  { %p7636_p9 = por %p7635_p8, %p7634_p7 }
 0x9d0   :  { %p7637_p10 = pnand %p7636_p9, %p7630_p6 }
 0x9d2   :  { %7640 = shalt.err (!%p7637_p10)
}
 0x9d3   :  { %6053 = dma.vmem_to_hbm [thread:$0]  %s6051_s24, 128, %s9275_s7, [#allocation11]   ;;  %v5911_v60 = vcombine.high %v5909_v21, %v5909_v21  ;;  %v5925_v14 = vrot.slane %v5909_v21, %v7927_v6  ;;  %v5932_v10 = vrot.slane %v5910_v3, %v7927_v6  ;;  %v5940_v23 = vcombine.high %v5918_v46, %v5918_v46  ;;  %6344 = vst.sshfl [vmem:[#allocation9 + $0xf] sm:$0x1 pattern:$0x73625140] %v5910_v3 }
 0x9d4   :  { %6345 = vst.sshfl [vmem:[#allocation9 + $0x27] sm:$0x1 pattern:$0x73625140] %v5909_v21  ;;  %s7690_s6 = smov [#allocation9]  }
 0x9d5   :  { %s6027_s8 = sshll.u32 %s7690_s6, 4  ;;  %v5939_v12 = vrot.slane %v5911_v60, %v7927_v6  ;;  %v5941_v20 = vcombine.high %v5925_v14, %v5925_v14  ;;  %v5942_v17 = vcombine.high %v5932_v10, %v5932_v10  ;;  %5954 = vst [vmem:[#allocation9 + $0x17] sm:$0x1] %v5940_v23  ;;  %s6028_s8 = int_to_ptr.vmem [resolvable:$true] %s6027_s8 }
 0x9d6   :  { %6346 = vst.sshfl [vmem:[#allocation9 + $0x2f] sm:$0x1 pattern:$0x73625140] %v5911_v60  ;;  %s7649_s7 = scalar_lea.vmem %s6028_s8, 1024  ;;  %p7654_p12 = scmp.lt.s32.totalorder %s6028_s8, %s6028_s8 }
 0x9d7   :  { %v5943_v15 = vcombine.high %v5939_v12, %v5939_v12  ;;  %5955 = vst [vmem:[#allocation9 + $0x1f] sm:$0x1] %v5942_v17  ;;  %5958 = vst [vmem:[#allocation9 + $0x37] sm:$0x1] %v5941_v20  ;;  %p7650_p11 = scmp.ne.s32.totalorder %s6028_s8, %s7649_s7  ;;  %p7655_p13 = scmp.lt.s32.totalorder %s7649_s7, %s7649_s7 }
 0x9d9   :  { %5959 = vst [vmem:[#allocation9 + $0x3f] sm:$0x1] %v5943_v15  ;;  %p7656_p0 = por %p7655_p13, %p7654_p12 }
 0x9db   :  { %p7657_p1 = pnand %p7656_p0, %p7650_p11 }
 0x9dd   :  { %7660 = shalt.err (!%p7657_p1)
}
 0x9de   :  { %s7691_s9 = smov 128   ;;  %s7692_s10 = smov 8  }
 0x9df   :  { %6033 = dma.vmem_to_hbm [thread:$0]  %s6028_s8, 1024, %s9273_s5, [#allocation5], %s7691_s9, %s7691_s9, %s7692_s10  }
 0x9e0   :  { %7673 = dma.done.wait [#allocation5], 1024  }
 0x9e1   :  { %7674 = vsyncadd [#allocation5], 4294966272 }
 0x9e2   :  { %7675 = dma.done.wait [#allocation11], 256  }
 0x9e3   :  { %7676 = vsyncadd [#allocation11], 4294967040 }
 0x9e4   :  { %6063 = vsyncpa [#allocation4], 1 }
 0x9e5   :  { %6064 = vsyncpa [#allocation7], 1 }
 0x9e6   :  { %6065 = vsyncpa [#allocation5], 1 }
 0x9e7   :  { %6066 = vsyncpa [#allocation11], 1 }

// kernel: tpu_custom_call.1
= control target key start
LH: loop header
LB: loop body
LE: loop exit
PB: predicated region body
PF: predicated region fallthrough
CT: control target
= control target key end

     0   :  { %13 = vsyncpa [#allocation4], 0  ;;  %s9268_s0 = inlined_call_operand.vmem [shape: s32[8,1], index: 0, kind: input, shape index: {}]   ;;  %s9269_s1 = inlined_call_operand.hbm [shape: bf16[8,8,16], index: 1, kind: input, shape index: {}]   ;;  %s9270_s2 = inlined_call_operand.hbm [shape: bf16[16,512], index: 2, kind: input, shape index: {}]   ;;  %s9271_s3 = inlined_call_operand.hbm [shape: bf16[128,512], index: 3, kind: input, shape index: {}]   ;;  %s9272_s4 = inlined_call_operand.vmem [shape: f32[1,512], index: 4, kind: input, shape index: {}]   ;;  %s9273_s5 = inlined_call_operand.hbm [shape: f32[8,8,128], index: 5, kind: output, shape index: {0}]   ;;  %s9274_s6 = inlined_call_operand.hbm [shape: f32[8,128], index: 6, kind: output, shape index: {1}]   ;;  %s9275_s7 = inlined_call_operand.hbm [shape: f32[8,128], index: 7, kind: output, shape index: {2}]  }
   0x1   :  { %14 = vsyncpa [#allocation7], 0 }
   0x2   :  { %15 = vsyncpa [#allocation5], 0 }
   0x3   :  { %16 = vsyncpa [#allocation11], 0  ;;  %s7677_s24 = smov [#allocation6]  }
   0x4   :  { %s36_s25 = sshll.u32 %s7677_s24, 4  ;;  %s37_s25 = int_to_ptr.vmem [resolvable:$true] %s36_s25 }
   0x5   :  { %s7557_s26 = scalar_lea.vmem %s37_s25, 512  ;;  %p7562_p1 = scmp.lt.s32.totalorder %s37_s25, %s37_s25 }
   0x6   :  { %p7558_p0 = scmp.ne.s32.totalorder %s37_s25, %s7557_s26  ;;  %p7563_p2 = scmp.lt.s32.totalorder %s7557_s26, %s7557_s26 }
   0x8   :  { %p7564_p3 = por %p7563_p2, %p7562_p1 }
   0xa   :  { %p7565_p4 = pnand %p7564_p3, %p7558_p0 }
   0xc   :  { %7568 = shalt.err (!%p7565_p4)
}
   0xd   :  { %s7678_s27 = smov 256   ;;  %s7679_s28 = smov 16  }
   0xe   :  { %42 = dma.hbm_to_vmem [thread:$0]  %s9270_s2, 512, %s37_s25, [#allocation7], %s7678_s27, %s7678_s27, %s7679_s28  }
   0xf   :  { %s7680_s8 = smov [#allocation3]  }
  0x10   :  { %s24_s9 = sshll.u32 %s7680_s8, 4  ;;  %s25_s9 = int_to_ptr.vmem [resolvable:$true] %s24_s9 }
  0x11   :  { %s7577_s10 = scalar_lea.vmem %s25_s9, 512  ;;  %p7582_p6 = scmp.lt.s32.totalorder %s25_s9, %s25_s9 }
  0x12   :  { %p7578_p5 = scmp.ne.s32.totalorder %s25_s9, %s7577_s10  ;;  %p7583_p7 = scmp.lt.s32.totalorder %s7577_s10, %s7577_s10 }
  0x14   :  { %p7584_p8 = por %p7583_p7, %p7582_p6 }
  0x16   :  { %p7585_p9 = pnand %p7584_p8, %p7578_p5 }
  0x18   :  { %7588 = shalt.err (!%p7585_p9)
}
  0x19   :  { %s7681_s11 = smov 64   ;;  %s7682_s12 = smov 4  }
  0x1a   :  { %30 = dma.hbm_to_vmem [thread:$0]  %s9269_s1, 512, %s25_s9, [#allocation4], %s7681_s11, %s7681_s11, %s7682_s12  }
  0x1b   :  { %s7683_s15 = smov [#allocation8]  }
  0x1c   :  { %s48_s16 = sshll.u32 %s7683_s15, 4  ;;  %s49_s16 = int_to_ptr.vmem [resolvable:$true] %s48_s16 }
  0x1d   :  { %s7597_s2 = scalar_lea.vmem %s49_s16, 4096  ;;  %p7602_p11 = scmp.lt.s32.totalorder %s49_s16, %s49_s16 }
  0x1e   :  { %p7598_p10 = scmp.ne.s32.totalorder %s49_s16, %s7597_s2  ;;  %p7603_p12 = scmp.lt.s32.totalorder %s7597_s2, %s7597_s2 }
  0x20   :  { %p7604_p13 = por %p7603_p12, %p7602_p11 }
  0x22   :  { %p7605_p0 = pnand %p7604_p13, %p7598_p10 }
  0x24   :  { %7608 = shalt.err (!%p7605_p0)
}
  0x25   :  { %54 = dma.hbm_to_vmem [thread:$0]  %s9271_s3, 4096, %s49_s16, [#allocation7], %s7678_s27, %s7678_s27, %s7679_s28  }
  0x26   :  { %7669 = dma.done.wait [#allocation4], 512  }
  0x27   :  { %7670 = vsyncadd [#allocation4], 4294966784 }
  0x28   :  { %7671 = dma.done.wait [#allocation7], 4608  }
  0x29   :  { %7672 = vsyncadd [#allocation7], 4294962688  ;;  %v9276_v0 = vmov 0   ;;  %v6364_v1 = vld [vmem:[#allocation6 + $0x4] ss:$16 sps:$4 sm:$0xff]   ;;  %vm147_vm0 = vcmask 130048   ;;  %v87_v47 = vlaneseq }
  0x2a   :  { %192 = vmatprep.mubr.bf16.mxu0 %v9276_v0  ;;  %265 = vmatprep.mubr.bf16.mxu1 %v9276_v0  ;;  %v6366_v2 = vld [vmem:[#allocation6 + $0xc] ss:$16 sps:$4 sm:$0xff]   ;;  %v6368_v3 = vld [vmem:[#allocation6] ss:$16 sps:$4 sm:$0xff]   ;;  %v6369_v4 = vld [vmem:[#allocation6 + $0x8] ss:$16 sps:$4 sm:$0xff]  }
  0x2b   :  { %6362 = vset.pattern.permute.xlu0 %v9276_v0  ;;  %6363 = vset.pattern.permute.xlu1 %v9276_v0  ;;  %v6370_v5 = vld [vmem:[#allocation3] sm:$0xff]   ;;  %v7748_v7 = vld [vmem:[#allocation8 + $0xec] ss:$16 sps:$4 sm:$0xff]   ;;  %v7753_v9 = vld [vmem:[#allocation8 + $0xe8] ss:$16 sps:$4 sm:$0xff]   ;;  %v7685_v44 = vmov 0.0|0.0  }
  0x2c   :  { %174 = vmatprep.subr.bf16.mxu0 %v6364_v1  ;;  %247 = vmatprep.subr.bf16.mxu1 %v6366_v2  ;;  %v7746_v6 = vld [vmem:[#allocation8 + $0xe4] ss:$16 sps:$4 sm:$0xff]   ;;  %v7750_v8 = vld [vmem:[#allocation8 + $0xe0] ss:$16 sps:$4 sm:$0xff]   ;;  %v7761_v11 = vld [vmem:[#allocation8 + $0xcc] ss:$16 sps:$4 sm:$0xff]  }
  0x2d   :  { %175 = vmatpush1.bf16.msra.mxu0 %v6368_v3  ;;  %248 = vmatpush1.bf16.msra.mxu1 %v6369_v4  ;;  %v7757_v10 = vld [vmem:[#allocation8 + $0xc4] ss:$16 sps:$4 sm:$0xff]   ;;  %v7763_v12 = vld [vmem:[#allocation8 + $0xc0] ss:$16 sps:$4 sm:$0xff]   ;;  %v7765_v13 = vld [vmem:[#allocation8 + $0xc8] ss:$16 sps:$4 sm:$0xff]  }
  0x2e   :  { %550 = vmatprep.subr.bf16.mxu0 %v7746_v6  ;;  %591 = vmatprep.subr.bf16.mxu1 %v7748_v7  ;;  %v6383_v14 = vld [vmem:[#allocation3 + $0x8] sm:$0xff]   ;;  %v7771_v15 = vld [vmem:[#allocation8 + $0xa4] ss:$16 sps:$4 sm:$0xff]   ;;  %v7777_v17 = vld [vmem:[#allocation8 + $0xa0] ss:$16 sps:$4 sm:$0xff]   ;;  %v7877_v48 = vshrl.u32 %v87_v47, 7 }
  0x2f   :  { %v7774_v16 = vld [vmem:[#allocation8 + $0xac] ss:$16 sps:$4 sm:$0xff]   ;;  %v7779_v18 = vld [vmem:[#allocation8 + $0xa8] ss:$16 sps:$4 sm:$0xff]   ;;  %v7783_v19 = vld [vmem:[#allocation8 + $0x84] ss:$16 sps:$4 sm:$0xff]  }
  0x30   :  { %6075 = vmatmul.mubr.msk.bf16.vlgmr.msra.gmra.mxu0 %vm147_vm0, %v6370_v5  ;;  %6079 = vmatmul.mubr.msk.bf16.vlgmr.msra.gmra.mxu1 %vm147_vm0, %v6370_v5  ;;  %v7786_v20 = vld [vmem:[#allocation8 + $0x8c] ss:$16 sps:$4 sm:$0xff]   ;;  %v7790_v21 = vld [vmem:[#allocation8 + $0x80] ss:$16 sps:$4 sm:$0xff]   ;;  %v7793_v22 = vld [vmem:[#allocation8 + $0x88] ss:$16 sps:$4 sm:$0xff]  }
  0x31   :  { %551 = vmatpush1.bf16.msra.mxu0 %v7750_v8  ;;  %592 = vmatpush1.bf16.msra.mxu1 %v7753_v9  ;;  %v7798_v23 = vld [vmem:[#allocation8 + $0x64] ss:$16 sps:$4 sm:$0xff]   ;;  %v7802_v24 = vld [vmem:[#allocation8 + $0x6c] ss:$16 sps:$4 sm:$0xff]   ;;  %v7805_v26 = vld [vmem:[#allocation8 + $0x60] ss:$16 sps:$4 sm:$0xff]  }
  0x32   :  { %552 = vmatprep.subr.bf16.mxu0 %v7757_v10  ;;  %593 = vmatprep.subr.bf16.mxu1 %v7761_v11  ;;  %v6396_v25 = vld [vmem:[#allocation3 + $0x10] sm:$0xff]   ;;  %v7809_v27 = vld [vmem:[#allocation8 + $0x68] ss:$16 sps:$4 sm:$0xff]   ;;  %v7814_v29 = vld [vmem:[#allocation8 + $0x4c] ss:$16 sps:$4 sm:$0xff]   ;;  %v89_v49 = vsub.s32 0, %v7877_v48 }
  0x33   :  { %202 = vmatprep.mubr.bf16.mxu0 %v9276_v0  ;;  %275 = vmatprep.mubr.bf16.mxu1 %v9276_v0  ;;  %v7811_v28 = vld [vmem:[#allocation8 + $0x44] ss:$16 sps:$4 sm:$0xff]   ;;  %v7819_v30 = vld [vmem:[#allocation8 + $0x40] ss:$16 sps:$4 sm:$0xff]   ;;  %v7821_v31 = vld [vmem:[#allocation8 + $0x48] ss:$16 sps:$4 sm:$0xff]  }
  0x34   :  { %v7826_v32 = vld [vmem:[#allocation8 + $0x24] ss:$16 sps:$4 sm:$0xff]   ;;  %v7830_v33 = vld [vmem:[#allocation8 + $0x2c] ss:$16 sps:$4 sm:$0xff]   ;;  %v6414_v35 = vld [vmem:[#allocation8 + $0x20] ss:$16 sps:$4 sm:$0xff]  }
  0x35   :  { %553 = vmatpush1.bf16.msra.mxu0 %v7763_v12  ;;  %594 = vmatpush1.bf16.msra.mxu1 %v7765_v13  ;;  %v6409_v34 = vld [vmem:[#allocation3 + $0x18] sm:$0xff]   ;;  %v338_v36 = vld [vmem:[%s9268_s0] sm:$0xff]  ;;  %v97_v50 = vsub.s32 2, %v7877_v48  ;;  %v93_v52 = vsub.s32 1, %v7877_v48  ;;  %v101_v53 = vsub.s32 3, %v7877_v48  ;;  %s7689_s23 = smov [#allocation12]  }
  0x36   :  { %554 = vmatprep.subr.bf16.mxu0 %v7771_v15  ;;  %595 = vmatprep.subr.bf16.mxu1 %v7774_v16  ;;  %v6415_v37 = vld [vmem:[#allocation8 + $0x28] ss:$16 sps:$4 sm:$0xff]   ;;  %v6416_v38 = vld [vmem:[#allocation8 + $0x4] ss:$16 sps:$4 sm:$0xff]   ;;  %vm6139_vm1 = vcmp.gt.s32.totalorder %v338_v36, 0  ;;  %vm6168_vm2 = vcmp.gt.s32.totalorder %v338_v36, 1 }
  0x37   :  { %v6418_v39 = vld [vmem:[#allocation8 + $0xc] ss:$16 sps:$4 sm:$0xff]   ;;  %v6420_v40 = vld [vmem:[#allocation8] ss:$16 sps:$4 sm:$0xff]   ;;  %v1028_v41 = vsel %vm6139_vm1, 1, %v9276_v0  ;;  %v1714_v43 = vsel %vm6168_vm2, 1, %v9276_v0 }
  0x38   :  { %6076 = vmatmul.mubr.msk.bf16.gmra.mxu0 %vm147_vm0, %v6383_v14  ;;  %6080 = vmatmul.mubr.msk.bf16.gmra.mxu1 %vm147_vm0, %v6383_v14  ;;  %v6421_v42 = vld [vmem:[#allocation8 + $0x8] ss:$16 sps:$4 sm:$0xff]   ;;  %vm6255_vm3 = vcmp.gt.s32.totalorder %v338_v36, 4  ;;  %vm6313_vm4 = vcmp.gt.s32.totalorder %v338_v36, 6  ;;  %v85_v51 = vld [vmem:[%s9272_s4] sm:$0xf] }
  0x39   :  { %555 = vmatpush1.bf16.msra.mxu0 %v7777_v17  ;;  %212 = vmatprep.mubr.bf16.mxu0 %v9276_v0  ;;  %v3772_v45 = vsel %vm6255_vm3, 1, %v9276_v0  ;;  %v5144_v46 = vsel %vm6313_vm4, 1, %v9276_v0  ;;  %v7886_v54 = vrot.slane %v85_v51, %v89_v49  ;;  %v7888_v55 = vrot.slane %v85_v51, %v97_v50  ;;  %s6050_s24 = sshll.u32 %s7689_s23, 4  ;;  %s6051_s24 = int_to_ptr.vmem [resolvable:$true] %s6050_s24 }
  0x3a   :  { %596 = vmatpush1.bf16.msra.mxu1 %v7779_v18  ;;  %556 = vmatprep.subr.bf16.mxu0 %v7783_v19  ;;  %v7890_v56 = vrot.slane %v85_v51, %v93_v52  ;;  %v7892_v57 = vrot.slane %v85_v51, %v101_v53  ;;  %v7686_v47 = vmov 1966171168  }
  0x3b   :  { %597 = vmatprep.subr.bf16.mxu1 %v7786_v20  ;;  %285 = vmatprep.mubr.bf16.mxu1 %v9276_v0  ;;  %v641_v49 = vunpack.c.l.s4 %v7686_v47 }
  0x3c   :  { %1030 = vperm.xlu0 %6362, %v1028_v41  }
  0x3d   :  { %557 = vmatpush1.bf16.msra.mxu0 %v7790_v21 }
  0x3e   :  { %598 = vmatpush1.bf16.msra.mxu1 %v7793_v22  ;;  %558 = vmatprep.subr.bf16.mxu0 %v7798_v23 }
  0x3f   :  { %599 = vmatprep.subr.bf16.mxu1 %v7802_v24 }
  0x40   :  { %6077 = vmatmul.mubr.msk.bf16.gmra.mxu0 %vm147_vm0, %v6396_v25  ;;  %6081 = vmatmul.mubr.msk.bf16.gmra.mxu1 %vm147_vm0, %v6396_v25 }
  0x41   :  { %559 = vmatpush1.bf16.msra.mxu0 %v7805_v26  ;;  %222 = vmatprep.mubr.bf16.mxu0 %v9276_v0 }
  0x42   :  { %600 = vmatpush1.bf16.msra.mxu1 %v7809_v27  ;;  %560 = vmatprep.subr.bf16.mxu0 %v7811_v28 }
  0x43   :  { %601 = vmatprep.subr.bf16.mxu1 %v7814_v29  ;;  %295 = vmatprep.mubr.bf16.mxu1 %v9276_v0 }
  0x44   :  { %1716 = vperm.xlu0 %6362, %v1714_v43  }
  0x45   :  { %561 = vmatpush1.bf16.msra.mxu0 %v7819_v30 }
  0x46   :  { %602 = vmatpush1.bf16.msra.mxu1 %v7821_v31  ;;  %562 = vmatprep.subr.bf16.mxu0 %v7826_v32 }
  0x47   :  { %603 = vmatprep.subr.bf16.mxu1 %v7830_v33 }
  0x48   :  { %6078 = vmatmul.mubr.msk.bf16.gmra.mxu0 %vm147_vm0, %v6409_v34  ;;  %6082 = vmatmul.mubr.msk.bf16.gmra.mxu1 %vm147_vm0, %v6409_v34 }
  0x49   :  { %563 = vmatpush1.bf16.msra.mxu0 %v6414_v35  ;;  %582 = vmatprep.mubr.bf16.mxu0 %v9276_v0 }
  0x4a   :  { %604 = vmatpush1.bf16.msra.mxu1 %v6415_v37  ;;  %564 = vmatprep.subr.bf16.mxu0 %v6416_v38 }
  0x4b   :  { %605 = vmatprep.subr.bf16.mxu1 %v6418_v39  ;;  %623 = vmatprep.mubr.bf16.mxu1 %v9276_v0 }
  0x4c   :  { %3774 = vperm.xlu0 %6362, %v3772_v45  }
  0x4d   :  { %565 = vmatpush1.bf16.msra.mxu0 %v6420_v40 }
  0x4e   :  { %606 = vmatpush1.bf16.msra.mxu1 %v6421_v42  ;;  %1235 = vmatprep.subr.bf16.mxu0 %v7746_v6 }
  0x4f   :  { %1276 = vmatprep.subr.bf16.mxu1 %v7748_v7 }
  0x50   :  { %583 = vmatmul.mubr.bf16.vlgmr.msra.gmra.mxu0 %v7685_v44  ;;  %5146 = vperm.xlu0 %6362, %v5144_v46  }
  0x51   :  { %624 = vmatmul.mubr.bf16.vlgmr.msra.gmra.mxu1 %v7685_v44  ;;  %1236 = vmatpush1.bf16.msra.mxu0 %v7750_v8 }
  0x52   :  { %1277 = vmatpush1.bf16.msra.mxu1 %v7753_v9  ;;  %1237 = vmatprep.subr.bf16.mxu0 %v7757_v10 }
  0x53   :  { %1278 = vmatprep.subr.bf16.mxu1 %v7761_v11  ;;  %1267 = vmatprep.mubr.bf16.mxu0 %v9276_v0 }
  0x54   :  { %1308 = vmatprep.mubr.bf16.mxu1 %v9276_v0 }
  0x55   :  { %1238 = vmatpush1.bf16.msra.mxu0 %v7763_v12 }
  0x56   :  { %1279 = vmatpush1.bf16.msra.mxu1 %v7765_v13  ;;  %1239 = vmatprep.subr.bf16.mxu0 %v7771_v15 }
  0x57   :  { %1280 = vmatprep.subr.bf16.mxu1 %v7774_v16 }
  0x59   :  { %1240 = vmatpush1.bf16.msra.mxu0 %v7777_v17 }
  0x5a   :  { %1281 = vmatpush1.bf16.msra.mxu1 %v7779_v18  ;;  %1241 = vmatprep.subr.bf16.mxu0 %v7783_v19 }
  0x5b   :  { %1282 = vmatprep.subr.bf16.mxu1 %v7786_v20 }
  0x5d   :  { %1242 = vmatpush1.bf16.msra.mxu0 %v7790_v21 }
  0x5e   :  { %1283 = vmatpush1.bf16.msra.mxu1 %v7793_v22  ;;  %1243 = vmatprep.subr.bf16.mxu0 %v7798_v23 }
  0x5f   :  { %1284 = vmatprep.subr.bf16.mxu1 %v7802_v24 }
  0x61   :  { %1244 = vmatpush1.bf16.msra.mxu0 %v7805_v26 }
  0x62   :  { %1285 = vmatpush1.bf16.msra.mxu1 %v7809_v27  ;;  %1245 = vmatprep.subr.bf16.mxu0 %v7811_v28 }
  0x63   :  { %1286 = vmatprep.subr.bf16.mxu1 %v7814_v29 }
  0x65   :  { %1246 = vmatpush1.bf16.msra.mxu0 %v7819_v30 }
  0x66   :  { %1287 = vmatpush1.bf16.msra.mxu1 %v7821_v31  ;;  %1247 = vmatprep.subr.bf16.mxu0 %v7826_v32 }
  0x67   :  { %1288 = vmatprep.subr.bf16.mxu1 %v7830_v33 }
  0x69   :  { %1248 = vmatpush1.bf16.msra.mxu0 %v6414_v35 }
  0x6a   :  { %1289 = vmatpush1.bf16.msra.mxu1 %v6415_v37  ;;  %1249 = vmatprep.subr.bf16.mxu0 %v6416_v38 }
  0x6b   :  { %1290 = vmatprep.subr.bf16.mxu1 %v6418_v39 }
  0x6d   :  { %1250 = vmatpush1.bf16.msra.mxu0 %v6420_v40 }
  0x6e   :  { %1291 = vmatpush1.bf16.msra.mxu1 %v6421_v42  ;;  %1921 = vmatprep.subr.bf16.mxu0 %v7746_v6 }
  0x6f   :  { %1962 = vmatprep.subr.bf16.mxu1 %v7748_v7 }
  0xf0   :  { %v194_v58 = vpop.f32.mrf.mxu0  ;;  %v267_v59 = vpop.f32.mrf.mxu1 }
  0xf1   :  { %v195_v60 = vadd.f32 %v194_v58, %v7886_v54  ;;  %v268_v61 = vadd.f32 %v267_v59, %v7888_v55 }
  0xf2   :  { %v196_v62 = vpop.f32.mrf.mxu0  ;;  %v269_v63 = vpop.f32.mrf.mxu1 }
  0xf3   :  { %306 = vst [vmem:[#allocation2] sm:$0xff] %v195_v60  ;;  %308 = vst [vmem:[#allocation2 + $0x10] sm:$0xff] %v268_v61  ;;  %v197_v1 = vadd.f32 %v196_v62, %v7890_v56  ;;  %v270_v2 = vadd.f32 %v269_v63, %v7892_v57  ;;  %v642_v62 = vunpack.c.0.s8 %v641_v49 }
  0xf4   :  { %v198_v3 = vpop.f32.mrf.mxu0  ;;  %v271_v4 = vpop.f32.mrf.mxu1 }
  0xf5   :  { %307 = vst [vmem:[#allocation2 + $0x8] sm:$0xff] %v197_v1  ;;  %309 = vst [vmem:[#allocation2 + $0x18] sm:$0xff] %v270_v2  ;;  %v199_v5 = vadd.f32 %v198_v3, %v7886_v54  ;;  %v272_v6 = vadd.f32 %v271_v4, %v7888_v55 }
  0xf6   :  { %v200_v7 = vpop.f32.mrf.mxu0  ;;  %v273_v8 = vpop.f32.mrf.mxu1 }
  0xf7   :  { %310 = vst [vmem:[#allocation2 + $0x20] sm:$0xff] %v199_v5  ;;  %312 = vst [vmem:[#allocation2 + $0x30] sm:$0xff] %v272_v6  ;;  %v201_v9 = vadd.f32 %v200_v7, %v7890_v56  ;;  %v274_v10 = vadd.f32 %v273_v8, %v7892_v57  ;;  %v7927_v6 = vsub.s32 %v642_v62, %v7877_v48 }
  0xf8   :  { %v204_v11 = vpop.f32.mrf.mxu0  ;;  %v277_v12 = vpop.f32.mrf.mxu1 }
  0xf9   :  { %311 = vst [vmem:[#allocation2 + $0x28] sm:$0xff] %v201_v9  ;;  %313 = vst [vmem:[#allocation2 + $0x38] sm:$0xff] %v274_v10  ;;  %v205_v13 = vadd.f32 %v204_v11, %v7886_v54  ;;  %v278_v14 = vadd.f32 %v277_v12, %v7888_v55 }
  0xfa   :  { %v206_v15 = vpop.f32.mrf.mxu0  ;;  %v279_v16 = vpop.f32.mrf.mxu1 }
  0xfb   :  { %314 = vst [vmem:[#allocation2 + $0x40] sm:$0xff] %v205_v13  ;;  %316 = vst [vmem:[#allocation2 + $0x50] sm:$0xff] %v278_v14  ;;  %v207_v17 = vadd.f32 %v206_v15, %v7890_v56  ;;  %v280_v18 = vadd.f32 %v279_v16, %v7892_v57 }
  0xfc   :  { %v208_v19 = vpop.f32.mrf.mxu0  ;;  %v281_v20 = vpop.f32.mrf.mxu1 }
  0xfd   :  { %315 = vst [vmem:[#allocation2 + $0x48] sm:$0xff] %v207_v17  ;;  %317 = vst [vmem:[#allocation2 + $0x58] sm:$0xff] %v280_v18  ;;  %v209_v21 = vadd.f32 %v208_v19, %v7886_v54  ;;  %v282_v22 = vadd.f32 %v281_v20, %v7888_v55 }
  0xfe   :  { %v210_v23 = vpop.f32.mrf.mxu0  ;;  %v283_v24 = vpop.f32.mrf.mxu1 }
  0xff   :  { %318 = vst [vmem:[#allocation2 + $0x60] sm:$0xff] %v209_v21  ;;  %320 = vst [vmem:[#allocation2 + $0x70] sm:$0xff] %v282_v22  ;;  %v211_v25 = vadd.f32 %v210_v23, %v7890_v56  ;;  %v284_v26 = vadd.f32 %v283_v24, %v7892_v57  ;;  %v374_v24 = vld [vmem:[#allocation2] ss:$8 sm:$0xf] }
 0x100   :  { %v214_v27 = vpop.f32.mrf.mxu0  ;;  %v287_v28 = vpop.f32.mrf.mxu1 }
 0x101   :  { %319 = vst [vmem:[#allocation2 + $0x68] sm:$0xff] %v211_v25  ;;  %321 = vst [vmem:[#allocation2 + $0x78] sm:$0xff] %v284_v26  ;;  %v215_v29 = vadd.f32 %v214_v27, %v7886_v54  ;;  %v288_v30 = vadd.f32 %v287_v28, %v7888_v55  ;;  %v376_v25 = vld [vmem:[#allocation2 + $0x20] ss:$8 sm:$0xf] }
 0x102   :  { %v216_v31 = vpop.f32.mrf.mxu0  ;;  %v289_v32 = vpop.f32.mrf.mxu1 }
 0x103   :  { %322 = vst [vmem:[#allocation2 + $0x80] sm:$0xff] %v215_v29  ;;  %324 = vst [vmem:[#allocation2 + $0x90] sm:$0xff] %v288_v30  ;;  %v217_v33 = vadd.f32 %v216_v31, %v7890_v56  ;;  %v290_v34 = vadd.f32 %v289_v32, %v7892_v57 }
 0x104   :  { %v218_v35 = vpop.f32.mrf.mxu0  ;;  %v291_v36 = vpop.f32.mrf.mxu1  ;;  %v378_v26 = vld [vmem:[#allocation2 + $0x40] ss:$8 sm:$0xf] }
 0x105   :  { %323 = vst [vmem:[#allocation2 + $0x88] sm:$0xff] %v217_v33  ;;  %325 = vst [vmem:[#allocation2 + $0x98] sm:$0xff] %v290_v34  ;;  %v219_v37 = vadd.f32 %v218_v35, %v7886_v54  ;;  %v292_v38 = vadd.f32 %v291_v36, %v7888_v55 }
 0x106   :  { %v220_v39 = vpop.f32.mrf.mxu0  ;;  %v293_v40 = vpop.f32.mrf.mxu1 }
 0x107   :  { %326 = vst [vmem:[#allocation2 + $0xa0] sm:$0xff] %v219_v37  ;;  %328 = vst [vmem:[#allocation2 + $0xb0] sm:$0xff] %v292_v38  ;;  %v221_v41 = vadd.f32 %v220_v39, %v7890_v56  ;;  %v294_v42 = vadd.f32 %v293_v40, %v7892_v57 }
 0x108   :  { %v224_v43 = vpop.f32.mrf.mxu0  ;;  %v297_v44 = vpop.f32.mrf.mxu1  ;;  %v380_v32 = vld [vmem:[#allocation2 + $0x60] ss:$8 sm:$0xf] }
 0x109   :  { %327 = vst [vmem:[#allocation2 + $0xa8] sm:$0xff] %v221_v41  ;;  %329 = vst [vmem:[#allocation2 + $0xb8] sm:$0xff] %v294_v42  ;;  %v225_v45 = vadd.f32 %v224_v43, %v7886_v54  ;;  %v298_v46 = vadd.f32 %v297_v44, %v7888_v55 }
 0x10a   :  { %v226_v50 = vpop.f32.mrf.mxu0  ;;  %v299_v51 = vpop.f32.mrf.mxu1 }
 0x10b   :  { %330 = vst [vmem:[#allocation2 + $0xc0] sm:$0xff] %v225_v45  ;;  %332 = vst [vmem:[#allocation2 + $0xd0] sm:$0xff] %v298_v46  ;;  %v227_v52 = vadd.f32 %v226_v50, %v7890_v56  ;;  %v300_v53 = vadd.f32 %v299_v51, %v7892_v57 }
 0x10c   :  { %v228_v58 = vpop.f32.mrf.mxu0  ;;  %v301_v59 = vpop.f32.mrf.mxu1  ;;  %v382_v27 = vld [vmem:[#allocation2 + $0x80] ss:$8 sm:$0xf] }
 0x10d   :  { %331 = vst [vmem:[#allocation2 + $0xc8] sm:$0xff] %v227_v52  ;;  %333 = vst [vmem:[#allocation2 + $0xd8] sm:$0xff] %v300_v53  ;;  %v229_v60 = vadd.f32 %v228_v58, %v7886_v54  ;;  %v302_v61 = vadd.f32 %v301_v59, %v7888_v55 }
 0x10e   :  { %v230_v63 = vpop.f32.mrf.mxu0  ;;  %v303_v1 = vpop.f32.mrf.mxu1 }
 0x10f   :  { %334 = vst [vmem:[#allocation2 + $0xe0] sm:$0xff] %v229_v60  ;;  %336 = vst [vmem:[#allocation2 + $0xf0] sm:$0xff] %v302_v61  ;;  %v231_v2 = vadd.f32 %v230_v63, %v7890_v56  ;;  %v304_v3 = vadd.f32 %v303_v1, %v7892_v57 }
 0x110   :  { %v584_v4 = vpop.f32.mrf.mxu0  ;;  %v384_v33 = vld [vmem:[#allocation2 + $0xa0] ss:$8 sm:$0xf] }
 0x111   :  { %335 = vst [vmem:[#allocation2 + $0xe8] sm:$0xff] %v231_v2  ;;  %337 = vst [vmem:[#allocation2 + $0xf8] sm:$0xff] %v304_v3  ;;  %v625_v5 = vpop.f32.mrf.mxu1 }
 0x112   :  { %v586_v7 = vpop.f32.mrf.mxu0 }
 0x113   :  { %v636_v54 = vcombine.low %v584_v4, %v586_v7  ;;  %v637_v8 = vcombine.high %v584_v4, %v586_v7  ;;  %v627_v55 = vpop.f32.mrf.mxu1 }
 0x114   :  { %v638_v9 = vcombine.low %v625_v5, %v627_v55  ;;  %v639_v10 = vcombine.high %v625_v5, %v627_v55  ;;  %v588_v11 = vpop.f32.mrf.mxu0  ;;  %v386_v37 = vld [vmem:[#allocation2 + $0xc0] ss:$8 sm:$0xf] }
 0x115   :  { %v646_v12 = vrot.slane %v636_v54, %v7927_v6  ;;  %v653_v56 = vrot.slane %v637_v8, %v7927_v6  ;;  %v629_v13 = vpop.f32.mrf.mxu1 }
 0x116   :  { %v660_v57 = vrot.slane %v638_v9, %v7927_v6  ;;  %v667_v14 = vrot.slane %v639_v10, %v7927_v6  ;;  %v589_v15 = vpop.f32.mrf.mxu0 }
 0x117   :  { %v630_v16 = vpop.f32.mrf.mxu1 }
 0x118   :  { %v668_v48 = vcombine.low %v646_v12, %v660_v57  ;;  %v669_v17 = vcombine.high %v646_v12, %v660_v57  ;;  %v670_v18 = vcombine.low %v653_v56, %v667_v14  ;;  %v671_v19 = vcombine.high %v653_v56, %v667_v14  ;;  %v388_v38 = vld [vmem:[#allocation2 + $0xe0] ss:$8 sm:$0xf] }
 0x11a   :  { %v678_v20 = vrot.slane %v668_v48, %v7927_v6  ;;  %v685_v21 = vrot.slane %v670_v18, %v7927_v6  ;;  %v692_v22 = vrot.slane %v669_v17, %v7927_v6  ;;  %v699_v23 = vrot.slane %v671_v19, %v7927_v6 }
 0x11c   :  { %v700_v28 = vcombine.high %v678_v20, %v678_v20  ;;  %v701_v29 = vcombine.high %v685_v21, %v685_v21  ;;  %v702_v30 = vcombine.high %v692_v22, %v692_v22  ;;  %v703_v31 = vcombine.high %v699_v23, %v699_v23 }
 0x11d   :  { %v7937_v34 = vadd.f32 %v678_v20, %v374_v24  ;;  %v7939_v35 = vadd.f32 %v692_v22, %v376_v25  ;;  %v7941_v36 = vadd.f32 %v685_v21, %v382_v27  ;;  %v7947_v41 = vadd.f32 %v699_v23, %v384_v33 }
 0x11e   :  { %v7943_v39 = vadd.f32 %v700_v28, %v378_v26  ;;  %v7945_v40 = vadd.f32 %v702_v30, %v380_v32  ;;  %v7949_v42 = vadd.f32 %v701_v29, %v386_v37  ;;  %v7953_v45 = vadd.f32 %v703_v31, %v388_v38 }
 0x11f   :  { %v6115_v43 = vmul.f32 -1.442695, %v7937_v34  ;;  %v6116_v44 = vmul.f32 -1.442695, %v7939_v35  ;;  %v6119_v49 = vmul.f32 -1.442695, %v7941_v36 }
 0x120   :  { %v6117_v46 = vmul.f32 -1.442695, %v7943_v39  ;;  %v6118_v47 = vmul.f32 -1.442695, %v7945_v40  ;;  %v776_v50 = vrot.slane %v7937_v34, 1  ;;  %v777_v52 = vrot.slane %v7939_v35, 1 }
 0x121   :  { %6422 = vpow2.f32 %v6115_v43  ;;  %v6120_v51 = vmul.f32 -1.442695, %v7947_v41  ;;  %v6121_v53 = vmul.f32 -1.442695, %v7949_v42  ;;  %v778_v58 = vrot.slane %v7943_v39, 1 }
 0x122   :  { %6424 = vpow2.f32 %v6116_v44  ;;  %v6122_v59 = vmul.f32 -1.442695, %v7953_v45  ;;  %v779_v60 = vrot.slane %v7945_v40, 1  ;;  %v780_v61 = vrot.slane %v7941_v36, 1 }
 0x123   :  { %6426 = vpow2.f32 %v6117_v46  ;;  %v6123_v62 = vmul.f32 -1.442695, %v776_v50  ;;  %v781_v63 = vrot.slane %v7947_v41, 1  ;;  %v6124_v1 = vmul.f32 -1.442695, %v777_v52 }
 0x124   :  { %6428 = vpow2.f32 %v6118_v47  ;;  %v782_v2 = vrot.slane %v7949_v42, 1  ;;  %v6125_v3 = vmul.f32 -1.442695, %v778_v58  ;;  %v783_v4 = vrot.slane %v7953_v45, 1 }
 0x125   :  { %6430 = vpow2.f32 %v6119_v49  ;;  %v6126_v5 = vmul.f32 -1.442695, %v779_v60  ;;  %v6127_v7 = vmul.f32 -1.442695, %v780_v61  ;;  %v6128_v54 = vmul.f32 -1.442695, %v781_v63 }
 0x126   :  { %6432 = vpow2.f32 %v6120_v51  ;;  %v6129_v8 = vmul.f32 -1.442695, %v782_v2  ;;  %v6130_v55 = vmul.f32 -1.442695, %v783_v4  ;;  %v840_v44 = vrot.slane %v7937_v34, 2 }
 0x127   :  { %6434 = vpow2.f32 %v6121_v53  ;;  %v841_v49 = vrot.slane %v7939_v35, 2  ;;  %v842_v51 = vrot.slane %v7943_v39, 2  ;;  %v7687_v52 = vmov 0.0  }
 0x128   :  { %6436 = vpow2.f32 %v6122_v59  ;;  %v929_v53 = vcombine.high %v7687_v52, %v7687_v52  ;;  %v843_v59 = vrot.slane %v7945_v40, 2  ;;  %v936_v60 = vrot.slane %v7687_v52, %v7927_v6 }
 0x129   :  { %6438 = vpow2.f32 %v6123_v62  ;;  %v844_v62 = vrot.slane %v7941_v36, 2  ;;  %v864_v63 = vrot.slane %v7937_v34, 3  ;;  %v845_v2 = vrot.slane %v7947_v41, 2 }
 0x12a   :  { %6440 = vpow2.f32 %v6124_v1  ;;  %v847_v34 = vrot.slane %v7953_v45, 2 }
 0x12b   :  { %6442 = vpow2.f32 %v6125_v3  ;;  %v865_v3 = vrot.slane %v7939_v35, 3  ;;  %v868_v35 = vrot.slane %v7941_v36, 3 }
 0x12c   :  { %6444 = vpow2.f32 %v6126_v5  ;;  %v846_v5 = vrot.slane %v7949_v42, 2 }
 0x12d   :  { %6446 = vpow2.f32 %v6127_v7  ;;  %v866_v7 = vrot.slane %v7943_v39, 3  ;;  %v869_v39 = vrot.slane %v7947_v41, 3 }
 0x12e   :  { %v6423_v9 = vpop.eup %6422  ;;  %6448 = vpow2.f32 %v6128_v54  ;;  %v943_v54 = vrot.slane %v929_v53, %v7927_v6 }
 0x12f   :  { %v6425_v10 = vpop.eup %6424  ;;  %v744_v11 = vadd.f32 1.0, %v6423_v9  ;;  %6450 = vpow2.f32 %v6129_v8  ;;  %v944_v9 = vcombine.high %v936_v60, %v936_v60 }
 0x130   :  { %v6427_v12 = vpop.eup %6426  ;;  %v745_v56 = vadd.f32 1.0, %v6425_v10  ;;  %6452 = vpow2.f32 %v6130_v55  ;;  %v867_v55 = vrot.slane %v7945_v40, 3  ;;  %v945_v40 = vcombine.high %v943_v54, %v943_v54 }
 0x131   :  { %v6429_v13 = vpop.eup %6428  ;;  %v746_v57 = vadd.f32 1.0, %v6427_v12  ;;  %6454 = vrcp.f32 %v744_v11  ;;  %v6131_v11 = vmul.f32 -1.442695, %v864_v63  ;;  %v966_v36 = vrot.slane %v944_v9, %v7927_v6 }
 0x132   :  { %v6431_v14 = vpop.eup %6430  ;;  %v747_v15 = vadd.f32 1.0, %v6429_v13  ;;  %6456 = vrcp.f32 %v745_v56  ;;  %v6132_v56 = vmul.f32 -1.442695, %v865_v3  ;;  %v952_v13 = vrot.slane %v936_v60, %v7927_v6 }
 0x133   :  { %v6433_v16 = vpop.eup %6432  ;;  %v748_v48 = vadd.f32 1.0, %v6431_v14  ;;  %6458 = vrcp.f32 %v746_v57  ;;  %v870_v14 = vrot.slane %v7949_v42, 3 }
 0x134   :  { %v6435_v17 = vpop.eup %6434  ;;  %v749_v18 = vadd.f32 1.0, %v6433_v16  ;;  %6460 = vrcp.f32 %v747_v15  ;;  %v6133_v15 = vmul.f32 -1.442695, %v866_v7 }
 0x135   :  { %v6437_v19 = vpop.eup %6436  ;;  %v750_v20 = vadd.f32 1.0, %v6435_v17  ;;  %6462 = vrcp.f32 %v748_v48  ;;  %v871_v48 = vrot.slane %v7953_v45, 3  ;;  %v6134_v17 = vmul.f32 -1.442695, %v867_v55 }
 0x136   :  { %v6439_v21 = vpop.eup %6438  ;;  %v751_v22 = vadd.f32 1.0, %v6437_v19  ;;  %6464 = vrcp.f32 %v749_v18  ;;  %v6135_v19 = vmul.f32 -1.442695, %v868_v35  ;;  %v6137_v42 = vmul.f32 -1.442695, %v870_v14 }
 0x137   :  { %v6441_v23 = vpop.eup %6440  ;;  %6466 = vrcp.f32 %v750_v20  ;;  %v816_v24 = vadd.f32 1.0, %v6439_v21  ;;  %v6136_v20 = vmul.f32 -1.442695, %v869_v39  ;;  %v959_v21 = vrot.slane %v943_v54, %v7927_v6 }
 0x138   :  { %v6443_v25 = vpop.eup %6442  ;;  %6468 = vrcp.f32 %v751_v22  ;;  %v817_v26 = vadd.f32 1.0, %v6441_v23  ;;  %v973_v23 = vrot.slane %v945_v40, %v7927_v6  ;;  %v6138_v45 = vmul.f32 -1.442695, %v871_v48 }
 0x139   :  { %v6445_v27 = vpop.eup %6444  ;;  %v818_v28 = vadd.f32 1.0, %v6443_v25  ;;  %6470 = vrcp.f32 %v816_v24  ;;  %v974_v24 = vcombine.high %v952_v13, %v952_v13 }
 0x13a   :  { %v6447_v29 = vpop.eup %6446  ;;  %v819_v30 = vadd.f32 1.0, %v6445_v27  ;;  %6472 = vrcp.f32 %v817_v26  ;;  %v976_v26 = vcombine.high %v966_v36, %v966_v36 }
 0x13b   :  { %v6449_v31 = vpop.eup %6448  ;;  %v820_v32 = vadd.f32 1.0, %v6447_v29  ;;  %6474 = vrcp.f32 %v818_v28 }
 0x13c   :  { %v6451_v33 = vpop.eup %6450  ;;  %v821_v37 = vadd.f32 1.0, %v6449_v31  ;;  %6476 = vrcp.f32 %v819_v30  ;;  %v975_v30 = vcombine.high %v959_v21, %v959_v21 }
 0x13d   :  { %v6453_v38 = vpop.eup %6452  ;;  %v822_v43 = vadd.f32 1.0, %v6451_v33  ;;  %6478 = vrcp.f32 %v820_v32  ;;  %v977_v33 = vcombine.high %v973_v23, %v973_v23 }
 0x13e   :  { %v7970_v46 = vpop.eup %6454  ;;  %v823_v47 = vadd.f32 1.0, %v6453_v38  ;;  %6480 = vrcp.f32 %v821_v37 }
 0x13f   :  { %v7973_v50 = vpop.eup %6456  ;;  %6482 = vrcp.f32 %v822_v43 }
 0x140   :  { %v7976_v58 = vpop.eup %6458  ;;  %6484 = vrcp.f32 %v823_v47 }
 0x141   :  { %v7980_v61 = vpop.eup %6460  ;;  %6486 = vtanh.f32 %v840_v44 }
 0x142   :  { %v7984_v1 = vpop.eup %6462  ;;  %6488 = vtanh.f32 %v841_v49 }
 0x143   :  { %v7988_v4 = vpop.eup %6464  ;;  %6490 = vtanh.f32 %v842_v51 }
 0x144   :  { %v7993_v8 = vpop.eup %6466  ;;  %6492 = vtanh.f32 %v843_v59 }
 0x145   :  { %v7997_v10 = vpop.eup %6468  ;;  %6494 = vtanh.f32 %v844_v62 }
 0x146   :  { %v6471_v12 = vpop.eup %6470  ;;  %6496 = vtanh.f32 %v845_v2 }
 0x147   :  { %v6473_v57 = vpop.eup %6472  ;;  %6498 = vtanh.f32 %v846_v5  ;;  %v986_v28 = vmul.f32 %v6471_v12, %v952_v13 }
 0x148   :  { %v6475_v16 = vpop.eup %6474  ;;  %6500 = vtanh.f32 %v847_v34  ;;  %v987_v31 = vmul.f32 %v6473_v57, %v966_v36 }
 0x149   :  { %v6477_v18 = vpop.eup %6476  ;;  %6502 = vpow2.f32 %v6131_v11  ;;  %v988_v37 = vmul.f32 %v6475_v16, %v974_v24 }
 0x14a   :  { %v6479_v41 = vpop.eup %6478  ;;  %6504 = vpow2.f32 %v6132_v56  ;;  %v989_v44 = vmul.f32 %v6477_v18, %v976_v26 }
 0x14b   :  { %v6481_v22 = vpop.eup %6480  ;;  %6506 = vpow2.f32 %v6133_v15  ;;  %v990_v51 = vmul.f32 %v6479_v41, %v959_v21 }
 0x14c   :  { %v6483_v25 = vpop.eup %6482  ;;  %6508 = vpow2.f32 %v6134_v17  ;;  %v991_v60 = vmul.f32 %v6481_v22, %v973_v23 }
 0x14d   :  { %v6485_v27 = vpop.eup %6484  ;;  %6510 = vpow2.f32 %v6135_v19  ;;  %v992_v62 = vmul.f32 %v6483_v25, %v975_v30 }
 0x14e   :  { %v6487_v29 = vpop.eup %6486  ;;  %6512 = vpow2.f32 %v6136_v20  ;;  %v993_v5 = vmul.f32 %v6485_v27, %v977_v33 }
 0x14f   :  { %v6489_v32 = vpop.eup %6488  ;;  %6514 = vpow2.f32 %v6137_v42  ;;  %v994_v38 = vmul.f32 %v6487_v29, %v7970_v46 }
 0x150   :  { %v6491_v43 = vpop.eup %6490  ;;  %6516 = vpow2.f32 %v6138_v45  ;;  %v995_v47 = vmul.f32 %v6489_v32, %v7973_v50  ;;  %v1031_v45 = vpop.permute.xlu0 %1030 }
 0x151   :  { %v6493_v49 = vpop.eup %6492  ;;  %v996_v52 = vmul.f32 %v6491_v43, %v7976_v58  ;;  %v1002_v53 = vadd.f32 %v994_v38, %v986_v28  ;;  %vm1032_vm5 = vcmp.eq.s32.totalorder %v1031_v45, 1  ;;  %v8061_v45 = vld [vmem:[#allocation8 + $0xc8] ss:$16 sps:$4 sm:$0xff]  }
 0x152   :  { %v6495_v59 = vpop.eup %6494  ;;  %v997_v63 = vmul.f32 %v6493_v49, %v7980_v61  ;;  %v1003_v2 = vadd.f32 %v995_v47, %v987_v31  ;;  %vm7543_vm6 = vmpackc.low %vm1032_vm5, %vm1032_vm5 }
 0x153   :  { %v6497_v3 = vpop.eup %6496  ;;  %v998_v46 = vmul.f32 %v6495_v59, %v7984_v1  ;;  %v1004_v7 = vadd.f32 %v996_v52, %v988_v37  ;;  %6518 = vtanh.f32 %v1002_v53 }
 0x154   :  { %v6499_v54 = vpop.eup %6498  ;;  %v999_v50 = vmul.f32 %v6497_v3, %v7988_v4  ;;  %v1005_v34 = vadd.f32 %v997_v63, %v989_v44  ;;  %6520 = vtanh.f32 %v1003_v2  ;;  %v1167_v55 = vcombine.low %v1002_v53, %v1003_v2 }
 0x155   :  { %v6501_v58 = vpop.eup %6500  ;;  %v1000_v9 = vmul.f32 %v6499_v54, %v7993_v8  ;;  %v1006_v35 = vadd.f32 %v998_v46, %v990_v51  ;;  %6522 = vtanh.f32 %v1004_v7 }
 0x156   :  { %v6503_v11 = vpop.eup %6502  ;;  %v1001_v61 = vmul.f32 %v6501_v58, %v7997_v10  ;;  %v1007_v12 = vadd.f32 %v999_v50, %v991_v60  ;;  %6524 = vtanh.f32 %v1005_v34  ;;  %v1168_v39 = vcombine.low %v1004_v7, %v1005_v34 }
 0x157   :  { %v6505_v1 = vpop.eup %6504  ;;  %v904_v56 = vadd.f32 1.0, %v6503_v11  ;;  %v1008_v13 = vadd.f32 %v1000_v9, %v992_v62  ;;  %6526 = vtanh.f32 %v1006_v35  ;;  %v1177_v8 = vrot.slane %v1167_v55, %v7927_v6 }
 0x158   :  { %v6507_v57 = vpop.eup %6506  ;;  %v905_v4 = vadd.f32 1.0, %v6505_v1  ;;  %v1009_v14 = vadd.f32 %v1001_v61, %v993_v5  ;;  %6528 = vtanh.f32 %v1007_v12  ;;  %v1169_v15 = vcombine.low %v1006_v35, %v1007_v12 }
 0x159   :  { %v6509_v40 = vpop.eup %6508  ;;  %v906_v16 = vadd.f32 1.0, %v6507_v57  ;;  %6530 = vrcp.f32 %v904_v56  ;;  %v1184_v48 = vrot.slane %v1168_v39, %v7927_v6 }
 0x15a   :  { %v6511_v10 = vpop.eup %6510  ;;  %v907_v17 = vadd.f32 1.0, %v6509_v40  ;;  %6532 = vrcp.f32 %v905_v4  ;;  %v1170_v36 = vcombine.low %v1008_v13, %v1009_v14  ;;  %v1191_v22 = vrot.slane %v1169_v15, %v7927_v6 }
 0x15b   :  { %v6513_v18 = vpop.eup %6512  ;;  %v908_v19 = vadd.f32 1.0, %v6511_v10  ;;  %6534 = vrcp.f32 %v906_v16  ;;  %v1199_v41 = vcombine.low %v1177_v8, %v1184_v48 }
 0x15c   :  { %v6515_v20 = vpop.eup %6514  ;;  %v909_v21 = vadd.f32 1.0, %v6513_v18  ;;  %6536 = vrcp.f32 %v907_v17  ;;  %v1198_v42 = vrot.slane %v1170_v36, %v7927_v6  ;;  %v8041_v17 = vld [vmem:[#allocation8 + $0xe0] ss:$16 sps:$4 sm:$0xff]   ;;  %v8044_v36 = vld [vmem:[#allocation8 + $0xe8] ss:$16 sps:$4 sm:$0xff]  }
 0x15d   :  { %v6517_v23 = vpop.eup %6516  ;;  %v910_v24 = vadd.f32 1.0, %v6515_v20  ;;  %6538 = vrcp.f32 %v908_v19  ;;  %v1207_v27 = vrot.slane %v1199_v41, %v7927_v6 }
 0x15e   :  { %v911_v25 = vadd.f32 1.0, %v6517_v23  ;;  %6540 = vrcp.f32 %v909_v21  ;;  %v1200_v26 = vcombine.low %v1191_v22, %v1198_v42  ;;  %v8049_v21 = vld [vmem:[#allocation8 + $0xc4] ss:$16 sps:$4 sm:$0xff]   ;;  %v8052_v22 = vld [vmem:[#allocation8 + $0xcc] ss:$16 sps:$4 sm:$0xff]  }
 0x15f   :  { %6542 = vrcp.f32 %v910_v24 }
 0x160   :  { %v6519_v28 = vpop.eup %6518  ;;  %6544 = vrcp.f32 %v911_v25  ;;  %v1214_v29 = vrot.slane %v1200_v26, %v7927_v6  ;;  %v8058_v25 = vld [vmem:[#allocation8 + $0xc0] ss:$16 sps:$4 sm:$0xff]  }
 0x161   :  { %v6521_v30 = vpop.eup %6520  ;;  %6546 = vtanh.f32 %v1008_v13 }
 0x162   :  { %v6523_v31 = vpop.eup %6522  ;;  %6548 = vtanh.f32 %v1009_v14  ;;  %v1215_v32 = vcombine.low %v1207_v27, %v1214_v29  ;;  %v8064_v27 = vld [vmem:[#allocation8 + $0xa4] ss:$16 sps:$4 sm:$0xff]   ;;  %v8070_v29 = vld [vmem:[#allocation8 + $0xa0] ss:$16 sps:$4 sm:$0xff]  }
 0x163   :  { %v6525_v33 = vpop.eup %6524 }
 0x164   :  { %v6527_v37 = vpop.eup %6526  ;;  %v8022_v38 = vsel %vm1032_vm5, %v1215_v32, 0.0  ;;  %v8079_v32 = vld [vmem:[#allocation8 + $0x8c] ss:$16 sps:$4 sm:$0xff]  }
 0x165   :  { %v6529_v43 = vpop.eup %6528 }
 0x166   :  { %v6531_v44 = vpop.eup %6530 }
 0x167   :  { %v6533_v47 = vpop.eup %6532  ;;  %v1018_v51 = vmul.f32 %v6531_v44, %v6519_v28  ;;  %v8067_v28 = vld [vmem:[#allocation8 + $0xac] ss:$16 sps:$4 sm:$0xff]  }
 0x168   :  { %v6535_v49 = vpop.eup %6534  ;;  %v1019_v52 = vmul.f32 %v6533_v47, %v6521_v30  ;;  %v8073_v30 = vld [vmem:[#allocation8 + $0xa8] ss:$16 sps:$4 sm:$0xff]   ;;  %v8091_v44 = vld [vmem:[#allocation8 + $0x6c] ss:$16 sps:$4 sm:$0xff]   ;;  %v8094_v47 = vld [vmem:[#allocation8 + $0x60] ss:$16 sps:$4 sm:$0xff]  }
 0x169   :  { %v6537_v53 = vpop.eup %6536  ;;  %v1020_v59 = vmul.f32 %v6535_v49, %v6523_v31  ;;  %v8076_v31 = vld [vmem:[#allocation8 + $0x84] ss:$16 sps:$4 sm:$0xff]   ;;  %v8097_v49 = vld [vmem:[#allocation8 + $0x68] ss:$16 sps:$4 sm:$0xff]  }
 0x16a   :  { %v6539_v60 = vpop.eup %6538  ;;  %v1021_v62 = vmul.f32 %v6537_v53, %v6525_v33  ;;  %v1041_v46 = vcombine.low %v1018_v51, %v1019_v52  ;;  %v8082_v33 = vld [vmem:[#allocation8 + $0x80] ss:$16 sps:$4 sm:$0xff]   ;;  %v8100_v51 = vld [vmem:[#allocation8 + $0x44] ss:$16 sps:$4 sm:$0xff]   ;;  %v8103_v52 = vld [vmem:[#allocation8 + $0x4c] ss:$16 sps:$4 sm:$0xff]  }
 0x16b   :  { %v6541_v63 = vpop.eup %6540  ;;  %v1022_v3 = vmul.f32 %v6539_v60, %v6527_v37  ;;  %v8085_v37 = vld [vmem:[#allocation8 + $0x88] ss:$16 sps:$4 sm:$0xff]   ;;  %v8106_v53 = vld [vmem:[#allocation8 + $0x40] ss:$16 sps:$4 sm:$0xff]   ;;  %v8112_v60 = vld [vmem:[#allocation8 + $0x24] ss:$16 sps:$4 sm:$0xff]  }
 0x16c   :  { %v6543_v2 = vpop.eup %6542  ;;  %v1023_v5 = vmul.f32 %v6541_v63, %v6529_v43  ;;  %v1042_v7 = vcombine.low %v1020_v59, %v1021_v62  ;;  %v1051_v11 = vrot.slane %v1041_v46, %v7927_v6  ;;  %v8088_v43 = vld [vmem:[#allocation8 + $0x64] ss:$16 sps:$4 sm:$0xff]   ;;  %v8109_v59 = vld [vmem:[#allocation8 + $0x48] ss:$16 sps:$4 sm:$0xff]   ;;  %9308 = vst [vmem:[#allocation17_spill] sm:$0xff] %v8112_v60 }
 0x16d   :  { %v6545_v54 = vpop.eup %6544  ;;  %v8115_v62 = vld [vmem:[#allocation8 + $0x2c] ss:$16 sps:$4 sm:$0xff]   ;;  %v8118_v63 = vld [vmem:[#allocation8 + $0x20] ss:$16 sps:$4 sm:$0xff]  }
 0x16e   :  { %v6547_v50 = vpop.eup %6546  ;;  %v1058_v34 = vrot.slane %v1042_v7, %v7927_v6  ;;  %v1043_v35 = vcombine.low %v1022_v3, %v1023_v5  ;;  %9309 = vst [vmem:[#allocation18_spill] sm:$0xff] %v8115_v62  ;;  %9310 = vst [vmem:[#allocation19_spill] sm:$0xff] %v8118_v63  ;;  %v8124_v3 = vld [vmem:[#allocation8 + $0x4] ss:$16 sps:$4 sm:$0xff]   ;;  %v8127_v5 = vld [vmem:[#allocation8 + $0xc] ss:$16 sps:$4 sm:$0xff]  }
 0x16f   :  { %v6549_v55 = vpop.eup %6548  ;;  %v1024_v58 = vmul.f32 %v6547_v50, %v6543_v2  ;;  %v8121_v2 = vld [vmem:[#allocation8 + $0x28] ss:$16 sps:$4 sm:$0xff]   ;;  %9312 = vst [vmem:[#allocation21_spill] sm:$0xff] %v8124_v3  ;;  %9313 = vst [vmem:[#allocation22_spill] sm:$0xff] %v8127_v5  ;;  %v8130_v46 = vld [vmem:[#allocation8] ss:$16 sps:$4 sm:$0xff]  }
 0x170   :  { %v1025_v9 = vmul.f32 %v6549_v55, %v6545_v54  ;;  %v1073_v12 = vcombine.low %v1051_v11, %v1058_v34  ;;  %v1065_v39 = vrot.slane %v1043_v35, %v7927_v6  ;;  %9311 = vst [vmem:[#allocation20_spill] sm:$0xff] %v8121_v2  ;;  %9314 = vst [vmem:[#allocation23_spill] sm:$0xff] %v8130_v46  ;;  %v8133_v7 = vld [vmem:[#allocation8 + $0x8] ss:$16 sps:$4 sm:$0xff]   ;;  %v8136_v54 = vld [vmem:[#allocation8 + $0xe4] ss:$16 sps:$4 sm:$0xff]  }
 0x171   :  { %9315 = vst [vmem:[#allocation24_spill] sm:$0xff] %v8133_v7  ;;  %9316 = vst [vmem:[#allocation25_spill] sm:$0xff] %v8136_v54  ;;  %v8139_v50 = vld [vmem:[#allocation8 + $0xec] ss:$16 sps:$4 sm:$0xff]   ;;  %v7478_v34 = vld [vmem:[%s9268_s0] sm:$0xff]  ;;  %s7688_s0 = smov [#allocation10]  }
 0x172   :  { %v1044_v61 = vcombine.low %v1024_v58, %v1025_v9  ;;  %v1081_v13 = vrot.slane %v1073_v12, %v7927_v6  ;;  %9317 = vst [vmem:[#allocation26_spill] sm:$0xff] %v8139_v50  ;;  %vm6197_vm7 = vcmp.gt.s32.totalorder %v7478_v34, 2  ;;  %vm6226_vm8 = vcmp.gt.s32.totalorder %v7478_v34, 3  ;;  %s6040_s22 = sshll.u32 %s7688_s0, 4  ;;  %s6041_s22 = int_to_ptr.vmem [resolvable:$true] %s6040_s22 }
 0x173   :  { %v2400_v55 = vsel %vm6197_vm7, 1, %v9276_v0  ;;  %v3086_v58 = vsel %vm6226_vm8, 1, %v9276_v0  ;;  %vm6284_vm9 = vcmp.gt.s32.totalorder %v7478_v34, 5  ;;  %vm6342_vm10 = vcmp.gt.s32.totalorder %v7478_v34, 7  ;;  %s7609_s25 = scalar_lea.vmem %s6041_s22, 128  ;;  %p7614_p2 = scmp.lt.s32.totalorder %s6041_s22, %s6041_s22 }
 0x174   :  { %v1072_v1 = vrot.slane %v1044_v61, %v7927_v6  ;;  %2402 = vperm.xlu1 %6363, %v2400_v55   ;;  %v4458_v9 = vsel %vm6284_vm9, 1, %v9276_v0  ;;  %v5830_v61 = vsel %vm6342_vm10, 1, %v9276_v0  ;;  %v1219_v55 = vld [vmem:[#allocation2 + $0x1] ss:$8 sm:$0xf]  ;;  %p7610_p1 = scmp.ne.s32.totalorder %s6041_s22, %s7609_s25  ;;  %p7615_p3 = scmp.lt.s32.totalorder %s7609_s25, %s7609_s25 }
 0x176   :  { %v1074_v56 = vcombine.low %v1065_v39, %v1072_v1  ;;  %p7616_p4 = por %p7615_p3, %p7614_p2 }
 0x178   :  { %v1088_v57 = vrot.slane %v1074_v56, %v7927_v6  ;;  %3088 = vperm.xlu1 %6363, %v3086_v58   ;;  %v1221_v58 = vld [vmem:[#allocation2 + $0x21] ss:$8 sm:$0xf]  ;;  %p7617_p5 = pnand %p7616_p4, %p7610_p1 }
 0x17a   :  { %v1089_v4 = vcombine.low %v1081_v13, %v1088_v57 }
 0x17c   :  { %v8031_v14 = vsel %vm1032_vm5, %v1089_v4, 0.0  ;;  %v7544_v10 = vpack.c.bf16 %v1089_v4, %v1089_v4  ;;  %4460 = vperm.xlu1 %6363, %v4458_v9   ;;  %v1223_v9 = vld [vmem:[#allocation2 + $0x41] ss:$8 sm:$0xf] }
 0x17d   :  { %v1093_v15 = vcombine.high %v8031_v14, %v8031_v14  ;;  %v1100_v40 = vrot.slane %v8031_v14, %v7927_v6 }
 0x17e   :  { %7545 = vmatmul.mubr.msk.bf16.vlgmr.msra.gmra.mxu0 %vm7543_vm6, %v7544_v10  ;;  %7548 = vmatmul.mubr.msk.bf16.vlgmr.msra.gmra.mxu1 %vm7543_vm6, %v7544_v10 }
 0x17f   :  { %v1107_v16 = vrot.slane %v1093_v15, %v7927_v6  ;;  %v1108_v8 = vcombine.high %v1100_v40, %v1100_v40  ;;  %v1116_v48 = vrot.slane %v1100_v40, %v7927_v6  ;;  %6140 = vst.sshfl [vmem:[#allocation9] sm:$0x1 pattern:$0x73625140] %v1100_v40  ;;  %1922 = vmatpush1.bf16.msra.mxu0 %v8041_v17 }
 0x180   :  { %1963 = vmatpush1.bf16.msra.mxu1 %v8044_v36  ;;  %1923 = vmatprep.subr.bf16.mxu0 %v8049_v21 }
 0x181   :  { %v1109_v18 = vcombine.high %v1107_v16, %v1107_v16  ;;  %v1123_v19 = vrot.slane %v1107_v16, %v7927_v6  ;;  %v1130_v41 = vrot.slane %v1108_v8, %v7927_v6  ;;  %v1138_v20 = vcombine.high %v1116_v48, %v1116_v48  ;;  %6141 = vst.sshfl [vmem:[#allocation9 + $0x8] sm:$0x1 pattern:$0x73625140] %v1108_v8 }
 0x182   :  { %6142 = vst.sshfl [vmem:[#allocation9 + $0x20] sm:$0x1 pattern:$0x73625140] %v1107_v16  ;;  %1964 = vmatprep.subr.bf16.mxu1 %v8052_v22  ;;  %1953 = vmatprep.mubr.bf16.mxu0 %v9276_v0 }
 0x183   :  { %v1137_v42 = vrot.slane %v1109_v18, %v7927_v6  ;;  %v1139_v23 = vcombine.high %v1123_v19, %v1123_v19  ;;  %v1140_v24 = vcombine.high %v1130_v41, %v1130_v41  ;;  %1152 = vst [vmem:[#allocation9 + $0x10] sm:$0x1] %v1138_v20  ;;  %6143 = vst.sshfl [vmem:[#allocation9 + $0x28] sm:$0x1 pattern:$0x73625140] %v1109_v18  ;;  %1994 = vmatprep.mubr.bf16.mxu1 %v9276_v0 }
 0x184   :  { %1924 = vmatpush1.bf16.msra.mxu0 %v8058_v25  ;;  %1965 = vmatpush1.bf16.msra.mxu1 %v8061_v45 }
 0x185   :  { %v1141_v26 = vcombine.high %v1137_v42, %v1137_v42  ;;  %1153 = vst [vmem:[#allocation9 + $0x18] sm:$0x1] %v1140_v24  ;;  %1156 = vst [vmem:[#allocation9 + $0x30] sm:$0x1] %v1139_v23  ;;  %1925 = vmatprep.subr.bf16.mxu0 %v8064_v27  ;;  %1966 = vmatprep.subr.bf16.mxu1 %v8067_v28 }
 0x186   :  { %5832 = vperm.xlu1 %6363, %v5830_v61  }
 0x187   :  { %1157 = vst [vmem:[#allocation9 + $0x38] sm:$0x1] %v1141_v26 }
 0x188   :  { %1926 = vmatpush1.bf16.msra.mxu0 %v8070_v29  ;;  %1967 = vmatpush1.bf16.msra.mxu1 %v8073_v30 }
 0x189   :  { %1927 = vmatprep.subr.bf16.mxu0 %v8076_v31  ;;  %1968 = vmatprep.subr.bf16.mxu1 %v8079_v32 }
 0x18c   :  { %1928 = vmatpush1.bf16.msra.mxu0 %v8082_v33  ;;  %1969 = vmatpush1.bf16.msra.mxu1 %v8085_v37 }
 0x18d   :  { %1929 = vmatprep.subr.bf16.mxu0 %v8088_v43  ;;  %1970 = vmatprep.subr.bf16.mxu1 %v8091_v44 }
 0x190   :  { %1930 = vmatpush1.bf16.msra.mxu0 %v8094_v47  ;;  %1971 = vmatpush1.bf16.msra.mxu1 %v8097_v49 }
 0x191   :  { %1931 = vmatprep.subr.bf16.mxu0 %v8100_v51  ;;  %1972 = vmatprep.subr.bf16.mxu1 %v8103_v52 }
 0x194   :  { %1932 = vmatpush1.bf16.msra.mxu0 %v8106_v53  ;;  %1973 = vmatpush1.bf16.msra.mxu1 %v8109_v59 }
 0x195   :  { %1933 = vmatprep.subr.bf16.mxu0 %v8112_v60  ;;  %1974 = vmatprep.subr.bf16.mxu1 %v8115_v62 }
 0x198   :  { %1934 = vmatpush1.bf16.msra.mxu0 %v8118_v63  ;;  %1975 = vmatpush1.bf16.msra.mxu1 %v8121_v2 }
 0x199   :  { %1935 = vmatprep.subr.bf16.mxu0 %v8124_v3  ;;  %1976 = vmatprep.subr.bf16.mxu1 %v8127_v5 }
 0x19c   :  { %1936 = vmatpush1.bf16.msra.mxu0 %v8130_v46  ;;  %1977 = vmatpush1.bf16.msra.mxu1 %v8133_v7 }
 0x19d   :  { %2607 = vmatprep.subr.bf16.mxu0 %v8136_v54  ;;  %2648 = vmatprep.subr.bf16.mxu1 %v8139_v50 }
 0x23e   :  { %v1269_v35 = vpop.f32.mrf.mxu0  ;;  %v1310_v11 = vpop.f32.mrf.mxu1 }
 0x240   :  { %v1271_v12 = vpop.f32.mrf.mxu0  ;;  %v1312_v39 = vpop.f32.mrf.mxu1 }
 0x241   :  { %v1321_v1 = vcombine.low %v1269_v35, %v1271_v12  ;;  %v1322_v56 = vcombine.high %v1269_v35, %v1271_v12  ;;  %v1323_v13 = vcombine.low %v1310_v11, %v1312_v39  ;;  %v1324_v57 = vcombine.high %v1310_v11, %v1312_v39  ;;  %v1227_v35 = vld [vmem:[#allocation2 + $0x81] ss:$8 sm:$0xf] }
 0x242   :  { %v1273_v4 = vpop.f32.mrf.mxu0  ;;  %v1314_v15 = vpop.f32.mrf.mxu1 }
 0x243   :  { %v1331_v40 = vrot.slane %v1321_v1, %v7927_v6  ;;  %v1338_v16 = vrot.slane %v1322_v56, %v7927_v6  ;;  %v1345_v8 = vrot.slane %v1323_v13, %v7927_v6  ;;  %v1352_v48 = vrot.slane %v1324_v57, %v7927_v6  ;;  %v1225_v1 = vld [vmem:[#allocation2 + $0x61] ss:$8 sm:$0xf] }
 0x244   :  { %v1274_v10 = vpop.f32.mrf.mxu0  ;;  %v1315_v18 = vpop.f32.mrf.mxu1  ;;  %v1229_v56 = vld [vmem:[#allocation2 + $0xa1] ss:$8 sm:$0xf] }
 0x245   :  { %v1353_v19 = vcombine.low %v1331_v40, %v1345_v8  ;;  %v1354_v41 = vcombine.high %v1331_v40, %v1345_v8  ;;  %v1355_v20 = vcombine.low %v1338_v16, %v1352_v48  ;;  %v1356_v42 = vcombine.high %v1338_v16, %v1352_v48  ;;  %v1231_v15 = vld [vmem:[#allocation2 + $0xc1] ss:$8 sm:$0xf] }
 0x246   :  { %v1233_v40 = vld [vmem:[#allocation2 + $0xe1] ss:$8 sm:$0xf] }
 0x247   :  { %v1363_v23 = vrot.slane %v1353_v19, %v7927_v6  ;;  %v1370_v24 = vrot.slane %v1355_v20, %v7927_v6  ;;  %v1377_v26 = vrot.slane %v1354_v41, %v7927_v6  ;;  %v1384_v34 = vrot.slane %v1356_v42, %v7927_v6 }
 0x249   :  { %v1385_v11 = vcombine.high %v1363_v23, %v1363_v23  ;;  %v1386_v61 = vcombine.high %v1370_v24, %v1370_v24  ;;  %v1387_v12 = vcombine.high %v1377_v26, %v1377_v26  ;;  %v1388_v39 = vcombine.high %v1384_v34, %v1384_v34 }
 0x24a   :  { %v8157_v13 = vadd.f32 %v1363_v23, %v1219_v55  ;;  %v8159_v57 = vadd.f32 %v1377_v26, %v1221_v58  ;;  %v8161_v4 = vadd.f32 %v1370_v24, %v1227_v35  ;;  %v8167_v48 = vadd.f32 %v1384_v34, %v1229_v56 }
 0x24b   :  { %v8163_v16 = vadd.f32 %v1385_v11, %v1223_v9  ;;  %v8165_v8 = vadd.f32 %v1387_v12, %v1225_v1  ;;  %v8169_v10 = vadd.f32 %v1386_v61, %v1231_v15  ;;  %v8173_v41 = vadd.f32 %v1388_v39, %v1233_v40 }
 0x24c   :  { %v6144_v18 = vmul.f32 -1.442695, %v8157_v13  ;;  %v6145_v19 = vmul.f32 -1.442695, %v8159_v57  ;;  %v6148_v23 = vmul.f32 -1.442695, %v8161_v4 }
 0x24d   :  { %v6146_v20 = vmul.f32 -1.442695, %v8163_v16  ;;  %v6147_v42 = vmul.f32 -1.442695, %v8165_v8  ;;  %v1461_v24 = vrot.slane %v8157_v13, 1  ;;  %v1462_v34 = vrot.slane %v8159_v57, 1 }
 0x24e   :  { %6550 = vpow2.f32 %v6144_v18  ;;  %v6149_v26 = vmul.f32 -1.442695, %v8167_v48  ;;  %v6150_v55 = vmul.f32 -1.442695, %v8169_v10  ;;  %v1463_v58 = vrot.slane %v8163_v16, 1 }
 0x24f   :  { %6552 = vpow2.f32 %v6145_v19  ;;  %v6151_v9 = vmul.f32 -1.442695, %v8173_v41  ;;  %v1464_v35 = vrot.slane %v8165_v8, 1  ;;  %v1465_v11 = vrot.slane %v8161_v4, 1 }
 0x250   :  { %6554 = vpow2.f32 %v6146_v20  ;;  %v6152_v61 = vmul.f32 -1.442695, %v1461_v24  ;;  %v1466_v12 = vrot.slane %v8167_v48, 1  ;;  %v6153_v39 = vmul.f32 -1.442695, %v1462_v34 }
 0x251   :  { %6556 = vpow2.f32 %v6147_v42  ;;  %v1467_v1 = vrot.slane %v8169_v10, 1  ;;  %v6154_v56 = vmul.f32 -1.442695, %v1463_v58  ;;  %v1468_v15 = vrot.slane %v8173_v41, 1 }
 0x252   :  { %6558 = vpow2.f32 %v6148_v23  ;;  %v6155_v40 = vmul.f32 -1.442695, %v1464_v35  ;;  %v6156_v18 = vmul.f32 -1.442695, %v1465_v11  ;;  %v6157_v19 = vmul.f32 -1.442695, %v1466_v12 }
 0x253   :  { %6560 = vpow2.f32 %v6149_v26  ;;  %v6158_v20 = vmul.f32 -1.442695, %v1467_v1  ;;  %v6159_v42 = vmul.f32 -1.442695, %v1468_v15  ;;  %v1556_v5 = vrot.slane %v8173_v41, 3 }
 0x254   :  { %6562 = vpow2.f32 %v6150_v55 }
 0x255   :  { %6564 = vpow2.f32 %v6151_v9 }
 0x256   :  { %6566 = vpow2.f32 %v6152_v61 }
 0x257   :  { %6568 = vpow2.f32 %v6153_v39 }
 0x258   :  { %6570 = vpow2.f32 %v6154_v56 }
 0x259   :  { %6572 = vpow2.f32 %v6155_v40 }
 0x25a   :  { %6574 = vpow2.f32 %v6156_v18 }
 0x25b   :  { %v6551_v23 = vpop.eup %6550  ;;  %6576 = vpow2.f32 %v6157_v19 }
 0x25c   :  { %v6553_v24 = vpop.eup %6552  ;;  %v1429_v26 = vadd.f32 1.0, %v6551_v23  ;;  %6578 = vpow2.f32 %v6158_v20 }
 0x25d   :  { %v6555_v34 = vpop.eup %6554  ;;  %v1430_v55 = vadd.f32 1.0, %v6553_v24  ;;  %6580 = vpow2.f32 %v6159_v42 }
 0x25e   :  { %v6557_v58 = vpop.eup %6556  ;;  %v1431_v9 = vadd.f32 1.0, %v6555_v34  ;;  %6582 = vrcp.f32 %v1429_v26 }
 0x25f   :  { %v6559_v35 = vpop.eup %6558  ;;  %v1432_v11 = vadd.f32 1.0, %v6557_v58  ;;  %6584 = vrcp.f32 %v1430_v55 }
 0x260   :  { %v6561_v61 = vpop.eup %6560  ;;  %v1433_v12 = vadd.f32 1.0, %v6559_v35  ;;  %6586 = vrcp.f32 %v1431_v9 }
 0x261   :  { %v6563_v39 = vpop.eup %6562  ;;  %v1434_v1 = vadd.f32 1.0, %v6561_v61  ;;  %6588 = vrcp.f32 %v1432_v11 }
 0x262   :  { %v6565_v56 = vpop.eup %6564  ;;  %v1435_v15 = vadd.f32 1.0, %v6563_v39  ;;  %6590 = vrcp.f32 %v1433_v12  ;;  %v1525_v39 = vrot.slane %v8157_v13, 2 }
 0x263   :  { %v6567_v40 = vpop.eup %6566  ;;  %v1436_v18 = vadd.f32 1.0, %v6565_v56  ;;  %6592 = vrcp.f32 %v1434_v1 }
 0x264   :  { %v6569_v19 = vpop.eup %6568  ;;  %6594 = vrcp.f32 %v1435_v15  ;;  %v1501_v20 = vadd.f32 1.0, %v6567_v40  ;;  %v1526_v15 = vrot.slane %v8159_v57, 2 }
 0x265   :  { %v6571_v42 = vpop.eup %6570  ;;  %6596 = vrcp.f32 %v1436_v18  ;;  %v1502_v23 = vadd.f32 1.0, %v6569_v19  ;;  %v1527_v18 = vrot.slane %v8163_v16, 2 }
 0x266   :  { %v6573_v24 = vpop.eup %6572  ;;  %v1503_v26 = vadd.f32 1.0, %v6571_v42  ;;  %6598 = vrcp.f32 %v1501_v20  ;;  %v1528_v20 = vrot.slane %v8165_v8, 2 }
 0x267   :  { %v6575_v34 = vpop.eup %6574  ;;  %v1504_v55 = vadd.f32 1.0, %v6573_v24  ;;  %6600 = vrcp.f32 %v1502_v23  ;;  %v1614_v23 = vcombine.high %v8022_v38, %v8022_v38  ;;  %v1529_v24 = vrot.slane %v8161_v4, 2 }
 0x268   :  { %v6577_v58 = vpop.eup %6576  ;;  %v1505_v9 = vadd.f32 1.0, %v6575_v34  ;;  %6602 = vrcp.f32 %v1503_v26  ;;  %v1549_v26 = vrot.slane %v8157_v13, 3  ;;  %v1532_v13 = vrot.slane %v8173_v41, 2 }
 0x269   :  { %v6579_v35 = vpop.eup %6578  ;;  %v1506_v11 = vadd.f32 1.0, %v6577_v58  ;;  %6604 = vrcp.f32 %v1504_v55  ;;  %v1621_v55 = vrot.slane %v8022_v38, %v7927_v6  ;;  %v1530_v58 = vrot.slane %v8167_v48, 2 }
 0x26a   :  { %v6581_v61 = vpop.eup %6580  ;;  %v1507_v12 = vadd.f32 1.0, %v6579_v35  ;;  %6606 = vrcp.f32 %v1505_v9  ;;  %v1550_v9 = vrot.slane %v8159_v57, 3  ;;  %v1553_v57 = vrot.slane %v8161_v4, 3 }
 0x26b   :  { %v8190_v1 = vpop.eup %6582  ;;  %v1508_v56 = vadd.f32 1.0, %v6581_v61  ;;  %6608 = vrcp.f32 %v1506_v11  ;;  %v1531_v11 = vrot.slane %v8169_v10, 2  ;;  %v1551_v61 = vrot.slane %v8163_v16, 3 }
 0x26c   :  { %v8193_v40 = vpop.eup %6584  ;;  %6610 = vrcp.f32 %v1507_v12  ;;  %v6160_v0 = vmul.f32 -1.442695, %v1549_v26  ;;  %v1629_v54 = vcombine.high %v1621_v55, %v1621_v55  ;;  %v1554_v16 = vrot.slane %v8167_v48, 3 }
 0x26d   :  { %v8196_v19 = vpop.eup %6586  ;;  %6612 = vrcp.f32 %v1508_v56  ;;  %v6162_v46 = vmul.f32 -1.442695, %v1551_v61  ;;  %v1637_v4 = vrot.slane %v1621_v55, %v7927_v6  ;;  %v6164_v26 = vmul.f32 -1.442695, %v1553_v57 }
 0x26e   :  { %v8199_v42 = vpop.eup %6588  ;;  %6614 = vtanh.f32 %v1525_v39  ;;  %v1552_v39 = vrot.slane %v8165_v8, 3  ;;  %v1651_v48 = vrot.slane %v1629_v54, %v7927_v6  ;;  %v6167_v41 = vmul.f32 -1.442695, %v1556_v5 }
 0x26f   :  { %v8205_v34 = vpop.eup %6590  ;;  %6616 = vtanh.f32 %v1526_v15  ;;  %v1628_v15 = vrot.slane %v1614_v23, %v7927_v6  ;;  %v1659_v63 = vcombine.high %v1637_v4, %v1637_v4 }
 0x270   :  { %v8211_v35 = vpop.eup %6592  ;;  %6618 = vtanh.f32 %v1527_v18  ;;  %v6161_v18 = vmul.f32 -1.442695, %v1550_v9  ;;  %v6163_v23 = vmul.f32 -1.442695, %v1552_v39  ;;  %v6165_v9 = vmul.f32 -1.442695, %v1554_v16 }
 0x271   :  { %v8215_v12 = vpop.eup %6594  ;;  %6620 = vtanh.f32 %v1528_v20  ;;  %v1555_v20 = vrot.slane %v8169_v10, 3  ;;  %v1630_v3 = vcombine.high %v1628_v15, %v1628_v15  ;;  %v1661_v57 = vcombine.high %v1651_v48, %v1651_v48 }
 0x272   :  { %v8219_v56 = vpop.eup %6596  ;;  %6622 = vtanh.f32 %v1529_v24 }
 0x273   :  { %v6599_v50 = vpop.eup %6598  ;;  %6624 = vtanh.f32 %v1530_v58  ;;  %v6166_v10 = vmul.f32 -1.442695, %v1555_v20  ;;  %v1658_v2 = vrot.slane %v1630_v3, %v7927_v6 }
 0x274   :  { %v6601_v7 = vpop.eup %6600  ;;  %6626 = vtanh.f32 %v1531_v11 }
 0x275   :  { %v6603_v8 = vpop.eup %6602  ;;  %6628 = vtanh.f32 %v1532_v13  ;;  %v1644_v13 = vrot.slane %v1628_v15, %v7927_v6  ;;  %v1672_v54 = vmul.f32 %v6601_v7, %v1651_v48  ;;  %v1662_v3 = vcombine.high %v1658_v2, %v1658_v2 }
 0x276   :  { %v6605_v24 = vpop.eup %6604  ;;  %6630 = vpow2.f32 %v6160_v0  ;;  %v1671_v0 = vmul.f32 %v6599_v50, %v1637_v4  ;;  %v1673_v16 = vmul.f32 %v6603_v8, %v1659_v63 }
 0x277   :  { %v6607_v58 = vpop.eup %6606  ;;  %6632 = vpow2.f32 %v6161_v18  ;;  %v1660_v62 = vcombine.high %v1644_v13, %v1644_v13  ;;  %v1674_v15 = vmul.f32 %v6605_v24, %v1661_v57 }
 0x278   :  { %v6609_v11 = vpop.eup %6608  ;;  %6634 = vpow2.f32 %v6162_v46  ;;  %v1675_v60 = vmul.f32 %v6607_v58, %v1644_v13 }
 0x279   :  { %v6611_v61 = vpop.eup %6610  ;;  %6636 = vpow2.f32 %v6163_v23 }
 0x27a   :  { %v6613_v39 = vpop.eup %6612  ;;  %6638 = vpow2.f32 %v6164_v26  ;;  %v1677_v7 = vmul.f32 %v6611_v61, %v1660_v62 }
 0x27b   :  { %v6615_v55 = vpop.eup %6614  ;;  %6640 = vpow2.f32 %v6165_v9  ;;  %v1676_v9 = vmul.f32 %v6609_v11, %v1658_v2 }
 0x27c   :  { %v6617_v18 = vpop.eup %6616  ;;  %6642 = vpow2.f32 %v6166_v10  ;;  %v1679_v46 = vmul.f32 %v6615_v55, %v8190_v1  ;;  %v1678_v1 = vmul.f32 %v6613_v39, %v1662_v3 }
 0x27d   :  { %v6619_v20 = vpop.eup %6618  ;;  %6644 = vpow2.f32 %v6167_v41  ;;  %v1680_v5 = vmul.f32 %v6617_v18, %v8193_v40 }
 0x27e   :  { %v6621_v23 = vpop.eup %6620  ;;  %v1681_v50 = vmul.f32 %v6619_v20, %v8196_v19  ;;  %v1687_v4 = vadd.f32 %v1679_v46, %v1671_v0 }
 0x27f   :  { %v6623_v26 = vpop.eup %6622  ;;  %v1682_v48 = vmul.f32 %v6621_v23, %v8199_v42  ;;  %v1688_v63 = vadd.f32 %v1680_v5, %v1672_v54 }
 0x280   :  { %v6625_v8 = vpop.eup %6624  ;;  %v1683_v10 = vmul.f32 %v6623_v26, %v8205_v34  ;;  %v1689_v41 = vadd.f32 %v1681_v50, %v1673_v16  ;;  %6646 = vtanh.f32 %v1687_v4 }
 0x281   :  { %v6627_v24 = vpop.eup %6626  ;;  %v1684_v40 = vmul.f32 %v6625_v8, %v8211_v35  ;;  %v1690_v55 = vadd.f32 %v1682_v48, %v1674_v15  ;;  %6648 = vtanh.f32 %v1688_v63  ;;  %v1853_v58 = vcombine.low %v1687_v4, %v1688_v63 }
 0x282   :  { %v6629_v19 = vpop.eup %6628  ;;  %v1685_v13 = vmul.f32 %v6627_v24, %v8215_v12  ;;  %v1691_v2 = vadd.f32 %v1683_v10, %v1675_v60  ;;  %6650 = vtanh.f32 %v1689_v41 }
 0x283   :  { %v6631_v62 = vpop.eup %6630  ;;  %v1686_v42 = vmul.f32 %v6629_v19, %v8219_v56  ;;  %v1692_v11 = vadd.f32 %v1684_v40, %v1676_v9  ;;  %6652 = vtanh.f32 %v1690_v55  ;;  %v1854_v61 = vcombine.low %v1689_v41, %v1690_v55  ;;  %v1717_v55 = vpop.permute.xlu0 %1716 }
 0x284   :  { %v6633_v34 = vpop.eup %6632  ;;  %v1589_v39 = vadd.f32 1.0, %v6631_v62  ;;  %v1693_v0 = vadd.f32 %v1685_v13, %v1677_v7  ;;  %6654 = vtanh.f32 %v1691_v2  ;;  %v1863_v60 = vrot.slane %v1853_v58, %v7927_v6 }
 0x285   :  { %v6635_v57 = vpop.eup %6634  ;;  %v1590_v35 = vadd.f32 1.0, %v6633_v34  ;;  %v1694_v54 = vadd.f32 %v1686_v42, %v1678_v1  ;;  %6656 = vtanh.f32 %v1692_v11  ;;  %v1855_v18 = vcombine.low %v1691_v2, %v1692_v11 }
 0x286   :  { %v6637_v16 = vpop.eup %6636  ;;  %v1591_v46 = vadd.f32 1.0, %v6635_v57  ;;  %6658 = vrcp.f32 %v1589_v39  ;;  %v1870_v12 = vrot.slane %v1854_v61, %v7927_v6  ;;  %vm1718_vm11 = vcmp.eq.s32.totalorder %v1717_v55, 1 }
 0x287   :  { %v6639_v56 = vpop.eup %6638  ;;  %v1592_v20 = vadd.f32 1.0, %v6637_v16  ;;  %6660 = vrcp.f32 %v1590_v35  ;;  %v1856_v15 = vcombine.low %v1693_v0, %v1694_v54  ;;  %v1877_v26 = vrot.slane %v1855_v18, %v7927_v6 }
 0x288   :  { %v6641_v5 = vpop.eup %6640  ;;  %v1593_v23 = vadd.f32 1.0, %v6639_v56  ;;  %6662 = vrcp.f32 %v1591_v46  ;;  %v1885_v3 = vcombine.low %v1863_v60, %v1870_v12 }
 0x289   :  { %v6643_v50 = vpop.eup %6642  ;;  %v1594_v4 = vadd.f32 1.0, %v6641_v5  ;;  %6664 = vrcp.f32 %v1592_v20  ;;  %v1884_v9 = vrot.slane %v1856_v15, %v7927_v6 }
 0x28a   :  { %v6645_v7 = vpop.eup %6644  ;;  %v1595_v48 = vadd.f32 1.0, %v6643_v50  ;;  %6666 = vrcp.f32 %v1593_v23  ;;  %v1893_v1 = vrot.slane %v1885_v3, %v7927_v6 }
 0x28b   :  { %v1596_v63 = vadd.f32 1.0, %v6645_v7  ;;  %6668 = vrcp.f32 %v1594_v4  ;;  %v1886_v8 = vcombine.low %v1877_v26, %v1884_v9 }
 0x28c   :  { %6670 = vrcp.f32 %v1595_v48 }
 0x28d   :  { %v6647_v10 = vpop.eup %6646  ;;  %6672 = vrcp.f32 %v1596_v63  ;;  %v1900_v41 = vrot.slane %v1886_v8, %v7927_v6 }
 0x28e   :  { %v6649_v24 = vpop.eup %6648  ;;  %6674 = vtanh.f32 %v1693_v0 }
 0x28f   :  { %v6651_v40 = vpop.eup %6650  ;;  %6676 = vtanh.f32 %v1694_v54  ;;  %v1901_v58 = vcombine.low %v1893_v1, %v1900_v41 }
 0x290   :  { %v6653_v19 = vpop.eup %6652 }
 0x291   :  { %v6655_v13 = vpop.eup %6654  ;;  %v8246_v2 = vsel %vm1718_vm11, %v1901_v58, %v8022_v38 }
 0x292   :  { %v6657_v62 = vpop.eup %6656 }
 0x293   :  { %v6659_v42 = vpop.eup %6658 }
 0x294   :  { %v6661_v11 = vpop.eup %6660  ;;  %v1703_v34 = vmul.f32 %v6659_v42, %v6647_v10 }
 0x295   :  { %v6663_v61 = vpop.eup %6662  ;;  %v1704_v39 = vmul.f32 %v6661_v11, %v6649_v24 }
 0x296   :  { %v6665_v57 = vpop.eup %6664  ;;  %v1705_v35 = vmul.f32 %v6663_v61, %v6651_v40 }
 0x297   :  { %v6667_v0 = vpop.eup %6666  ;;  %v1706_v18 = vmul.f32 %v6665_v57, %v6653_v19  ;;  %v1727_v12 = vcombine.low %v1703_v34, %v1704_v39  ;;  %v9318_v34 = vmov 0  }
 0x298   :  { %v6669_v16 = vpop.eup %6668  ;;  %v1707_v46 = vmul.f32 %v6667_v0, %v6655_v13 }
 0x299   :  { %v6671_v54 = vpop.eup %6670  ;;  %v1708_v60 = vmul.f32 %v6669_v16, %v6657_v62  ;;  %v1728_v56 = vcombine.low %v1705_v35, %v1706_v18  ;;  %v1737_v4 = vrot.slane %v1727_v12, %v7927_v6 }
 0x29a   :  { %v6673_v20 = vpop.eup %6672 }
 0x29b   :  { %v6675_v15 = vpop.eup %6674  ;;  %v1744_v38 = vrot.slane %v1728_v56, %v7927_v6  ;;  %v1729_v50 = vcombine.low %v1707_v46, %v1708_v60 }
 0x29c   :  { %v6677_v5 = vpop.eup %6676  ;;  %v1709_v23 = vmul.f32 %v6675_v15, %v6671_v54 }
 0x29d   :  { %v1710_v3 = vmul.f32 %v6677_v5, %v6673_v20  ;;  %v1759_v9 = vcombine.low %v1737_v4, %v1744_v38  ;;  %v1751_v7 = vrot.slane %v1729_v50, %v7927_v6  ;;  %v1907_v50 = vld [vmem:[#allocation2 + $0x22] ss:$8 sm:$0xf] }
 0x29e   :  { %v1909_v4 = vld [vmem:[#allocation2 + $0x42] ss:$8 sm:$0xf] }
 0x29f   :  { %v1730_v26 = vcombine.low %v1709_v23, %v1710_v3  ;;  %v1767_v8 = vrot.slane %v1759_v9, %v7927_v6  ;;  %v1905_v3 = vld [vmem:[#allocation2 + $0x2] ss:$8 sm:$0xf] }
 0x2a1   :  { %v1758_v48 = vrot.slane %v1730_v26, %v7927_v6  ;;  %v1913_v26 = vld [vmem:[#allocation2 + $0x82] ss:$8 sm:$0xf] }
 0x2a3   :  { %v1760_v63 = vcombine.low %v1751_v7, %v1758_v48 }
 0x2a5   :  { %v1774_v1 = vrot.slane %v1760_v63, %v7927_v6 }
 0x2a7   :  { %v1775_v10 = vcombine.low %v1767_v8, %v1774_v1  ;;  %v1911_v8 = vld [vmem:[#allocation2 + $0x62] ss:$8 sm:$0xf] }
 0x2a8   :  { %v1915_v1 = vld [vmem:[#allocation2 + $0xa2] ss:$8 sm:$0xf] }
 0x2a9   :  { %v1777_v41 = vsel %vm1718_vm11, %v1775_v10, 0.0  ;;  %v8257_v24 = vsel %vm1718_vm11, %v1775_v10, %v8031_v14 }
 0x2aa   :  { %v1779_v40 = vcombine.high %v1777_v41, %v1777_v41  ;;  %v1786_v58 = vrot.slane %v1777_v41, %v7927_v6  ;;  %v1920_v19 = vpack.c.bf16 %v8257_v24, %v8257_v24 }
 0x2ac   :  { %v1793_v13 = vrot.slane %v1779_v40, %v7927_v6  ;;  %v1794_v62 = vcombine.high %v1786_v58, %v1786_v58  ;;  %v1802_v42 = vrot.slane %v1786_v58, %v7927_v6  ;;  %6169 = vst.sshfl [vmem:[#allocation9 + $0x1] sm:$0x1 pattern:$0x73625140] %v1786_v58  ;;  %1954 = vmatmul.mubr.bf16.vlgmr.msra.gmra.mxu0 %v1920_v19 }
 0x2ad   :  { %1995 = vmatmul.mubr.bf16.vlgmr.msra.gmra.mxu1 %v1920_v19  ;;  %2608 = vmatpush1.bf16.msra.mxu0 %v8041_v17  ;;  %v1917_v58 = vld [vmem:[#allocation2 + $0xc2] ss:$8 sm:$0xf] }
 0x2ae   :  { %2649 = vmatpush1.bf16.msra.mxu1 %v8044_v36  ;;  %v1795_v14 = vcombine.high %v1793_v13, %v1793_v13  ;;  %v1809_v55 = vrot.slane %v1793_v13, %v7927_v6  ;;  %v1816_v11 = vrot.slane %v1794_v62, %v7927_v6  ;;  %v1824_v61 = vcombine.high %v1802_v42, %v1802_v42  ;;  %v1919_v19 = vld [vmem:[#allocation2 + $0xe2] ss:$8 sm:$0xf] }
 0x2af   :  { %6170 = vst.sshfl [vmem:[#allocation9 + $0x9] sm:$0x1 pattern:$0x73625140] %v1794_v62  ;;  %2609 = vmatprep.subr.bf16.mxu0 %v8049_v21  ;;  %2650 = vmatprep.subr.bf16.mxu1 %v8052_v22  ;;  %v9319_v21 = vld [vmem:[#allocation17_spill] sm:$0xff]  ;;  %v9320_v22 = vld [vmem:[#allocation18_spill] sm:$0xff] }
 0x2b0   :  { %6171 = vst.sshfl [vmem:[#allocation9 + $0x21] sm:$0x1 pattern:$0x73625140] %v1793_v13  ;;  %2639 = vmatprep.mubr.bf16.mxu0 %v9318_v34  ;;  %v1823_v39 = vrot.slane %v1795_v14, %v7927_v6  ;;  %v1825_v57 = vcombine.high %v1809_v55, %v1809_v55  ;;  %v1826_v17 = vcombine.high %v1816_v11, %v1816_v11  ;;  %1838 = vst [vmem:[#allocation9 + $0x11] sm:$0x1] %v1824_v61 }
 0x2b1   :  { %6172 = vst.sshfl [vmem:[#allocation9 + $0x29] sm:$0x1 pattern:$0x73625140] %v1795_v14  ;;  %2680 = vmatprep.mubr.bf16.mxu1 %v9318_v34  ;;  %2610 = vmatpush1.bf16.msra.mxu0 %v8058_v25  ;;  %v9321_v25 = vld [vmem:[#allocation19_spill] sm:$0xff] }
 0x2b2   :  { %2651 = vmatpush1.bf16.msra.mxu1 %v8061_v45  ;;  %v1827_v36 = vcombine.high %v1823_v39, %v1823_v39  ;;  %1839 = vst [vmem:[#allocation9 + $0x19] sm:$0x1] %v1826_v17  ;;  %1842 = vst [vmem:[#allocation9 + $0x31] sm:$0x1] %v1825_v57  ;;  %2611 = vmatprep.subr.bf16.mxu0 %v8064_v27  ;;  %v9322_v45 = vld [vmem:[#allocation20_spill] sm:$0xff]  ;;  %v9323_v27 = vld [vmem:[#allocation21_spill] sm:$0xff] }
 0x2b3   :  { %2652 = vmatprep.subr.bf16.mxu1 %v8067_v28  ;;  %v9324_v28 = vld [vmem:[#allocation22_spill] sm:$0xff] }
 0x2b4   :  { %1843 = vst [vmem:[#allocation9 + $0x39] sm:$0x1] %v1827_v36 }
 0x2b5   :  { %2612 = vmatpush1.bf16.msra.mxu0 %v8070_v29  ;;  %v9325_v29 = vld [vmem:[#allocation23_spill] sm:$0xff] }
 0x2b6   :  { %2653 = vmatpush1.bf16.msra.mxu1 %v8073_v30  ;;  %2613 = vmatprep.subr.bf16.mxu0 %v8076_v31  ;;  %v9326_v30 = vld [vmem:[#allocation24_spill] sm:$0xff]  ;;  %v9327_v31 = vld [vmem:[#allocation25_spill] sm:$0xff] }
 0x2b7   :  { %2654 = vmatprep.subr.bf16.mxu1 %v8079_v32  ;;  %v9328_v32 = vld [vmem:[#allocation26_spill] sm:$0xff] }
 0x2b9   :  { %2614 = vmatpush1.bf16.msra.mxu0 %v8082_v33 }
 0x2ba   :  { %2655 = vmatpush1.bf16.msra.mxu1 %v8085_v37  ;;  %2615 = vmatprep.subr.bf16.mxu0 %v8088_v43 }
 0x2bb   :  { %2656 = vmatprep.subr.bf16.mxu1 %v8091_v44 }
 0x2bd   :  { %2616 = vmatpush1.bf16.msra.mxu0 %v8094_v47 }
 0x2be   :  { %2657 = vmatpush1.bf16.msra.mxu1 %v8097_v49  ;;  %2617 = vmatprep.subr.bf16.mxu0 %v8100_v51 }
 0x2bf   :  { %2658 = vmatprep.subr.bf16.mxu1 %v8103_v52 }
 0x2c1   :  { %2618 = vmatpush1.bf16.msra.mxu0 %v8106_v53 }
 0x2c2   :  { %2659 = vmatpush1.bf16.msra.mxu1 %v8109_v59  ;;  %2619 = vmatprep.subr.bf16.mxu0 %v9319_v21 }
 0x2c3   :  { %2660 = vmatprep.subr.bf16.mxu1 %v9320_v22 }
 0x2c5   :  { %2620 = vmatpush1.bf16.msra.mxu0 %v9321_v25 }
 0x2c6   :  { %2661 = vmatpush1.bf16.msra.mxu1 %v9322_v45  ;;  %2621 = vmatprep.subr.bf16.mxu0 %v9323_v27 }
 0x2c7   :  { %2662 = vmatprep.subr.bf16.mxu1 %v9324_v28 }
 0x2c9   :  { %2622 = vmatpush1.bf16.msra.mxu0 %v9325_v29 }
 0x2ca   :  { %2663 = vmatpush1.bf16.msra.mxu1 %v9326_v30  ;;  %3293 = vmatprep.subr.bf16.mxu0 %v9327_v31 }
 0x2cb   :  { %3334 = vmatprep.subr.bf16.mxu1 %v9328_v32 }
 0x36c   :  { %v1955_v33 = vpop.f32.mrf.mxu0 }
 0x36d   :  { %v1996_v37 = vpop.f32.mrf.mxu1 }
 0x36e   :  { %v1957_v43 = vpop.f32.mrf.mxu0 }
 0x36f   :  { %v1998_v44 = vpop.f32.mrf.mxu1  ;;  %v2007_v47 = vcombine.low %v1955_v33, %v1957_v43  ;;  %v2008_v49 = vcombine.high %v1955_v33, %v1957_v43 }
 0x370   :  { %v2009_v51 = vcombine.low %v1996_v37, %v1998_v44  ;;  %v2010_v52 = vcombine.high %v1996_v37, %v1998_v44  ;;  %v1959_v53 = vpop.f32.mrf.mxu0 }
 0x371   :  { %v2000_v59 = vpop.f32.mrf.mxu1  ;;  %v2017_v35 = vrot.slane %v2007_v47, %v7927_v6  ;;  %v2024_v0 = vrot.slane %v2008_v49, %v7927_v6 }
 0x372   :  { %v2031_v18 = vrot.slane %v2009_v51, %v7927_v6  ;;  %v2038_v16 = vrot.slane %v2010_v52, %v7927_v6  ;;  %v1960_v54 = vpop.f32.mrf.mxu0 }
 0x373   :  { %v2001_v46 = vpop.f32.mrf.mxu1 }
 0x374   :  { %v2039_v60 = vcombine.low %v2017_v35, %v2031_v18  ;;  %v2040_v12 = vcombine.high %v2017_v35, %v2031_v18  ;;  %v2041_v56 = vcombine.low %v2024_v0, %v2038_v16  ;;  %v2042_v20 = vcombine.high %v2024_v0, %v2038_v16 }
 0x376   :  { %v2049_v15 = vrot.slane %v2039_v60, %v7927_v6  ;;  %v2056_v38 = vrot.slane %v2041_v56, %v7927_v6  ;;  %v2063_v5 = vrot.slane %v2040_v12, %v7927_v6  ;;  %v2070_v23 = vrot.slane %v2042_v20, %v7927_v6 }
 0x378   :  { %v2071_v9 = vcombine.high %v2049_v15, %v2049_v15  ;;  %v2072_v7 = vcombine.high %v2056_v38, %v2056_v38  ;;  %v2073_v48 = vcombine.high %v2063_v5, %v2063_v5  ;;  %v2074_v63 = vcombine.high %v2070_v23, %v2070_v23 }
 0x379   :  { %v8309_v10 = vadd.f32 %v2049_v15, %v1905_v3  ;;  %v8311_v41 = vadd.f32 %v2063_v5, %v1907_v50  ;;  %v8313_v40 = vadd.f32 %v2056_v38, %v1913_v26  ;;  %v8319_v42 = vadd.f32 %v2070_v23, %v1915_v1 }
 0x37a   :  { %v8315_v13 = vadd.f32 %v2071_v9, %v1909_v4  ;;  %v8317_v62 = vadd.f32 %v2073_v48, %v1911_v8  ;;  %v8321_v14 = vadd.f32 %v2072_v7, %v1917_v58  ;;  %v8325_v61 = vadd.f32 %v2074_v63, %v1919_v19 }
 0x37b   :  { %v6173_v55 = vmul.f32 -1.442695, %v8309_v10  ;;  %v6174_v11 = vmul.f32 -1.442695, %v8311_v41  ;;  %v6177_v17 = vmul.f32 -1.442695, %v8313_v40 }
 0x37c   :  { %v6175_v39 = vmul.f32 -1.442695, %v8315_v13  ;;  %v6176_v57 = vmul.f32 -1.442695, %v8317_v62  ;;  %v2147_v36 = vrot.slane %v8309_v10, 1  ;;  %v2148_v22 = vrot.slane %v8311_v41, 1 }
 0x37d   :  { %6678 = vpow2.f32 %v6173_v55  ;;  %v6178_v21 = vmul.f32 -1.442695, %v8319_v42  ;;  %v6179_v25 = vmul.f32 -1.442695, %v8321_v14  ;;  %v2149_v45 = vrot.slane %v8315_v13, 1 }
 0x37e   :  { %6680 = vpow2.f32 %v6174_v11  ;;  %v6180_v27 = vmul.f32 -1.442695, %v8325_v61  ;;  %v2150_v28 = vrot.slane %v8317_v62, 1  ;;  %v2151_v29 = vrot.slane %v8313_v40, 1 }
 0x37f   :  { %6682 = vpow2.f32 %v6175_v39  ;;  %v6181_v30 = vmul.f32 -1.442695, %v2147_v36  ;;  %v2152_v31 = vrot.slane %v8319_v42, 1  ;;  %v6182_v32 = vmul.f32 -1.442695, %v2148_v22 }
 0x380   :  { %6684 = vpow2.f32 %v6176_v57  ;;  %v2153_v33 = vrot.slane %v8321_v14, 1  ;;  %v6183_v37 = vmul.f32 -1.442695, %v2149_v45  ;;  %v2154_v43 = vrot.slane %v8325_v61, 1 }
 0x381   :  { %6686 = vpow2.f32 %v6177_v17  ;;  %v6184_v44 = vmul.f32 -1.442695, %v2150_v28  ;;  %v6185_v47 = vmul.f32 -1.442695, %v2151_v29  ;;  %v6186_v49 = vmul.f32 -1.442695, %v2152_v31 }
 0x382   :  { %6688 = vpow2.f32 %v6178_v21  ;;  %v6187_v51 = vmul.f32 -1.442695, %v2153_v33  ;;  %v6188_v52 = vmul.f32 -1.442695, %v2154_v43  ;;  %v2211_v57 = vrot.slane %v8309_v10, 2 }
 0x383   :  { %6690 = vpow2.f32 %v6179_v25  ;;  %v2212_v21 = vrot.slane %v8311_v41, 2  ;;  %v2213_v25 = vrot.slane %v8315_v13, 2  ;;  %v2215_v29 = vrot.slane %v8313_v40, 2 }
 0x384   :  { %6692 = vpow2.f32 %v6180_v27  ;;  %v2214_v27 = vrot.slane %v8317_v62, 2  ;;  %v2300_v31 = vcombine.high %v8246_v2, %v8246_v2  ;;  %v2216_v33 = vrot.slane %v8319_v42, 2 }
 0x385   :  { %6694 = vpow2.f32 %v6181_v30  ;;  %v2235_v30 = vrot.slane %v8309_v10, 3  ;;  %v2307_v43 = vrot.slane %v8246_v2, %v7927_v6  ;;  %v2237_v10 = vrot.slane %v8315_v13, 3 }
 0x386   :  { %6696 = vpow2.f32 %v6182_v32 }
 0x387   :  { %6698 = vpow2.f32 %v6183_v37  ;;  %v2236_v37 = vrot.slane %v8311_v41, 3  ;;  %v2239_v41 = vrot.slane %v8313_v40, 3 }
 0x388   :  { %6700 = vpow2.f32 %v6184_v44 }
 0x389   :  { %6702 = vpow2.f32 %v6185_v47  ;;  %v2217_v47 = vrot.slane %v8321_v14, 2  ;;  %v6190_v13 = vmul.f32 -1.442695, %v2236_v37 }
 0x38a   :  { %v6679_v53 = vpop.eup %6678  ;;  %6704 = vpow2.f32 %v6186_v49 }
 0x38b   :  { %v6681_v59 = vpop.eup %6680  ;;  %v2115_v35 = vadd.f32 1.0, %v6679_v53  ;;  %6706 = vpow2.f32 %v6187_v51  ;;  %v2218_v51 = vrot.slane %v8325_v61, 2 }
 0x38c   :  { %v6683_v0 = vpop.eup %6682  ;;  %v2116_v18 = vadd.f32 1.0, %v6681_v59  ;;  %6708 = vpow2.f32 %v6188_v52  ;;  %v2238_v52 = vrot.slane %v8317_v62, 3  ;;  %v6189_v59 = vmul.f32 -1.442695, %v2235_v30 }
 0x38d   :  { %v6685_v16 = vpop.eup %6684  ;;  %v2117_v54 = vadd.f32 1.0, %v6683_v0  ;;  %6710 = vrcp.f32 %v2115_v35  ;;  %v2314_v35 = vrot.slane %v2300_v31, %v7927_v6 }
 0x38e   :  { %v6687_v46 = vpop.eup %6686  ;;  %v2118_v60 = vadd.f32 1.0, %v6685_v16  ;;  %6712 = vrcp.f32 %v2116_v18  ;;  %v2240_v18 = vrot.slane %v8319_v42, 3  ;;  %v2315_v16 = vcombine.high %v2307_v43, %v2307_v43 }
 0x38f   :  { %v6689_v12 = vpop.eup %6688  ;;  %v2119_v56 = vadd.f32 1.0, %v6687_v46  ;;  %6714 = vrcp.f32 %v2117_v54  ;;  %v2241_v46 = vrot.slane %v8321_v14, 3 }
 0x390   :  { %v6691_v20 = vpop.eup %6690  ;;  %v2120_v15 = vadd.f32 1.0, %v6689_v12  ;;  %6716 = vrcp.f32 %v2118_v60  ;;  %v6191_v60 = vmul.f32 -1.442695, %v2237_v10  ;;  %v2242_v12 = vrot.slane %v8325_v61, 3 }
 0x391   :  { %v6693_v38 = vpop.eup %6692  ;;  %v2121_v5 = vadd.f32 1.0, %v6691_v20  ;;  %6718 = vrcp.f32 %v2119_v56  ;;  %v6192_v56 = vmul.f32 -1.442695, %v2238_v52  ;;  %v6193_v20 = vmul.f32 -1.442695, %v2239_v41 }
 0x392   :  { %v6695_v23 = vpop.eup %6694  ;;  %v2122_v3 = vadd.f32 1.0, %v6693_v38  ;;  %6720 = vrcp.f32 %v2120_v15  ;;  %v2316_v15 = vcombine.high %v2314_v35, %v2314_v35  ;;  %v2323_v38 = vrot.slane %v2307_v43, %v7927_v6 }
 0x393   :  { %v6697_v50 = vpop.eup %6696  ;;  %6722 = vrcp.f32 %v2121_v5  ;;  %v2187_v4 = vadd.f32 1.0, %v6695_v23  ;;  %v6194_v42 = vmul.f32 -1.442695, %v2240_v18  ;;  %v2337_v23 = vrot.slane %v2315_v16, %v7927_v6 }
 0x394   :  { %v6699_v26 = vpop.eup %6698  ;;  %6724 = vrcp.f32 %v2122_v3  ;;  %v2188_v9 = vadd.f32 1.0, %v6697_v50  ;;  %v6195_v14 = vmul.f32 -1.442695, %v2241_v46  ;;  %v2330_v61 = vrot.slane %v2314_v35, %v7927_v6 }
 0x395   :  { %v6701_v7 = vpop.eup %6700  ;;  %v2189_v48 = vadd.f32 1.0, %v6699_v26  ;;  %6726 = vrcp.f32 %v2187_v4  ;;  %v6196_v4 = vmul.f32 -1.442695, %v2242_v12 }
 0x396   :  { %v6703_v63 = vpop.eup %6702  ;;  %v2190_v8 = vadd.f32 1.0, %v6701_v7  ;;  %6728 = vrcp.f32 %v2188_v9  ;;  %v2344_v9 = vrot.slane %v2316_v15, %v7927_v6  ;;  %v2345_v7 = vcombine.high %v2323_v38, %v2323_v38 }
 0x397   :  { %v6705_v1 = vpop.eup %6704  ;;  %v2191_v58 = vadd.f32 1.0, %v6703_v63  ;;  %6730 = vrcp.f32 %v2189_v48 }
 0x398   :  { %v6707_v19 = vpop.eup %6706  ;;  %v2192_v55 = vadd.f32 1.0, %v6705_v1  ;;  %6732 = vrcp.f32 %v2190_v8  ;;  %v2347_v8 = vcombine.high %v2337_v23, %v2337_v23 }
 0x399   :  { %v6709_v11 = vpop.eup %6708  ;;  %v2193_v39 = vadd.f32 1.0, %v6707_v19  ;;  %6734 = vrcp.f32 %v2191_v58 }
 0x39a   :  { %v8342_v17 = vpop.eup %6710  ;;  %v2194_v36 = vadd.f32 1.0, %v6709_v11  ;;  %6736 = vrcp.f32 %v2192_v55 }
 0x39b   :  { %v8345_v22 = vpop.eup %6712  ;;  %6738 = vrcp.f32 %v2193_v39  ;;  %v2346_v39 = vcombine.high %v2330_v61, %v2330_v61 }
 0x39c   :  { %v8348_v45 = vpop.eup %6714  ;;  %6740 = vrcp.f32 %v2194_v36 }
 0x39d   :  { %v8351_v28 = vpop.eup %6716  ;;  %6742 = vtanh.f32 %v2211_v57 }
 0x39e   :  { %v8357_v32 = vpop.eup %6718  ;;  %6744 = vtanh.f32 %v2212_v21 }
 0x39f   :  { %v8363_v44 = vpop.eup %6720  ;;  %6746 = vtanh.f32 %v2213_v25  ;;  %v2348_v25 = vcombine.high %v2344_v9, %v2344_v9 }
 0x3a0   :  { %v8367_v49 = vpop.eup %6722  ;;  %6748 = vtanh.f32 %v2214_v27 }
 0x3a1   :  { %v8371_v53 = vpop.eup %6724  ;;  %6750 = vtanh.f32 %v2215_v29 }
 0x3a2   :  { %v6727_v0 = vpop.eup %6726  ;;  %6752 = vtanh.f32 %v2216_v33 }
 0x3a3   :  { %v6729_v54 = vpop.eup %6728  ;;  %6754 = vtanh.f32 %v2217_v47  ;;  %v2357_v48 = vmul.f32 %v6727_v0, %v2323_v38 }
 0x3a4   :  { %v6731_v62 = vpop.eup %6730  ;;  %6756 = vtanh.f32 %v2218_v51  ;;  %v2358_v1 = vmul.f32 %v6729_v54, %v2337_v23 }
 0x3a5   :  { %v6733_v40 = vpop.eup %6732  ;;  %6758 = vpow2.f32 %v6189_v59  ;;  %v2359_v19 = vmul.f32 %v6731_v62, %v2345_v7 }
 0x3a6   :  { %v6735_v5 = vpop.eup %6734  ;;  %6760 = vpow2.f32 %v6190_v13  ;;  %v2360_v57 = vmul.f32 %v6733_v40, %v2347_v8 }
 0x3a7   :  { %v6737_v3 = vpop.eup %6736  ;;  %6762 = vpow2.f32 %v6191_v60  ;;  %v2361_v27 = vmul.f32 %v6735_v5, %v2330_v61 }
 0x3a8   :  { %v6739_v50 = vpop.eup %6738  ;;  %6764 = vpow2.f32 %v6192_v56  ;;  %v2362_v33 = vmul.f32 %v6737_v3, %v2344_v9 }
 0x3a9   :  { %v6741_v26 = vpop.eup %6740  ;;  %6766 = vpow2.f32 %v6193_v20  ;;  %v2363_v37 = vmul.f32 %v6739_v50, %v2346_v39 }
 0x3aa   :  { %v6743_v63 = vpop.eup %6742  ;;  %6768 = vpow2.f32 %v6194_v42 }
 0x3ab   :  { %v6745_v58 = vpop.eup %6744  ;;  %6770 = vpow2.f32 %v6195_v14  ;;  %v2365_v55 = vmul.f32 %v6743_v63, %v8342_v17  ;;  %v2364_v17 = vmul.f32 %v6741_v26, %v2348_v25 }
 0x3ac   :  { %v6747_v11 = vpop.eup %6746  ;;  %6772 = vpow2.f32 %v6196_v4  ;;  %v2366_v36 = vmul.f32 %v6745_v58, %v8345_v22 }
 0x3ad   :  { %v6749_v21 = vpop.eup %6748  ;;  %v2367_v29 = vmul.f32 %v6747_v11, %v8348_v45  ;;  %v2373_v30 = vadd.f32 %v2365_v55, %v2357_v48  ;;  %v2403_v48 = vpop.permute.xlu1 %2402 }
 0x3ae   :  { %v6751_v31 = vpop.eup %6750  ;;  %v2368_v43 = vmul.f32 %v6749_v21, %v8351_v28  ;;  %v2374_v47 = vadd.f32 %v2366_v36, %v2358_v1  ;;  %vm2404_vm12 = vcmp.eq.s32.totalorder %v2403_v48, 1  ;;  %v8433_v48 = vld [vmem:[#allocation8 + $0xc0] ss:$16 sps:$4 sm:$0xff]  }
 0x3af   :  { %v6753_v10 = vpop.eup %6752  ;;  %v2369_v51 = vmul.f32 %v6751_v31, %v8357_v32  ;;  %v2375_v52 = vadd.f32 %v2367_v29, %v2359_v19  ;;  %6774 = vtanh.f32 %v2373_v30 }
 0x3b0   :  { %v6755_v41 = vpop.eup %6754  ;;  %v2370_v22 = vmul.f32 %v6753_v10, %v8363_v44  ;;  %v2376_v59 = vadd.f32 %v2368_v43, %v2360_v57  ;;  %6776 = vtanh.f32 %v2374_v47  ;;  %v2539_v35 = vcombine.low %v2373_v30, %v2374_v47 }
 0x3b1   :  { %v6757_v45 = vpop.eup %6756  ;;  %v2371_v0 = vmul.f32 %v6755_v41, %v8367_v49  ;;  %v2377_v18 = vadd.f32 %v2369_v51, %v2361_v27  ;;  %6778 = vtanh.f32 %v2375_v52 }
 0x3b2   :  { %v6759_v13 = vpop.eup %6758  ;;  %v2372_v28 = vmul.f32 %v6757_v45, %v8371_v53  ;;  %v2378_v16 = vadd.f32 %v2370_v22, %v2362_v33  ;;  %6780 = vtanh.f32 %v2376_v59  ;;  %v2540_v54 = vcombine.low %v2375_v52, %v2376_v59 }
 0x3b3   :  { %v6761_v32 = vpop.eup %6760  ;;  %v2275_v46 = vadd.f32 1.0, %v6759_v13  ;;  %v2379_v60 = vadd.f32 %v2371_v0, %v2363_v37  ;;  %6782 = vtanh.f32 %v2377_v18  ;;  %v2549_v49 = vrot.slane %v2539_v35, %v7927_v6 }
 0x3b4   :  { %v6763_v62 = vpop.eup %6762  ;;  %v2276_v44 = vadd.f32 1.0, %v6761_v32  ;;  %v2380_v12 = vadd.f32 %v2372_v28, %v2364_v17  ;;  %6784 = vtanh.f32 %v2378_v16  ;;  %v2541_v56 = vcombine.low %v2377_v18, %v2378_v16 }
 0x3b5   :  { %v6765_v40 = vpop.eup %6764  ;;  %v2277_v20 = vadd.f32 1.0, %v6763_v62  ;;  %6786 = vrcp.f32 %v2275_v46  ;;  %v2556_v15 = vrot.slane %v2540_v54, %v7927_v6 }
 0x3b6   :  { %v6767_v53 = vpop.eup %6766  ;;  %v2278_v38 = vadd.f32 1.0, %v6765_v40  ;;  %6788 = vrcp.f32 %v2276_v44  ;;  %v2542_v5 = vcombine.low %v2379_v60, %v2380_v12  ;;  %v2563_v4 = vrot.slane %v2541_v56, %v7927_v6 }
 0x3b7   :  { %v6769_v42 = vpop.eup %6768  ;;  %v2279_v23 = vadd.f32 1.0, %v6767_v53  ;;  %6790 = vrcp.f32 %v2277_v20  ;;  %v2571_v3 = vcombine.low %v2549_v49, %v2556_v15 }
 0x3b8   :  { %v6771_v14 = vpop.eup %6770  ;;  %v2280_v50 = vadd.f32 1.0, %v6769_v42  ;;  %6792 = vrcp.f32 %v2278_v38  ;;  %v2570_v61 = vrot.slane %v2542_v5, %v7927_v6  ;;  %v8416_v42 = vld [vmem:[#allocation8 + $0xe0] ss:$16 sps:$4 sm:$0xff]  }
 0x3b9   :  { %v6773_v26 = vpop.eup %6772  ;;  %v2281_v9 = vadd.f32 1.0, %v6771_v14  ;;  %6794 = vrcp.f32 %v2279_v23  ;;  %v2579_v8 = vrot.slane %v2571_v3, %v7927_v6 }
 0x3ba   :  { %v2282_v7 = vadd.f32 1.0, %v6773_v26  ;;  %6796 = vrcp.f32 %v2280_v50  ;;  %v2572_v63 = vcombine.low %v2563_v4, %v2570_v61  ;;  %v8424_v4 = vld [vmem:[#allocation8 + $0xc4] ss:$16 sps:$4 sm:$0xff]   ;;  %v8427_v61 = vld [vmem:[#allocation8 + $0xcc] ss:$16 sps:$4 sm:$0xff]  }
 0x3bb   :  { %6798 = vrcp.f32 %v2281_v9 }
 0x3bc   :  { %v6775_v1 = vpop.eup %6774  ;;  %6800 = vrcp.f32 %v2282_v7  ;;  %v2586_v58 = vrot.slane %v2572_v63, %v7927_v6  ;;  %v8436_v63 = vld [vmem:[#allocation8 + $0xc8] ss:$16 sps:$4 sm:$0xff]  }
 0x3bd   :  { %v6777_v19 = vpop.eup %6776  ;;  %6802 = vtanh.f32 %v2379_v60 }
 0x3be   :  { %v6779_v55 = vpop.eup %6778  ;;  %6804 = vtanh.f32 %v2380_v12  ;;  %v2587_v11 = vcombine.low %v2579_v8, %v2586_v58  ;;  %v8442_v58 = vld [vmem:[#allocation8 + $0xac] ss:$16 sps:$4 sm:$0xff]  }
 0x3bf   :  { %v6781_v39 = vpop.eup %6780 }
 0x3c0   :  { %v6783_v57 = vpop.eup %6782  ;;  %v8398_v36 = vsel %vm2404_vm12, %v2587_v11, %v8246_v2  ;;  %v8451_v11 = vld [vmem:[#allocation8 + $0x84] ss:$16 sps:$4 sm:$0xff]  }
 0x3c1   :  { %v6785_v21 = vpop.eup %6784 }
 0x3c2   :  { %v6787_v25 = vpop.eup %6786 }
 0x3c3   :  { %v6789_v27 = vpop.eup %6788  ;;  %v2389_v30 = vmul.f32 %v6787_v25, %v6775_v1  ;;  %v8439_v1 = vld [vmem:[#allocation8 + $0xa4] ss:$16 sps:$4 sm:$0xff]  }
 0x3c4   :  { %v6791_v29 = vpop.eup %6790  ;;  %v2390_v31 = vmul.f32 %v6789_v27, %v6777_v19  ;;  %v8445_v19 = vld [vmem:[#allocation8 + $0xa0] ss:$16 sps:$4 sm:$0xff]   ;;  %v8463_v25 = vld [vmem:[#allocation8 + $0x64] ss:$16 sps:$4 sm:$0xff]   ;;  %v8466_v27 = vld [vmem:[#allocation8 + $0x6c] ss:$16 sps:$4 sm:$0xff]  }
 0x3c5   :  { %v6793_v33 = vpop.eup %6792  ;;  %v2391_v37 = vmul.f32 %v6791_v29, %v6779_v55  ;;  %v8448_v55 = vld [vmem:[#allocation8 + $0xa8] ss:$16 sps:$4 sm:$0xff]   ;;  %v8469_v29 = vld [vmem:[#allocation8 + $0x60] ss:$16 sps:$4 sm:$0xff]  }
 0x3c6   :  { %v6795_v43 = vpop.eup %6794  ;;  %v2392_v47 = vmul.f32 %v6793_v33, %v6781_v39  ;;  %v2413_v41 = vcombine.low %v2389_v30, %v2390_v31  ;;  %v8454_v39 = vld [vmem:[#allocation8 + $0x8c] ss:$16 sps:$4 sm:$0xff]   ;;  %v8472_v30 = vld [vmem:[#allocation8 + $0x68] ss:$16 sps:$4 sm:$0xff]   ;;  %v8475_v31 = vld [vmem:[#allocation8 + $0x44] ss:$16 sps:$4 sm:$0xff]  }
 0x3c7   :  { %v6797_v10 = vpop.eup %6796  ;;  %v2393_v51 = vmul.f32 %v6795_v43, %v6783_v57  ;;  %v8457_v57 = vld [vmem:[#allocation8 + $0x80] ss:$16 sps:$4 sm:$0xff]   ;;  %v8478_v33 = vld [vmem:[#allocation8 + $0x4c] ss:$16 sps:$4 sm:$0xff]   ;;  %v8484_v43 = vld [vmem:[#allocation8 + $0x48] ss:$16 sps:$4 sm:$0xff]  }
 0x3c8   :  { %v6799_v17 = vpop.eup %6798  ;;  %v2394_v52 = vmul.f32 %v6797_v10, %v6785_v21  ;;  %v2414_v22 = vcombine.low %v2391_v37, %v2392_v47  ;;  %v2423_v28 = vrot.slane %v2413_v41, %v7927_v6  ;;  %v8460_v21 = vld [vmem:[#allocation8 + $0x88] ss:$16 sps:$4 sm:$0xff]   ;;  %v8481_v37 = vld [vmem:[#allocation8 + $0x40] ss:$16 sps:$4 sm:$0xff]   ;;  %9329 = vst [vmem:[#allocation17_spill] sm:$0xff] %v8484_v43 }
 0x3c9   :  { %v6801_v59 = vpop.eup %6800  ;;  %v8487_v47 = vld [vmem:[#allocation8 + $0x24] ss:$16 sps:$4 sm:$0xff]   ;;  %v8490_v10 = vld [vmem:[#allocation8 + $0x2c] ss:$16 sps:$4 sm:$0xff]  }
 0x3ca   :  { %v6803_v35 = vpop.eup %6802  ;;  %v2430_v2 = vrot.slane %v2414_v22, %v7927_v6  ;;  %v2415_v13 = vcombine.low %v2393_v51, %v2394_v52  ;;  %9330 = vst [vmem:[#allocation18_spill] sm:$0xff] %v8487_v47  ;;  %9331 = vst [vmem:[#allocation19_spill] sm:$0xff] %v8490_v10  ;;  %v8496_v51 = vld [vmem:[#allocation8 + $0x28] ss:$16 sps:$4 sm:$0xff]   ;;  %v8499_v52 = vld [vmem:[#allocation8 + $0x4] ss:$16 sps:$4 sm:$0xff]  }
 0x3cb   :  { %v6805_v45 = vpop.eup %6804  ;;  %v2395_v0 = vmul.f32 %v6803_v35, %v6799_v17  ;;  %v8493_v17 = vld [vmem:[#allocation8 + $0x20] ss:$16 sps:$4 sm:$0xff]   ;;  %9333 = vst [vmem:[#allocation21_spill] sm:$0xff] %v8496_v51  ;;  %9334 = vst [vmem:[#allocation22_spill] sm:$0xff] %v8499_v52  ;;  %v8502_v41 = vld [vmem:[#allocation8 + $0xc] ss:$16 sps:$4 sm:$0xff]  }
 0x3cc   :  { %v2396_v18 = vmul.f32 %v6805_v45, %v6801_v59  ;;  %v2445_v54 = vcombine.low %v2423_v28, %v2430_v2  ;;  %v2437_v32 = vrot.slane %v2415_v13, %v7927_v6  ;;  %9332 = vst [vmem:[#allocation20_spill] sm:$0xff] %v8493_v17  ;;  %9335 = vst [vmem:[#allocation23_spill] sm:$0xff] %v8502_v41  ;;  %v8505_v22 = vld [vmem:[#allocation8] ss:$16 sps:$4 sm:$0xff]   ;;  %v8508_v59 = vld [vmem:[#allocation8 + $0x8] ss:$16 sps:$4 sm:$0xff]  }
 0x3cd   :  { %9336 = vst [vmem:[#allocation24_spill] sm:$0xff] %v8505_v22  ;;  %9337 = vst [vmem:[#allocation25_spill] sm:$0xff] %v8508_v59  ;;  %v8511_v35 = vld [vmem:[#allocation8 + $0xe4] ss:$16 sps:$4 sm:$0xff]   ;;  %v8514_v2 = vld [vmem:[#allocation8 + $0xec] ss:$16 sps:$4 sm:$0xff]  }
 0x3ce   :  { %v2416_v16 = vcombine.low %v2395_v0, %v2396_v18  ;;  %v2453_v62 = vrot.slane %v2445_v54, %v7927_v6  ;;  %9338 = vst [vmem:[#allocation26_spill] sm:$0xff] %v8511_v35  ;;  %9339 = vst [vmem:[#allocation27_spill] sm:$0xff] %v8514_v2 }
 0x3d0   :  { %v2444_v46 = vrot.slane %v2416_v16, %v7927_v6 }
 0x3d2   :  { %v2446_v60 = vcombine.low %v2437_v32, %v2444_v46 }
 0x3d4   :  { %v2460_v44 = vrot.slane %v2446_v60, %v7927_v6 }
 0x3d6   :  { %v2461_v12 = vcombine.low %v2453_v62, %v2460_v44 }
 0x3d8   :  { %v2463_v56 = vsel %vm2404_vm12, %v2461_v12, 0.0  ;;  %v8409_v40 = vsel %vm2404_vm12, %v2461_v12, %v8257_v24  ;;  %v8419_v24 = vld [vmem:[#allocation8 + $0xe8] ss:$16 sps:$4 sm:$0xff]  }
 0x3d9   :  { %v2465_v20 = vcombine.high %v2463_v56, %v2463_v56  ;;  %v2472_v49 = vrot.slane %v2463_v56, %v7927_v6  ;;  %v2606_v15 = vpack.c.bf16 %v8409_v40, %v8409_v40 }
 0x3db   :  { %v2479_v53 = vrot.slane %v2465_v20, %v7927_v6  ;;  %v2480_v38 = vcombine.high %v2472_v49, %v2472_v49  ;;  %v2488_v5 = vrot.slane %v2472_v49, %v7927_v6  ;;  %6198 = vst.sshfl [vmem:[#allocation9 + $0x2] sm:$0x1 pattern:$0x73625140] %v2472_v49  ;;  %2640 = vmatmul.mubr.bf16.vlgmr.msra.gmra.mxu0 %v2606_v15 }
 0x3dc   :  { %2681 = vmatmul.mubr.bf16.vlgmr.msra.gmra.mxu1 %v2606_v15  ;;  %3294 = vmatpush1.bf16.msra.mxu0 %v8416_v42 }
 0x3dd   :  { %3335 = vmatpush1.bf16.msra.mxu1 %v8419_v24  ;;  %v2481_v23 = vcombine.high %v2479_v53, %v2479_v53  ;;  %v2495_v3 = vrot.slane %v2479_v53, %v7927_v6  ;;  %v2502_v14 = vrot.slane %v2480_v38, %v7927_v6  ;;  %v2510_v50 = vcombine.high %v2488_v5, %v2488_v5 }
 0x3de   :  { %6199 = vst.sshfl [vmem:[#allocation9 + $0xa] sm:$0x1 pattern:$0x73625140] %v2480_v38  ;;  %3295 = vmatprep.subr.bf16.mxu0 %v8424_v4  ;;  %3336 = vmatprep.subr.bf16.mxu1 %v8427_v61 }
 0x3df   :  { %6200 = vst.sshfl [vmem:[#allocation9 + $0x22] sm:$0x1 pattern:$0x73625140] %v2479_v53  ;;  %3325 = vmatprep.mubr.bf16.mxu0 %v9318_v34  ;;  %v2509_v26 = vrot.slane %v2481_v23, %v7927_v6  ;;  %v2511_v9 = vcombine.high %v2495_v3, %v2495_v3  ;;  %v2512_v7 = vcombine.high %v2502_v14, %v2502_v14  ;;  %2524 = vst [vmem:[#allocation9 + $0x12] sm:$0x1] %v2510_v50 }
 0x3e0   :  { %6201 = vst.sshfl [vmem:[#allocation9 + $0x2a] sm:$0x1 pattern:$0x73625140] %v2481_v23  ;;  %3366 = vmatprep.mubr.bf16.mxu1 %v9318_v34  ;;  %3296 = vmatpush1.bf16.msra.mxu0 %v8433_v48 }
 0x3e1   :  { %3337 = vmatpush1.bf16.msra.mxu1 %v8436_v63  ;;  %v2513_v8 = vcombine.high %v2509_v26, %v2509_v26  ;;  %2525 = vst [vmem:[#allocation9 + $0x1a] sm:$0x1] %v2512_v7  ;;  %2528 = vst [vmem:[#allocation9 + $0x32] sm:$0x1] %v2511_v9  ;;  %3297 = vmatprep.subr.bf16.mxu0 %v8439_v1 }
 0x3e2   :  { %3338 = vmatprep.subr.bf16.mxu1 %v8442_v58  ;;  %v2591_v26 = vld [vmem:[#allocation2 + $0x3] ss:$8 sm:$0xf] }
 0x3e3   :  { %2529 = vst [vmem:[#allocation9 + $0x3a] sm:$0x1] %v2513_v8  ;;  %v2593_v9 = vld [vmem:[#allocation2 + $0x23] ss:$8 sm:$0xf] }
 0x3e4   :  { %3298 = vmatpush1.bf16.msra.mxu0 %v8445_v19  ;;  %v2595_v7 = vld [vmem:[#allocation2 + $0x43] ss:$8 sm:$0xf] }
 0x3e5   :  { %3339 = vmatpush1.bf16.msra.mxu1 %v8448_v55  ;;  %3299 = vmatprep.subr.bf16.mxu0 %v8451_v11  ;;  %v2599_v8 = vld [vmem:[#allocation2 + $0x83] ss:$8 sm:$0xf] }
 0x3e6   :  { %3340 = vmatprep.subr.bf16.mxu1 %v8454_v39 }
 0x3e8   :  { %3300 = vmatpush1.bf16.msra.mxu0 %v8457_v57 }
 0x3e9   :  { %3341 = vmatpush1.bf16.msra.mxu1 %v8460_v21  ;;  %3301 = vmatprep.subr.bf16.mxu0 %v8463_v25 }
 0x3ea   :  { %3342 = vmatprep.subr.bf16.mxu1 %v8466_v27 }
 0x3ec   :  { %3302 = vmatpush1.bf16.msra.mxu0 %v8469_v29 }
 0x3ed   :  { %3343 = vmatpush1.bf16.msra.mxu1 %v8472_v30  ;;  %3303 = vmatprep.subr.bf16.mxu0 %v8475_v31 }
 0x3ee   :  { %3344 = vmatprep.subr.bf16.mxu1 %v8478_v33 }
 0x3f0   :  { %3304 = vmatpush1.bf16.msra.mxu0 %v8481_v37 }
 0x3f1   :  { %3345 = vmatpush1.bf16.msra.mxu1 %v8484_v43  ;;  %3305 = vmatprep.subr.bf16.mxu0 %v8487_v47 }
 0x3f2   :  { %3346 = vmatprep.subr.bf16.mxu1 %v8490_v10 }
 0x3f4   :  { %3306 = vmatpush1.bf16.msra.mxu0 %v8493_v17 }
 0x3f5   :  { %3347 = vmatpush1.bf16.msra.mxu1 %v8496_v51  ;;  %3307 = vmatprep.subr.bf16.mxu0 %v8499_v52 }
 0x3f6   :  { %3348 = vmatprep.subr.bf16.mxu1 %v8502_v41 }
 0x3f8   :  { %3308 = vmatpush1.bf16.msra.mxu0 %v8505_v22 }
 0x3f9   :  { %3349 = vmatpush1.bf16.msra.mxu1 %v8508_v59  ;;  %3979 = vmatprep.subr.bf16.mxu0 %v8511_v35 }
 0x3fa   :  { %4020 = vmatprep.subr.bf16.mxu1 %v8514_v2 }
 0x49b   :  { %v2641_v45 = vpop.f32.mrf.mxu0 }
 0x49c   :  { %v2682_v0 = vpop.f32.mrf.mxu1 }
 0x49d   :  { %v2643_v18 = vpop.f32.mrf.mxu0 }
 0x49e   :  { %v2684_v13 = vpop.f32.mrf.mxu1  ;;  %v2693_v28 = vcombine.low %v2641_v45, %v2643_v18  ;;  %v2694_v16 = vcombine.high %v2641_v45, %v2643_v18 }
 0x49f   :  { %v2695_v54 = vcombine.low %v2682_v0, %v2684_v13  ;;  %v2696_v32 = vcombine.high %v2682_v0, %v2684_v13  ;;  %v2645_v46 = vpop.f32.mrf.mxu0 }
 0x4a0   :  { %v2686_v60 = vpop.f32.mrf.mxu1  ;;  %v2703_v62 = vrot.slane %v2693_v28, %v7927_v6  ;;  %v2710_v44 = vrot.slane %v2694_v16, %v7927_v6  ;;  %v2597_v28 = vld [vmem:[#allocation2 + $0x63] ss:$8 sm:$0xf] }
 0x4a1   :  { %v2717_v12 = vrot.slane %v2695_v54, %v7927_v6  ;;  %v2724_v56 = vrot.slane %v2696_v32, %v7927_v6  ;;  %v2646_v20 = vpop.f32.mrf.mxu0  ;;  %v2601_v16 = vld [vmem:[#allocation2 + $0xa3] ss:$8 sm:$0xf] }
 0x4a2   :  { %v2687_v49 = vpop.f32.mrf.mxu1  ;;  %v2603_v60 = vld [vmem:[#allocation2 + $0xc3] ss:$8 sm:$0xf] }
 0x4a3   :  { %v2725_v15 = vcombine.low %v2703_v62, %v2717_v12  ;;  %v2726_v53 = vcombine.high %v2703_v62, %v2717_v12  ;;  %v2727_v38 = vcombine.low %v2710_v44, %v2724_v56  ;;  %v2728_v5 = vcombine.high %v2710_v44, %v2724_v56  ;;  %v2605_v62 = vld [vmem:[#allocation2 + $0xe3] ss:$8 sm:$0xf] }
 0x4a5   :  { %v2735_v23 = vrot.slane %v2725_v15, %v7927_v6  ;;  %v2742_v3 = vrot.slane %v2727_v38, %v7927_v6  ;;  %v2749_v14 = vrot.slane %v2726_v53, %v7927_v6  ;;  %v2756_v50 = vrot.slane %v2728_v5, %v7927_v6 }
 0x4a7   :  { %v2757_v45 = vcombine.high %v2735_v23, %v2735_v23  ;;  %v2758_v0 = vcombine.high %v2742_v3, %v2742_v3  ;;  %v2759_v18 = vcombine.high %v2749_v14, %v2749_v14  ;;  %v2760_v13 = vcombine.high %v2756_v50, %v2756_v50 }
 0x4a8   :  { %v8525_v54 = vadd.f32 %v2735_v23, %v2591_v26  ;;  %v8527_v32 = vadd.f32 %v2749_v14, %v2593_v9  ;;  %v8529_v46 = vadd.f32 %v2742_v3, %v2599_v8  ;;  %v8535_v56 = vadd.f32 %v2756_v50, %v2601_v16 }
 0x4a9   :  { %v8531_v44 = vadd.f32 %v2757_v45, %v2595_v7  ;;  %v8533_v12 = vadd.f32 %v2759_v18, %v2597_v28  ;;  %v8537_v20 = vadd.f32 %v2758_v0, %v2603_v60  ;;  %v8541_v53 = vadd.f32 %v2760_v13, %v2605_v62 }
 0x4aa   :  { %v6202_v49 = vmul.f32 -1.442695, %v8525_v54  ;;  %v6203_v15 = vmul.f32 -1.442695, %v8527_v32  ;;  %v6206_v23 = vmul.f32 -1.442695, %v8529_v46 }
 0x4ab   :  { %v6204_v38 = vmul.f32 -1.442695, %v8531_v44  ;;  %v6205_v5 = vmul.f32 -1.442695, %v8533_v12  ;;  %v2833_v3 = vrot.slane %v8525_v54, 1  ;;  %v2834_v50 = vrot.slane %v8527_v32, 1 }
 0x4ac   :  { %6806 = vpow2.f32 %v6202_v49  ;;  %v6207_v14 = vmul.f32 -1.442695, %v8535_v56  ;;  %v6208_v26 = vmul.f32 -1.442695, %v8537_v20  ;;  %v2835_v9 = vrot.slane %v8531_v44, 1 }
 0x4ad   :  { %6808 = vpow2.f32 %v6203_v15  ;;  %v6209_v7 = vmul.f32 -1.442695, %v8541_v53  ;;  %v2836_v8 = vrot.slane %v8533_v12, 1  ;;  %v2837_v45 = vrot.slane %v8529_v46, 1 }
 0x4ae   :  { %6810 = vpow2.f32 %v6204_v38  ;;  %v6210_v0 = vmul.f32 -1.442695, %v2833_v3  ;;  %v2838_v18 = vrot.slane %v8535_v56, 1  ;;  %v6211_v13 = vmul.f32 -1.442695, %v2834_v50 }
 0x4af   :  { %6812 = vpow2.f32 %v6205_v5  ;;  %v2839_v28 = vrot.slane %v8537_v20, 1  ;;  %v6212_v16 = vmul.f32 -1.442695, %v2835_v9  ;;  %v2840_v60 = vrot.slane %v8541_v53, 1 }
 0x4b0   :  { %6814 = vpow2.f32 %v6206_v23  ;;  %v6213_v62 = vmul.f32 -1.442695, %v2836_v8  ;;  %v6214_v49 = vmul.f32 -1.442695, %v2837_v45  ;;  %v6215_v15 = vmul.f32 -1.442695, %v2838_v18 }
 0x4b1   :  { %6816 = vpow2.f32 %v6207_v14  ;;  %v6216_v38 = vmul.f32 -1.442695, %v2839_v28  ;;  %v6217_v5 = vmul.f32 -1.442695, %v2840_v60  ;;  %v2928_v52 = vrot.slane %v8541_v53, 3 }
 0x4b2   :  { %6818 = vpow2.f32 %v6208_v26 }
 0x4b3   :  { %6820 = vpow2.f32 %v6209_v7 }
 0x4b4   :  { %6822 = vpow2.f32 %v6210_v0 }
 0x4b5   :  { %6824 = vpow2.f32 %v6211_v13 }
 0x4b6   :  { %6826 = vpow2.f32 %v6212_v16 }
 0x4b7   :  { %6828 = vpow2.f32 %v6213_v62 }
 0x4b8   :  { %6830 = vpow2.f32 %v6214_v49 }
 0x4b9   :  { %v6807_v23 = vpop.eup %6806  ;;  %6832 = vpow2.f32 %v6215_v15 }
 0x4ba   :  { %v6809_v3 = vpop.eup %6808  ;;  %v2801_v14 = vadd.f32 1.0, %v6807_v23  ;;  %6834 = vpow2.f32 %v6216_v38 }
 0x4bb   :  { %v6811_v50 = vpop.eup %6810  ;;  %v2802_v26 = vadd.f32 1.0, %v6809_v3  ;;  %6836 = vpow2.f32 %v6217_v5 }
 0x4bc   :  { %v6813_v9 = vpop.eup %6812  ;;  %v2803_v7 = vadd.f32 1.0, %v6811_v50  ;;  %6838 = vrcp.f32 %v2801_v14 }
 0x4bd   :  { %v6815_v8 = vpop.eup %6814  ;;  %v2804_v45 = vadd.f32 1.0, %v6813_v9  ;;  %6840 = vrcp.f32 %v2802_v26 }
 0x4be   :  { %v6817_v0 = vpop.eup %6816  ;;  %v2805_v18 = vadd.f32 1.0, %v6815_v8  ;;  %6842 = vrcp.f32 %v2803_v7 }
 0x4bf   :  { %v6819_v13 = vpop.eup %6818  ;;  %v2806_v28 = vadd.f32 1.0, %v6817_v0  ;;  %6844 = vrcp.f32 %v2804_v45 }
 0x4c0   :  { %v6821_v16 = vpop.eup %6820  ;;  %v2807_v60 = vadd.f32 1.0, %v6819_v13  ;;  %6846 = vrcp.f32 %v2805_v18  ;;  %v2897_v13 = vrot.slane %v8525_v54, 2 }
 0x4c1   :  { %v6823_v62 = vpop.eup %6822  ;;  %v2808_v49 = vadd.f32 1.0, %v6821_v16  ;;  %6848 = vrcp.f32 %v2806_v28 }
 0x4c2   :  { %v6825_v15 = vpop.eup %6824  ;;  %6850 = vrcp.f32 %v2807_v60  ;;  %v2873_v38 = vadd.f32 1.0, %v6823_v62  ;;  %v2898_v60 = vrot.slane %v8527_v32, 2 }
 0x4c3   :  { %v6827_v5 = vpop.eup %6826  ;;  %6852 = vrcp.f32 %v2808_v49  ;;  %v2874_v23 = vadd.f32 1.0, %v6825_v15  ;;  %v2899_v49 = vrot.slane %v8531_v44, 2 }
 0x4c4   :  { %v6829_v3 = vpop.eup %6828  ;;  %v2875_v14 = vadd.f32 1.0, %v6827_v5  ;;  %6854 = vrcp.f32 %v2873_v38  ;;  %v2900_v38 = vrot.slane %v8533_v12, 2 }
 0x4c5   :  { %v6831_v50 = vpop.eup %6830  ;;  %v2876_v26 = vadd.f32 1.0, %v6829_v3  ;;  %6856 = vrcp.f32 %v2874_v23  ;;  %v2986_v23 = vcombine.high %v8398_v36, %v8398_v36  ;;  %v2901_v3 = vrot.slane %v8529_v46, 2 }
 0x4c6   :  { %v6833_v9 = vpop.eup %6832  ;;  %v2877_v7 = vadd.f32 1.0, %v6831_v50  ;;  %6858 = vrcp.f32 %v2875_v14  ;;  %v2921_v14 = vrot.slane %v8525_v54, 3  ;;  %v2904_v54 = vrot.slane %v8541_v53, 2 }
 0x4c7   :  { %v6835_v8 = vpop.eup %6834  ;;  %v2878_v45 = vadd.f32 1.0, %v6833_v9  ;;  %6860 = vrcp.f32 %v2876_v26  ;;  %v2993_v26 = vrot.slane %v8398_v36, %v7927_v6  ;;  %v2902_v9 = vrot.slane %v8535_v56, 2 }
 0x4c8   :  { %v6837_v0 = vpop.eup %6836  ;;  %v2879_v18 = vadd.f32 1.0, %v6835_v8  ;;  %6862 = vrcp.f32 %v2877_v7  ;;  %v2922_v7 = vrot.slane %v8527_v32, 3  ;;  %v2925_v32 = vrot.slane %v8529_v46, 3 }
 0x4c9   :  { %v8558_v28 = vpop.eup %6838  ;;  %v2880_v16 = vadd.f32 1.0, %v6837_v0  ;;  %6864 = vrcp.f32 %v2878_v45  ;;  %v2903_v45 = vrot.slane %v8537_v20, 2  ;;  %v2923_v0 = vrot.slane %v8531_v44, 3 }
 0x4ca   :  { %v8561_v62 = vpop.eup %6840  ;;  %6866 = vrcp.f32 %v2879_v18  ;;  %v6218_v2 = vmul.f32 -1.442695, %v2921_v14  ;;  %v3001_v59 = vcombine.high %v2993_v26, %v2993_v26  ;;  %v2926_v44 = vrot.slane %v8535_v56, 3 }
 0x4cb   :  { %v8564_v15 = vpop.eup %6842  ;;  %6868 = vrcp.f32 %v2880_v16  ;;  %v6220_v41 = vmul.f32 -1.442695, %v2923_v0  ;;  %v3009_v46 = vrot.slane %v2993_v26, %v7927_v6  ;;  %v6222_v14 = vmul.f32 -1.442695, %v2925_v32 }
 0x4cc   :  { %v8567_v5 = vpop.eup %6844  ;;  %6870 = vtanh.f32 %v2897_v13  ;;  %v2924_v13 = vrot.slane %v8533_v12, 3  ;;  %v3023_v56 = vrot.slane %v3001_v59, %v7927_v6  ;;  %v6225_v53 = vmul.f32 -1.442695, %v2928_v52 }
 0x4cd   :  { %v8573_v50 = vpop.eup %6846  ;;  %6872 = vtanh.f32 %v2898_v60  ;;  %v3000_v60 = vrot.slane %v2986_v23, %v7927_v6  ;;  %v3031_v10 = vcombine.high %v3009_v46, %v3009_v46 }
 0x4ce   :  { %v8579_v8 = vpop.eup %6848  ;;  %6874 = vtanh.f32 %v2899_v49  ;;  %v6219_v49 = vmul.f32 -1.442695, %v2922_v7  ;;  %v6221_v23 = vmul.f32 -1.442695, %v2924_v13  ;;  %v6223_v7 = vmul.f32 -1.442695, %v2926_v44 }
 0x4cf   :  { %v8583_v18 = vpop.eup %6850  ;;  %6876 = vtanh.f32 %v2900_v38  ;;  %v2927_v38 = vrot.slane %v8537_v20, 3  ;;  %v3002_v51 = vcombine.high %v3000_v60, %v3000_v60  ;;  %v3033_v32 = vcombine.high %v3023_v56, %v3023_v56 }
 0x4d0   :  { %v8587_v16 = vpop.eup %6852  ;;  %6878 = vtanh.f32 %v2901_v3 }
 0x4d1   :  { %v6855_v35 = vpop.eup %6854  ;;  %6880 = vtanh.f32 %v2902_v9  ;;  %v6224_v20 = vmul.f32 -1.442695, %v2927_v38  ;;  %v3030_v17 = vrot.slane %v3002_v51, %v7927_v6 }
 0x4d2   :  { %v6857_v22 = vpop.eup %6856  ;;  %6882 = vtanh.f32 %v2903_v45 }
 0x4d3   :  { %v6859_v12 = vpop.eup %6858  ;;  %6884 = vtanh.f32 %v2904_v54  ;;  %v3016_v54 = vrot.slane %v3000_v60, %v7927_v6  ;;  %v3044_v59 = vmul.f32 %v6857_v22, %v3023_v56  ;;  %v3034_v51 = vcombine.high %v3030_v17, %v3030_v17 }
 0x4d4   :  { %v6861_v3 = vpop.eup %6860  ;;  %6886 = vpow2.f32 %v6218_v2  ;;  %v3043_v2 = vmul.f32 %v6855_v35, %v3009_v46  ;;  %v3045_v44 = vmul.f32 %v6859_v12, %v3031_v10 }
 0x4d5   :  { %v6863_v9 = vpop.eup %6862  ;;  %6888 = vpow2.f32 %v6219_v49  ;;  %v3032_v47 = vcombine.high %v3016_v54, %v3016_v54  ;;  %v3046_v60 = vmul.f32 %v6861_v3, %v3033_v32 }
 0x4d6   :  { %v6865_v45 = vpop.eup %6864  ;;  %6890 = vpow2.f32 %v6220_v41  ;;  %v3047_v43 = vmul.f32 %v6863_v9, %v3016_v54 }
 0x4d7   :  { %v6867_v0 = vpop.eup %6866  ;;  %6892 = vpow2.f32 %v6221_v23 }
 0x4d8   :  { %v6869_v13 = vpop.eup %6868  ;;  %6894 = vpow2.f32 %v6222_v14  ;;  %v3049_v12 = vmul.f32 %v6867_v0, %v3032_v47 }
 0x4d9   :  { %v6871_v26 = vpop.eup %6870  ;;  %6896 = vpow2.f32 %v6223_v7  ;;  %v3048_v7 = vmul.f32 %v6865_v45, %v3030_v17 }
 0x4da   :  { %v6873_v49 = vpop.eup %6872  ;;  %6898 = vpow2.f32 %v6224_v20  ;;  %v3051_v41 = vmul.f32 %v6871_v26, %v8558_v28  ;;  %v3050_v28 = vmul.f32 %v6869_v13, %v3034_v51 }
 0x4db   :  { %v6875_v38 = vpop.eup %6874  ;;  %6900 = vpow2.f32 %v6225_v53  ;;  %v3052_v52 = vmul.f32 %v6873_v49, %v8561_v62 }
 0x4dc   :  { %v6877_v23 = vpop.eup %6876  ;;  %v3053_v35 = vmul.f32 %v6875_v38, %v8564_v15  ;;  %v3059_v46 = vadd.f32 %v3051_v41, %v3043_v2 }
 0x4dd   :  { %v6879_v14 = vpop.eup %6878  ;;  %v3054_v22 = vmul.f32 %v6877_v23, %v8567_v5  ;;  %v3060_v56 = vadd.f32 %v3052_v52, %v3044_v59 }
 0x4de   :  { %v6881_v10 = vpop.eup %6880  ;;  %v3055_v20 = vmul.f32 %v6879_v14, %v8573_v50  ;;  %v3061_v53 = vadd.f32 %v3053_v35, %v3045_v44  ;;  %6902 = vtanh.f32 %v3059_v46 }
 0x4df   :  { %v6883_v3 = vpop.eup %6882  ;;  %v3056_v62 = vmul.f32 %v6881_v10, %v8579_v8  ;;  %v3062_v26 = vadd.f32 %v3054_v22, %v3046_v60  ;;  %v3225_v9 = vcombine.low %v3059_v46, %v3060_v56  ;;  %6904 = vtanh.f32 %v3060_v56 }
 0x4e0   :  { %v6885_v54 = vpop.eup %6884  ;;  %v3057_v15 = vmul.f32 %v6883_v3, %v8583_v18  ;;  %v3063_v2 = vadd.f32 %v3055_v20, %v3047_v43  ;;  %6906 = vtanh.f32 %v3061_v53 }
 0x4e1   :  { %v6887_v17 = vpop.eup %6886  ;;  %v3058_v5 = vmul.f32 %v6885_v54, %v8587_v16  ;;  %v3064_v45 = vadd.f32 %v3056_v62, %v3048_v7  ;;  %v3226_v47 = vcombine.low %v3061_v53, %v3062_v26  ;;  %v3235_v43 = vrot.slane %v3225_v9, %v7927_v6  ;;  %v3089_v62 = vpop.permute.xlu1 %3088 }
 0x4e2   :  { %v6889_v0 = vpop.eup %6888  ;;  %v2961_v50 = vadd.f32 1.0, %v6887_v17  ;;  %v3065_v13 = vadd.f32 %v3057_v15, %v3049_v12  ;;  %6908 = vtanh.f32 %v3063_v2  ;;  %vm3090_vm13 = vcmp.eq.s32.totalorder %v3089_v62, 1 }
 0x4e3   :  { %v6891_v32 = vpop.eup %6890  ;;  %v2962_v8 = vadd.f32 1.0, %v6889_v0  ;;  %v3066_v59 = vadd.f32 %v3058_v5, %v3050_v28  ;;  %6910 = vtanh.f32 %v3064_v45  ;;  %v3227_v49 = vcombine.low %v3063_v2, %v3064_v45 }
 0x4e4   :  { %v6893_v44 = vpop.eup %6892  ;;  %v2963_v41 = vadd.f32 1.0, %v6891_v32  ;;  %6912 = vrcp.f32 %v2961_v50  ;;  %v3242_v18 = vrot.slane %v3226_v47, %v7927_v6 }
 0x4e5   :  { %v6895_v16 = vpop.eup %6894  ;;  %v2964_v38 = vadd.f32 1.0, %v6893_v44  ;;  %6914 = vrcp.f32 %v2962_v8  ;;  %v3228_v60 = vcombine.low %v3065_v13, %v3066_v59  ;;  %v3249_v14 = vrot.slane %v3227_v49, %v7927_v6 }
 0x4e6   :  { %v6897_v52 = vpop.eup %6896  ;;  %v2965_v23 = vadd.f32 1.0, %v6895_v16  ;;  %6916 = vrcp.f32 %v2963_v41  ;;  %v3257_v51 = vcombine.low %v3235_v43, %v3242_v18 }
 0x4e7   :  { %v6899_v35 = vpop.eup %6898  ;;  %v2966_v46 = vadd.f32 1.0, %v6897_v52  ;;  %6918 = vrcp.f32 %v2964_v38  ;;  %v3256_v7 = vrot.slane %v3228_v60, %v7927_v6 }
 0x4e8   :  { %v6901_v22 = vpop.eup %6900  ;;  %v2967_v56 = vadd.f32 1.0, %v6899_v35  ;;  %6920 = vrcp.f32 %v2965_v23  ;;  %v3265_v28 = vrot.slane %v3257_v51, %v7927_v6 }
 0x4e9   :  { %v2968_v10 = vadd.f32 1.0, %v6901_v22  ;;  %6922 = vrcp.f32 %v2966_v46  ;;  %v3258_v12 = vcombine.low %v3249_v14, %v3256_v7 }
 0x4ea   :  { %6924 = vrcp.f32 %v2967_v56 }
 0x4eb   :  { %6926 = vrcp.f32 %v2968_v10  ;;  %v3272_v20 = vrot.slane %v3258_v12, %v7927_v6  ;;  %v6903_v53 = vpop.eup %6902 }
 0x4ec   :  { %6928 = vtanh.f32 %v3062_v26  ;;  %v6905_v3 = vpop.eup %6904 }
 0x4ed   :  { %v3273_v9 = vcombine.low %v3265_v28, %v3272_v20  ;;  %6930 = vtanh.f32 %v3065_v13  ;;  %v6907_v54 = vpop.eup %6906 }
 0x4ee   :  { %6932 = vtanh.f32 %v3066_v59 }
 0x4ef   :  { %v6909_v15 = vpop.eup %6908  ;;  %v8614_v2 = vsel %vm3090_vm13, %v3273_v9, %v8398_v36 }
 0x4f0   :  { %v6911_v17 = vpop.eup %6910 }
 0x4f1   :  { %v6913_v5 = vpop.eup %6912 }
 0x4f2   :  { %v6915_v45 = vpop.eup %6914  ;;  %v3075_v26 = vmul.f32 %v6913_v5, %v6903_v53 }
 0x4f3   :  { %v6917_v47 = vpop.eup %6916  ;;  %v3076_v8 = vmul.f32 %v6915_v45, %v6905_v3 }
 0x4f4   :  { %v6919_v0 = vpop.eup %6918  ;;  %v3077_v13 = vmul.f32 %v6917_v47, %v6907_v54 }
 0x4f5   :  { %v6921_v50 = vpop.eup %6920  ;;  %v3099_v38 = vcombine.low %v3075_v26, %v3076_v8 }
 0x4f6   :  { %v6923_v32 = vpop.eup %6922  ;;  %v3079_v41 = vmul.f32 %v6921_v50, %v6909_v15 }
 0x4f7   :  { %v6925_v49 = vpop.eup %6924  ;;  %v3080_v43 = vmul.f32 %v6923_v32, %v6911_v17  ;;  %v3109_v46 = vrot.slane %v3099_v38, %v7927_v6 }
 0x4f8   :  { %v6927_v44 = vpop.eup %6926 }
 0x4f9   :  { %v6929_v59 = vpop.eup %6928  ;;  %v3101_v51 = vcombine.low %v3079_v41, %v3080_v43 }
 0x4fa   :  { %v6931_v18 = vpop.eup %6930  ;;  %v3078_v16 = vmul.f32 %v6929_v59, %v6919_v0 }
 0x4fb   :  { %v6933_v36 = vpop.eup %6932  ;;  %v3081_v60 = vmul.f32 %v6931_v18, %v6925_v49  ;;  %v3123_v7 = vrot.slane %v3101_v51, %v7927_v6 }
 0x4fc   :  { %v3082_v52 = vmul.f32 %v6933_v36, %v6927_v44  ;;  %v3100_v23 = vcombine.low %v3077_v13, %v3078_v16 }
 0x4fe   :  { %v3102_v35 = vcombine.low %v3081_v60, %v3082_v52  ;;  %v3116_v14 = vrot.slane %v3100_v23, %v7927_v6 }
 0x500   :  { %v3130_v22 = vrot.slane %v3102_v35, %v7927_v6  ;;  %v3131_v56 = vcombine.low %v3109_v46, %v3116_v14  ;;  %v3277_v35 = vld [vmem:[#allocation2 + $0x4] ss:$8 sm:$0xf] }
 0x501   :  { %v3279_v46 = vld [vmem:[#allocation2 + $0x24] ss:$8 sm:$0xf] }
 0x502   :  { %v3132_v10 = vcombine.low %v3123_v7, %v3130_v22  ;;  %v3139_v12 = vrot.slane %v3131_v56, %v7927_v6  ;;  %v3281_v14 = vld [vmem:[#allocation2 + $0x44] ss:$8 sm:$0xf] }
 0x503   :  { %v3285_v7 = vld [vmem:[#allocation2 + $0x84] ss:$8 sm:$0xf] }
 0x504   :  { %v3146_v28 = vrot.slane %v3132_v10, %v7927_v6 }
 0x506   :  { %v3147_v20 = vcombine.low %v3139_v12, %v3146_v28  ;;  %v3283_v28 = vld [vmem:[#allocation2 + $0x64] ss:$8 sm:$0xf] }
 0x508   :  { %v3149_v53 = vsel %vm3090_vm13, %v3147_v20, 0.0  ;;  %v8625_v3 = vsel %vm3090_vm13, %v3147_v20, %v8409_v40  ;;  %v3287_v20 = vld [vmem:[#allocation2 + $0xa4] ss:$8 sm:$0xf] }
 0x509   :  { %v3151_v9 = vcombine.high %v3149_v53, %v3149_v53  ;;  %v3158_v54 = vrot.slane %v3149_v53, %v7927_v6  ;;  %v3292_v15 = vpack.c.bf16 %v8625_v3, %v8625_v3 }
 0x50b   :  { %v3165_v17 = vrot.slane %v3151_v9, %v7927_v6  ;;  %v3166_v5 = vcombine.high %v3158_v54, %v3158_v54  ;;  %v3174_v45 = vrot.slane %v3158_v54, %v7927_v6  ;;  %6227 = vst.sshfl [vmem:[#allocation9 + $0x3] sm:$0x1 pattern:$0x73625140] %v3158_v54  ;;  %3326 = vmatmul.mubr.bf16.vlgmr.msra.gmra.mxu0 %v3292_v15 }
 0x50c   :  { %3367 = vmatmul.mubr.bf16.vlgmr.msra.gmra.mxu1 %v3292_v15  ;;  %3980 = vmatpush1.bf16.msra.mxu0 %v8416_v42  ;;  %v3289_v15 = vld [vmem:[#allocation2 + $0xc4] ss:$8 sm:$0xf] }
 0x50d   :  { %4021 = vmatpush1.bf16.msra.mxu1 %v8419_v24  ;;  %v3167_v40 = vcombine.high %v3165_v17, %v3165_v17  ;;  %v3181_v62 = vrot.slane %v3165_v17, %v7927_v6  ;;  %v3188_v47 = vrot.slane %v3166_v5, %v7927_v6  ;;  %v3196_v0 = vcombine.high %v3174_v45, %v3174_v45 }
 0x50e   :  { %6228 = vst.sshfl [vmem:[#allocation9 + $0xb] sm:$0x1 pattern:$0x73625140] %v3166_v5  ;;  %3981 = vmatprep.subr.bf16.mxu0 %v8424_v4  ;;  %4022 = vmatprep.subr.bf16.mxu1 %v8427_v61  ;;  %v9340_v4 = vld [vmem:[#allocation17_spill] sm:$0xff]  ;;  %v9341_v61 = vld [vmem:[#allocation18_spill] sm:$0xff] }
 0x50f   :  { %6229 = vst.sshfl [vmem:[#allocation9 + $0x23] sm:$0x1 pattern:$0x73625140] %v3165_v17  ;;  %4011 = vmatprep.mubr.bf16.mxu0 %v9318_v34  ;;  %v3195_v50 = vrot.slane %v3167_v40, %v7927_v6  ;;  %v3197_v32 = vcombine.high %v3181_v62, %v3181_v62  ;;  %v3198_v42 = vcombine.high %v3188_v47, %v3188_v47  ;;  %3210 = vst [vmem:[#allocation9 + $0x13] sm:$0x1] %v3196_v0 }
 0x510   :  { %6230 = vst.sshfl [vmem:[#allocation9 + $0x2b] sm:$0x1 pattern:$0x73625140] %v3167_v40  ;;  %4052 = vmatprep.mubr.bf16.mxu1 %v9318_v34  ;;  %3982 = vmatpush1.bf16.msra.mxu0 %v8433_v48  ;;  %v9342_v48 = vld [vmem:[#allocation19_spill] sm:$0xff] }
 0x511   :  { %4023 = vmatpush1.bf16.msra.mxu1 %v8436_v63  ;;  %v3199_v24 = vcombine.high %v3195_v50, %v3195_v50  ;;  %3211 = vst [vmem:[#allocation9 + $0x1b] sm:$0x1] %v3198_v42  ;;  %3214 = vst [vmem:[#allocation9 + $0x33] sm:$0x1] %v3197_v32  ;;  %3983 = vmatprep.subr.bf16.mxu0 %v8439_v1  ;;  %v9343_v63 = vld [vmem:[#allocation20_spill] sm:$0xff]  ;;  %v9344_v1 = vld [vmem:[#allocation21_spill] sm:$0xff] }
 0x512   :  { %4024 = vmatprep.subr.bf16.mxu1 %v8442_v58  ;;  %v9345_v58 = vld [vmem:[#allocation22_spill] sm:$0xff] }
 0x513   :  { %3215 = vst [vmem:[#allocation9 + $0x3b] sm:$0x1] %v3199_v24  ;;  %v3291_v17 = vld [vmem:[#allocation2 + $0xe4] ss:$8 sm:$0xf] }
 0x514   :  { %3984 = vmatpush1.bf16.msra.mxu0 %v8445_v19  ;;  %v9346_v19 = vld [vmem:[#allocation23_spill] sm:$0xff] }
 0x515   :  { %4025 = vmatpush1.bf16.msra.mxu1 %v8448_v55  ;;  %3985 = vmatprep.subr.bf16.mxu0 %v8451_v11  ;;  %v9347_v55 = vld [vmem:[#allocation24_spill] sm:$0xff]  ;;  %v9348_v11 = vld [vmem:[#allocation25_spill] sm:$0xff] }
 0x516   :  { %4026 = vmatprep.subr.bf16.mxu1 %v8454_v39  ;;  %v9349_v39 = vld [vmem:[#allocation26_spill] sm:$0xff] }
 0x518   :  { %3986 = vmatpush1.bf16.msra.mxu0 %v8457_v57  ;;  %v9350_v57 = vld [vmem:[#allocation27_spill] sm:$0xff] }
 0x519   :  { %4027 = vmatpush1.bf16.msra.mxu1 %v8460_v21  ;;  %3987 = vmatprep.subr.bf16.mxu0 %v8463_v25 }
 0x51a   :  { %4028 = vmatprep.subr.bf16.mxu1 %v8466_v27 }
 0x51c   :  { %3988 = vmatpush1.bf16.msra.mxu0 %v8469_v29 }
 0x51d   :  { %4029 = vmatpush1.bf16.msra.mxu1 %v8472_v30  ;;  %3989 = vmatprep.subr.bf16.mxu0 %v8475_v31 }
 0x51e   :  { %4030 = vmatprep.subr.bf16.mxu1 %v8478_v33 }
 0x520   :  { %3990 = vmatpush1.bf16.msra.mxu0 %v8481_v37 }
 0x521   :  { %4031 = vmatpush1.bf16.msra.mxu1 %v9340_v4  ;;  %3991 = vmatprep.subr.bf16.mxu0 %v9341_v61 }
 0x522   :  { %4032 = vmatprep.subr.bf16.mxu1 %v9342_v48 }
 0x524   :  { %3992 = vmatpush1.bf16.msra.mxu0 %v9343_v63 }
 0x525   :  { %4033 = vmatpush1.bf16.msra.mxu1 %v9344_v1  ;;  %3993 = vmatprep.subr.bf16.mxu0 %v9345_v58 }
 0x526   :  { %4034 = vmatprep.subr.bf16.mxu1 %v9346_v19 }
 0x528   :  { %3994 = vmatpush1.bf16.msra.mxu0 %v9347_v55 }
 0x529   :  { %4035 = vmatpush1.bf16.msra.mxu1 %v9348_v11  ;;  %4665 = vmatprep.subr.bf16.mxu0 %v9349_v39 }
 0x52a   :  { %4706 = vmatprep.subr.bf16.mxu1 %v9350_v57 }
 0x5cb   :  { %v3327_v21 = vpop.f32.mrf.mxu0 }
 0x5cc   :  { %v3368_v25 = vpop.f32.mrf.mxu1 }
 0x5cd   :  { %v3329_v27 = vpop.f32.mrf.mxu0 }
 0x5ce   :  { %v3370_v29 = vpop.f32.mrf.mxu1  ;;  %v3379_v30 = vcombine.low %v3327_v21, %v3329_v27  ;;  %v3380_v31 = vcombine.high %v3327_v21, %v3329_v27 }
 0x5cf   :  { %v3381_v33 = vcombine.low %v3368_v25, %v3370_v29  ;;  %v3382_v37 = vcombine.high %v3368_v25, %v3370_v29  ;;  %v3331_v26 = vpop.f32.mrf.mxu0 }
 0x5d0   :  { %v3372_v8 = vpop.f32.mrf.mxu1  ;;  %v3389_v49 = vrot.slane %v3379_v30, %v7927_v6  ;;  %v3396_v44 = vrot.slane %v3380_v31, %v7927_v6 }
 0x5d1   :  { %v3403_v13 = vrot.slane %v3381_v33, %v7927_v6  ;;  %v3410_v41 = vrot.slane %v3382_v37, %v7927_v6  ;;  %v3332_v43 = vpop.f32.mrf.mxu0 }
 0x5d2   :  { %v3373_v59 = vpop.f32.mrf.mxu1 }
 0x5d3   :  { %v3411_v18 = vcombine.low %v3389_v49, %v3403_v13  ;;  %v3412_v16 = vcombine.high %v3389_v49, %v3403_v13  ;;  %v3413_v38 = vcombine.low %v3396_v44, %v3410_v41  ;;  %v3414_v36 = vcombine.high %v3396_v44, %v3410_v41 }
 0x5d5   :  { %v3421_v60 = vrot.slane %v3411_v18, %v7927_v6  ;;  %v3428_v52 = vrot.slane %v3413_v38, %v7927_v6  ;;  %v3435_v23 = vrot.slane %v3412_v16, %v7927_v6  ;;  %v3442_v51 = vrot.slane %v3414_v36, %v7927_v6 }
 0x5d7   :  { %v3443_v22 = vcombine.high %v3421_v60, %v3421_v60  ;;  %v3444_v56 = vcombine.high %v3428_v52, %v3428_v52  ;;  %v3445_v10 = vcombine.high %v3435_v23, %v3435_v23  ;;  %v3446_v12 = vcombine.high %v3442_v51, %v3442_v51 }
 0x5d8   :  { %v8677_v53 = vadd.f32 %v3421_v60, %v3277_v35  ;;  %v8679_v9 = vadd.f32 %v3435_v23, %v3279_v46  ;;  %v8681_v54 = vadd.f32 %v3428_v52, %v3285_v7  ;;  %v8687_v40 = vadd.f32 %v3442_v51, %v3287_v20 }
 0x5d9   :  { %v8683_v5 = vadd.f32 %v3443_v22, %v3281_v14  ;;  %v8685_v45 = vadd.f32 %v3445_v10, %v3283_v28  ;;  %v8689_v62 = vadd.f32 %v3444_v56, %v3289_v15  ;;  %v8693_v50 = vadd.f32 %v3446_v12, %v3291_v17 }
 0x5da   :  { %v6231_v47 = vmul.f32 -1.442695, %v8677_v53  ;;  %v6232_v0 = vmul.f32 -1.442695, %v8679_v9  ;;  %v6235_v24 = vmul.f32 -1.442695, %v8681_v54 }
 0x5db   :  { %v6233_v32 = vmul.f32 -1.442695, %v8683_v5  ;;  %v6234_v42 = vmul.f32 -1.442695, %v8685_v45  ;;  %v3519_v4 = vrot.slane %v8677_v53, 1  ;;  %v3520_v48 = vrot.slane %v8679_v9, 1 }
 0x5dc   :  { %6934 = vpow2.f32 %v6231_v47  ;;  %v6236_v61 = vmul.f32 -1.442695, %v8687_v40  ;;  %v6237_v63 = vmul.f32 -1.442695, %v8689_v62  ;;  %v3521_v1 = vrot.slane %v8683_v5, 1 }
 0x5dd   :  { %6936 = vpow2.f32 %v6232_v0  ;;  %v6238_v58 = vmul.f32 -1.442695, %v8693_v50  ;;  %v3522_v19 = vrot.slane %v8685_v45, 1  ;;  %v3523_v55 = vrot.slane %v8681_v54, 1 }
 0x5de   :  { %6938 = vpow2.f32 %v6233_v32  ;;  %v6239_v11 = vmul.f32 -1.442695, %v3519_v4  ;;  %v3524_v39 = vrot.slane %v8687_v40, 1  ;;  %v6240_v57 = vmul.f32 -1.442695, %v3520_v48 }
 0x5df   :  { %6940 = vpow2.f32 %v6234_v42  ;;  %v3525_v21 = vrot.slane %v8689_v62, 1  ;;  %v6241_v25 = vmul.f32 -1.442695, %v3521_v1  ;;  %v3526_v27 = vrot.slane %v8693_v50, 1 }
 0x5e0   :  { %6942 = vpow2.f32 %v6235_v24  ;;  %v6242_v29 = vmul.f32 -1.442695, %v3522_v19  ;;  %v6243_v30 = vmul.f32 -1.442695, %v3523_v55  ;;  %v6244_v31 = vmul.f32 -1.442695, %v3524_v39 }
 0x5e1   :  { %6944 = vpow2.f32 %v6236_v61  ;;  %v6245_v33 = vmul.f32 -1.442695, %v3525_v21  ;;  %v6246_v37 = vmul.f32 -1.442695, %v3526_v27  ;;  %v3583_v42 = vrot.slane %v8677_v53, 2 }
 0x5e2   :  { %6946 = vpow2.f32 %v6237_v63  ;;  %v3584_v61 = vrot.slane %v8679_v9, 2  ;;  %v3585_v63 = vrot.slane %v8683_v5, 2  ;;  %v3587_v55 = vrot.slane %v8681_v54, 2 }
 0x5e3   :  { %6948 = vpow2.f32 %v6238_v58  ;;  %v3586_v58 = vrot.slane %v8685_v45, 2  ;;  %v3672_v39 = vcombine.high %v8614_v2, %v8614_v2  ;;  %v3588_v21 = vrot.slane %v8687_v40, 2 }
 0x5e4   :  { %6950 = vpow2.f32 %v6239_v11  ;;  %v3607_v11 = vrot.slane %v8677_v53, 3  ;;  %v3679_v27 = vrot.slane %v8614_v2, %v7927_v6  ;;  %v3609_v53 = vrot.slane %v8683_v5, 3 }
 0x5e5   :  { %6952 = vpow2.f32 %v6240_v57 }
 0x5e6   :  { %6954 = vpow2.f32 %v6241_v25  ;;  %v3608_v25 = vrot.slane %v8679_v9, 3  ;;  %v3611_v9 = vrot.slane %v8681_v54, 3 }
 0x5e7   :  { %6956 = vpow2.f32 %v6242_v29 }
 0x5e8   :  { %6958 = vpow2.f32 %v6243_v30  ;;  %v3589_v30 = vrot.slane %v8689_v62, 2  ;;  %v6248_v5 = vmul.f32 -1.442695, %v3608_v25 }
 0x5e9   :  { %v6935_v26 = vpop.eup %6934  ;;  %6960 = vpow2.f32 %v6244_v31 }
 0x5ea   :  { %v6937_v8 = vpop.eup %6936  ;;  %v3487_v49 = vadd.f32 1.0, %v6935_v26  ;;  %6962 = vpow2.f32 %v6245_v33  ;;  %v3590_v33 = vrot.slane %v8693_v50, 2 }
 0x5eb   :  { %v6939_v44 = vpop.eup %6938  ;;  %v3488_v13 = vadd.f32 1.0, %v6937_v8  ;;  %6964 = vpow2.f32 %v6246_v37  ;;  %v3610_v37 = vrot.slane %v8685_v45, 3  ;;  %v6247_v8 = vmul.f32 -1.442695, %v3607_v11 }
 0x5ec   :  { %v6941_v41 = vpop.eup %6940  ;;  %v3489_v43 = vadd.f32 1.0, %v6939_v44  ;;  %6966 = vrcp.f32 %v3487_v49  ;;  %v3686_v49 = vrot.slane %v3672_v39, %v7927_v6 }
 0x5ed   :  { %v6943_v59 = vpop.eup %6942  ;;  %v3490_v18 = vadd.f32 1.0, %v6941_v41  ;;  %6968 = vrcp.f32 %v3488_v13  ;;  %v3612_v13 = vrot.slane %v8687_v40, 3  ;;  %v3687_v41 = vcombine.high %v3679_v27, %v3679_v27 }
 0x5ee   :  { %v6945_v16 = vpop.eup %6944  ;;  %v3491_v38 = vadd.f32 1.0, %v6943_v59  ;;  %6970 = vrcp.f32 %v3489_v43  ;;  %v3613_v59 = vrot.slane %v8689_v62, 3 }
 0x5ef   :  { %v6947_v36 = vpop.eup %6946  ;;  %v3492_v60 = vadd.f32 1.0, %v6945_v16  ;;  %6972 = vrcp.f32 %v3490_v18  ;;  %v6249_v18 = vmul.f32 -1.442695, %v3609_v53  ;;  %v3614_v16 = vrot.slane %v8693_v50, 3 }
 0x5f0   :  { %v6949_v52 = vpop.eup %6948  ;;  %v3493_v23 = vadd.f32 1.0, %v6947_v36  ;;  %6974 = vrcp.f32 %v3491_v38  ;;  %v6250_v38 = vmul.f32 -1.442695, %v3610_v37  ;;  %v6251_v36 = vmul.f32 -1.442695, %v3611_v9 }
 0x5f1   :  { %v6951_v51 = vpop.eup %6950  ;;  %v3494_v35 = vadd.f32 1.0, %v6949_v52  ;;  %6976 = vrcp.f32 %v3492_v60  ;;  %v3688_v60 = vcombine.high %v3686_v49, %v3686_v49  ;;  %v3695_v52 = vrot.slane %v3679_v27, %v7927_v6 }
 0x5f2   :  { %v6953_v46 = vpop.eup %6952  ;;  %6978 = vrcp.f32 %v3493_v23  ;;  %v3559_v14 = vadd.f32 1.0, %v6951_v51  ;;  %v6252_v40 = vmul.f32 -1.442695, %v3612_v13  ;;  %v3709_v51 = vrot.slane %v3687_v41, %v7927_v6 }
 0x5f3   :  { %v6955_v7 = vpop.eup %6954  ;;  %6980 = vrcp.f32 %v3494_v35  ;;  %v3560_v22 = vadd.f32 1.0, %v6953_v46  ;;  %v6253_v62 = vmul.f32 -1.442695, %v3613_v59  ;;  %v3702_v50 = vrot.slane %v3686_v49, %v7927_v6 }
 0x5f4   :  { %v6957_v56 = vpop.eup %6956  ;;  %v3561_v10 = vadd.f32 1.0, %v6955_v7  ;;  %6982 = vrcp.f32 %v3559_v14  ;;  %v6254_v14 = vmul.f32 -1.442695, %v3614_v16 }
 0x5f5   :  { %v6959_v12 = vpop.eup %6958  ;;  %v3562_v28 = vadd.f32 1.0, %v6957_v56  ;;  %6984 = vrcp.f32 %v3560_v22  ;;  %v3716_v22 = vrot.slane %v3688_v60, %v7927_v6  ;;  %v3717_v56 = vcombine.high %v3695_v52, %v3695_v52 }
 0x5f6   :  { %v6961_v20 = vpop.eup %6960  ;;  %v3563_v15 = vadd.f32 1.0, %v6959_v12  ;;  %6986 = vrcp.f32 %v3561_v10 }
 0x5f7   :  { %v6963_v17 = vpop.eup %6962  ;;  %v3564_v47 = vadd.f32 1.0, %v6961_v20  ;;  %6988 = vrcp.f32 %v3562_v28  ;;  %v3719_v28 = vcombine.high %v3709_v51, %v3709_v51 }
 0x5f8   :  { %v6965_v0 = vpop.eup %6964  ;;  %v3565_v32 = vadd.f32 1.0, %v6963_v17  ;;  %6990 = vrcp.f32 %v3563_v15 }
 0x5f9   :  { %v8710_v24 = vpop.eup %6966  ;;  %v3566_v4 = vadd.f32 1.0, %v6965_v0  ;;  %6992 = vrcp.f32 %v3564_v47 }
 0x5fa   :  { %v8713_v48 = vpop.eup %6968  ;;  %6994 = vrcp.f32 %v3565_v32  ;;  %v3718_v32 = vcombine.high %v3702_v50, %v3702_v50 }
 0x5fb   :  { %v8716_v1 = vpop.eup %6970  ;;  %6996 = vrcp.f32 %v3566_v4 }
 0x5fc   :  { %v8719_v19 = vpop.eup %6972  ;;  %6998 = vtanh.f32 %v3583_v42 }
 0x5fd   :  { %v8725_v57 = vpop.eup %6974  ;;  %7000 = vtanh.f32 %v3584_v61 }
 0x5fe   :  { %v8731_v29 = vpop.eup %6976  ;;  %7002 = vtanh.f32 %v3585_v63  ;;  %v3720_v63 = vcombine.high %v3716_v22, %v3716_v22 }
 0x5ff   :  { %v8735_v31 = vpop.eup %6978  ;;  %7004 = vtanh.f32 %v3586_v58 }
 0x600   :  { %v8739_v26 = vpop.eup %6980  ;;  %7006 = vtanh.f32 %v3587_v55 }
 0x601   :  { %v6983_v44 = vpop.eup %6982  ;;  %7008 = vtanh.f32 %v3588_v21 }
 0x602   :  { %v6985_v43 = vpop.eup %6984  ;;  %7010 = vtanh.f32 %v3589_v30  ;;  %v3729_v10 = vmul.f32 %v6983_v44, %v3695_v52 }
 0x603   :  { %v6987_v45 = vpop.eup %6986  ;;  %7012 = vtanh.f32 %v3590_v33  ;;  %v3730_v20 = vmul.f32 %v6985_v43, %v3709_v51 }
 0x604   :  { %v6989_v54 = vpop.eup %6988  ;;  %7014 = vpow2.f32 %v6247_v8  ;;  %v3731_v17 = vmul.f32 %v6987_v45, %v3717_v56 }
 0x605   :  { %v6991_v23 = vpop.eup %6990  ;;  %7016 = vpow2.f32 %v6248_v5  ;;  %v3732_v42 = vmul.f32 %v6989_v54, %v3719_v28 }
 0x606   :  { %v6993_v35 = vpop.eup %6992  ;;  %7018 = vpow2.f32 %v6249_v18  ;;  %v3733_v58 = vmul.f32 %v6991_v23, %v3702_v50 }
 0x607   :  { %v6995_v46 = vpop.eup %6994  ;;  %7020 = vpow2.f32 %v6250_v38  ;;  %v3734_v21 = vmul.f32 %v6993_v35, %v3716_v22 }
 0x608   :  { %v6997_v7 = vpop.eup %6996  ;;  %7022 = vpow2.f32 %v6251_v36  ;;  %v3735_v53 = vmul.f32 %v6995_v46, %v3718_v32 }
 0x609   :  { %v6999_v12 = vpop.eup %6998  ;;  %7024 = vpow2.f32 %v6252_v40 }
 0x60a   :  { %v7001_v15 = vpop.eup %7000  ;;  %7026 = vpow2.f32 %v6253_v62  ;;  %v3737_v47 = vmul.f32 %v6999_v12, %v8710_v24  ;;  %v3736_v24 = vmul.f32 %v6997_v7, %v3720_v63 }
 0x60b   :  { %v7003_v0 = vpop.eup %7002  ;;  %7028 = vpow2.f32 %v6254_v14  ;;  %v3738_v4 = vmul.f32 %v7001_v15, %v8713_v48 }
 0x60c   :  { %v7005_v61 = vpop.eup %7004  ;;  %v3739_v55 = vmul.f32 %v7003_v0, %v8716_v1  ;;  %v3745_v11 = vadd.f32 %v3737_v47, %v3729_v10 }
 0x60d   :  { %v7007_v39 = vpop.eup %7006  ;;  %v3740_v25 = vmul.f32 %v7005_v61, %v8719_v19  ;;  %v3746_v27 = vadd.f32 %v3738_v4, %v3730_v20 }
 0x60e   :  { %v7009_v30 = vpop.eup %7008  ;;  %v3741_v33 = vmul.f32 %v7007_v39, %v8725_v57  ;;  %v3747_v37 = vadd.f32 %v3739_v55, %v3731_v17  ;;  %7030 = vtanh.f32 %v3745_v11  ;;  %v3775_v17 = vpop.permute.xlu0 %3774 }
 0x60f   :  { %v7011_v9 = vpop.eup %7010  ;;  %v3742_v48 = vmul.f32 %v7009_v30, %v8731_v29  ;;  %v3748_v8 = vadd.f32 %v3740_v25, %v3732_v42  ;;  %v3911_v49 = vcombine.low %v3745_v11, %v3746_v27  ;;  %7032 = vtanh.f32 %v3746_v27 }
 0x610   :  { %v7013_v44 = vpop.eup %7012  ;;  %v3743_v1 = vmul.f32 %v7011_v9, %v8735_v31  ;;  %v3749_v13 = vadd.f32 %v3741_v33, %v3733_v58  ;;  %7034 = vtanh.f32 %v3747_v37  ;;  %vm3776_vm14 = vcmp.eq.s32.totalorder %v3775_v17, 1  ;;  %v8813_v17 = vld [vmem:[#allocation8 + $0xa0] ss:$16 sps:$4 sm:$0xff]  }
 0x611   :  { %v7015_v5 = vpop.eup %7014  ;;  %v3744_v19 = vmul.f32 %v7013_v44, %v8739_v26  ;;  %v3750_v41 = vadd.f32 %v3742_v48, %v3734_v21  ;;  %v3912_v43 = vcombine.low %v3747_v37, %v3748_v8  ;;  %v3921_v31 = vrot.slane %v3911_v49, %v7927_v6 }
 0x612   :  { %v7017_v59 = vpop.eup %7016  ;;  %v3647_v57 = vadd.f32 1.0, %v7015_v5  ;;  %v3751_v18 = vadd.f32 %v3743_v1, %v3735_v53  ;;  %7036 = vtanh.f32 %v3749_v13 }
 0x613   :  { %v7019_v45 = vpop.eup %7018  ;;  %v3648_v29 = vadd.f32 1.0, %v7017_v59  ;;  %v3752_v16 = vadd.f32 %v3744_v19, %v3736_v24  ;;  %7038 = vtanh.f32 %v3750_v41  ;;  %v3913_v38 = vcombine.low %v3749_v13, %v3750_v41 }
 0x614   :  { %v7021_v54 = vpop.eup %7020  ;;  %v3649_v36 = vadd.f32 1.0, %v7019_v45  ;;  %7040 = vrcp.f32 %v3647_v57  ;;  %v3928_v60 = vrot.slane %v3912_v43, %v7927_v6 }
 0x615   :  { %v7023_v26 = vpop.eup %7022  ;;  %v3650_v52 = vadd.f32 1.0, %v7021_v54  ;;  %7042 = vrcp.f32 %v3648_v29  ;;  %v3914_v23 = vcombine.low %v3751_v18, %v3752_v16  ;;  %v3935_v14 = vrot.slane %v3913_v38, %v7927_v6 }
 0x616   :  { %v7025_v40 = vpop.eup %7024  ;;  %v3651_v51 = vadd.f32 1.0, %v7023_v26  ;;  %7044 = vrcp.f32 %v3649_v36  ;;  %v3943_v35 = vcombine.low %v3921_v31, %v3928_v60 }
 0x617   :  { %v7027_v62 = vpop.eup %7026  ;;  %v3652_v46 = vadd.f32 1.0, %v7025_v40  ;;  %7046 = vrcp.f32 %v3650_v52  ;;  %v3942_v50 = vrot.slane %v3914_v23, %v7927_v6  ;;  %v8784_v40 = vld [vmem:[#allocation8 + $0xe0] ss:$16 sps:$4 sm:$0xff]  }
 0x618   :  { %v7029_v7 = vpop.eup %7028  ;;  %v3653_v22 = vadd.f32 1.0, %v7027_v62  ;;  %7048 = vrcp.f32 %v3651_v51  ;;  %v3951_v12 = vrot.slane %v3943_v35, %v7927_v6 }
 0x619   :  { %v3654_v56 = vadd.f32 1.0, %v7029_v7  ;;  %7050 = vrcp.f32 %v3652_v46  ;;  %v3944_v10 = vcombine.low %v3935_v14, %v3942_v50  ;;  %v8792_v14 = vld [vmem:[#allocation8 + $0xc4] ss:$16 sps:$4 sm:$0xff]   ;;  %v8795_v50 = vld [vmem:[#allocation8 + $0xcc] ss:$16 sps:$4 sm:$0xff]  }
 0x61a   :  { %7052 = vrcp.f32 %v3653_v22 }
 0x61b   :  { %7054 = vrcp.f32 %v3654_v56  ;;  %v3958_v28 = vrot.slane %v3944_v10, %v7927_v6  ;;  %v7031_v20 = vpop.eup %7030  ;;  %v8801_v10 = vld [vmem:[#allocation8 + $0xc0] ss:$16 sps:$4 sm:$0xff]  }
 0x61c   :  { %7056 = vtanh.f32 %v3748_v8  ;;  %v7033_v15 = vpop.eup %7032 }
 0x61d   :  { %v3959_v47 = vcombine.low %v3951_v12, %v3958_v28  ;;  %7058 = vtanh.f32 %v3751_v18  ;;  %v7035_v0 = vpop.eup %7034  ;;  %v8804_v12 = vld [vmem:[#allocation8 + $0xc8] ss:$16 sps:$4 sm:$0xff]  }
 0x61e   :  { %7060 = vtanh.f32 %v3752_v16 }
 0x61f   :  { %v7037_v32 = vpop.eup %7036  ;;  %v8766_v42 = vsel %vm3776_vm14, %v3959_v47, %v8614_v2  ;;  %v8816_v47 = vld [vmem:[#allocation8 + $0xa8] ss:$16 sps:$4 sm:$0xff]  }
 0x620   :  { %v7039_v4 = vpop.eup %7038 }
 0x621   :  { %v7041_v61 = vpop.eup %7040 }
 0x622   :  { %v7043_v63 = vpop.eup %7042  ;;  %v3761_v21 = vmul.f32 %v7041_v61, %v7031_v20  ;;  %v8807_v20 = vld [vmem:[#allocation8 + $0xa4] ss:$16 sps:$4 sm:$0xff]   ;;  %v8828_v61 = vld [vmem:[#allocation8 + $0x88] ss:$16 sps:$4 sm:$0xff]  }
 0x623   :  { %v7045_v58 = vpop.eup %7044  ;;  %v3762_v25 = vmul.f32 %v7043_v63, %v7033_v15  ;;  %v8810_v15 = vld [vmem:[#allocation8 + $0xac] ss:$16 sps:$4 sm:$0xff]   ;;  %v8831_v63 = vld [vmem:[#allocation8 + $0x64] ss:$16 sps:$4 sm:$0xff]  }
 0x624   :  { %v7047_v55 = vpop.eup %7046  ;;  %v3763_v53 = vmul.f32 %v7045_v58, %v7035_v0  ;;  %v8819_v0 = vld [vmem:[#allocation8 + $0x84] ss:$16 sps:$4 sm:$0xff]   ;;  %v8834_v58 = vld [vmem:[#allocation8 + $0x6c] ss:$16 sps:$4 sm:$0xff]  }
 0x625   :  { %v7049_v11 = vpop.eup %7048  ;;  %v3785_v8 = vcombine.low %v3761_v21, %v3762_v25  ;;  %v8846_v21 = vld [vmem:[#allocation8 + $0x4c] ss:$16 sps:$4 sm:$0xff]   ;;  %v8849_v25 = vld [vmem:[#allocation8 + $0x40] ss:$16 sps:$4 sm:$0xff]  }
 0x626   :  { %v7051_v39 = vpop.eup %7050  ;;  %v3765_v24 = vmul.f32 %v7049_v11, %v7037_v32  ;;  %v8822_v32 = vld [vmem:[#allocation8 + $0x8c] ss:$16 sps:$4 sm:$0xff]   ;;  %v8840_v11 = vld [vmem:[#allocation8 + $0x68] ss:$16 sps:$4 sm:$0xff]  }
 0x627   :  { %v7053_v27 = vpop.eup %7052  ;;  %v3766_v33 = vmul.f32 %v7051_v39, %v7039_v4  ;;  %v3795_v19 = vrot.slane %v3785_v8, %v7927_v6  ;;  %v8825_v4 = vld [vmem:[#allocation8 + $0x80] ss:$16 sps:$4 sm:$0xff]   ;;  %v8843_v39 = vld [vmem:[#allocation8 + $0x44] ss:$16 sps:$4 sm:$0xff]   ;;  %v8876_v8 = vld [vmem:[#allocation8 + $0x8] ss:$16 sps:$4 sm:$0xff]  }
 0x628   :  { %v7055_v30 = vpop.eup %7054  ;;  %9359 = vst [vmem:[#allocation25_spill] sm:$0xff] %v8876_v8 }
 0x629   :  { %v7057_v37 = vpop.eup %7056  ;;  %v3787_v13 = vcombine.low %v3765_v24, %v3766_v33  ;;  %v8861_v24 = vld [vmem:[#allocation8 + $0x20] ss:$16 sps:$4 sm:$0xff]   ;;  %v8864_v33 = vld [vmem:[#allocation8 + $0x28] ss:$16 sps:$4 sm:$0xff]  }
 0x62a   :  { %v7059_v9 = vpop.eup %7058  ;;  %v3764_v48 = vmul.f32 %v7057_v37, %v7047_v55  ;;  %v8837_v55 = vld [vmem:[#allocation8 + $0x60] ss:$16 sps:$4 sm:$0xff]   ;;  %9354 = vst [vmem:[#allocation20_spill] sm:$0xff] %v8861_v24  ;;  %9355 = vst [vmem:[#allocation21_spill] sm:$0xff] %v8864_v33  ;;  %v8867_v37 = vld [vmem:[#allocation8 + $0x4] ss:$16 sps:$4 sm:$0xff]  }
 0x62b   :  { %v7061_v2 = vpop.eup %7060  ;;  %v3767_v49 = vmul.f32 %v7059_v9, %v7053_v27  ;;  %v3809_v43 = vrot.slane %v3787_v13, %v7927_v6  ;;  %v8852_v27 = vld [vmem:[#allocation8 + $0x48] ss:$16 sps:$4 sm:$0xff]   ;;  %9356 = vst [vmem:[#allocation22_spill] sm:$0xff] %v8867_v37  ;;  %v8870_v9 = vld [vmem:[#allocation8 + $0xc] ss:$16 sps:$4 sm:$0xff]  }
 0x62c   :  { %v3768_v44 = vmul.f32 %v7061_v2, %v7055_v30  ;;  %v3786_v1 = vcombine.low %v3763_v53, %v3764_v48  ;;  %9351 = vst [vmem:[#allocation17_spill] sm:$0xff] %v8852_v27  ;;  %v8855_v30 = vld [vmem:[#allocation8 + $0x24] ss:$16 sps:$4 sm:$0xff]   ;;  %v8858_v53 = vld [vmem:[#allocation8 + $0x2c] ss:$16 sps:$4 sm:$0xff]   ;;  %9357 = vst [vmem:[#allocation23_spill] sm:$0xff] %v8870_v9 }
 0x62d   :  { %9352 = vst [vmem:[#allocation18_spill] sm:$0xff] %v8855_v30  ;;  %9353 = vst [vmem:[#allocation19_spill] sm:$0xff] %v8858_v53  ;;  %v8873_v48 = vld [vmem:[#allocation8] ss:$16 sps:$4 sm:$0xff]   ;;  %v7541_v2 = vld [vmem:[#allocation8 + $0xe4] ss:$16 sps:$4 sm:$0xff]  }
 0x62e   :  { %v3788_v5 = vcombine.low %v3767_v49, %v3768_v44  ;;  %v3802_v41 = vrot.slane %v3786_v1, %v7927_v6  ;;  %9358 = vst [vmem:[#allocation24_spill] sm:$0xff] %v8873_v48  ;;  %v7542_v49 = vld [vmem:[#allocation8 + $0xec] ss:$16 sps:$4 sm:$0xff]  }
 0x630   :  { %v3816_v59 = vrot.slane %v3788_v5, %v7927_v6  ;;  %v3817_v57 = vcombine.low %v3795_v19, %v3802_v41 }
 0x632   :  { %v3818_v18 = vcombine.low %v3809_v43, %v3816_v59  ;;  %v3825_v45 = vrot.slane %v3817_v57, %v7927_v6 }
 0x634   :  { %v3832_v29 = vrot.slane %v3818_v18, %v7927_v6 }
 0x636   :  { %v3833_v16 = vcombine.low %v3825_v45, %v3832_v29 }
 0x638   :  { %v3835_v38 = vsel %vm3776_vm14, %v3833_v16, 0.0  ;;  %v8777_v54 = vsel %vm3776_vm14, %v3833_v16, %v8625_v3  ;;  %v8787_v3 = vld [vmem:[#allocation8 + $0xe8] ss:$16 sps:$4 sm:$0xff]  }
 0x639   :  { %v3837_v36 = vcombine.high %v3835_v38, %v3835_v38  ;;  %v3844_v31 = vrot.slane %v3835_v38, %v7927_v6  ;;  %v3978_v60 = vpack.c.bf16 %v8777_v54, %v8777_v54 }
 0x63b   :  { %v3851_v26 = vrot.slane %v3837_v36, %v7927_v6  ;;  %v3852_v52 = vcombine.high %v3844_v31, %v3844_v31  ;;  %v3860_v23 = vrot.slane %v3844_v31, %v7927_v6  ;;  %6256 = vst.sshfl [vmem:[#allocation9 + $0x4] sm:$0x1 pattern:$0x73625140] %v3844_v31  ;;  %4012 = vmatmul.mubr.bf16.vlgmr.msra.gmra.mxu0 %v3978_v60 }
 0x63c   :  { %4053 = vmatmul.mubr.bf16.vlgmr.msra.gmra.mxu1 %v3978_v60  ;;  %4666 = vmatpush1.bf16.msra.mxu0 %v8784_v40 }
 0x63d   :  { %4707 = vmatpush1.bf16.msra.mxu1 %v8787_v3  ;;  %v3853_v51 = vcombine.high %v3851_v26, %v3851_v26  ;;  %v3867_v35 = vrot.slane %v3851_v26, %v7927_v6  ;;  %v3874_v62 = vrot.slane %v3852_v52, %v7927_v6  ;;  %v3882_v46 = vcombine.high %v3860_v23, %v3860_v23 }
 0x63e   :  { %6257 = vst.sshfl [vmem:[#allocation9 + $0xc] sm:$0x1 pattern:$0x73625140] %v3852_v52  ;;  %4667 = vmatprep.subr.bf16.mxu0 %v8792_v14  ;;  %4708 = vmatprep.subr.bf16.mxu1 %v8795_v50 }
 0x63f   :  { %6258 = vst.sshfl [vmem:[#allocation9 + $0x24] sm:$0x1 pattern:$0x73625140] %v3851_v26  ;;  %4697 = vmatprep.mubr.bf16.mxu0 %v9318_v34  ;;  %v3881_v7 = vrot.slane %v3853_v51, %v7927_v6  ;;  %v3883_v22 = vcombine.high %v3867_v35, %v3867_v35  ;;  %v3884_v56 = vcombine.high %v3874_v62, %v3874_v62  ;;  %3896 = vst [vmem:[#allocation9 + $0x14] sm:$0x1] %v3882_v46 }
 0x640   :  { %6259 = vst.sshfl [vmem:[#allocation9 + $0x2c] sm:$0x1 pattern:$0x73625140] %v3853_v51  ;;  %4738 = vmatprep.mubr.bf16.mxu1 %v9318_v34  ;;  %4668 = vmatpush1.bf16.msra.mxu0 %v8801_v10 }
 0x641   :  { %4709 = vmatpush1.bf16.msra.mxu1 %v8804_v12  ;;  %v3885_v28 = vcombine.high %v3881_v7, %v3881_v7  ;;  %3897 = vst [vmem:[#allocation9 + $0x1c] sm:$0x1] %v3884_v56  ;;  %3900 = vst [vmem:[#allocation9 + $0x34] sm:$0x1] %v3883_v22  ;;  %4669 = vmatprep.subr.bf16.mxu0 %v8807_v20 }
 0x642   :  { %4710 = vmatprep.subr.bf16.mxu1 %v8810_v15  ;;  %v3963_v7 = vld [vmem:[#allocation2 + $0x5] ss:$8 sm:$0xf] }
 0x643   :  { %3901 = vst [vmem:[#allocation9 + $0x3c] sm:$0x1] %v3885_v28  ;;  %v3965_v22 = vld [vmem:[#allocation2 + $0x25] ss:$8 sm:$0xf] }
 0x644   :  { %4670 = vmatpush1.bf16.msra.mxu0 %v8813_v17  ;;  %v3967_v56 = vld [vmem:[#allocation2 + $0x45] ss:$8 sm:$0xf] }
 0x645   :  { %4711 = vmatpush1.bf16.msra.mxu1 %v8816_v47  ;;  %4671 = vmatprep.subr.bf16.mxu0 %v8819_v0  ;;  %v3971_v28 = vld [vmem:[#allocation2 + $0x85] ss:$8 sm:$0xf] }
 0x646   :  { %4712 = vmatprep.subr.bf16.mxu1 %v8822_v32 }
 0x648   :  { %4672 = vmatpush1.bf16.msra.mxu0 %v8825_v4 }
 0x649   :  { %4713 = vmatpush1.bf16.msra.mxu1 %v8828_v61  ;;  %4673 = vmatprep.subr.bf16.mxu0 %v8831_v63 }
 0x64a   :  { %4714 = vmatprep.subr.bf16.mxu1 %v8834_v58 }
 0x64c   :  { %4674 = vmatpush1.bf16.msra.mxu0 %v8837_v55 }
 0x64d   :  { %4715 = vmatpush1.bf16.msra.mxu1 %v8840_v11  ;;  %4675 = vmatprep.subr.bf16.mxu0 %v8843_v39 }
 0x64e   :  { %4716 = vmatprep.subr.bf16.mxu1 %v8846_v21 }
 0x650   :  { %4676 = vmatpush1.bf16.msra.mxu0 %v8849_v25 }
 0x651   :  { %4717 = vmatpush1.bf16.msra.mxu1 %v8852_v27  ;;  %4677 = vmatprep.subr.bf16.mxu0 %v8855_v30 }
 0x652   :  { %4718 = vmatprep.subr.bf16.mxu1 %v8858_v53 }
 0x654   :  { %4678 = vmatpush1.bf16.msra.mxu0 %v8861_v24 }
 0x655   :  { %4719 = vmatpush1.bf16.msra.mxu1 %v8864_v33  ;;  %4679 = vmatprep.subr.bf16.mxu0 %v8867_v37 }
 0x656   :  { %4720 = vmatprep.subr.bf16.mxu1 %v8870_v9 }
 0x658   :  { %4680 = vmatpush1.bf16.msra.mxu0 %v8873_v48 }
 0x659   :  { %4721 = vmatpush1.bf16.msra.mxu1 %v8876_v8  ;;  %5351 = vmatprep.subr.bf16.mxu0 %v7541_v2 }
 0x65a   :  { %5392 = vmatprep.subr.bf16.mxu1 %v7542_v49 }
 0x6fb   :  { %v4013_v44 = vpop.f32.mrf.mxu0 }
 0x6fc   :  { %v4054_v1 = vpop.f32.mrf.mxu1 }
 0x6fd   :  { %v4015_v13 = vpop.f32.mrf.mxu0 }
 0x6fe   :  { %v4056_v5 = vpop.f32.mrf.mxu1  ;;  %v4065_v19 = vcombine.low %v4013_v44, %v4015_v13  ;;  %v4066_v41 = vcombine.high %v4013_v44, %v4015_v13  ;;  %v3969_v13 = vld [vmem:[#allocation2 + $0x65] ss:$8 sm:$0xf] }
 0x6ff   :  { %v4067_v43 = vcombine.low %v4054_v1, %v4056_v5  ;;  %v4068_v59 = vcombine.high %v4054_v1, %v4056_v5  ;;  %v4017_v57 = vpop.f32.mrf.mxu0  ;;  %v3973_v5 = vld [vmem:[#allocation2 + $0xa5] ss:$8 sm:$0xf] }
 0x700   :  { %v4058_v18 = vpop.f32.mrf.mxu1  ;;  %v4075_v45 = vrot.slane %v4065_v19, %v7927_v6  ;;  %v4082_v29 = vrot.slane %v4066_v41, %v7927_v6  ;;  %v3977_v57 = vld [vmem:[#allocation2 + $0xe5] ss:$8 sm:$0xf] }
 0x701   :  { %v4089_v16 = vrot.slane %v4067_v43, %v7927_v6  ;;  %v4096_v38 = vrot.slane %v4068_v59, %v7927_v6  ;;  %v4018_v36 = vpop.f32.mrf.mxu0  ;;  %v3975_v59 = vld [vmem:[#allocation2 + $0xc5] ss:$8 sm:$0xf] }
 0x702   :  { %v4059_v31 = vpop.f32.mrf.mxu1 }
 0x703   :  { %v4097_v60 = vcombine.low %v4075_v45, %v4089_v16  ;;  %v4098_v26 = vcombine.high %v4075_v45, %v4089_v16  ;;  %v4099_v52 = vcombine.low %v4082_v29, %v4096_v38  ;;  %v4100_v23 = vcombine.high %v4082_v29, %v4096_v38 }
 0x705   :  { %v4107_v51 = vrot.slane %v4097_v60, %v7927_v6  ;;  %v4114_v35 = vrot.slane %v4099_v52, %v7927_v6  ;;  %v4121_v62 = vrot.slane %v4098_v26, %v7927_v6  ;;  %v4128_v46 = vrot.slane %v4100_v23, %v7927_v6 }
 0x707   :  { %v4129_v2 = vcombine.high %v4107_v51, %v4107_v51  ;;  %v4130_v49 = vcombine.high %v4114_v35, %v4114_v35  ;;  %v4131_v44 = vcombine.high %v4121_v62, %v4121_v62  ;;  %v4132_v1 = vcombine.high %v4128_v46, %v4128_v46 }
 0x708   :  { %v8887_v19 = vadd.f32 %v4107_v51, %v3963_v7  ;;  %v8889_v41 = vadd.f32 %v4121_v62, %v3965_v22  ;;  %v8891_v43 = vadd.f32 %v4114_v35, %v3971_v28  ;;  %v8897_v29 = vadd.f32 %v4128_v46, %v3973_v5 }
 0x709   :  { %v8893_v18 = vadd.f32 %v4129_v2, %v3967_v56  ;;  %v8895_v45 = vadd.f32 %v4131_v44, %v3969_v13  ;;  %v8899_v16 = vadd.f32 %v4130_v49, %v3975_v59  ;;  %v8903_v31 = vadd.f32 %v4132_v1, %v3977_v57 }
 0x70a   :  { %v6260_v38 = vmul.f32 -1.442695, %v8887_v19  ;;  %v6261_v36 = vmul.f32 -1.442695, %v8889_v41  ;;  %v6264_v52 = vmul.f32 -1.442695, %v8891_v43 }
 0x70b   :  { %v6262_v60 = vmul.f32 -1.442695, %v8893_v18  ;;  %v6263_v26 = vmul.f32 -1.442695, %v8895_v45  ;;  %v4205_v23 = vrot.slane %v8887_v19, 1  ;;  %v4206_v35 = vrot.slane %v8889_v41, 1 }
 0x70c   :  { %7062 = vpow2.f32 %v6260_v38  ;;  %v6265_v51 = vmul.f32 -1.442695, %v8897_v29  ;;  %v6266_v62 = vmul.f32 -1.442695, %v8899_v16  ;;  %v4207_v46 = vrot.slane %v8893_v18, 1 }
 0x70d   :  { %7064 = vpow2.f32 %v6261_v36  ;;  %v6267_v7 = vmul.f32 -1.442695, %v8903_v31  ;;  %v4208_v22 = vrot.slane %v8895_v45, 1  ;;  %v4209_v56 = vrot.slane %v8891_v43, 1 }
 0x70e   :  { %7066 = vpow2.f32 %v6262_v60  ;;  %v6268_v28 = vmul.f32 -1.442695, %v4205_v23  ;;  %v4210_v2 = vrot.slane %v8897_v29, 1  ;;  %v6269_v49 = vmul.f32 -1.442695, %v4206_v35 }
 0x70f   :  { %7068 = vpow2.f32 %v6263_v26  ;;  %v4211_v44 = vrot.slane %v8899_v16, 1  ;;  %v6270_v1 = vmul.f32 -1.442695, %v4207_v46  ;;  %v4212_v13 = vrot.slane %v8903_v31, 1 }
 0x710   :  { %7070 = vpow2.f32 %v6264_v52  ;;  %v6271_v5 = vmul.f32 -1.442695, %v4208_v22  ;;  %v6272_v59 = vmul.f32 -1.442695, %v4209_v56  ;;  %v6273_v57 = vmul.f32 -1.442695, %v4210_v2 }
 0x711   :  { %7072 = vpow2.f32 %v6265_v51  ;;  %v6274_v38 = vmul.f32 -1.442695, %v4211_v44  ;;  %v6275_v36 = vmul.f32 -1.442695, %v4212_v13 }
 0x712   :  { %7074 = vpow2.f32 %v6266_v62 }
 0x713   :  { %7076 = vpow2.f32 %v6267_v7 }
 0x714   :  { %7078 = vpow2.f32 %v6268_v28 }
 0x715   :  { %7080 = vpow2.f32 %v6269_v49 }
 0x716   :  { %7082 = vpow2.f32 %v6270_v1 }
 0x717   :  { %7084 = vpow2.f32 %v6271_v5 }
 0x718   :  { %7086 = vpow2.f32 %v6272_v59 }
 0x719   :  { %v7063_v60 = vpop.eup %7062  ;;  %7088 = vpow2.f32 %v6273_v57 }
 0x71a   :  { %v7065_v26 = vpop.eup %7064  ;;  %v4173_v52 = vadd.f32 1.0, %v7063_v60  ;;  %7090 = vpow2.f32 %v6274_v38 }
 0x71b   :  { %v7067_v23 = vpop.eup %7066  ;;  %v4174_v51 = vadd.f32 1.0, %v7065_v26  ;;  %7092 = vpow2.f32 %v6275_v36 }
 0x71c   :  { %v7069_v35 = vpop.eup %7068  ;;  %v4175_v62 = vadd.f32 1.0, %v7067_v23  ;;  %7094 = vrcp.f32 %v4173_v52 }
 0x71d   :  { %v7071_v46 = vpop.eup %7070  ;;  %v4176_v7 = vadd.f32 1.0, %v7069_v35  ;;  %7096 = vrcp.f32 %v4174_v51 }
 0x71e   :  { %v7073_v22 = vpop.eup %7072  ;;  %v4177_v56 = vadd.f32 1.0, %v7071_v46  ;;  %7098 = vrcp.f32 %v4175_v62 }
 0x71f   :  { %v7075_v28 = vpop.eup %7074  ;;  %v4178_v2 = vadd.f32 1.0, %v7073_v22  ;;  %7100 = vrcp.f32 %v4176_v7  ;;  %v4269_v22 = vrot.slane %v8887_v19, 2 }
 0x720   :  { %v7077_v49 = vpop.eup %7076  ;;  %v4179_v44 = vadd.f32 1.0, %v7075_v28  ;;  %7102 = vrcp.f32 %v4177_v56 }
 0x721   :  { %v7079_v1 = vpop.eup %7078  ;;  %v4180_v13 = vadd.f32 1.0, %v7077_v49  ;;  %7104 = vrcp.f32 %v4178_v2  ;;  %v4270_v2 = vrot.slane %v8889_v41, 2 }
 0x722   :  { %v7081_v5 = vpop.eup %7080  ;;  %7106 = vrcp.f32 %v4179_v44  ;;  %v4245_v59 = vadd.f32 1.0, %v7079_v1  ;;  %v4271_v44 = vrot.slane %v8893_v18, 2 }
 0x723   :  { %v7083_v57 = vpop.eup %7082  ;;  %7108 = vrcp.f32 %v4180_v13  ;;  %v4246_v38 = vadd.f32 1.0, %v7081_v5  ;;  %v4272_v13 = vrot.slane %v8895_v45, 2 }
 0x724   :  { %v7085_v36 = vpop.eup %7084  ;;  %v4247_v60 = vadd.f32 1.0, %v7083_v57  ;;  %7110 = vrcp.f32 %v4245_v59  ;;  %v4273_v59 = vrot.slane %v8891_v43, 2  ;;  %v4293_v57 = vrot.slane %v8887_v19, 3 }
 0x725   :  { %v7087_v26 = vpop.eup %7086  ;;  %v4248_v52 = vadd.f32 1.0, %v7085_v36  ;;  %7112 = vrcp.f32 %v4246_v38  ;;  %v4358_v38 = vcombine.high %v8766_v42, %v8766_v42  ;;  %v4295_v19 = vrot.slane %v8893_v18, 3 }
 0x726   :  { %v7089_v23 = vpop.eup %7088  ;;  %v4249_v51 = vadd.f32 1.0, %v7087_v26  ;;  %7114 = vrcp.f32 %v4247_v60  ;;  %v4274_v60 = vrot.slane %v8897_v29, 2  ;;  %v4294_v26 = vrot.slane %v8889_v41, 3 }
 0x727   :  { %v7091_v35 = vpop.eup %7090  ;;  %v4250_v62 = vadd.f32 1.0, %v7089_v23  ;;  %7116 = vrcp.f32 %v4248_v52  ;;  %v4365_v52 = vrot.slane %v8766_v42, %v7927_v6  ;;  %v4297_v41 = vrot.slane %v8891_v43, 3 }
 0x728   :  { %v7093_v46 = vpop.eup %7092  ;;  %v4251_v7 = vadd.f32 1.0, %v7091_v35  ;;  %7118 = vrcp.f32 %v4249_v51  ;;  %v4275_v51 = vrot.slane %v8899_v16, 2  ;;  %v6277_v18 = vmul.f32 -1.442695, %v4294_v26 }
 0x729   :  { %v8920_v56 = vpop.eup %7094  ;;  %v4252_v28 = vadd.f32 1.0, %v7093_v46  ;;  %7120 = vrcp.f32 %v4250_v62  ;;  %v4276_v62 = vrot.slane %v8903_v31, 2  ;;  %v4296_v46 = vrot.slane %v8895_v45, 3 }
 0x72a   :  { %v8923_v49 = vpop.eup %7096  ;;  %7122 = vrcp.f32 %v4251_v7  ;;  %v4373_v8 = vcombine.high %v4365_v52, %v4365_v52  ;;  %v6278_v9 = vmul.f32 -1.442695, %v4295_v19 }
 0x72b   :  { %v8926_v1 = vpop.eup %7098  ;;  %7124 = vrcp.f32 %v4252_v28  ;;  %v4372_v28 = vrot.slane %v4358_v38, %v7927_v6  ;;  %v6279_v37 = vmul.f32 -1.442695, %v4296_v46 }
 0x72c   :  { %v8929_v5 = vpop.eup %7100  ;;  %7126 = vtanh.f32 %v4269_v22  ;;  %v6276_v22 = vmul.f32 -1.442695, %v4293_v57  ;;  %v6280_v57 = vmul.f32 -1.442695, %v4297_v41  ;;  %v4395_v26 = vrot.slane %v4373_v8, %v7927_v6 }
 0x72d   :  { %v8935_v36 = vpop.eup %7102  ;;  %7128 = vtanh.f32 %v4270_v2  ;;  %v4374_v38 = vcombine.high %v4372_v28, %v4372_v28 }
 0x72e   :  { %v8941_v23 = vpop.eup %7104  ;;  %7130 = vtanh.f32 %v4271_v44  ;;  %v4298_v44 = vrot.slane %v8897_v29, 3 }
 0x72f   :  { %v8945_v35 = vpop.eup %7106  ;;  %7132 = vtanh.f32 %v4272_v13  ;;  %v4299_v13 = vrot.slane %v8899_v16, 3  ;;  %v4402_v41 = vrot.slane %v4374_v38, %v7927_v6 }
 0x730   :  { %v8949_v7 = vpop.eup %7108  ;;  %7134 = vtanh.f32 %v4273_v59  ;;  %v4300_v59 = vrot.slane %v8903_v31, 3  ;;  %v6281_v29 = vmul.f32 -1.442695, %v4298_v44  ;;  %v4388_v31 = vrot.slane %v4372_v28, %v7927_v6 }
 0x731   :  { %v7111_v2 = vpop.eup %7110  ;;  %7136 = vtanh.f32 %v4274_v60  ;;  %v4381_v60 = vrot.slane %v4365_v52, %v7927_v6  ;;  %v6282_v16 = vmul.f32 -1.442695, %v4299_v13  ;;  %v4406_v30 = vcombine.high %v4402_v41, %v4402_v41 }
 0x732   :  { %v7113_v48 = vpop.eup %7112  ;;  %7138 = vtanh.f32 %v4275_v51 }
 0x733   :  { %v7115_v45 = vpop.eup %7114  ;;  %7140 = vtanh.f32 %v4276_v62  ;;  %v6283_v62 = vmul.f32 -1.442695, %v4300_v59  ;;  %v4415_v24 = vmul.f32 %v7111_v2, %v4381_v60  ;;  %v4416_v44 = vmul.f32 %v7113_v48, %v4395_v26 }
 0x734   :  { %v7117_v43 = vpop.eup %7116  ;;  %7142 = vpow2.f32 %v6276_v22  ;;  %v4403_v22 = vcombine.high %v4381_v60, %v4381_v60 }
 0x735   :  { %v7119_v33 = vpop.eup %7118  ;;  %7144 = vpow2.f32 %v6277_v18  ;;  %v4405_v18 = vcombine.high %v4395_v26, %v4395_v26 }
 0x736   :  { %v7121_v51 = vpop.eup %7120  ;;  %7146 = vpow2.f32 %v6278_v9  ;;  %v4417_v8 = vmul.f32 %v7115_v45, %v4403_v22  ;;  %v4419_v38 = vmul.f32 %v7119_v33, %v4388_v31 }
 0x737   :  { %v7123_v19 = vpop.eup %7122  ;;  %7148 = vpow2.f32 %v6279_v37  ;;  %v4404_v37 = vcombine.high %v4388_v31, %v4388_v31  ;;  %v4418_v59 = vmul.f32 %v7117_v43, %v4405_v18  ;;  %v4420_v27 = vmul.f32 %v7121_v51, %v4402_v41 }
 0x738   :  { %v7125_v46 = vpop.eup %7124  ;;  %7150 = vpow2.f32 %v6280_v57 }
 0x739   :  { %v7127_v52 = vpop.eup %7126  ;;  %7152 = vpow2.f32 %v6281_v29 }
 0x73a   :  { %v7129_v53 = vpop.eup %7128  ;;  %7154 = vpow2.f32 %v6282_v16  ;;  %v4423_v9 = vmul.f32 %v7127_v52, %v8920_v56  ;;  %v4421_v16 = vmul.f32 %v7123_v19, %v4404_v37  ;;  %v4422_v56 = vmul.f32 %v7125_v46, %v4406_v30 }
 0x73b   :  { %v7131_v13 = vpop.eup %7130  ;;  %7156 = vpow2.f32 %v6283_v62  ;;  %v4424_v28 = vmul.f32 %v7129_v53, %v8923_v49 }
 0x73c   :  { %v7133_v57 = vpop.eup %7132  ;;  %v4425_v2 = vmul.f32 %v7131_v13, %v8926_v1  ;;  %v4431_v60 = vadd.f32 %v4423_v9, %v4415_v24 }
 0x73d   :  { %v7135_v29 = vpop.eup %7134  ;;  %v4426_v48 = vmul.f32 %v7133_v57, %v8929_v5  ;;  %v4432_v26 = vadd.f32 %v4424_v28, %v4416_v44 }
 0x73e   :  { %v7137_v45 = vpop.eup %7136  ;;  %v4427_v62 = vmul.f32 %v7135_v29, %v8935_v36  ;;  %v4433_v22 = vadd.f32 %v4425_v2, %v4417_v8  ;;  %7158 = vtanh.f32 %v4431_v60 }
 0x73f   :  { %v7139_v43 = vpop.eup %7138  ;;  %v4428_v53 = vmul.f32 %v7137_v45, %v8941_v23  ;;  %v4434_v49 = vadd.f32 %v4426_v48, %v4418_v59  ;;  %v4597_v33 = vcombine.low %v4431_v60, %v4432_v26  ;;  %7160 = vtanh.f32 %v4432_v26 }
 0x740   :  { %v7141_v31 = vpop.eup %7140  ;;  %v4429_v24 = vmul.f32 %v7139_v43, %v8945_v35  ;;  %v4435_v1 = vadd.f32 %v4427_v62, %v4419_v38  ;;  %7162 = vtanh.f32 %v4433_v22 }
 0x741   :  { %v7143_v51 = vpop.eup %7142  ;;  %v4430_v5 = vmul.f32 %v7141_v31, %v8949_v7  ;;  %v4436_v41 = vadd.f32 %v4428_v53, %v4420_v27  ;;  %v4598_v19 = vcombine.low %v4433_v22, %v4434_v49  ;;  %v4607_v35 = vrot.slane %v4597_v33, %v7927_v6  ;;  %v4461_v53 = vpop.permute.xlu1 %4460 }
 0x742   :  { %v7145_v30 = vpop.eup %7144  ;;  %v4333_v36 = vadd.f32 1.0, %v7143_v51  ;;  %v4437_v46 = vadd.f32 %v4429_v24, %v4421_v16  ;;  %7164 = vtanh.f32 %v4435_v1  ;;  %vm4462_vm15 = vcmp.eq.s32.totalorder %v4461_v53, 1 }
 0x743   :  { %v7147_v52 = vpop.eup %7146  ;;  %v4334_v23 = vadd.f32 1.0, %v7145_v30  ;;  %v4438_v18 = vadd.f32 %v4430_v5, %v4422_v56  ;;  %7166 = vtanh.f32 %v4436_v41  ;;  %v4599_v44 = vcombine.low %v4435_v1, %v4436_v41 }
 0x744   :  { %v7149_v8 = vpop.eup %7148  ;;  %v4335_v9 = vadd.f32 1.0, %v7147_v52  ;;  %7168 = vrcp.f32 %v4333_v36  ;;  %v4614_v13 = vrot.slane %v4598_v19, %v7927_v6 }
 0x745   :  { %v7151_v7 = vpop.eup %7150  ;;  %v4336_v27 = vadd.f32 1.0, %v7149_v8  ;;  %7170 = vrcp.f32 %v4334_v23  ;;  %v4600_v37 = vcombine.low %v4437_v46, %v4438_v18  ;;  %v4621_v60 = vrot.slane %v4599_v44, %v7927_v6 }
 0x746   :  { %v7153_v59 = vpop.eup %7152  ;;  %v4337_v28 = vadd.f32 1.0, %v7151_v7  ;;  %7172 = vrcp.f32 %v4335_v9  ;;  %v4629_v57 = vcombine.low %v4607_v35, %v4614_v13 }
 0x747   :  { %v7155_v38 = vpop.eup %7154  ;;  %v4338_v2 = vadd.f32 1.0, %v7153_v59  ;;  %7174 = vrcp.f32 %v4336_v27  ;;  %v4628_v29 = vrot.slane %v4600_v37, %v7927_v6 }
 0x748   :  { %v7157_v48 = vpop.eup %7156  ;;  %v4339_v26 = vadd.f32 1.0, %v7155_v38  ;;  %7176 = vrcp.f32 %v4337_v28  ;;  %v4637_v56 = vrot.slane %v4629_v57, %v7927_v6 }
 0x749   :  { %v4340_v45 = vadd.f32 1.0, %v7157_v48  ;;  %7178 = vrcp.f32 %v4338_v2  ;;  %v4630_v16 = vcombine.low %v4621_v60, %v4628_v29 }
 0x74a   :  { %7180 = vrcp.f32 %v4339_v26 }
 0x74b   :  { %7182 = vrcp.f32 %v4340_v45  ;;  %v4644_v62 = vrot.slane %v4630_v16, %v7927_v6  ;;  %v7159_v22 = vpop.eup %7158 }
 0x74c   :  { %7184 = vtanh.f32 %v4434_v49  ;;  %v7161_v43 = vpop.eup %7160 }
 0x74d   :  { %v4645_v33 = vcombine.low %v4637_v56, %v4644_v62  ;;  %7186 = vtanh.f32 %v4437_v46  ;;  %v7163_v31 = vpop.eup %7162 }
 0x74e   :  { %7188 = vtanh.f32 %v4438_v18 }
 0x74f   :  { %v7165_v24 = vpop.eup %7164  ;;  %v8976_v1 = vsel %vm4462_vm15, %v4645_v33, %v8766_v42 }
 0x750   :  { %v7167_v51 = vpop.eup %7166 }
 0x751   :  { %v7169_v5 = vpop.eup %7168 }
 0x752   :  { %v7171_v41 = vpop.eup %7170  ;;  %v4447_v49 = vmul.f32 %v7169_v5, %v7159_v22 }
 0x753   :  { %v7173_v19 = vpop.eup %7172  ;;  %v4448_v23 = vmul.f32 %v7171_v41, %v7161_v43 }
 0x754   :  { %v7175_v30 = vpop.eup %7174  ;;  %v4449_v46 = vmul.f32 %v7173_v19, %v7163_v31 }
 0x755   :  { %v7177_v36 = vpop.eup %7176  ;;  %v4471_v27 = vcombine.low %v4447_v49, %v4448_v23 }
 0x756   :  { %v7179_v52 = vpop.eup %7178  ;;  %v4451_v9 = vmul.f32 %v7177_v36, %v7165_v24 }
 0x757   :  { %v7181_v44 = vpop.eup %7180  ;;  %v4452_v35 = vmul.f32 %v7179_v52, %v7167_v51  ;;  %v4481_v2 = vrot.slane %v4471_v27, %v7927_v6 }
 0x758   :  { %v7183_v8 = vpop.eup %7182 }
 0x759   :  { %v7185_v18 = vpop.eup %7184  ;;  %v4473_v57 = vcombine.low %v4451_v9, %v4452_v35 }
 0x75a   :  { %v7187_v13 = vpop.eup %7186  ;;  %v4450_v7 = vmul.f32 %v7185_v18, %v7175_v30 }
 0x75b   :  { %v7189_v42 = vpop.eup %7188  ;;  %v4453_v37 = vmul.f32 %v7187_v13, %v7181_v44  ;;  %v4495_v29 = vrot.slane %v4473_v57, %v7927_v6  ;;  %v4653_v57 = vld [vmem:[#allocation2 + $0x46] ss:$8 sm:$0xf] }
 0x75c   :  { %v4454_v59 = vmul.f32 %v7189_v42, %v7183_v8  ;;  %v4472_v28 = vcombine.low %v4449_v46, %v4450_v7 }
 0x75e   :  { %v4474_v38 = vcombine.low %v4453_v37, %v4454_v59  ;;  %v4488_v60 = vrot.slane %v4472_v28, %v7927_v6  ;;  %v4649_v59 = vld [vmem:[#allocation2 + $0x6] ss:$8 sm:$0xf] }
 0x75f   :  { %v4651_v28 = vld [vmem:[#allocation2 + $0x26] ss:$8 sm:$0xf] }
 0x760   :  { %v4502_v48 = vrot.slane %v4474_v38, %v7927_v6  ;;  %v4503_v26 = vcombine.low %v4481_v2, %v4488_v60  ;;  %v4657_v38 = vld [vmem:[#allocation2 + $0x86] ss:$8 sm:$0xf] }
 0x762   :  { %v4504_v45 = vcombine.low %v4495_v29, %v4502_v48  ;;  %v4511_v16 = vrot.slane %v4503_v26, %v7927_v6  ;;  %v4655_v26 = vld [vmem:[#allocation2 + $0x66] ss:$8 sm:$0xf] }
 0x764   :  { %v4518_v56 = vrot.slane %v4504_v45, %v7927_v6  ;;  %v4659_v45 = vld [vmem:[#allocation2 + $0xa6] ss:$8 sm:$0xf] }
 0x766   :  { %v4519_v62 = vcombine.low %v4511_v16, %v4518_v56 }
 0x768   :  { %v4521_v22 = vsel %vm4462_vm15, %v4519_v62, 0.0  ;;  %v8987_v43 = vsel %vm4462_vm15, %v4519_v62, %v8777_v54 }
 0x769   :  { %v4523_v33 = vcombine.high %v4521_v22, %v4521_v22  ;;  %v4530_v31 = vrot.slane %v4521_v22, %v7927_v6  ;;  %v4664_v24 = vpack.c.bf16 %v8987_v43, %v8987_v43  ;;  %v4661_v22 = vld [vmem:[#allocation2 + $0xc6] ss:$8 sm:$0xf] }
 0x76b   :  { %v4537_v51 = vrot.slane %v4523_v33, %v7927_v6  ;;  %v4538_v5 = vcombine.high %v4530_v31, %v4530_v31  ;;  %v4546_v41 = vrot.slane %v4530_v31, %v7927_v6  ;;  %6285 = vst.sshfl [vmem:[#allocation9 + $0x5] sm:$0x1 pattern:$0x73625140] %v4530_v31  ;;  %4698 = vmatmul.mubr.bf16.vlgmr.msra.gmra.mxu0 %v4664_v24 }
 0x76c   :  { %4739 = vmatmul.mubr.bf16.vlgmr.msra.gmra.mxu1 %v4664_v24  ;;  %5352 = vmatpush1.bf16.msra.mxu0 %v8784_v40  ;;  %v4663_v33 = vld [vmem:[#allocation2 + $0xe6] ss:$8 sm:$0xf] }
 0x76d   :  { %5393 = vmatpush1.bf16.msra.mxu1 %v8787_v3  ;;  %v4539_v54 = vcombine.high %v4537_v51, %v4537_v51  ;;  %v4553_v53 = vrot.slane %v4537_v51, %v7927_v6  ;;  %v4560_v19 = vrot.slane %v4538_v5, %v7927_v6  ;;  %v4568_v30 = vcombine.high %v4546_v41, %v4546_v41 }
 0x76e   :  { %6286 = vst.sshfl [vmem:[#allocation9 + $0xd] sm:$0x1 pattern:$0x73625140] %v4538_v5  ;;  %5353 = vmatprep.subr.bf16.mxu0 %v8792_v14  ;;  %5394 = vmatprep.subr.bf16.mxu1 %v8795_v50  ;;  %v9361_v14 = vld [vmem:[#allocation18_spill] sm:$0xff]  ;;  %v9362_v50 = vld [vmem:[#allocation19_spill] sm:$0xff] }
 0x76f   :  { %6287 = vst.sshfl [vmem:[#allocation9 + $0x25] sm:$0x1 pattern:$0x73625140] %v4537_v51  ;;  %5383 = vmatprep.mubr.bf16.mxu0 %v9318_v34  ;;  %v4567_v36 = vrot.slane %v4539_v54, %v7927_v6  ;;  %v4569_v52 = vcombine.high %v4553_v53, %v4553_v53  ;;  %v4570_v40 = vcombine.high %v4560_v19, %v4560_v19  ;;  %4582 = vst [vmem:[#allocation9 + $0x15] sm:$0x1] %v4568_v30 }
 0x770   :  { %6288 = vst.sshfl [vmem:[#allocation9 + $0x2d] sm:$0x1 pattern:$0x73625140] %v4539_v54  ;;  %5424 = vmatprep.mubr.bf16.mxu1 %v9318_v34  ;;  %5354 = vmatpush1.bf16.msra.mxu0 %v8801_v10  ;;  %v9360_v34 = vld [vmem:[#allocation17_spill] sm:$0xff]  ;;  %v9363_v10 = vld [vmem:[#allocation20_spill] sm:$0xff] }
 0x771   :  { %5395 = vmatpush1.bf16.msra.mxu1 %v8804_v12  ;;  %v4571_v3 = vcombine.high %v4567_v36, %v4567_v36  ;;  %4583 = vst [vmem:[#allocation9 + $0x1d] sm:$0x1] %v4570_v40  ;;  %4586 = vst [vmem:[#allocation9 + $0x35] sm:$0x1] %v4569_v52  ;;  %5355 = vmatprep.subr.bf16.mxu0 %v8807_v20  ;;  %v9364_v12 = vld [vmem:[#allocation21_spill] sm:$0xff]  ;;  %v9365_v20 = vld [vmem:[#allocation22_spill] sm:$0xff] }
 0x772   :  { %5396 = vmatprep.subr.bf16.mxu1 %v8810_v15  ;;  %v9366_v15 = vld [vmem:[#allocation23_spill] sm:$0xff] }
 0x773   :  { %4587 = vst [vmem:[#allocation9 + $0x3d] sm:$0x1] %v4571_v3 }
 0x774   :  { %5356 = vmatpush1.bf16.msra.mxu0 %v8813_v17  ;;  %v9367_v17 = vld [vmem:[#allocation24_spill] sm:$0xff] }
 0x775   :  { %5397 = vmatpush1.bf16.msra.mxu1 %v8816_v47  ;;  %5357 = vmatprep.subr.bf16.mxu0 %v8819_v0  ;;  %v9368_v47 = vld [vmem:[#allocation25_spill] sm:$0xff] }
 0x776   :  { %5398 = vmatprep.subr.bf16.mxu1 %v8822_v32 }
 0x778   :  { %5358 = vmatpush1.bf16.msra.mxu0 %v8825_v4 }
 0x779   :  { %5399 = vmatpush1.bf16.msra.mxu1 %v8828_v61  ;;  %5359 = vmatprep.subr.bf16.mxu0 %v8831_v63 }
 0x77a   :  { %5400 = vmatprep.subr.bf16.mxu1 %v8834_v58 }
 0x77c   :  { %5360 = vmatpush1.bf16.msra.mxu0 %v8837_v55 }
 0x77d   :  { %5401 = vmatpush1.bf16.msra.mxu1 %v8840_v11  ;;  %5361 = vmatprep.subr.bf16.mxu0 %v8843_v39 }
 0x77e   :  { %5402 = vmatprep.subr.bf16.mxu1 %v8846_v21 }
 0x780   :  { %5362 = vmatpush1.bf16.msra.mxu0 %v8849_v25 }
 0x781   :  { %5403 = vmatpush1.bf16.msra.mxu1 %v9360_v34  ;;  %5363 = vmatprep.subr.bf16.mxu0 %v9361_v14 }
 0x782   :  { %5404 = vmatprep.subr.bf16.mxu1 %v9362_v50 }
 0x784   :  { %5364 = vmatpush1.bf16.msra.mxu0 %v9363_v10 }
 0x785   :  { %5405 = vmatpush1.bf16.msra.mxu1 %v9364_v12  ;;  %5365 = vmatprep.subr.bf16.mxu0 %v9365_v20 }
 0x786   :  { %5406 = vmatprep.subr.bf16.mxu1 %v9366_v15 }
 0x788   :  { %5366 = vmatpush1.bf16.msra.mxu0 %v9367_v17 }
 0x789   :  { %5407 = vmatpush1.bf16.msra.mxu1 %v9368_v47 }
 0x82b   :  { %v4699_v0 = vpop.f32.mrf.mxu0 }
 0x82c   :  { %v4740_v32 = vpop.f32.mrf.mxu1 }
 0x82d   :  { %v4701_v4 = vpop.f32.mrf.mxu0 }
 0x82e   :  { %v4742_v61 = vpop.f32.mrf.mxu1  ;;  %v4751_v63 = vcombine.low %v4699_v0, %v4701_v4  ;;  %v4752_v58 = vcombine.high %v4699_v0, %v4701_v4 }
 0x82f   :  { %v4753_v55 = vcombine.low %v4740_v32, %v4742_v61  ;;  %v4754_v11 = vcombine.high %v4740_v32, %v4742_v61  ;;  %v4703_v39 = vpop.f32.mrf.mxu0 }
 0x830   :  { %v4744_v21 = vpop.f32.mrf.mxu1  ;;  %v4761_v25 = vrot.slane %v4751_v63, %v7927_v6  ;;  %v4768_v49 = vrot.slane %v4752_v58, %v7927_v6 }
 0x831   :  { %v4775_v23 = vrot.slane %v4753_v55, %v7927_v6  ;;  %v4782_v44 = vrot.slane %v4754_v11, %v7927_v6  ;;  %v4704_v8 = vpop.f32.mrf.mxu0 }
 0x832   :  { %v4745_v46 = vpop.f32.mrf.mxu1 }
 0x833   :  { %v4783_v9 = vcombine.low %v4761_v25, %v4775_v23  ;;  %v4784_v35 = vcombine.high %v4761_v25, %v4775_v23  ;;  %v4785_v18 = vcombine.low %v4768_v49, %v4782_v44  ;;  %v4786_v13 = vcombine.high %v4768_v49, %v4782_v44 }
 0x835   :  { %v4793_v7 = vrot.slane %v4783_v9, %v7927_v6  ;;  %v4800_v27 = vrot.slane %v4785_v18, %v7927_v6  ;;  %v4807_v42 = vrot.slane %v4784_v35, %v7927_v6  ;;  %v4814_v37 = vrot.slane %v4786_v13, %v7927_v6 }
 0x837   :  { %v4815_v2 = vcombine.high %v4793_v7, %v4793_v7  ;;  %v4816_v60 = vcombine.high %v4800_v27, %v4800_v27  ;;  %v4817_v29 = vcombine.high %v4807_v42, %v4807_v42  ;;  %v4818_v48 = vcombine.high %v4814_v37, %v4814_v37 }
 0x838   :  { %v9037_v16 = vadd.f32 %v4793_v7, %v4649_v59  ;;  %v9039_v56 = vadd.f32 %v4807_v42, %v4651_v28  ;;  %v9041_v62 = vadd.f32 %v4800_v27, %v4657_v38  ;;  %v9047_v51 = vadd.f32 %v4814_v37, %v4659_v45 }
 0x839   :  { %v9043_v31 = vadd.f32 %v4815_v2, %v4653_v57  ;;  %v9045_v24 = vadd.f32 %v4817_v29, %v4655_v26  ;;  %v9049_v5 = vadd.f32 %v4816_v60, %v4661_v22  ;;  %v9053_v53 = vadd.f32 %v4818_v48, %v4663_v33 }
 0x83a   :  { %v6289_v41 = vmul.f32 -1.442695, %v9037_v16  ;;  %v6290_v54 = vmul.f32 -1.442695, %v9039_v56  ;;  %v6293_v36 = vmul.f32 -1.442695, %v9041_v62 }
 0x83b   :  { %v6291_v19 = vmul.f32 -1.442695, %v9043_v31  ;;  %v6292_v30 = vmul.f32 -1.442695, %v9045_v24  ;;  %v4891_v52 = vrot.slane %v9037_v16, 1  ;;  %v4892_v3 = vrot.slane %v9039_v56, 1 }
 0x83c   :  { %7190 = vpow2.f32 %v6289_v41  ;;  %v6294_v40 = vmul.f32 -1.442695, %v9047_v51  ;;  %v6295_v34 = vmul.f32 -1.442695, %v9049_v5  ;;  %v4893_v14 = vrot.slane %v9043_v31, 1 }
 0x83d   :  { %7192 = vpow2.f32 %v6290_v54  ;;  %v6296_v50 = vmul.f32 -1.442695, %v9053_v53  ;;  %v4894_v10 = vrot.slane %v9045_v24, 1  ;;  %v4895_v12 = vrot.slane %v9041_v62, 1 }
 0x83e   :  { %7194 = vpow2.f32 %v6291_v19  ;;  %v6297_v20 = vmul.f32 -1.442695, %v4891_v52  ;;  %v4896_v15 = vrot.slane %v9047_v51, 1  ;;  %v6298_v17 = vmul.f32 -1.442695, %v4892_v3 }
 0x83f   :  { %7196 = vpow2.f32 %v6292_v30  ;;  %v4897_v47 = vrot.slane %v9049_v5, 1  ;;  %v6299_v0 = vmul.f32 -1.442695, %v4893_v14  ;;  %v4898_v32 = vrot.slane %v9053_v53, 1 }
 0x840   :  { %7198 = vpow2.f32 %v6293_v36  ;;  %v6300_v4 = vmul.f32 -1.442695, %v4894_v10  ;;  %v6301_v61 = vmul.f32 -1.442695, %v4895_v12  ;;  %v6302_v63 = vmul.f32 -1.442695, %v4896_v15 }
 0x841   :  { %7200 = vpow2.f32 %v6294_v40  ;;  %v6303_v58 = vmul.f32 -1.442695, %v4897_v47  ;;  %v6304_v55 = vmul.f32 -1.442695, %v4898_v32  ;;  %v4955_v19 = vrot.slane %v9037_v16, 2 }
 0x842   :  { %7202 = vpow2.f32 %v6295_v34  ;;  %v4956_v52 = vrot.slane %v9039_v56, 2  ;;  %v4957_v3 = vrot.slane %v9043_v31, 2  ;;  %v4958_v14 = vrot.slane %v9045_v24, 2 }
 0x843   :  { %7204 = vpow2.f32 %v6296_v50  ;;  %v4959_v10 = vrot.slane %v9041_v62, 2  ;;  %v4979_v12 = vrot.slane %v9037_v16, 3  ;;  %v4980_v47 = vrot.slane %v9039_v56, 3 }
 0x844   :  { %7206 = vpow2.f32 %v6297_v20  ;;  %v5044_v20 = vcombine.high %v8976_v1, %v8976_v1  ;;  %v4981_v16 = vrot.slane %v9043_v31, 3  ;;  %v4983_v56 = vrot.slane %v9041_v62, 3 }
 0x845   :  { %7208 = vpow2.f32 %v6298_v17  ;;  %v4960_v17 = vrot.slane %v9047_v51, 2  ;;  %v6306_v31 = vmul.f32 -1.442695, %v4980_v47 }
 0x846   :  { %7210 = vpow2.f32 %v6299_v0  ;;  %v5051_v0 = vrot.slane %v8976_v1, %v7927_v6 }
 0x847   :  { %7212 = vpow2.f32 %v6300_v4  ;;  %v4961_v4 = vrot.slane %v9049_v5, 2 }
 0x848   :  { %7214 = vpow2.f32 %v6301_v61 }
 0x849   :  { %v7191_v11 = vpop.eup %7190  ;;  %7216 = vpow2.f32 %v6302_v63  ;;  %v4962_v63 = vrot.slane %v9053_v53, 2 }
 0x84a   :  { %v7193_v39 = vpop.eup %7192  ;;  %v4859_v21 = vadd.f32 1.0, %v7191_v11  ;;  %7218 = vpow2.f32 %v6303_v58  ;;  %v4982_v58 = vrot.slane %v9045_v24, 3  ;;  %v6305_v11 = vmul.f32 -1.442695, %v4979_v12 }
 0x84b   :  { %v7195_v25 = vpop.eup %7194  ;;  %v4860_v49 = vadd.f32 1.0, %v7193_v39  ;;  %7220 = vpow2.f32 %v6304_v55  ;;  %v5058_v39 = vrot.slane %v5044_v20, %v7927_v6 }
 0x84c   :  { %v7197_v23 = vpop.eup %7196  ;;  %v4861_v44 = vadd.f32 1.0, %v7195_v25  ;;  %7222 = vrcp.f32 %v4859_v21  ;;  %v4984_v25 = vrot.slane %v9047_v51, 3 }
 0x84d   :  { %v7199_v8 = vpop.eup %7198  ;;  %v4862_v46 = vadd.f32 1.0, %v7197_v23  ;;  %7224 = vrcp.f32 %v4860_v49  ;;  %v5059_v49 = vcombine.high %v5051_v0, %v5051_v0 }
 0x84e   :  { %v7201_v9 = vpop.eup %7200  ;;  %v4863_v35 = vadd.f32 1.0, %v7199_v8  ;;  %7226 = vrcp.f32 %v4861_v44  ;;  %v4985_v44 = vrot.slane %v9049_v5, 3  ;;  %v6307_v8 = vmul.f32 -1.442695, %v4981_v16 }
 0x84f   :  { %v7203_v18 = vpop.eup %7202  ;;  %v4864_v13 = vadd.f32 1.0, %v7201_v9  ;;  %7228 = vrcp.f32 %v4862_v46  ;;  %v4986_v46 = vrot.slane %v9053_v53, 3  ;;  %v6308_v9 = vmul.f32 -1.442695, %v4982_v58 }
 0x850   :  { %v7205_v7 = vpop.eup %7204  ;;  %v4865_v27 = vadd.f32 1.0, %v7203_v18  ;;  %7230 = vrcp.f32 %v4863_v35  ;;  %v6309_v35 = vmul.f32 -1.442695, %v4983_v56  ;;  %v5060_v18 = vcombine.high %v5058_v39, %v5058_v39 }
 0x851   :  { %v7207_v42 = vpop.eup %7206  ;;  %v4866_v37 = vadd.f32 1.0, %v7205_v7  ;;  %7232 = vrcp.f32 %v4864_v13  ;;  %v5067_v13 = vrot.slane %v5051_v0, %v7927_v6  ;;  %v6310_v51 = vmul.f32 -1.442695, %v4984_v25 }
 0x852   :  { %v7209_v59 = vpop.eup %7208  ;;  %7234 = vrcp.f32 %v4865_v27  ;;  %v4931_v28 = vadd.f32 1.0, %v7207_v42  ;;  %v5081_v27 = vrot.slane %v5059_v49, %v7927_v6  ;;  %v6311_v5 = vmul.f32 -1.442695, %v4985_v44 }
 0x853   :  { %v7211_v57 = vpop.eup %7210  ;;  %7236 = vrcp.f32 %v4866_v37  ;;  %v4932_v38 = vadd.f32 1.0, %v7209_v59  ;;  %v6312_v59 = vmul.f32 -1.442695, %v4986_v46  ;;  %v5074_v53 = vrot.slane %v5058_v39, %v7927_v6 }
 0x854   :  { %v7213_v2 = vpop.eup %7212  ;;  %v4933_v60 = vadd.f32 1.0, %v7211_v57  ;;  %7238 = vrcp.f32 %v4931_v28  ;;  %v5088_v57 = vrot.slane %v5060_v18, %v7927_v6 }
 0x855   :  { %v7215_v29 = vpop.eup %7214  ;;  %v4934_v48 = vadd.f32 1.0, %v7213_v2  ;;  %7240 = vrcp.f32 %v4932_v38  ;;  %v5089_v38 = vcombine.high %v5067_v13, %v5067_v13 }
 0x856   :  { %v7217_v26 = vpop.eup %7216  ;;  %v4935_v45 = vadd.f32 1.0, %v7215_v29  ;;  %7242 = vrcp.f32 %v4933_v60  ;;  %v5091_v29 = vcombine.high %v5081_v27, %v5081_v27 }
 0x857   :  { %v7219_v22 = vpop.eup %7218  ;;  %v4936_v33 = vadd.f32 1.0, %v7217_v26  ;;  %7244 = vrcp.f32 %v4934_v48 }
 0x858   :  { %v7221_v41 = vpop.eup %7220  ;;  %v4937_v54 = vadd.f32 1.0, %v7219_v22  ;;  %7246 = vrcp.f32 %v4935_v45 }
 0x859   :  { %v9070_v30 = vpop.eup %7222  ;;  %v4938_v36 = vadd.f32 1.0, %v7221_v41  ;;  %7248 = vrcp.f32 %v4936_v33  ;;  %v5090_v41 = vcombine.high %v5074_v53, %v5074_v53 }
 0x85a   :  { %v9073_v40 = vpop.eup %7224  ;;  %7250 = vrcp.f32 %v4937_v54 }
 0x85b   :  { %v9076_v34 = vpop.eup %7226  ;;  %7252 = vrcp.f32 %v4938_v36 }
 0x85c   :  { %v9079_v50 = vpop.eup %7228  ;;  %7254 = vtanh.f32 %v4955_v19 }
 0x85d   :  { %v9085_v15 = vpop.eup %7230  ;;  %7256 = vtanh.f32 %v4956_v52  ;;  %v5092_v52 = vcombine.high %v5088_v57, %v5088_v57 }
 0x85e   :  { %v9091_v32 = vpop.eup %7232  ;;  %7258 = vtanh.f32 %v4957_v3 }
 0x85f   :  { %v9095_v61 = vpop.eup %7234  ;;  %7260 = vtanh.f32 %v4958_v14 }
 0x860   :  { %v9099_v55 = vpop.eup %7236  ;;  %7262 = vtanh.f32 %v4959_v10 }
 0x861   :  { %v7239_v21 = vpop.eup %7238  ;;  %7264 = vtanh.f32 %v4960_v17 }
 0x862   :  { %v7241_v23 = vpop.eup %7240  ;;  %7266 = vtanh.f32 %v4961_v4  ;;  %v5101_v2 = vmul.f32 %v7239_v21, %v5067_v13 }
 0x863   :  { %v7243_v24 = vpop.eup %7242  ;;  %7268 = vtanh.f32 %v4962_v63  ;;  %v5102_v48 = vmul.f32 %v7241_v23, %v5081_v27 }
 0x864   :  { %v7245_v62 = vpop.eup %7244  ;;  %7270 = vpow2.f32 %v6305_v11  ;;  %v5103_v45 = vmul.f32 %v7243_v24, %v5089_v38 }
 0x865   :  { %v7247_v7 = vpop.eup %7246  ;;  %7272 = vpow2.f32 %v6306_v31  ;;  %v5104_v54 = vmul.f32 %v7245_v62, %v5091_v29 }
 0x866   :  { %v7249_v42 = vpop.eup %7248  ;;  %7274 = vpow2.f32 %v6307_v8  ;;  %v5105_v3 = vmul.f32 %v7247_v7, %v5074_v53 }
 0x867   :  { %v7251_v37 = vpop.eup %7250  ;;  %7276 = vpow2.f32 %v6308_v9  ;;  %v5106_v20 = vmul.f32 %v7249_v42, %v5088_v57 }
 0x868   :  { %v7253_v28 = vpop.eup %7252  ;;  %7278 = vpow2.f32 %v6309_v35  ;;  %v5107_v4 = vmul.f32 %v7251_v37, %v5090_v41 }
 0x869   :  { %v7255_v60 = vpop.eup %7254  ;;  %7280 = vpow2.f32 %v6310_v51 }
 0x86a   :  { %v7257_v26 = vpop.eup %7256  ;;  %7282 = vpow2.f32 %v6311_v5  ;;  %v5109_v22 = vmul.f32 %v7255_v60, %v9070_v30  ;;  %v5108_v30 = vmul.f32 %v7253_v28, %v5092_v52  ;;  %v5147_v60 = vpop.permute.xlu0 %5146 }
 0x86b   :  { %v7259_v33 = vpop.eup %7258  ;;  %7284 = vpow2.f32 %v6312_v59  ;;  %v5110_v19 = vmul.f32 %v7257_v26, %v9073_v40  ;;  %vm5148_vm0 = vcmp.eq.s32.totalorder %v5147_v60, 1 }
 0x86c   :  { %v7261_v36 = vpop.eup %7260  ;;  %v5111_v14 = vmul.f32 %v7259_v33, %v9076_v34  ;;  %v5117_v10 = vadd.f32 %v5109_v22, %v5101_v2 }
 0x86d   :  { %v7263_v12 = vpop.eup %7262  ;;  %v5112_v17 = vmul.f32 %v7261_v36, %v9079_v50  ;;  %v5118_v47 = vadd.f32 %v5110_v19, %v5102_v48 }
 0x86e   :  { %v7265_v0 = vpop.eup %7264  ;;  %v5113_v16 = vmul.f32 %v7263_v12, %v9085_v15  ;;  %v5119_v63 = vadd.f32 %v5111_v14, %v5103_v45  ;;  %7286 = vtanh.f32 %v5117_v10 }
 0x86f   :  { %v7267_v58 = vpop.eup %7266  ;;  %v5114_v40 = vmul.f32 %v7265_v0, %v9091_v32  ;;  %v5120_v56 = vadd.f32 %v5112_v17, %v5104_v54  ;;  %v5283_v11 = vcombine.low %v5117_v10, %v5118_v47  ;;  %7288 = vtanh.f32 %v5118_v47 }
 0x870   :  { %v7269_v39 = vpop.eup %7268  ;;  %v5115_v34 = vmul.f32 %v7267_v58, %v9095_v61  ;;  %v5121_v21 = vadd.f32 %v5113_v16, %v5105_v3  ;;  %7290 = vtanh.f32 %v5119_v63 }
 0x871   :  { %v7271_v25 = vpop.eup %7270  ;;  %v5116_v50 = vmul.f32 %v7269_v39, %v9099_v55  ;;  %v5122_v31 = vadd.f32 %v5114_v40, %v5106_v20  ;;  %v5284_v49 = vcombine.low %v5119_v63, %v5120_v56  ;;  %v5293_v61 = vrot.slane %v5283_v11, %v7927_v6 }
 0x872   :  { %v7273_v23 = vpop.eup %7272  ;;  %v5019_v15 = vadd.f32 1.0, %v7271_v25  ;;  %v5123_v44 = vadd.f32 %v5115_v34, %v5107_v4  ;;  %7292 = vtanh.f32 %v5121_v21 }
 0x873   :  { %v7275_v8 = vpop.eup %7274  ;;  %v5020_v32 = vadd.f32 1.0, %v7273_v23  ;;  %v5124_v24 = vadd.f32 %v5116_v50, %v5108_v30  ;;  %7294 = vtanh.f32 %v5122_v31  ;;  %v5285_v46 = vcombine.low %v5121_v21, %v5122_v31 }
 0x874   :  { %v7277_v9 = vpop.eup %7276  ;;  %v5021_v62 = vadd.f32 1.0, %v7275_v8  ;;  %7296 = vrcp.f32 %v5019_v15  ;;  %v5300_v35 = vrot.slane %v5284_v49, %v7927_v6 }
 0x875   :  { %v7279_v55 = vpop.eup %7278  ;;  %v5022_v18 = vadd.f32 1.0, %v7277_v9  ;;  %7298 = vrcp.f32 %v5020_v32  ;;  %v5286_v13 = vcombine.low %v5123_v44, %v5124_v24  ;;  %v5307_v37 = vrot.slane %v5285_v46, %v7927_v6 }
 0x876   :  { %v7281_v7 = vpop.eup %7280  ;;  %v5023_v51 = vadd.f32 1.0, %v7279_v55  ;;  %7300 = vrcp.f32 %v5021_v62  ;;  %v5315_v27 = vcombine.low %v5293_v61, %v5300_v35 }
 0x877   :  { %v7283_v42 = vpop.eup %7282  ;;  %v5024_v5 = vadd.f32 1.0, %v7281_v7  ;;  %7302 = vrcp.f32 %v5022_v18  ;;  %v5314_v59 = vrot.slane %v5286_v13, %v7927_v6 }
 0x878   :  { %v7285_v53 = vpop.eup %7284  ;;  %v5025_v28 = vadd.f32 1.0, %v7283_v42  ;;  %7304 = vrcp.f32 %v5023_v51  ;;  %v5323_v2 = vrot.slane %v5315_v27, %v7927_v6 }
 0x879   :  { %v5026_v57 = vadd.f32 1.0, %v7285_v53  ;;  %7306 = vrcp.f32 %v5024_v5  ;;  %v5316_v38 = vcombine.low %v5307_v37, %v5314_v59 }
 0x87a   :  { %7308 = vrcp.f32 %v5025_v28 }
 0x87b   :  { %7310 = vrcp.f32 %v5026_v57  ;;  %v5330_v29 = vrot.slane %v5316_v38, %v7927_v6  ;;  %v7287_v48 = vpop.eup %7286 }
 0x87c   :  { %7312 = vtanh.f32 %v5120_v56  ;;  %v7289_v26 = vpop.eup %7288 }
 0x87d   :  { %v5331_v45 = vcombine.low %v5323_v2, %v5330_v29  ;;  %7314 = vtanh.f32 %v5123_v44  ;;  %v7291_v22 = vpop.eup %7290 }
 0x87e   :  { %7316 = vtanh.f32 %v5124_v24 }
 0x87f   :  { %v7293_v33 = vpop.eup %7292  ;;  %v9126_v41 = vsel %vm5148_vm0, %v5331_v45, %v8976_v1 }
 0x880   :  { %v7295_v54 = vpop.eup %7294 }
 0x881   :  { %v7297_v19 = vpop.eup %7296 }
 0x882   :  { %v7299_v36 = vpop.eup %7298  ;;  %v5133_v12 = vmul.f32 %v7297_v19, %v7287_v48 }
 0x883   :  { %v7301_v52 = vpop.eup %7300  ;;  %v5134_v20 = vmul.f32 %v7299_v36, %v7289_v26 }
 0x884   :  { %v7303_v3 = vpop.eup %7302  ;;  %v5135_v0 = vmul.f32 %v7301_v52, %v7291_v22 }
 0x885   :  { %v7305_v14 = vpop.eup %7304  ;;  %v5157_v40 = vcombine.low %v5133_v12, %v5134_v20 }
 0x886   :  { %v7307_v10 = vpop.eup %7306  ;;  %v5137_v4 = vmul.f32 %v7305_v14, %v7293_v33 }
 0x887   :  { %v7309_v17 = vpop.eup %7308  ;;  %v5138_v30 = vmul.f32 %v7307_v10, %v7295_v54  ;;  %v5167_v25 = vrot.slane %v5157_v40, %v7927_v6 }
 0x888   :  { %v7311_v47 = vpop.eup %7310 }
 0x889   :  { %v7313_v16 = vpop.eup %7312  ;;  %v5159_v34 = vcombine.low %v5137_v4, %v5138_v30  ;;  %v5337_v4 = vld [vmem:[#allocation2 + $0x27] ss:$8 sm:$0xf] }
 0x88a   :  { %v7315_v63 = vpop.eup %7314  ;;  %v5136_v58 = vmul.f32 %v7313_v16, %v7303_v3  ;;  %v5339_v30 = vld [vmem:[#allocation2 + $0x47] ss:$8 sm:$0xf] }
 0x88b   :  { %v7317_v1 = vpop.eup %7316  ;;  %v5139_v56 = vmul.f32 %v7315_v63, %v7309_v17  ;;  %v5181_v31 = vrot.slane %v5159_v34, %v7927_v6  ;;  %v5343_v16 = vld [vmem:[#allocation2 + $0x87] ss:$8 sm:$0xf] }
 0x88c   :  { %v5140_v11 = vmul.f32 %v7317_v1, %v7311_v47  ;;  %v5158_v39 = vcombine.low %v5135_v0, %v5136_v58  ;;  %v5335_v0 = vld [vmem:[#allocation2 + $0x7] ss:$8 sm:$0xf] }
 0x88e   :  { %v5160_v21 = vcombine.low %v5139_v56, %v5140_v11  ;;  %v5174_v50 = vrot.slane %v5158_v39, %v7927_v6  ;;  %v5341_v56 = vld [vmem:[#allocation2 + $0x67] ss:$8 sm:$0xf] }
 0x88f   :  { %v5345_v11 = vld [vmem:[#allocation2 + $0xa7] ss:$8 sm:$0xf] }
 0x890   :  { %v5188_v49 = vrot.slane %v5160_v21, %v7927_v6  ;;  %v5189_v23 = vcombine.low %v5167_v25, %v5174_v50  ;;  %v5347_v25 = vld [vmem:[#allocation2 + $0xc7] ss:$8 sm:$0xf] }
 0x891   :  { %v5349_v50 = vld [vmem:[#allocation2 + $0xe7] ss:$8 sm:$0xf] }
 0x892   :  { %v5190_v15 = vcombine.low %v5181_v31, %v5188_v49  ;;  %v5197_v44 = vrot.slane %v5189_v23, %v7927_v6 }
 0x894   :  { %v5204_v8 = vrot.slane %v5190_v15, %v7927_v6 }
 0x896   :  { %v5205_v32 = vcombine.low %v5197_v44, %v5204_v8 }
 0x898   :  { %v5207_v24 = vsel %vm5148_vm0, %v5205_v32, 0.0  ;;  %v9137_v46 = vsel %vm5148_vm0, %v5205_v32, %v8987_v43 }
 0x899   :  { %v5209_v9 = vcombine.high %v5207_v24, %v5207_v24  ;;  %v5216_v62 = vrot.slane %v5207_v24, %v7927_v6  ;;  %v5350_v61 = vpack.c.bf16 %v9137_v46, %v9137_v46 }
 0x89b   :  { %v5223_v35 = vrot.slane %v5209_v9, %v7927_v6  ;;  %v5224_v55 = vcombine.high %v5216_v62, %v5216_v62  ;;  %v5232_v18 = vrot.slane %v5216_v62, %v7927_v6  ;;  %6314 = vst.sshfl [vmem:[#allocation9 + $0x6] sm:$0x1 pattern:$0x73625140] %v5216_v62  ;;  %5384 = vmatmul.mubr.bf16.vlgmr.msra.gmra.mxu0 %v5350_v61 }
 0x89c   :  { %5425 = vmatmul.mubr.bf16.vlgmr.msra.gmra.mxu1 %v5350_v61 }
 0x89d   :  { %v5225_v13 = vcombine.high %v5223_v35, %v5223_v35  ;;  %v5239_v7 = vrot.slane %v5223_v35, %v7927_v6  ;;  %v5246_v43 = vrot.slane %v5224_v55, %v7927_v6  ;;  %v5254_v51 = vcombine.high %v5232_v18, %v5232_v18  ;;  %6315 = vst.sshfl [vmem:[#allocation9 + $0xe] sm:$0x1 pattern:$0x73625140] %v5224_v55 }
 0x89e   :  { %6316 = vst.sshfl [vmem:[#allocation9 + $0x26] sm:$0x1 pattern:$0x73625140] %v5223_v35 }
 0x89f   :  { %v5253_v27 = vrot.slane %v5225_v13, %v7927_v6  ;;  %v5255_v42 = vcombine.high %v5239_v7, %v5239_v7  ;;  %v5256_v5 = vcombine.high %v5246_v43, %v5246_v43  ;;  %5268 = vst [vmem:[#allocation9 + $0x16] sm:$0x1] %v5254_v51  ;;  %6317 = vst.sshfl [vmem:[#allocation9 + $0x2e] sm:$0x1 pattern:$0x73625140] %v5225_v13 }
 0x8a1   :  { %v5257_v37 = vcombine.high %v5253_v27, %v5253_v27  ;;  %5269 = vst [vmem:[#allocation9 + $0x1e] sm:$0x1] %v5256_v5  ;;  %5272 = vst [vmem:[#allocation9 + $0x36] sm:$0x1] %v5255_v42 }
 0x8a3   :  { %5273 = vst [vmem:[#allocation9 + $0x3e] sm:$0x1] %v5257_v37 }
 0x95b   :  { %v5385_v59 = vpop.f32.mrf.mxu0 }
 0x95c   :  { %v5426_v53 = vpop.f32.mrf.mxu1 }
 0x95d   :  { %v5387_v28 = vpop.f32.mrf.mxu0 }
 0x95e   :  { %v5428_v57 = vpop.f32.mrf.mxu1  ;;  %v5437_v38 = vcombine.low %v5385_v59, %v5387_v28  ;;  %v5438_v2 = vcombine.high %v5385_v59, %v5387_v28 }
 0x95f   :  { %v5439_v60 = vcombine.low %v5426_v53, %v5428_v57  ;;  %v5440_v29 = vcombine.high %v5426_v53, %v5428_v57  ;;  %v5389_v48 = vpop.f32.mrf.mxu0 }
 0x960   :  { %v5430_v26 = vpop.f32.mrf.mxu1  ;;  %v5447_v45 = vrot.slane %v5437_v38, %v7927_v6  ;;  %v5454_v22 = vrot.slane %v5438_v2, %v7927_v6 }
 0x961   :  { %v5461_v33 = vrot.slane %v5439_v60, %v7927_v6  ;;  %v5468_v54 = vrot.slane %v5440_v29, %v7927_v6  ;;  %v5390_v19 = vpop.f32.mrf.mxu0 }
 0x962   :  { %v5431_v36 = vpop.f32.mrf.mxu1 }
 0x963   :  { %v5469_v52 = vcombine.low %v5447_v45, %v5461_v33  ;;  %v5470_v3 = vcombine.high %v5447_v45, %v5461_v33  ;;  %v5471_v14 = vcombine.low %v5454_v22, %v5468_v54  ;;  %v5472_v10 = vcombine.high %v5454_v22, %v5468_v54 }
 0x965   :  { %v5479_v12 = vrot.slane %v5469_v52, %v7927_v6  ;;  %v5486_v20 = vrot.slane %v5471_v14, %v7927_v6  ;;  %v5493_v17 = vrot.slane %v5470_v3, %v7927_v6  ;;  %v5500_v47 = vrot.slane %v5472_v10, %v7927_v6 }
 0x967   :  { %v5501_v63 = vcombine.high %v5479_v12, %v5479_v12  ;;  %v5502_v58 = vcombine.high %v5486_v20, %v5486_v20  ;;  %v5503_v40 = vcombine.high %v5493_v17, %v5493_v17  ;;  %v5504_v1 = vcombine.high %v5500_v47, %v5500_v47 }
 0x968   :  { %v9155_v39 = vadd.f32 %v5479_v12, %v5335_v0  ;;  %v9157_v34 = vadd.f32 %v5493_v17, %v5337_v4  ;;  %v9159_v21 = vadd.f32 %v5486_v20, %v5343_v16  ;;  %v9165_v23 = vadd.f32 %v5500_v47, %v5345_v11 }
 0x969   :  { %v9161_v31 = vadd.f32 %v5501_v63, %v5339_v30  ;;  %v9163_v49 = vadd.f32 %v5503_v40, %v5341_v56  ;;  %v9167_v15 = vadd.f32 %v5502_v58, %v5347_v25  ;;  %v9171_v32 = vadd.f32 %v5504_v1, %v5349_v50 }
 0x96a   :  { %v6318_v44 = vmul.f32 -1.442695, %v9155_v39  ;;  %v6319_v8 = vmul.f32 -1.442695, %v9157_v34  ;;  %v6322_v62 = vmul.f32 -1.442695, %v9159_v21 }
 0x96b   :  { %v6320_v24 = vmul.f32 -1.442695, %v9161_v31  ;;  %v6321_v9 = vmul.f32 -1.442695, %v9163_v49  ;;  %v5577_v61 = vrot.slane %v9155_v39, 1  ;;  %v5578_v55 = vrot.slane %v9157_v34, 1 }
 0x96c   :  { %7318 = vpow2.f32 %v6318_v44  ;;  %v6323_v35 = vmul.f32 -1.442695, %v9165_v23  ;;  %v6324_v18 = vmul.f32 -1.442695, %v9167_v15  ;;  %v5579_v13 = vrot.slane %v9161_v31, 1 }
 0x96d   :  { %7320 = vpow2.f32 %v6319_v8  ;;  %v6325_v7 = vmul.f32 -1.442695, %v9171_v32  ;;  %v5580_v43 = vrot.slane %v9163_v49, 1  ;;  %v5581_v51 = vrot.slane %v9159_v21, 1 }
 0x96e   :  { %7322 = vpow2.f32 %v6320_v24  ;;  %v6326_v27 = vmul.f32 -1.442695, %v5577_v61  ;;  %v5582_v42 = vrot.slane %v9165_v23, 1  ;;  %v6327_v5 = vmul.f32 -1.442695, %v5578_v55 }
 0x96f   :  { %7324 = vpow2.f32 %v6321_v9  ;;  %v5583_v37 = vrot.slane %v9167_v15, 1  ;;  %v6328_v59 = vmul.f32 -1.442695, %v5579_v13  ;;  %v5584_v53 = vrot.slane %v9171_v32, 1 }
 0x970   :  { %7326 = vpow2.f32 %v6322_v62  ;;  %v6329_v28 = vmul.f32 -1.442695, %v5580_v43  ;;  %v6330_v57 = vmul.f32 -1.442695, %v5581_v51  ;;  %v6331_v38 = vmul.f32 -1.442695, %v5582_v42 }
 0x971   :  { %7328 = vpow2.f32 %v6323_v35  ;;  %v6332_v2 = vmul.f32 -1.442695, %v5583_v37  ;;  %v6333_v60 = vmul.f32 -1.442695, %v5584_v53  ;;  %v5641_v24 = vrot.slane %v9155_v39, 2 }
 0x972   :  { %7330 = vpow2.f32 %v6324_v18  ;;  %v5642_v61 = vrot.slane %v9157_v34, 2  ;;  %v5643_v55 = vrot.slane %v9161_v31, 2  ;;  %v5644_v13 = vrot.slane %v9163_v49, 2 }
 0x973   :  { %7332 = vpow2.f32 %v6325_v7  ;;  %v5645_v43 = vrot.slane %v9159_v21, 2  ;;  %v5665_v51 = vrot.slane %v9155_v39, 3  ;;  %v5666_v37 = vrot.slane %v9157_v34, 3 }
 0x974   :  { %7334 = vpow2.f32 %v6326_v27  ;;  %v5730_v27 = vcombine.high %v9126_v41, %v9126_v41  ;;  %v5667_v39 = vrot.slane %v9161_v31, 3  ;;  %v5669_v34 = vrot.slane %v9159_v21, 3 }
 0x975   :  { %7336 = vpow2.f32 %v6327_v5  ;;  %v5646_v5 = vrot.slane %v9165_v23, 2  ;;  %v6335_v31 = vmul.f32 -1.442695, %v5666_v37 }
 0x976   :  { %7338 = vpow2.f32 %v6328_v59  ;;  %v5737_v59 = vrot.slane %v9126_v41, %v7927_v6 }
 0x977   :  { %7340 = vpow2.f32 %v6329_v28  ;;  %v5647_v28 = vrot.slane %v9167_v15, 2 }
 0x978   :  { %7342 = vpow2.f32 %v6330_v57 }
 0x979   :  { %v7319_v29 = vpop.eup %7318  ;;  %7344 = vpow2.f32 %v6331_v38  ;;  %v5648_v38 = vrot.slane %v9171_v32, 2 }
 0x97a   :  { %v7321_v48 = vpop.eup %7320  ;;  %v5545_v26 = vadd.f32 1.0, %v7319_v29  ;;  %7346 = vpow2.f32 %v6332_v2  ;;  %v5668_v2 = vrot.slane %v9163_v49, 3  ;;  %v6334_v29 = vmul.f32 -1.442695, %v5665_v51 }
 0x97b   :  { %v7323_v45 = vpop.eup %7322  ;;  %v5546_v22 = vadd.f32 1.0, %v7321_v48  ;;  %7348 = vpow2.f32 %v6333_v60  ;;  %v5744_v48 = vrot.slane %v5730_v27, %v7927_v6 }
 0x97c   :  { %v7325_v33 = vpop.eup %7324  ;;  %v5547_v54 = vadd.f32 1.0, %v7323_v45  ;;  %7350 = vrcp.f32 %v5545_v26  ;;  %v5670_v45 = vrot.slane %v9165_v23, 3 }
 0x97d   :  { %v7327_v19 = vpop.eup %7326  ;;  %v5548_v36 = vadd.f32 1.0, %v7325_v33  ;;  %7352 = vrcp.f32 %v5546_v22  ;;  %v5745_v22 = vcombine.high %v5737_v59, %v5737_v59 }
 0x97e   :  { %v7329_v52 = vpop.eup %7328  ;;  %v5549_v3 = vadd.f32 1.0, %v7327_v19  ;;  %7354 = vrcp.f32 %v5547_v54  ;;  %v5671_v54 = vrot.slane %v9167_v15, 3  ;;  %v6336_v19 = vmul.f32 -1.442695, %v5667_v39 }
 0x97f   :  { %v7331_v14 = vpop.eup %7330  ;;  %v5550_v10 = vadd.f32 1.0, %v7329_v52  ;;  %7356 = vrcp.f32 %v5548_v36  ;;  %v5672_v36 = vrot.slane %v9171_v32, 3  ;;  %v6337_v52 = vmul.f32 -1.442695, %v5668_v2 }
 0x980   :  { %v7333_v12 = vpop.eup %7332  ;;  %v5551_v20 = vadd.f32 1.0, %v7331_v14  ;;  %7358 = vrcp.f32 %v5549_v3  ;;  %v6338_v3 = vmul.f32 -1.442695, %v5669_v34  ;;  %v5753_v14 = vrot.slane %v5737_v59, %v7927_v6 }
 0x981   :  { %v7335_v17 = vpop.eup %7334  ;;  %v5552_v47 = vadd.f32 1.0, %v7333_v12  ;;  %7360 = vrcp.f32 %v5550_v10  ;;  %v6339_v23 = vmul.f32 -1.442695, %v5670_v45  ;;  %v5746_v12 = vcombine.high %v5744_v48, %v5744_v48 }
 0x982   :  { %v7337_v0 = vpop.eup %7336  ;;  %7362 = vrcp.f32 %v5551_v20  ;;  %v5617_v4 = vadd.f32 1.0, %v7335_v17  ;;  %v5767_v20 = vrot.slane %v5745_v22, %v7927_v6  ;;  %v6340_v15 = vmul.f32 -1.442695, %v5671_v54 }
 0x983   :  { %v7339_v30 = vpop.eup %7338  ;;  %7364 = vrcp.f32 %v5552_v47  ;;  %v5618_v16 = vadd.f32 1.0, %v7337_v0  ;;  %v6341_v0 = vmul.f32 -1.442695, %v5672_v36  ;;  %v5760_v32 = vrot.slane %v5744_v48, %v7927_v6 }
 0x984   :  { %v7341_v63 = vpop.eup %7340  ;;  %v5619_v58 = vadd.f32 1.0, %v7339_v30  ;;  %7366 = vrcp.f32 %v5617_v4 }
 0x985   :  { %v7343_v40 = vpop.eup %7342  ;;  %v5620_v1 = vadd.f32 1.0, %v7341_v63  ;;  %7368 = vrcp.f32 %v5618_v16  ;;  %v5775_v16 = vcombine.high %v5753_v14, %v5753_v14 }
 0x986   :  { %v7345_v56 = vpop.eup %7344  ;;  %v5621_v11 = vadd.f32 1.0, %v7343_v40  ;;  %7370 = vrcp.f32 %v5619_v58  ;;  %v5774_v58 = vrot.slane %v5746_v12, %v7927_v6 }
 0x987   :  { %v7347_v25 = vpop.eup %7346  ;;  %v5622_v50 = vadd.f32 1.0, %v7345_v56  ;;  %7372 = vrcp.f32 %v5620_v1  ;;  %v5777_v1 = vcombine.high %v5767_v20, %v5767_v20 }
 0x988   :  { %v7349_v44 = vpop.eup %7348  ;;  %v5623_v8 = vadd.f32 1.0, %v7347_v25  ;;  %7374 = vrcp.f32 %v5621_v11  ;;  %v5778_v37 = vcombine.high %v5774_v58, %v5774_v58 }
 0x989   :  { %v9188_v9 = vpop.eup %7350  ;;  %v5624_v62 = vadd.f32 1.0, %v7349_v44  ;;  %7376 = vrcp.f32 %v5622_v50 }
 0x98a   :  { %v9191_v35 = vpop.eup %7352  ;;  %7378 = vrcp.f32 %v5623_v8 }
 0x98b   :  { %v9194_v18 = vpop.eup %7354  ;;  %7380 = vrcp.f32 %v5624_v62 }
 0x98c   :  { %v9197_v7 = vpop.eup %7356  ;;  %7382 = vtanh.f32 %v5641_v24 }
 0x98d   :  { %v9203_v42 = vpop.eup %7358  ;;  %7384 = vtanh.f32 %v5642_v61 }
 0x98e   :  { %v9209_v53 = vpop.eup %7360  ;;  %7386 = vtanh.f32 %v5643_v55 }
 0x98f   :  { %v9213_v57 = vpop.eup %7362  ;;  %7388 = vtanh.f32 %v5644_v13  ;;  %v5776_v13 = vcombine.high %v5760_v32, %v5760_v32 }
 0x990   :  { %v9217_v60 = vpop.eup %7364  ;;  %7390 = vtanh.f32 %v5645_v43 }
 0x991   :  { %v7367_v26 = vpop.eup %7366  ;;  %7392 = vtanh.f32 %v5646_v5 }
 0x992   :  { %v7369_v33 = vpop.eup %7368  ;;  %7394 = vtanh.f32 %v5647_v28  ;;  %v5787_v30 = vmul.f32 %v7367_v26, %v5753_v14 }
 0x993   :  { %v7371_v49 = vpop.eup %7370  ;;  %7396 = vtanh.f32 %v5648_v38  ;;  %v5788_v40 = vmul.f32 %v7369_v33, %v5767_v20 }
 0x994   :  { %v7373_v21 = vpop.eup %7372  ;;  %7398 = vpow2.f32 %v6334_v29  ;;  %v5789_v25 = vmul.f32 %v7371_v49, %v5775_v16 }
 0x995   :  { %v7375_v10 = vpop.eup %7374  ;;  %7400 = vpow2.f32 %v6335_v31  ;;  %v5790_v8 = vmul.f32 %v7373_v21, %v5777_v1 }
 0x996   :  { %v7377_v17 = vpop.eup %7376  ;;  %7402 = vpow2.f32 %v6336_v19  ;;  %v5791_v62 = vmul.f32 %v7375_v10, %v5760_v32 }
 0x997   :  { %v7379_v47 = vpop.eup %7378  ;;  %7404 = vpow2.f32 %v6337_v52  ;;  %v5792_v51 = vmul.f32 %v7377_v17, %v5774_v58 }
 0x998   :  { %v7381_v4 = vpop.eup %7380  ;;  %7406 = vpow2.f32 %v6338_v3  ;;  %v5793_v28 = vmul.f32 %v7379_v47, %v5776_v13 }
 0x999   :  { %v7383_v63 = vpop.eup %7382  ;;  %7408 = vpow2.f32 %v6339_v23  ;;  %v5794_v2 = vmul.f32 %v7381_v4, %v5778_v37 }
 0x99a   :  { %v7385_v56 = vpop.eup %7384  ;;  %7410 = vpow2.f32 %v6340_v15  ;;  %v5795_v11 = vmul.f32 %v7383_v63, %v9188_v9 }
 0x99b   :  { %v7387_v50 = vpop.eup %7386  ;;  %7412 = vpow2.f32 %v6341_v0  ;;  %v5796_v44 = vmul.f32 %v7385_v56, %v9191_v35 }
 0x99c   :  { %v7389_v24 = vpop.eup %7388  ;;  %v5797_v61 = vmul.f32 %v7387_v50, %v9194_v18  ;;  %v5803_v55 = vadd.f32 %v5795_v11, %v5787_v30 }
 0x99d   :  { %v7391_v43 = vpop.eup %7390  ;;  %v5798_v27 = vmul.f32 %v7389_v24, %v9197_v7  ;;  %v5804_v5 = vadd.f32 %v5796_v44, %v5788_v40  ;;  %v5833_v40 = vpop.permute.xlu1 %5832 }
 0x99e   :  { %v7393_v59 = vpop.eup %7392  ;;  %v5799_v9 = vmul.f32 %v7391_v43, %v9203_v42  ;;  %v5805_v39 = vadd.f32 %v5797_v61, %v5789_v25  ;;  %7414 = vtanh.f32 %v5803_v55  ;;  %vm5834_vm1 = vcmp.eq.s32.totalorder %v5833_v40, 1 }
 0x99f   :  { %v7395_v35 = vpop.eup %7394  ;;  %v5800_v38 = vmul.f32 %v7393_v59, %v9209_v53  ;;  %v5806_v34 = vadd.f32 %v5798_v27, %v5790_v8  ;;  %7416 = vtanh.f32 %v5804_v5  ;;  %v5969_v7 = vcombine.low %v5803_v55, %v5804_v5 }
 0x9a0   :  { %v7397_v18 = vpop.eup %7396  ;;  %v5801_v29 = vmul.f32 %v7395_v35, %v9213_v57  ;;  %v5807_v48 = vadd.f32 %v5799_v9, %v5791_v62  ;;  %7418 = vtanh.f32 %v5805_v39 }
 0x9a1   :  { %v7399_v26 = vpop.eup %7398  ;;  %v5802_v45 = vmul.f32 %v7397_v18, %v9217_v60  ;;  %v5808_v31 = vadd.f32 %v5800_v38, %v5792_v51  ;;  %7420 = vtanh.f32 %v5806_v34  ;;  %v5970_v42 = vcombine.low %v5805_v39, %v5806_v34 }
 0x9a2   :  { %v7401_v22 = vpop.eup %7400  ;;  %v5705_v33 = vadd.f32 1.0, %v7399_v26  ;;  %v5809_v54 = vadd.f32 %v5801_v29, %v5793_v28  ;;  %7422 = vtanh.f32 %v5807_v48  ;;  %v5979_v21 = vrot.slane %v5969_v7, %v7927_v6 }
 0x9a3   :  { %v7403_v53 = vpop.eup %7402  ;;  %v5706_v19 = vadd.f32 1.0, %v7401_v22  ;;  %v5810_v49 = vadd.f32 %v5802_v45, %v5794_v2  ;;  %7424 = vtanh.f32 %v5808_v31  ;;  %v5971_v36 = vcombine.low %v5807_v48, %v5808_v31 }
 0x9a4   :  { %v7405_v52 = vpop.eup %7404  ;;  %v5707_v57 = vadd.f32 1.0, %v7403_v53  ;;  %7426 = vrcp.f32 %v5705_v33  ;;  %v5986_v3 = vrot.slane %v5970_v42, %v7927_v6 }
 0x9a5   :  { %v7407_v60 = vpop.eup %7406  ;;  %v5708_v14 = vadd.f32 1.0, %v7405_v52  ;;  %7428 = vrcp.f32 %v5706_v19  ;;  %v5972_v10 = vcombine.low %v5809_v54, %v5810_v49  ;;  %v5993_v47 = vrot.slane %v5971_v36, %v7927_v6 }
 0x9a6   :  { %v7409_v23 = vpop.eup %7408  ;;  %v5709_v12 = vadd.f32 1.0, %v7407_v60  ;;  %7430 = vrcp.f32 %v5707_v57  ;;  %v6001_v20 = vcombine.low %v5979_v21, %v5986_v3 }
 0x9a7   :  { %v7411_v17 = vpop.eup %7410  ;;  %v5710_v15 = vadd.f32 1.0, %v7409_v23  ;;  %7432 = vrcp.f32 %v5708_v14  ;;  %v6000_v0 = vrot.slane %v5972_v10, %v7927_v6 }
 0x9a8   :  { %v7413_v4 = vpop.eup %7412  ;;  %v5711_v32 = vadd.f32 1.0, %v7411_v17  ;;  %7434 = vrcp.f32 %v5709_v12  ;;  %v6009_v63 = vrot.slane %v6001_v20, %v7927_v6 }
 0x9a9   :  { %v5712_v30 = vadd.f32 1.0, %v7413_v4  ;;  %7436 = vrcp.f32 %v5710_v15  ;;  %v6002_v16 = vcombine.low %v5993_v47, %v6000_v0 }
 0x9aa   :  { %7438 = vrcp.f32 %v5711_v32 }
 0x9ab   :  { %v7415_v58 = vpop.eup %7414  ;;  %7440 = vrcp.f32 %v5712_v30  ;;  %v6016_v1 = vrot.slane %v6002_v16, %v7927_v6 }
 0x9ac   :  { %v7417_v56 = vpop.eup %7416  ;;  %7442 = vtanh.f32 %v5809_v54 }
 0x9ad   :  { %v7419_v11 = vpop.eup %7418  ;;  %7444 = vtanh.f32 %v5810_v49  ;;  %v6017_v25 = vcombine.low %v6009_v63, %v6016_v1 }
 0x9ae   :  { %v7421_v50 = vpop.eup %7420 }
 0x9af   :  { %v7423_v44 = vpop.eup %7422  ;;  %v6019_v8 = vsel %vm5834_vm1, %v6017_v25, %v9126_v41 }
 0x9b0   :  { %v7425_v24 = vpop.eup %7424  ;;  %6021 = vst [vmem:[#allocation12] sm:$0xff] %v6019_v8 }
 0x9b1   :  { %v7427_v62 = vpop.eup %7426 }
 0x9b2   :  { %v7429_v61 = vpop.eup %7428  ;;  %v5819_v13 = vmul.f32 %v7427_v62, %v7415_v58 }
 0x9b3   :  { %v7431_v55 = vpop.eup %7430  ;;  %v5820_v43 = vmul.f32 %v7429_v61, %v7417_v56 }
 0x9b4   :  { %v7433_v51 = vpop.eup %7432  ;;  %v5821_v27 = vmul.f32 %v7431_v55, %v7419_v11 }
 0x9b5   :  { %v7435_v5 = vpop.eup %7434  ;;  %v5822_v37 = vmul.f32 %v7433_v51, %v7421_v50  ;;  %v5843_v35 = vcombine.low %v5819_v13, %v5820_v43 }
 0x9b6   :  { %v7437_v59 = vpop.eup %7436  ;;  %v5823_v28 = vmul.f32 %v7435_v5, %v7423_v44 }
 0x9b7   :  { %v7439_v9 = vpop.eup %7438  ;;  %v5824_v39 = vmul.f32 %v7437_v59, %v7425_v24  ;;  %v5844_v38 = vcombine.low %v5821_v27, %v5822_v37  ;;  %v5853_v26 = vrot.slane %v5843_v35, %v7927_v6 }
 0x9b8   :  { %v7441_v2 = vpop.eup %7440 }
 0x9b9   :  { %v7443_v34 = vpop.eup %7442  ;;  %v5860_v41 = vrot.slane %v5844_v38, %v7927_v6  ;;  %v5845_v7 = vcombine.low %v5823_v28, %v5824_v39 }
 0x9ba   :  { %v7445_v18 = vpop.eup %7444  ;;  %v5825_v29 = vmul.f32 %v7443_v34, %v7439_v9 }
 0x9bb   :  { %v5826_v48 = vmul.f32 %v7445_v18, %v7441_v2  ;;  %v5875_v31 = vcombine.low %v5853_v26, %v5860_v41  ;;  %v5867_v42 = vrot.slane %v5845_v7, %v7927_v6 }
 0x9bd   :  { %v5846_v45 = vcombine.low %v5825_v29, %v5826_v48  ;;  %v5883_v54 = vrot.slane %v5875_v31, %v7927_v6 }
 0x9bf   :  { %v5874_v22 = vrot.slane %v5846_v45, %v7927_v6 }
 0x9c1   :  { %v5876_v33 = vcombine.low %v5867_v42, %v5874_v22 }
 0x9c3   :  { %v5890_v53 = vrot.slane %v5876_v33, %v7927_v6 }
 0x9c5   :  { %v5891_v19 = vcombine.low %v5883_v54, %v5890_v53 }
 0x9c7   :  { %v5893_v49 = vsel %vm5834_vm1, %v5891_v19, 0.0  ;;  %v5960_v36 = vsel %vm5834_vm1, %v5891_v19, %v9137_v46 }
 0x9c8   :  { %v5895_v52 = vcombine.high %v5893_v49, %v5893_v49  ;;  %v5902_v57 = vrot.slane %v5893_v49, %v7927_v6  ;;  %6020 = vst [vmem:[#allocation10] sm:$0xff] %v5960_v36 }
 0x9c9   :  { %7620 = shalt.err (!%p7617_p5)
}
 0x9ca   :  { %6043 = dma.vmem_to_hbm [thread:$0]  %s6041_s22, 128, %s9274_s6, [#allocation11]   ;;  %v5909_v21 = vrot.slane %v5895_v52, %v7927_v6  ;;  %v5910_v3 = vcombine.high %v5902_v57, %v5902_v57  ;;  %v5918_v46 = vrot.slane %v5902_v57, %v7927_v6  ;;  %6343 = vst.sshfl [vmem:[#allocation9 + $0x7] sm:$0x1 pattern:$0x73625140] %v5902_v57 }
 0x9cb   :  { %s7629_s28 = scalar_lea.vmem %s6051_s24, 128  ;;  %p7634_p7 = scmp.lt.s32.totalorder %s6051_s24, %s6051_s24 }
 0x9cc   :  { %p7630_p6 = scmp.ne.s32.totalorder %s6051_s24, %s7629_s28  ;;  %p7635_p8 = scmp.lt.s32.totalorder %s7629_s28, %s7629_s28 }
 0x9ce   :  { %p7636_p9 = por %p7635_p8, %p7634_p7 }
 0x9d0   :  { %p7637_p10 = pnand %p7636_p9, %p7630_p6 }
 0x9d2   :  { %7640 = shalt.err (!%p7637_p10)
}
 0x9d3   :  { %6053 = dma.vmem_to_hbm [thread:$0]  %s6051_s24, 128, %s9275_s7, [#allocation11]   ;;  %v5911_v60 = vcombine.high %v5909_v21, %v5909_v21  ;;  %v5925_v14 = vrot.slane %v5909_v21, %v7927_v6  ;;  %v5932_v10 = vrot.slane %v5910_v3, %v7927_v6  ;;  %v5940_v23 = vcombine.high %v5918_v46, %v5918_v46  ;;  %6344 = vst.sshfl [vmem:[#allocation9 + $0xf] sm:$0x1 pattern:$0x73625140] %v5910_v3 }
 0x9d4   :  { %6345 = vst.sshfl [vmem:[#allocation9 + $0x27] sm:$0x1 pattern:$0x73625140] %v5909_v21  ;;  %s7690_s6 = smov [#allocation9]  }
 0x9d5   :  { %s6027_s8 = sshll.u32 %s7690_s6, 4  ;;  %v5939_v12 = vrot.slane %v5911_v60, %v7927_v6  ;;  %v5941_v20 = vcombine.high %v5925_v14, %v5925_v14  ;;  %v5942_v17 = vcombine.high %v5932_v10, %v5932_v10  ;;  %5954 = vst [vmem:[#allocation9 + $0x17] sm:$0x1] %v5940_v23  ;;  %s6028_s8 = int_to_ptr.vmem [resolvable:$true] %s6027_s8 }
 0x9d6   :  { %6346 = vst.sshfl [vmem:[#allocation9 + $0x2f] sm:$0x1 pattern:$0x73625140] %v5911_v60  ;;  %s7649_s7 = scalar_lea.vmem %s6028_s8, 1024  ;;  %p7654_p12 = scmp.lt.s32.totalorder %s6028_s8, %s6028_s8 }
 0x9d7   :  { %v5943_v15 = vcombine.high %v5939_v12, %v5939_v12  ;;  %5955 = vst [vmem:[#allocation9 + $0x1f] sm:$0x1] %v5942_v17  ;;  %5958 = vst [vmem:[#allocation9 + $0x37] sm:$0x1] %v5941_v20  ;;  %p7650_p11 = scmp.ne.s32.totalorder %s6028_s8, %s7649_s7  ;;  %p7655_p13 = scmp.lt.s32.totalorder %s7649_s7, %s7649_s7 }
 0x9d9   :  { %5959 = vst [vmem:[#allocation9 + $0x3f] sm:$0x1] %v5943_v15  ;;  %p7656_p0 = por %p7655_p13, %p7654_p12 }
 0x9db   :  { %p7657_p1 = pnand %p7656_p0, %p7650_p11 }
 0x9dd   :  { %7660 = shalt.err (!%p7657_p1)
}
 0x9de   :  { %s7691_s9 = smov 128   ;;  %s7692_s10 = smov 8  }
 0x9df   :  { %6033 = dma.vmem_to_hbm [thread:$0]  %s6028_s8, 1024, %s9273_s5, [#allocation5], %s7691_s9, %s7691_s9, %s7692_s10  }
 0x9e0   :  { %7673 = dma.done.wait [#allocation5], 1024  }
 0x9e1   :  { %7674 = vsyncadd [#allocation5], 4294966272 }
 0x9e2   :  { %7675 = dma.done.wait [#allocation11], 256  }
 0x9e3   :  { %7676 = vsyncadd [#allocation11], 4294967040 }
 0x9e4   :  { %6063 = vsyncpa [#allocation4], 1 }
 0x9e5   :  { %6064 = vsyncpa [#allocation7], 1 }
 0x9e6   :  { %6065 = vsyncpa [#allocation5], 1 }
 0x9e7   :  { %6066 = vsyncpa [#allocation11], 1 }

</bundles_post_ra>
